<compile_context>
chip_gen: v7x
topology: tpu7x:2x2x1
jax: 0.10.0
libtpu: 0.0.40
codegen_flags: <defaults>
</compile_context>

<pallas_src>
import jax
import jax.numpy as jnp
from jax.experimental import pallas as pl
from jax.experimental.pallas import tpu as pltpu


def gate_kernel(x_ref, wp_ref, bp_ref, w1_ref, b1_ref, w2_ref, b2_ref,
                w3_ref, b3_ref, out_ref, pad1_ref, pad2_ref):
    Bt, HW, C2 = x_ref.shape            # C2 = 2 * C
    C = w1_ref.shape[-1]
    H = pad1_ref.shape[0] - 2
    W = pad1_ref.shape[1] - 2

    # Zero the padded scratch once per grid step. Per-image writes below only
    # touch the interior, so the 1-pixel border stays zero ('same' padding).
    # Done every step (not program_id==0 only) so it stays correct when the
    # "parallel" grid axis is sharded across TensorCores.
    pad1_ref[...] = jnp.zeros_like(pad1_ref)
    pad2_ref[...] = jnp.zeros_like(pad2_ref)

    # Hoist weight loads (and their broadcasts) out of the per-image loop.
    wp = wp_ref[...]                     # (2C, 2C) block-diag of the two 1x1 convs
    bp = bp_ref[...]                     # (1, 2C)
    w1 = w1_ref[...]                     # (9*2C, C)   im2col-flattened conv1
    b1 = b1_ref[...]                     # (1, C)
    w2 = w2_ref[...]                     # (9*C, C)    im2col-flattened conv2
    b2 = b2_ref[...]                     # (1, C)
    w3 = w3_ref[...]                     # (1, C)      conv3 as a row vector
    b3 = b3_ref[...]                     # (1, 1)

    def im2col(pad_ref, cin):
        # Build (H*W, 9*cin) patches; tap order (dy, dx, ci) matches the
        # row-major reshape of the (3, 3, cin, cout) HWIO weight.
        taps = []
        for dy in range(3):
            for dx in range(3):
                t = pad_ref[pl.ds(dy, H), pl.ds(dx, W), :]
                taps.append(t.reshape(HW, cin))
        return jnp.concatenate(taps, axis=-1)

    def one_image(i, carry):
        x = x_ref[i]                     # (HW, 2C), already channel-last flat

        # Fused 1x1 projections + concat (block-diagonal weight): one matmul.
        cat = jnp.dot(x, wp, preferred_element_type=jnp.float32) + bp

        # conv1: 3x3, 2C -> C, im2col + single matmul, ReLU.
        pad1_ref[pl.ds(1, H), pl.ds(1, W), :] = cat.reshape(H, W, C2)
        p1 = im2col(pad1_ref, C2)                                   # (HW, 9*2C)
        h1 = jnp.maximum(
            jnp.dot(p1, w1, preferred_element_type=jnp.float32) + b1, 0.0)

        # conv2: 3x3, C -> C, im2col + single matmul, ReLU.
        pad2_ref[pl.ds(1, H), pl.ds(1, W), :] = h1.reshape(H, W, C)
        p2 = im2col(pad2_ref, C)                                    # (HW, 9*C)
        h2 = jnp.maximum(
            jnp.dot(p2, w2, preferred_element_type=jnp.float32) + b2, 0.0)

        # conv3: 1x1, C -> 1 as a vector reduction, sigmoid (EUP),
        # lane-dense (HW-wide) store of one output row.
        logits = jnp.sum(h2 * w3, axis=-1, keepdims=True) + b3      # (HW, 1)
        out_ref[i, 0, :] = jax.nn.sigmoid(logits).reshape(HW)
        return carry

    jax.lax.fori_loop(0, Bt, one_image, 0, unroll=True)


def _pick_block_b(B):
    # Keep >= 2 grid steps when possible (v7x megacore sharding) while
    # amortizing per-step overhead for larger B; block size must divide B.
    bt = max(1, min(8, B // 2))
    while B % bt:
        bt -= 1
    return bt


def deformable_attention_gate(detail, semantic, params, *, block_b=None):
    """detail, semantic: (B, H, W, C) f32 -> weights map (B, H, W, 1) f32."""
    B, H, W, C = detail.shape
    wd, bd, ws, bs, w1, b1, w2, b2, w3, b3 = params
    C2 = 2 * C
    HW = H * W

    if block_b is None:
        block_b = _pick_block_b(B)
    assert B % block_b == 0

    # Trace-time preprocessing (pure layout, exact semantics):
    #   * concat detail/semantic once in HBM and flatten spatial dims
    #   * block-diagonal fused projection weight + concatenated bias
    #   * im2col-flattened 3x3 weights; conv3 weight as a row vector
    x = jnp.concatenate([detail, semantic], axis=-1).reshape(B, HW, C2)
    w_proj = jnp.zeros((C2, C2), jnp.float32)
    w_proj = w_proj.at[:C, :C].set(wd).at[C:, C:].set(ws)
    b_proj = jnp.concatenate([bd, bs], axis=-1)                     # (1, 2C)
    w1f = w1.reshape(9 * C2, C)
    w2f = w2.reshape(9 * C, C)
    w3r = w3.reshape(1, C)

    def full_spec(a):
        nd = a.ndim
        return pl.BlockSpec(a.shape, lambda b, nd=nd: (0,) * nd)

    grid_spec = pltpu.PrefetchScalarGridSpec(
        num_scalar_prefetch=0,
        grid=(B // block_b,),
        in_specs=[
            pl.BlockSpec((block_b, HW, C2), lambda b: (b, 0, 0)),
            full_spec(w_proj), full_spec(b_proj),
            full_spec(w1f), full_spec(b1),
            full_spec(w2f), full_spec(b2),
            full_spec(w3r), full_spec(b3),
        ],
        out_specs=pl.BlockSpec((block_b, 1, HW), lambda b: (b, 0, 0)),
        scratch_shapes=[
            pltpu.VMEM((H + 2, W + 2, C2), jnp.float32),   # padded conv1 input
            pltpu.VMEM((H + 2, W + 2, C), jnp.float32),    # padded conv2 input
        ],
    )
    out = pl.pallas_call(
        gate_kernel,
        out_shape=jax.ShapeDtypeStruct((B, 1, HW), jnp.float32),
        grid_spec=grid_spec,
        compiler_params=pltpu.CompilerParams(
            dimension_semantics=("parallel",),
            vmem_limit_bytes=32 * 1024 * 1024,
        ),
    )(x, w_proj, b_proj, w1f, b1, w2f, b2, w3r, b3)
    return out.reshape(B, H, W, 1)


def reference(detail, semantic, params):
    """Pure-JAX reference (matches PyTorch semantics in NHWC)."""
    wd, bd, ws, bs, w1, b1, w2, b2, w3, b3 = params
    dp = jnp.einsum('bhwc,cd->bhwd', detail, wd) + bd.reshape(-1)
    sp = jnp.einsum('bhwc,cd->bhwd', semantic, ws) + bs.reshape(-1)
    cat = jnp.concatenate([dp, sp], axis=-1)

    def conv(x, w, b):
        y = jax.lax.conv_general_dilated(
            x, w, window_strides=(1, 1), padding='SAME',
            dimension_numbers=('NHWC', 'HWIO', 'NHWC'))
        return y + b.reshape(-1)

    x = jax.nn.relu(conv(cat, w1, b1))
    x = jax.nn.relu(conv(x, w2, b2))
    logits = jnp.einsum('bhwc,co->bhwo', x, w3) + b3.reshape(-1)
    return jax.nn.sigmoid(logits)


def init_params(key, C):
    """Deterministic synthetic parameters (shapes follow the nn.Module)."""
    ks = jax.random.split(key, 10)
    scale = 0.2
    wd = scale * jax.random.normal(ks[0], (C, C), jnp.float32)            # detail_conv 1x1
    bd = scale * jax.random.normal(ks[1], (1, C), jnp.float32)
    ws = scale * jax.random.normal(ks[2], (C, C), jnp.float32)            # semantic_conv 1x1
    bs = scale * jax.random.normal(ks[3], (1, C), jnp.float32)
    w1 = scale * jax.random.normal(ks[4], (3, 3, 2 * C, C), jnp.float32)  # conv1 3x3, 2C->C
    b1 = scale * jax.random.normal(ks[5], (1, C), jnp.float32)
    w2 = scale * jax.random.normal(ks[6], (3, 3, C, C), jnp.float32)      # conv2 3x3, C->C
    b2 = scale * jax.random.normal(ks[7], (1, C), jnp.float32)
    w3 = scale * jax.random.normal(ks[8], (C, 1), jnp.float32)            # conv3 1x1, C->1
    b3 = scale * jax.random.normal(ks[9], (1, 1), jnp.float32)
    return (wd, bd, ws, bs, w1, b1, w2, b2, w3, b3)


if __name__ == "__main__":
    B, C, H, W = 2, 4, 16, 16
    key = jax.random.PRNGKey(0)
    k_det, k_sem, k_par = jax.random.split(key, 3)

    detail = jax.random.normal(k_det, (B, H, W, C), jnp.float32)
    semantic = jax.random.normal(k_sem, (B, H, W, C), jnp.float32)
    params = init_params(k_par, C)

    out = deformable_attention_gate(detail, semantic, params)
    out = jax.block_until_ready(out)

    ref = jax.block_until_ready(reference(detail, semantic, params))
    assert out.shape == (B, H, W, 1)
    assert jnp.all((out > 0.0) & (out < 1.0))
    assert jnp.allclose(out, ref, rtol=1e-4, atol=2e-5), (
        f"max abs err {jnp.max(jnp.abs(out - ref))}")

    print("KERNEL_OK")
</pallas_src>

<mosaic_0001>
module attributes {stable_mosaic.version = 11 : i64} {
  func.func @gate_kernel(%arg0: i32, %arg1: memref<1x256x8xf32, #tpu.memory_space<vmem>>, %arg2: memref<8x8xf32, #tpu.memory_space<vmem>>, %arg3: memref<1x8xf32, #tpu.memory_space<vmem>>, %arg4: memref<72x4xf32, #tpu.memory_space<vmem>>, %arg5: memref<1x4xf32, #tpu.memory_space<vmem>>, %arg6: memref<36x4xf32, #tpu.memory_space<vmem>>, %arg7: memref<1x4xf32, #tpu.memory_space<vmem>>, %arg8: memref<1x4xf32, #tpu.memory_space<vmem>>, %arg9: memref<1x1xf32, #tpu.memory_space<vmem>>, %arg10: memref<1x1x256xf32, #tpu.memory_space<vmem>>, %arg11: memref<18x18x8xf32, #tpu.memory_space<vmem>>, %arg12: memref<18x18x4xf32, #tpu.memory_space<vmem>>) attributes {dimension_semantics = [#tpu.dimension_semantics<parallel>], iteration_bounds = array<i64: 2>, scalar_prefetch = 0 : i64, scratch_operands = 2 : i64, tpu.core_type = #tpu.core_type<tc>, window_params = [{transform_indices = @transform_0, window_bounds = array<i64: 1, 256, 8>}, {pipeline_mode = #tpu.pipeline_mode<synchronous>, transform_indices = @transform_1, window_bounds = array<i64: 8, 8>}, {pipeline_mode = #tpu.pipeline_mode<synchronous>, transform_indices = @transform_2, window_bounds = array<i64: 1, 8>}, {pipeline_mode = #tpu.pipeline_mode<synchronous>, transform_indices = @transform_3, window_bounds = array<i64: 72, 4>}, {pipeline_mode = #tpu.pipeline_mode<synchronous>, transform_indices = @transform_4, window_bounds = array<i64: 1, 4>}, {pipeline_mode = #tpu.pipeline_mode<synchronous>, transform_indices = @transform_5, window_bounds = array<i64: 36, 4>}, {pipeline_mode = #tpu.pipeline_mode<synchronous>, transform_indices = @transform_6, window_bounds = array<i64: 1, 4>}, {pipeline_mode = #tpu.pipeline_mode<synchronous>, transform_indices = @transform_7, window_bounds = array<i64: 1, 4>}, {pipeline_mode = #tpu.pipeline_mode<synchronous>, transform_indices = @transform_8, window_bounds = array<i64: 1, 1>}, {transform_indices = @transform_9, window_bounds = array<i64: 1, 1, 256>}]} {
    %cst = arith.constant 0.000000e+00 : f32
    %0 = vector.broadcast %cst : f32 to vector<18x18x8xf32>
    %c0 = arith.constant 0 : index
    %c0_0 = arith.constant 0 : index
    %c0_1 = arith.constant 0 : index
    %1 = vector.load %arg11[%c0, %c0_0, %c0_1] : memref<18x18x8xf32, #tpu.memory_space<vmem>>, vector<18x18x8xf32>
    tpu.vector_store %arg11[%c0, %c0_0, %c0_1], %0 {strides = array<i32>} : memref<18x18x8xf32, #tpu.memory_space<vmem>>, vector<18x18x8xf32>,
    %cst_2 = arith.constant 0.000000e+00 : f32
    %2 = vector.broadcast %cst_2 : f32 to vector<18x18x4xf32>
    %c0_3 = arith.constant 0 : index
    %c0_4 = arith.constant 0 : index
    %c0_5 = arith.constant 0 : index
    %3 = vector.load %arg12[%c0_3, %c0_4, %c0_5] : memref<18x18x4xf32, #tpu.memory_space<vmem>>, vector<18x18x4xf32>
    tpu.vector_store %arg12[%c0_3, %c0_4, %c0_5], %2 {strides = array<i32>} : memref<18x18x4xf32, #tpu.memory_space<vmem>>, vector<18x18x4xf32>,
    %c0_6 = arith.constant 0 : index
    %c0_7 = arith.constant 0 : index
    %4 = vector.load %arg2[%c0_6, %c0_7] : memref<8x8xf32, #tpu.memory_space<vmem>>, vector<8x8xf32>
    %c0_8 = arith.constant 0 : index
    %c0_9 = arith.constant 0 : index
    %5 = vector.load %arg3[%c0_8, %c0_9] : memref<1x8xf32, #tpu.memory_space<vmem>>, vector<1x8xf32>
    %c0_10 = arith.constant 0 : index
    %c0_11 = arith.constant 0 : index
    %6 = vector.load %arg4[%c0_10, %c0_11] : memref<72x4xf32, #tpu.memory_space<vmem>>, vector<72x4xf32>
    %c0_12 = arith.constant 0 : index
    %c0_13 = arith.constant 0 : index
    %7 = vector.load %arg5[%c0_12, %c0_13] : memref<1x4xf32, #tpu.memory_space<vmem>>, vector<1x4xf32>
    %c0_14 = arith.constant 0 : index
    %c0_15 = arith.constant 0 : index
    %8 = vector.load %arg6[%c0_14, %c0_15] : memref<36x4xf32, #tpu.memory_space<vmem>>, vector<36x4xf32>
    %c0_16 = arith.constant 0 : index
    %c0_17 = arith.constant 0 : index
    %9 = vector.load %arg7[%c0_16, %c0_17] : memref<1x4xf32, #tpu.memory_space<vmem>>, vector<1x4xf32>
    %c0_18 = arith.constant 0 : index
    %c0_19 = arith.constant 0 : index
    %10 = vector.load %arg8[%c0_18, %c0_19] : memref<1x4xf32, #tpu.memory_space<vmem>>, vector<1x4xf32>
    %c0_20 = arith.constant 0 : index
    %c0_21 = arith.constant 0 : index
    %11 = vector.load %arg9[%c0_20, %c0_21] : memref<1x1xf32, #tpu.memory_space<vmem>>, vector<1x1xf32>
    %c0_i32 = arith.constant 0 : i32
    %12 = arith.index_cast %c0_i32 : i32 to index
    %c0_22 = arith.constant 0 : index
    %c0_23 = arith.constant 0 : index
    %13 = vector.load %arg1[%12, %c0_22, %c0_23] : memref<1x256x8xf32, #tpu.memory_space<vmem>>, vector<1x256x8xf32>
    %14 = vector.shape_cast %13 : vector<1x256x8xf32> to vector<256x8xf32>
    %cst_24 = arith.constant dense<0.000000e+00> : vector<256x8xf32>
    %15 = tpu.matmul %14, %4, %cst_24 {dimension_numbers = #tpu.dot_dimension_numbers<[1], [0], [0], [1], [0, 0, 1, 1], [], []>} : vector<256x8xf32>, vector<8x8xf32>, vector<256x8xf32> -> vector<256x8xf32>
    %16 = vector.broadcast %5 : vector<1x8xf32> to vector<256x8xf32>
    %17 = arith.addf %15, %16 : vector<256x8xf32>
    %18 = vector.shape_cast %17 : vector<256x8xf32> to vector<16x16x8xf32>
    %c1 = arith.constant 1 : index
    %c1_25 = arith.constant 1 : index
    %c0_26 = arith.constant 0 : index
    %19 = vector.load %arg11[%c1, %c1_25, %c0_26] : memref<18x18x8xf32, #tpu.memory_space<vmem>>, vector<16x16x8xf32>
    tpu.vector_store %arg11[%c1, %c1_25, %c0_26], %18 {strides = array<i32>} : memref<18x18x8xf32, #tpu.memory_space<vmem>>, vector<16x16x8xf32>,
    %c0_27 = arith.constant 0 : index
    %c0_28 = arith.constant 0 : index
    %c0_29 = arith.constant 0 : index
    %20 = vector.load %arg11[%c0_27, %c0_28, %c0_29] : memref<18x18x8xf32, #tpu.memory_space<vmem>>, vector<16x16x8xf32>
    %21 = vector.shape_cast %20 : vector<16x16x8xf32> to vector<256x8xf32>
    %c0_30 = arith.constant 0 : index
    %c1_31 = arith.constant 1 : index
    %c0_32 = arith.constant 0 : index
    %22 = vector.load %arg11[%c0_30, %c1_31, %c0_32] : memref<18x18x8xf32, #tpu.memory_space<vmem>>, vector<16x16x8xf32>
    %23 = vector.shape_cast %22 : vector<16x16x8xf32> to vector<256x8xf32>
    %c0_33 = arith.constant 0 : index
    %c2 = arith.constant 2 : index
    %c0_34 = arith.constant 0 : index
    %24 = vector.load %arg11[%c0_33, %c2, %c0_34] : memref<18x18x8xf32, #tpu.memory_space<vmem>>, vector<16x16x8xf32>
    %25 = vector.shape_cast %24 : vector<16x16x8xf32> to vector<256x8xf32>
    %c1_35 = arith.constant 1 : index
    %c0_36 = arith.constant 0 : index
    %c0_37 = arith.constant 0 : index
    %26 = vector.load %arg11[%c1_35, %c0_36, %c0_37] : memref<18x18x8xf32, #tpu.memory_space<vmem>>, vector<16x16x8xf32>
    %27 = vector.shape_cast %26 : vector<16x16x8xf32> to vector<256x8xf32>
    %c1_38 = arith.constant 1 : index
    %c1_39 = arith.constant 1 : index
    %c0_40 = arith.constant 0 : index
    %28 = vector.load %arg11[%c1_38, %c1_39, %c0_40] : memref<18x18x8xf32, #tpu.memory_space<vmem>>, vector<16x16x8xf32>
    %29 = vector.shape_cast %28 : vector<16x16x8xf32> to vector<256x8xf32>
    %c1_41 = arith.constant 1 : index
    %c2_42 = arith.constant 2 : index
    %c0_43 = arith.constant 0 : index
    %30 = vector.load %arg11[%c1_41, %c2_42, %c0_43] : memref<18x18x8xf32, #tpu.memory_space<vmem>>, vector<16x16x8xf32>
    %31 = vector.shape_cast %30 : vector<16x16x8xf32> to vector<256x8xf32>
    %c2_44 = arith.constant 2 : index
    %c0_45 = arith.constant 0 : index
    %c0_46 = arith.constant 0 : index
    %32 = vector.load %arg11[%c2_44, %c0_45, %c0_46] : memref<18x18x8xf32, #tpu.memory_space<vmem>>, vector<16x16x8xf32>
    %33 = vector.shape_cast %32 : vector<16x16x8xf32> to vector<256x8xf32>
    %c2_47 = arith.constant 2 : index
    %c1_48 = arith.constant 1 : index
    %c0_49 = arith.constant 0 : index
    %34 = vector.load %arg11[%c2_47, %c1_48, %c0_49] : memref<18x18x8xf32, #tpu.memory_space<vmem>>, vector<16x16x8xf32>
    %35 = vector.shape_cast %34 : vector<16x16x8xf32> to vector<256x8xf32>
    %c2_50 = arith.constant 2 : index
    %c2_51 = arith.constant 2 : index
    %c0_52 = arith.constant 0 : index
    %36 = vector.load %arg11[%c2_50, %c2_51, %c0_52] : memref<18x18x8xf32, #tpu.memory_space<vmem>>, vector<16x16x8xf32>
    %37 = vector.shape_cast %36 : vector<16x16x8xf32> to vector<256x8xf32>
    %38 = tpu.concatenate %21, %23, %25, %27, %29, %31, %33, %35, %37 in 1 : vector<256x8xf32>, vector<256x8xf32>, vector<256x8xf32>, vector<256x8xf32>, vector<256x8xf32>, vector<256x8xf32>, vector<256x8xf32>, vector<256x8xf32>, vector<256x8xf32> -> vector<256x72xf32>
    %cst_53 = arith.constant dense<0.000000e+00> : vector<256x4xf32>
    %39 = tpu.matmul %38, %6, %cst_53 {dimension_numbers = #tpu.dot_dimension_numbers<[1], [0], [0], [1], [0, 0, 1, 1], [], []>} : vector<256x72xf32>, vector<72x4xf32>, vector<256x4xf32> -> vector<256x4xf32>
    %40 = vector.broadcast %7 : vector<1x4xf32> to vector<256x4xf32>
    %41 = arith.addf %39, %40 : vector<256x4xf32>
    %cst_54 = arith.constant 0.000000e+00 : f32
    %42 = vector.broadcast %cst_54 : f32 to vector<256x4xf32>
    %43 = arith.maximumf %41, %42 : vector<256x4xf32>
    %44 = vector.shape_cast %43 : vector<256x4xf32> to vector<16x16x4xf32>
    %c1_55 = arith.constant 1 : index
    %c1_56 = arith.constant 1 : index
    %c0_57 = arith.constant 0 : index
    %45 = vector.load %arg12[%c1_55, %c1_56, %c0_57] : memref<18x18x4xf32, #tpu.memory_space<vmem>>, vector<16x16x4xf32>
    tpu.vector_store %arg12[%c1_55, %c1_56, %c0_57], %44 {strides = array<i32>} : memref<18x18x4xf32, #tpu.memory_space<vmem>>, vector<16x16x4xf32>,
    %c0_58 = arith.constant 0 : index
    %c0_59 = arith.constant 0 : index
    %c0_60 = arith.constant 0 : index
    %46 = vector.load %arg12[%c0_58, %c0_59, %c0_60] : memref<18x18x4xf32, #tpu.memory_space<vmem>>, vector<16x16x4xf32>
    %47 = vector.shape_cast %46 : vector<16x16x4xf32> to vector<256x4xf32>
    %c0_61 = arith.constant 0 : index
    %c1_62 = arith.constant 1 : index
    %c0_63 = arith.constant 0 : index
    %48 = vector.load %arg12[%c0_61, %c1_62, %c0_63] : memref<18x18x4xf32, #tpu.memory_space<vmem>>, vector<16x16x4xf32>
    %49 = vector.shape_cast %48 : vector<16x16x4xf32> to vector<256x4xf32>
    %c0_64 = arith.constant 0 : index
    %c2_65 = arith.constant 2 : index
    %c0_66 = arith.constant 0 : index
    %50 = vector.load %arg12[%c0_64, %c2_65, %c0_66] : memref<18x18x4xf32, #tpu.memory_space<vmem>>, vector<16x16x4xf32>
    %51 = vector.shape_cast %50 : vector<16x16x4xf32> to vector<256x4xf32>
    %c1_67 = arith.constant 1 : index
    %c0_68 = arith.constant 0 : index
    %c0_69 = arith.constant 0 : index
    %52 = vector.load %arg12[%c1_67, %c0_68, %c0_69] : memref<18x18x4xf32, #tpu.memory_space<vmem>>, vector<16x16x4xf32>
    %53 = vector.shape_cast %52 : vector<16x16x4xf32> to vector<256x4xf32>
    %c1_70 = arith.constant 1 : index
    %c1_71 = arith.constant 1 : index
    %c0_72 = arith.constant 0 : index
    %54 = vector.load %arg12[%c1_70, %c1_71, %c0_72] : memref<18x18x4xf32, #tpu.memory_space<vmem>>, vector<16x16x4xf32>
    %55 = vector.shape_cast %54 : vector<16x16x4xf32> to vector<256x4xf32>
    %c1_73 = arith.constant 1 : index
    %c2_74 = arith.constant 2 : index
    %c0_75 = arith.constant 0 : index
    %56 = vector.load %arg12[%c1_73, %c2_74, %c0_75] : memref<18x18x4xf32, #tpu.memory_space<vmem>>, vector<16x16x4xf32>
    %57 = vector.shape_cast %56 : vector<16x16x4xf32> to vector<256x4xf32>
    %c2_76 = arith.constant 2 : index
    %c0_77 = arith.constant 0 : index
    %c0_78 = arith.constant 0 : index
    %58 = vector.load %arg12[%c2_76, %c0_77, %c0_78] : memref<18x18x4xf32, #tpu.memory_space<vmem>>, vector<16x16x4xf32>
    %59 = vector.shape_cast %58 : vector<16x16x4xf32> to vector<256x4xf32>
    %c2_79 = arith.constant 2 : index
    %c1_80 = arith.constant 1 : index
    %c0_81 = arith.constant 0 : index
    %60 = vector.load %arg12[%c2_79, %c1_80, %c0_81] : memref<18x18x4xf32, #tpu.memory_space<vmem>>, vector<16x16x4xf32>
    %61 = vector.shape_cast %60 : vector<16x16x4xf32> to vector<256x4xf32>
    %c2_82 = arith.constant 2 : index
    %c2_83 = arith.constant 2 : index
    %c0_84 = arith.constant 0 : index
    %62 = vector.load %arg12[%c2_82, %c2_83, %c0_84] : memref<18x18x4xf32, #tpu.memory_space<vmem>>, vector<16x16x4xf32>
    %63 = vector.shape_cast %62 : vector<16x16x4xf32> to vector<256x4xf32>
    %64 = tpu.concatenate %47, %49, %51, %53, %55, %57, %59, %61, %63 in 1 : vector<256x4xf32>, vector<256x4xf32>, vector<256x4xf32>, vector<256x4xf32>, vector<256x4xf32>, vector<256x4xf32>, vector<256x4xf32>, vector<256x4xf32>, vector<256x4xf32> -> vector<256x36xf32>
    %cst_85 = arith.constant dense<0.000000e+00> : vector<256x4xf32>
    %65 = tpu.matmul %64, %8, %cst_85 {dimension_numbers = #tpu.dot_dimension_numbers<[1], [0], [0], [1], [0, 0, 1, 1], [], []>} : vector<256x36xf32>, vector<36x4xf32>, vector<256x4xf32> -> vector<256x4xf32>
    %66 = vector.broadcast %9 : vector<1x4xf32> to vector<256x4xf32>
    %67 = arith.addf %65, %66 : vector<256x4xf32>
    %cst_86 = arith.constant 0.000000e+00 : f32
    %68 = vector.broadcast %cst_86 : f32 to vector<256x4xf32>
    %69 = arith.maximumf %67, %68 : vector<256x4xf32>
    %70 = vector.broadcast %10 : vector<1x4xf32> to vector<256x4xf32>
    %71 = arith.mulf %69, %70 : vector<256x4xf32>
    %cst_87 = arith.constant dense<0.000000e+00> : vector<256xf32>
    %72 = vector.multi_reduction <add>, %71, %cst_87 [1] : vector<256x4xf32> to vector<256xf32>
    %73 = vector.shape_cast %72 : vector<256xf32> to vector<256x1xf32>
    %74 = vector.broadcast %11 : vector<1x1xf32> to vector<256x1xf32>
    %75 = arith.addf %73, %74 : vector<256x1xf32>
    %76 = arith.negf %75 : vector<256x1xf32>
    %77 = math.exp %76 : vector<256x1xf32>
    %cst_88 = arith.constant 1.000000e+00 : f32
    %78 = vector.broadcast %cst_88 : f32 to vector<256x1xf32>
    %79 = arith.addf %78, %77 : vector<256x1xf32>
    %80 = arith.divf %78, %79 : vector<256x1xf32>
    %81 = vector.shape_cast %80 : vector<256x1xf32> to vector<256xf32>
    %82 = arith.index_cast %c0_i32 : i32 to index
    %c0_89 = arith.constant 0 : index
    %c0_90 = arith.constant 0 : index
    %83 = vector.load %arg10[%82, %c0_89, %c0_90] : memref<1x1x256xf32, #tpu.memory_space<vmem>>, vector<1x1x256xf32>
    %84 = vector.shape_cast %83 : vector<1x1x256xf32> to vector<256xf32>
    %85 = vector.shape_cast %81 : vector<256xf32> to vector<1x1x256xf32>
    tpu.vector_store %arg10[%82, %c0_89, %c0_90], %85 {strides = array<i32>} : memref<1x1x256xf32, #tpu.memory_space<vmem>>, vector<1x1x256xf32>,
    %c1_i32 = arith.constant 1 : i32
    return
  }
  func.func @transform_0(%arg0: i32) -> (i32, i32, i32) {
    %c0_i32 = arith.constant 0 : i32
    %c0_i32_0 = arith.constant 0 : i32
    %c0_i32_1 = arith.constant 0 : i32
    return %arg0, %c0_i32, %c0_i32_0 : i32, i32, i32
  }
  func.func @transform_1(%arg0: i32) -> (i32, i32) {
    %c0_i32 = arith.constant 0 : i32
    %c0_i32_0 = arith.constant 0 : i32
    %c0_i32_1 = arith.constant 0 : i32
    return %c0_i32, %c0_i32_0 : i32, i32
  }
  func.func @transform_2(%arg0: i32) -> (i32, i32) {
    %c0_i32 = arith.constant 0 : i32
    %c0_i32_0 = arith.constant 0 : i32
    %c0_i32_1 = arith.constant 0 : i32
    return %c0_i32, %c0_i32_0 : i32, i32
  }
  func.func @transform_3(%arg0: i32) -> (i32, i32) {
    %c0_i32 = arith.constant 0 : i32
    %c0_i32_0 = arith.constant 0 : i32
    %c0_i32_1 = arith.constant 0 : i32
    return %c0_i32, %c0_i32_0 : i32, i32
  }
  func.func @transform_4(%arg0: i32) -> (i32, i32) {
    %c0_i32 = arith.constant 0 : i32
    %c0_i32_0 = arith.constant 0 : i32
    %c0_i32_1 = arith.constant 0 : i32
    return %c0_i32, %c0_i32_0 : i32, i32
  }
  func.func @transform_5(%arg0: i32) -> (i32, i32) {
    %c0_i32 = arith.constant 0 : i32
    %c0_i32_0 = arith.constant 0 : i32
    %c0_i32_1 = arith.constant 0 : i32
    return %c0_i32, %c0_i32_0 : i32, i32
  }
  func.func @transform_6(%arg0: i32) -> (i32, i32) {
    %c0_i32 = arith.constant 0 : i32
    %c0_i32_0 = arith.constant 0 : i32
    %c0_i32_1 = arith.constant 0 : i32
    return %c0_i32, %c0_i32_0 : i32, i32
  }
  func.func @transform_7(%arg0: i32) -> (i32, i32) {
    %c0_i32 = arith.constant 0 : i32
    %c0_i32_0 = arith.constant 0 : i32
    %c0_i32_1 = arith.constant 0 : i32
    return %c0_i32, %c0_i32_0 : i32, i32
  }
  func.func @transform_8(%arg0: i32) -> (i32, i32) {
    %c0_i32 = arith.constant 0 : i32
    %c0_i32_0 = arith.constant 0 : i32
    %c0_i32_1 = arith.constant 0 : i32
    return %c0_i32, %c0_i32_0 : i32, i32
  }
  func.func @transform_9(%arg0: i32) -> (i32, i32, i32) {
    %c0_i32 = arith.constant 0 : i32
    %c0_i32_0 = arith.constant 0 : i32
    %c0_i32_1 = arith.constant 0 : i32
    return %arg0, %c0_i32, %c0_i32_0 : i32, i32, i32
  }
}

</mosaic_0001>

<bundles_post_ra>
// kernel: tpu_custom_call.1
= control target key start
LH: loop header
LB: loop body
LE: loop exit
PB: predicated region body
PF: predicated region fallthrough
CT: control target
= control target key end

     0   :  { %s13538_s0 = inlined_call_operand.vmem [shape: f32[2,256,8], index: 0, kind: input, shape index: {}]   ;;  %s13539_s1 = inlined_call_operand.vmem [shape: f32[8,8], index: 1, kind: input, shape index: {}]   ;;  %s13540_s2 = inlined_call_operand.vmem [shape: f32[1,8], index: 2, kind: input, shape index: {}]   ;;  %s13541_s3 = inlined_call_operand.vmem [shape: f32[72,4], index: 3, kind: input, shape index: {}]   ;;  %s13542_s4 = inlined_call_operand.vmem [shape: f32[1,4], index: 4, kind: input, shape index: {}]   ;;  %s13543_s5 = inlined_call_operand.vmem [shape: f32[36,4], index: 5, kind: input, shape index: {}]   ;;  %s13544_s6 = inlined_call_operand.vmem [shape: f32[1,4], index: 6, kind: input, shape index: {}]   ;;  %s13545_s7 = inlined_call_operand.vmem [shape: f32[1,4], index: 7, kind: input, shape index: {}]   ;;  %s13546_s8 = inlined_call_operand.<no memory space> [shape: f32[1,1], index: 8, kind: input, shape index: {}]   ;;  %s13547_s9 = inlined_call_operand.hbm [shape: f32[2,1,256], index: 9, kind: output, shape index: {}]  }
   0x1   :  { %v14_v0 = vstv %s13546_s8 }
   0x2   :  { %15 = vst [vmem:[#allocation4] sm:$0x1] %v14_v0 }
   0x3   :  { %16 = vsyncpa [#allocation6], 0 }
   0x4   :  { %18 = vsyncpa [#allocation6 + $0x1], 0  ;;  %s9560_s11 = smov 0   ;;  %s9562_s12 = smov 0  }
   0x5   :  { %s9564_s13 = smov 0   ;;  %s9566_s14 = smov 0  }
   0x6 LB: > { %s9581_s8 = sadd.s32 4294967295, %s9489_s14   ;;  %s8675_s15 = sadd.s32 4294967294, %s9489_s14   ;;  %s9489_s14 = sphi %s9566_s14, %s14017_s14   ;;  %s9485_s13 = sphi %s9564_s13, %s14016_s13   ;;  %s9481_s12 = sphi %s9562_s12, %s14015_s12   ;;  %s9477_s11 = sphi %s9560_s11, %s14014_s11  }
   0x7   : > { %s9585_s16 = sadd.s32 1, %s9489_s14   ;;  %s225_s17 = sadd.s32 1, %s9485_s13 }
   0x8   : > { %s222_s18 = ssub.s32 %s9489_s14, %s9585_s16  ;;  %p235_p0 = scmp.ne.s32.totalorder %s9485_s13, %s9481_s12 }
   0x9   : > { %p223_p1 = scmp.eq.s32.totalorder %s222_s18, 0  ;;  %p236_p2 = scmp.eq.s32.totalorder %s9581_s8, 1 }
   0xa   : > { %p241_p3 = scmp.ne.s32.totalorder %s9481_s12, %s9477_s11  ;;  %p242_p4 = scmp.eq.s32.totalorder %s8675_s15, 1 }
   0xb   : > { %s9596_s19 = scalar_select %p223_p1, %s9485_s13, %s225_s17  }
   0xc   : > { %p9598_p5 = por %p236_p2, %p235_p0  ;;  %p9602_p6 = por %p242_p4, %p241_p3 }
   0xd   : > { %p8678_p7 = scmp.ge.s32.totalorder %s9489_s14, 1  ;;  %p292_p8 = scmp.lt.s32.totalorder %s9489_s14, 3 }
   0xf   : > { %p293_p9 = pnand %p8678_p7, %p292_p8 }
  0x11   : > { %296 = sbr.rel (%p293_p9) target bundleno = 2204 (0x89c), region = 56 }
  0x18   : > { %v445_v1 = vld [vmem:[%s13539_s1] sm:$0xff]  ;;  %p328_p10 = scmp.lt.s32.totalorder %s9581_s8, 1  ;;  %vm333_vm0 = vcmask 64512   ;;  %vm336_vm1 = vcmask 58368   ;;  %v13548_v2 = vmov 0.0   ;;  %s9492_s29 = smov 8  }
  0x19   : > { %8998 = vmatprep.subr.mxu0 %v445_v1  ;;  %9196 = vmatprep.subr.mxu1 %v445_v1  ;;  %334 = vst.msk [vmem:[#allocation2] sm:$0xff] %vm333_vm0, %v13548_v2  ;;  %335 = vst.msk [vmem:[#allocation2 + $0x8] sm:$0xff] %vm333_vm0, %v13548_v2  ;;  %s9493_s30 = smov 16   ;;  %v9799_v39 = vld [vmem:[%s13540_s2] ss:$0 sm:$0xff]  ;;  %s9494_s17 = smov 24  }
  0x1a   : > { %338 = vst.msk [vmem:[#allocation2 + $0x18] sm:$0xff] %vm333_vm0, %v13548_v2  ;;  %339 = vst.msk [vmem:[#allocation2 + $0x20] sm:$0xff] %vm333_vm0, %v13548_v2  ;;  %8999 = vmatpush3.msra.mxu0 %v445_v1  ;;  %9197 = vmatpush3.msra.mxu1 %v445_v1  ;;  %s329_s24 = scalar_select %p328_p10, %s9581_s8, 1  ;;  %vm389_vm2 = vcmask 31744   ;;  %vm392_vm3 = vcmask 25600   ;;  %vm2202_vm4 = vcmask 130048  }
  0x1b   : > { %341 = vst.msk [vmem:[#allocation2 + $0x30] sm:$0xff] %vm333_vm0, %v13548_v2  ;;  %342 = vst.msk [vmem:[#allocation2 + $0x38] sm:$0xff] %vm333_vm0, %v13548_v2  ;;  %s9495_s18 = smov 32   ;;  %s9496_s22 = smov 40   ;;  %vm2235_vm5 = vcmask 195584   ;;  %vm2268_vm6 = vcmask 261120  }
  0x1c   : > { %344 = vst.msk [vmem:[#allocation2 + $0x48] sm:$0xff] %vm333_vm0, %v13548_v2  ;;  %345 = vst.msk [vmem:[#allocation2 + $0x50] sm:$0xff] %vm333_vm0, %v13548_v2  ;;  %s8885_s25 = sshll.u32 %s329_s24, 8  ;;  %s9497_s23 = smov 48   ;;  %vm2301_vm7 = vcmask 326656   ;;  %vm2334_vm8 = vcmask 392192  }
  0x1d   : > { %347 = vst.msk [vmem:[#allocation2 + $0x60] sm:$0xff] %vm333_vm0, %v13548_v2  ;;  %348 = vst.msk [vmem:[#allocation2 + $0x68] sm:$0xff] %vm333_vm0, %v13548_v2  ;;  %s9726_s28 = scalar_lea.vmem %s13538_s0, %s8885_s25  ;;  %s9498_s24 = smov 56   ;;  %vm2367_vm9 = vcmask 457728   ;;  %vm2400_vm10 = vcmask 523264   ;;  %vm2439_vm11 = vcmask 588800  }
  0x1e   : > { %350 = vst.msk [vmem:[#allocation2 + $0x78] sm:$0xff] %vm333_vm0, %v13548_v2  ;;  %351 = vst.msk [vmem:[#allocation2 + $0x80] sm:$0xff] %vm333_vm0, %v13548_v2  ;;  %v465_v3 = vld [vmem:[%s9726_s28] sm:$0xff]  ;;  %v466_v5 = vld [vmem:[%s9726_s28 + $0x8] sm:$0xff]  ;;  %s9499_s27 = smov 64   ;;  %s9501_s15 = smov 12  }
  0x1f   : > { %353 = vst.msk [vmem:[#allocation2 + $0x90] sm:$0xff] %vm333_vm0, %v13548_v2  ;;  %354 = vst.msk [vmem:[#allocation2 + $0x98] sm:$0xff] %vm333_vm0, %v13548_v2  ;;  %v481_v4 = vld [vmem:[%s9726_s28 + $0x80] sm:$0xff]  ;;  %9000 = vmatprep.mubr.msk.f32.mxu0 %vm333_vm0, %v465_v3  ;;  %v482_v6 = vld [vmem:[%s9726_s28 + $0x88] sm:$0xff]  ;;  %s9502_s10 = smov 20   ;;  %vm4501_vm12 = vcmask 1043456  }
  0x20   : > { %356 = vst.msk [vmem:[#allocation2 + $0xa8] sm:$0xff] %vm333_vm0, %v13548_v2  ;;  %357 = vst.msk [vmem:[#allocation2 + $0xb0] sm:$0xff] %vm333_vm0, %v13548_v2  ;;  %9024 = vmatprep.mubr.msk.f32.mxu1 %vm333_vm0, %v481_v4  ;;  %v467_v7 = vld [vmem:[%s9726_s28 + $0x10] sm:$0xff]  ;;  %9001 = vmatmul.mubr.msk.f32.vlgmr.msra.gmra.mrb[0].mxu0 %vm333_vm0, %v466_v5  ;;  %v468_v9 = vld [vmem:[%s9726_s28 + $0x18] sm:$0xff]  ;;  %vm4203_vm13 = vcmask 97280   ;;  %vm4268_vm14 = vcmask 162816  }
  0x21   : > { %359 = vst.msk [vmem:[#allocation2 + $0xc0] sm:$0xff] %vm333_vm0, %v13548_v2  ;;  %360 = vst.msk [vmem:[#allocation2 + $0xc8] sm:$0xff] %vm333_vm0, %v13548_v2  ;;  %9025 = vmatmul.mubr.msk.f32.vlgmr.msra.gmra.mrb[0].mxu1 %vm333_vm0, %v482_v6  ;;  %v483_v8 = vld [vmem:[%s9726_s28 + $0x90] sm:$0xff]  ;;  %9003 = vmatprep.mubr.msk.f32.mxu0 %vm333_vm0, %v467_v7  ;;  %v484_v10 = vld [vmem:[%s9726_s28 + $0x98] sm:$0xff]  ;;  %vm4333_vm15 = vcmask 228352   ;;  %s9506_s25 = smov [#allocation5]  }
  0x22   : > { %362 = vst.msk [vmem:[#allocation2 + $0xd8] sm:$0xff] %vm333_vm0, %v13548_v2  ;;  %363 = vst.msk [vmem:[#allocation2 + $0xe0] sm:$0xff] %vm333_vm0, %v13548_v2  ;;  %9027 = vmatprep.mubr.msk.f32.mxu1 %vm333_vm0, %v483_v8  ;;  %v469_v11 = vld [vmem:[%s9726_s28 + $0x20] sm:$0xff]  ;;  %v470_v13 = vld [vmem:[%s9726_s28 + $0x28] sm:$0xff]  ;;  %s9431_s26 = sshll.u32 %s9506_s25, 4  ;;  %s9432_s26 = int_to_ptr.vmem [resolvable:$false] %s9431_s26 }
  0x23   : > { %365 = vst.msk [vmem:[#allocation2 + $0xf0] sm:$0xff] %vm333_vm0, %v13548_v2  ;;  %366 = vst.msk [vmem:[#allocation2 + $0xf8] sm:$0xff] %vm333_vm0, %v13548_v2  ;;  %v485_v12 = vld [vmem:[%s9726_s28 + $0xa0] sm:$0xff]  ;;  %v486_v14 = vld [vmem:[%s9726_s28 + $0xa8] sm:$0xff] }
  0x24   : > { %368 = vst.msk [vmem:[#allocation2 + $0x108] sm:$0xff] %vm333_vm0, %v13548_v2  ;;  %369 = vst.msk [vmem:[#allocation2 + $0x110] sm:$0xff] %vm333_vm0, %v13548_v2  ;;  %9004 = vmatmul.mubr.msk.f32.gmra.mrb[2].mxu0 %vm333_vm0, %v468_v9  ;;  %v471_v15 = vld [vmem:[%s9726_s28 + $0x30] sm:$0xff]  ;;  %v889_v17 = vld [vmem:[#allocation2 + $0x1] sm:$0xff] }
  0x25   : > { %371 = vst.msk [vmem:[#allocation2 + $0x120] sm:$0xff] %vm333_vm0, %v13548_v2  ;;  %372 = vst.msk [vmem:[#allocation2 + $0x128] sm:$0xff] %vm333_vm0, %v13548_v2  ;;  %9028 = vmatmul.mubr.msk.f32.gmra.mrb[2].mxu1 %vm333_vm0, %v484_v10  ;;  %9006 = vmatprep.mubr.msk.f32.mxu0 %vm333_vm0, %v469_v11  ;;  %v487_v16 = vld [vmem:[%s9726_s28 + $0xb0] sm:$0xff]  ;;  %v472_v18 = vld [vmem:[%s9726_s28 + $0x38] sm:$0xff] }
  0x26   : > { %374 = vst.msk [vmem:[#allocation2 + $0x138] sm:$0xff] %vm333_vm0, %v13548_v2  ;;  %375 = vst.msk [vmem:[#allocation2 + $0x140] sm:$0xff] %vm333_vm0, %v13548_v2  ;;  %9030 = vmatprep.mubr.msk.f32.mxu1 %vm333_vm0, %v485_v12  ;;  %v488_v19 = vld [vmem:[%s9726_s28 + $0xb8] sm:$0xff]  ;;  %v473_v20 = vld [vmem:[%s9726_s28 + $0x40] sm:$0xff]  ;;  %1178 = vrot.lane.b32.xlu0 %v889_v17, %s9492_s29 }
  0x27   : > { %377 = vst.msk [vmem:[#allocation2 + $0x150] sm:$0xff] %vm333_vm0, %v13548_v2  ;;  %378 = vst.msk [vmem:[#allocation2 + $0x158] sm:$0xff] %vm333_vm0, %v13548_v2  ;;  %v489_v21 = vld [vmem:[%s9726_s28 + $0xc0] sm:$0xff]  ;;  %v474_v22 = vld [vmem:[%s9726_s28 + $0x48] sm:$0xff] }
  0x28   : > { %380 = vst.msk [vmem:[#allocation2 + $0x168] sm:$0xff] %vm333_vm0, %v13548_v2  ;;  %381 = vst.msk [vmem:[#allocation2 + $0x170] sm:$0xff] %vm333_vm0, %v13548_v2  ;;  %9007 = vmatmul.mubr.msk.f32.gmra.mrb[4].mxu0 %vm333_vm0, %v470_v13  ;;  %v490_v23 = vld [vmem:[%s9726_s28 + $0xc8] sm:$0xff]  ;;  %v475_v24 = vld [vmem:[%s9726_s28 + $0x50] sm:$0xff] }
  0x29   : > { %383 = vst.msk [vmem:[#allocation2 + $0x180] sm:$0xff] %vm333_vm0, %v13548_v2  ;;  %384 = vst.msk [vmem:[#allocation2 + $0x188] sm:$0xff] %vm333_vm0, %v13548_v2  ;;  %9031 = vmatmul.mubr.msk.f32.gmra.mrb[4].mxu1 %vm333_vm0, %v486_v14  ;;  %9009 = vmatprep.mubr.msk.f32.mxu0 %vm333_vm0, %v471_v15  ;;  %v491_v25 = vld [vmem:[%s9726_s28 + $0xd0] sm:$0xff]  ;;  %v476_v26 = vld [vmem:[%s9726_s28 + $0x58] sm:$0xff] }
  0x2a   : > { %386 = vst.msk [vmem:[#allocation2 + $0x198] sm:$0xff] %vm333_vm0, %v13548_v2  ;;  %387 = vst.msk [vmem:[#allocation2 + $0x1a0] sm:$0xff] %vm333_vm0, %v13548_v2  ;;  %9033 = vmatprep.mubr.msk.f32.mxu1 %vm333_vm0, %v487_v16  ;;  %v492_v27 = vld [vmem:[%s9726_s28 + $0xd8] sm:$0xff]  ;;  %v477_v28 = vld [vmem:[%s9726_s28 + $0x60] sm:$0xff] }
  0x2b   : > { %340 = vst.msk [vmem:[#allocation2 + $0x28] sm:$0x3] %vm336_vm1, %v13548_v2  ;;  %337 = vst.msk [vmem:[#allocation2 + $0x10] sm:$0x3] %vm336_vm1, %v13548_v2  ;;  %v493_v29 = vld [vmem:[%s9726_s28 + $0xe0] sm:$0xff]  ;;  %v478_v30 = vld [vmem:[%s9726_s28 + $0x68] sm:$0xff] }
  0x2c   : > { %343 = vst.msk [vmem:[#allocation2 + $0x40] sm:$0x3] %vm336_vm1, %v13548_v2  ;;  %346 = vst.msk [vmem:[#allocation2 + $0x58] sm:$0x3] %vm336_vm1, %v13548_v2  ;;  %9010 = vmatmul.mubr.msk.f32.gmra.mrb[6].mxu0 %vm333_vm0, %v472_v18  ;;  %v494_v31 = vld [vmem:[%s9726_s28 + $0xe8] sm:$0xff]  ;;  %v479_v35 = vld [vmem:[%s9726_s28 + $0x70] sm:$0xff] }
  0x2d   : > { %349 = vst.msk [vmem:[#allocation2 + $0x70] sm:$0x3] %vm336_vm1, %v13548_v2  ;;  %352 = vst.msk [vmem:[#allocation2 + $0x88] sm:$0x3] %vm336_vm1, %v13548_v2  ;;  %9034 = vmatmul.mubr.msk.f32.gmra.mrb[6].mxu1 %vm333_vm0, %v488_v19  ;;  %9012 = vmatprep.mubr.msk.f32.mxu0 %vm333_vm0, %v473_v20  ;;  %v921_v34 = vld [vmem:[#allocation2 + $0x2] sm:$0xff]  ;;  %v480_v36 = vld [vmem:[%s9726_s28 + $0x78] sm:$0xff] }
  0x2e   : > { %355 = vst.msk [vmem:[#allocation2 + $0xa0] sm:$0x3] %vm336_vm1, %v13548_v2  ;;  %358 = vst.msk [vmem:[#allocation2 + $0xb8] sm:$0x3] %vm336_vm1, %v13548_v2  ;;  %9036 = vmatprep.mubr.msk.f32.mxu1 %vm333_vm0, %v489_v21  ;;  %v495_v37 = vld [vmem:[%s9726_s28 + $0xf0] sm:$0xff]  ;;  %v496_v38 = vld [vmem:[%s9726_s28 + $0xf8] sm:$0xff] }
  0x2f   : > { %361 = vst.msk [vmem:[#allocation2 + $0xd0] sm:$0x3] %vm336_vm1, %v13548_v2  ;;  %364 = vst.msk [vmem:[#allocation2 + $0xe8] sm:$0x3] %vm336_vm1, %v13548_v2  ;;  %s325_s28 = sand.u32 1, %s9481_s12  }
  0x30   : > { %367 = vst.msk [vmem:[#allocation2 + $0x100] sm:$0x3] %vm336_vm1, %v13548_v2  ;;  %370 = vst.msk [vmem:[#allocation2 + $0x118] sm:$0x3] %vm336_vm1, %v13548_v2  ;;  %9013 = vmatmul.mubr.msk.f32.gmra.mrb[8].mxu0 %vm333_vm0, %v474_v22 }
  0x31   : > { %373 = vst.msk [vmem:[#allocation2 + $0x130] sm:$0x3] %vm336_vm1, %v13548_v2  ;;  %376 = vst.msk [vmem:[#allocation2 + $0x148] sm:$0x3] %vm336_vm1, %v13548_v2  ;;  %9037 = vmatmul.mubr.msk.f32.gmra.mrb[8].mxu1 %vm333_vm0, %v490_v23  ;;  %9015 = vmatprep.mubr.msk.f32.mxu0 %vm333_vm0, %v475_v24 }
  0x32   : > { %379 = vst.msk [vmem:[#allocation2 + $0x160] sm:$0x3] %vm336_vm1, %v13548_v2  ;;  %382 = vst.msk [vmem:[#allocation2 + $0x178] sm:$0x3] %vm336_vm1, %v13548_v2  ;;  %9039 = vmatprep.mubr.msk.f32.mxu1 %vm333_vm0, %v491_v25  ;;  %v890_v32 = vld [vmem:[#allocation2 + $0x9] sm:$0xff] }
  0x33   : > { %385 = vst.msk [vmem:[#allocation2 + $0x190] sm:$0x3] %vm336_vm1, %v13548_v2  ;;  %388 = vst.msk [vmem:[#allocation2 + $0x1a8] sm:$0x3] %vm336_vm1, %v13548_v2  ;;  %1180 = vrot.lane.b32.xlu0 %v890_v32, %s9492_s29  ;;  %v922_v33 = vld [vmem:[#allocation2 + $0xa] sm:$0xff]  ;;  %vm4404_vm1 = vcmask 293888  }
  0x34   : > { %9016 = vmatmul.mubr.msk.f32.gmra.mrb[10].mxu0 %vm333_vm0, %v476_v26  ;;  %1308 = vrot.lane.b32.xlu1 %v922_v33, %s9493_s30 }
  0x35   : > { %9040 = vmatmul.mubr.msk.f32.gmra.mrb[10].mxu1 %vm333_vm0, %v492_v27  ;;  %9018 = vmatprep.mubr.msk.f32.mxu0 %vm333_vm0, %v477_v28 }
  0x36   : > { %9042 = vmatprep.mubr.msk.f32.mxu1 %vm333_vm0, %v493_v29 }
  0x37   : > { %1306 = vrot.lane.b32.xlu0 %v921_v34, %s9493_s30 }
  0x38   : > { %9019 = vmatmul.mubr.msk.f32.gmra.mrb[12].mxu0 %vm333_vm0, %v478_v30 }
  0x39   : > { %9043 = vmatmul.mubr.msk.f32.gmra.mrb[12].mxu1 %vm333_vm0, %v494_v31  ;;  %9021 = vmatprep.mubr.msk.f32.mxu0 %vm333_vm0, %v479_v35 }
  0x3a   : > { %9045 = vmatprep.mubr.msk.f32.mxu1 %vm333_vm0, %v495_v37 }
  0x3c   : > { %9022 = vmatmul.mubr.msk.f32.gmra.mrb[14].mxu0 %vm333_vm0, %v480_v36 }
  0x3d   : > { %9046 = vmatmul.mubr.msk.f32.gmra.mrb[14].mxu1 %vm333_vm0, %v496_v38 }
  0xf3   : > { %v9002_v40 = vpop.f32.mrb[0].mxu0 }
  0xf4   : > { %v9026_v41 = vpop.f32.mrb[0].mxu1  ;;  %v671_v42 = vadd.f32 %v9002_v40, %v9799_v39  ;;  %v665_v44 = vpop.f32.mrb[1].mxu0 }
  0xf5   : > { %v751_v43 = vadd.f32 %v9026_v41, %v9799_v39  ;;  %v745_v45 = vpop.f32.mrb[1].mxu1  ;;  %v666_v46 = vadd.f32 %v9799_v39, %v665_v44 }
  0xf6   : > { %v746_v47 = vadd.f32 %v9799_v39, %v745_v45  ;;  %826 = vst.msk [vmem:[#allocation2 + $0x21] sm:$0xff] %vm333_vm0, %v671_v42 }
  0xf7   : > { %842 = vst.msk [vmem:[#allocation2 + $0xe1] sm:$0xff] %vm333_vm0, %v751_v43  ;;  %825 = vst.msk [vmem:[#allocation2 + $0x19] sm:$0xff] %vm333_vm0, %v666_v46  ;;  %v9005_v48 = vpop.f32.mrb[2].mxu0 }
  0xf8   : > { %841 = vst.msk [vmem:[#allocation2 + $0xd9] sm:$0xff] %vm333_vm0, %v746_v47  ;;  %v9029_v49 = vpop.f32.mrb[2].mxu1  ;;  %v681_v50 = vadd.f32 %v9005_v48, %v9799_v39  ;;  %v675_v51 = vpop.f32.mrb[3].mxu0 }
  0xf9   : > { %v761_v52 = vadd.f32 %v9029_v49, %v9799_v39  ;;  %v755_v53 = vpop.f32.mrb[3].mxu1  ;;  %v676_v54 = vadd.f32 %v9799_v39, %v675_v51 }
  0xfa   : > { %v756_v55 = vadd.f32 %v9799_v39, %v755_v53  ;;  %828 = vst.msk [vmem:[#allocation2 + $0x39] sm:$0xff] %vm333_vm0, %v681_v50 }
  0xfb   : > { %844 = vst.msk [vmem:[#allocation2 + $0xf9] sm:$0xff] %vm333_vm0, %v761_v52  ;;  %827 = vst.msk [vmem:[#allocation2 + $0x31] sm:$0xff] %vm333_vm0, %v676_v54  ;;  %v9008_v56 = vpop.f32.mrb[4].mxu0 }
  0xfc   : > { %843 = vst.msk [vmem:[#allocation2 + $0xf1] sm:$0xff] %vm333_vm0, %v756_v55  ;;  %v9032_v57 = vpop.f32.mrb[4].mxu1  ;;  %v691_v58 = vadd.f32 %v9008_v56, %v9799_v39  ;;  %v685_v59 = vpop.f32.mrb[5].mxu0 }
  0xfd   : > { %v771_v60 = vadd.f32 %v9032_v57, %v9799_v39  ;;  %v765_v61 = vpop.f32.mrb[5].mxu1  ;;  %v892_v62 = vld [vmem:[#allocation2 + $0x21] sm:$0xff]  ;;  %v686_v63 = vadd.f32 %v9799_v39, %v685_v59 }
  0xfe   : > { %v766_v0 = vadd.f32 %v9799_v39, %v765_v61  ;;  %1184 = vrot.lane.b32.xlu1 %v892_v62, %s9492_s29  ;;  %830 = vst.msk [vmem:[#allocation2 + $0x51] sm:$0xff] %vm333_vm0, %v691_v58  ;;  %v908_v3 = vld [vmem:[#allocation2 + $0xe1] sm:$0xff]  ;;  %v953_v24 = vld [vmem:[#allocation2 + $0x18] sm:$0xff] }
  0xff   : > { %v907_v1 = vld [vmem:[#allocation2 + $0xd9] sm:$0xff]  ;;  %846 = vst.msk [vmem:[#allocation2 + $0x111] sm:$0xff] %vm333_vm0, %v771_v60  ;;  %829 = vst.msk [vmem:[#allocation2 + $0x49] sm:$0xff] %vm333_vm0, %v686_v63  ;;  %v9011_v4 = vpop.f32.mrb[6].mxu0  ;;  %v924_v19 = vld [vmem:[#allocation2 + $0x22] sm:$0xff] }
 0x100   : > { %1214 = vrot.lane.b32.xlu0 %v907_v1, %s9492_s29  ;;  %845 = vst.msk [vmem:[#allocation2 + $0x109] sm:$0xff] %vm333_vm0, %v766_v0  ;;  %v9035_v5 = vpop.f32.mrb[6].mxu1  ;;  %v701_v6 = vadd.f32 %v9011_v4, %v9799_v39  ;;  %v695_v7 = vpop.f32.mrb[7].mxu0  ;;  %v923_v12 = vld [vmem:[#allocation2 + $0x1a] sm:$0xff]  ;;  %v940_v23 = vld [vmem:[#allocation2 + $0xe2] sm:$0xff] }
 0x101   : > { %v781_v8 = vadd.f32 %v9035_v5, %v9799_v39  ;;  %v775_v9 = vpop.f32.mrb[7].mxu1  ;;  %v696_v10 = vadd.f32 %v9799_v39, %v695_v7  ;;  %v939_v22 = vld [vmem:[#allocation2 + $0xda] sm:$0xff] }
 0x102   : > { %v776_v11 = vadd.f32 %v9799_v39, %v775_v9  ;;  %1216 = vrot.lane.b32.xlu1 %v908_v3, %s9492_s29  ;;  %832 = vst.msk [vmem:[#allocation2 + $0x69] sm:$0xff] %vm333_vm0, %v701_v6  ;;  %v969_v25 = vld [vmem:[#allocation2 + $0xd8] sm:$0xff]  ;;  %v954_v36 = vld [vmem:[#allocation2 + $0x20] sm:$0xff]  ;;  %v955_v45 = vld [vmem:[#allocation2 + $0x30] sm:$0xff] }
 0x103   : > { %848 = vst.msk [vmem:[#allocation2 + $0x129] sm:$0xff] %vm333_vm0, %v781_v8  ;;  %831 = vst.msk [vmem:[#allocation2 + $0x61] sm:$0xff] %vm333_vm0, %v696_v10  ;;  %v9014_v13 = vpop.f32.mrb[8].mxu0  ;;  %v985_v26 = vld [vmem:[#allocation2 + $0x19] sm:$0xff]  ;;  %v893_v35 = vld [vmem:[#allocation2 + $0x31] sm:$0xff] }
 0x104   : > { %1310 = vrot.lane.b32.xlu0 %v923_v12, %s9493_s30  ;;  %847 = vst.msk [vmem:[#allocation2 + $0x121] sm:$0xff] %vm333_vm0, %v776_v11  ;;  %v9038_v14 = vpop.f32.mrb[8].mxu1  ;;  %v711_v15 = vadd.f32 %v9014_v13, %v9799_v39  ;;  %v705_v16 = vpop.f32.mrb[9].mxu0  ;;  %v909_v37 = vld [vmem:[#allocation2 + $0xf1] sm:$0xff]  ;;  %v970_v38 = vld [vmem:[#allocation2 + $0xe0] sm:$0xff] }
 0x105   : > { %v791_v17 = vadd.f32 %v9038_v14, %v9799_v39  ;;  %v785_v18 = vpop.f32.mrb[9].mxu1  ;;  %v706_v20 = vadd.f32 %v9799_v39, %v705_v16  ;;  %v894_v40 = vld [vmem:[#allocation2 + $0x39] sm:$0xff]  ;;  %v971_v47 = vld [vmem:[#allocation2 + $0xf0] sm:$0xff]  ;;  %v9938_v11 = vpop.permute.xlu0 %1178 }
 0x106   : > { %v786_v21 = vadd.f32 %v9799_v39, %v785_v18  ;;  %1312 = vrot.lane.b32.xlu1 %v924_v19, %s9493_s30  ;;  %834 = vst.msk [vmem:[#allocation2 + $0x81] sm:$0xff] %vm333_vm0, %v711_v15  ;;  %v9870_v41 = vld [vmem:[#allocation2 + $0x32] sm:$0xff]  ;;  %v9879_v44 = vld [vmem:[#allocation2 + $0x3a] sm:$0xff]  ;;  %v895_v56 = vld [vmem:[#allocation2 + $0x49] sm:$0xff] }
 0x107   : > { %850 = vst.msk [vmem:[#allocation2 + $0x141] sm:$0xff] %vm333_vm0, %v791_v17  ;;  %833 = vst.msk [vmem:[#allocation2 + $0x79] sm:$0xff] %vm333_vm0, %v706_v20  ;;  %v9017_v27 = vpop.f32.mrb[10].mxu0  ;;  %v910_v42 = vld [vmem:[#allocation2 + $0xf9] sm:$0xff]  ;;  %v911_v58 = vld [vmem:[#allocation2 + $0x109] sm:$0xff] }
 0x108   : > { %1342 = vrot.lane.b32.xlu0 %v939_v22, %s9493_s30  ;;  %849 = vst.msk [vmem:[#allocation2 + $0x139] sm:$0xff] %vm333_vm0, %v786_v21  ;;  %v721_v28 = vadd.f32 %v9017_v27, %v9799_v39  ;;  %v715_v29 = vpop.f32.mrb[11].mxu0  ;;  %v9041_v31 = vpop.f32.mrb[10].mxu1  ;;  %v9875_v43 = vld [vmem:[#allocation2 + $0xf2] sm:$0xff]  ;;  %v9884_v46 = vld [vmem:[#allocation2 + $0xfa] sm:$0xff]  ;;  %v9906_v61 = vld [vmem:[#allocation2 + $0x4a] sm:$0xff] }
 0x109   : > { %v716_v30 = vadd.f32 %v9799_v39, %v715_v29  ;;  %v801_v32 = vadd.f32 %v9041_v31, %v9799_v39  ;;  %v795_v33 = vpop.f32.mrb[11].mxu1  ;;  %v956_v57 = vld [vmem:[#allocation2 + $0x38] sm:$0xff]  ;;  %v9911_v63 = vld [vmem:[#allocation2 + $0x10a] sm:$0xff]  ;;  %v9956_v22 = vpop.permute.xlu1 %1308 }
 0x10a   : > { %1344 = vrot.lane.b32.xlu1 %v940_v23, %s9493_s30  ;;  %836 = vst.msk [vmem:[#allocation2 + $0x99] sm:$0xff] %vm333_vm0, %v721_v28  ;;  %v796_v34 = vadd.f32 %v9799_v39, %v795_v33  ;;  %v972_v59 = vld [vmem:[#allocation2 + $0xf8] sm:$0xff]  ;;  %v973_v4 = vld [vmem:[#allocation2 + $0x108] sm:$0xff]  ;;  %v9933_v10 = vld [vmem:[#allocation2 + $0x50] sm:$0xff] }
 0x10b   : > { %835 = vst.msk [vmem:[#allocation2 + $0x91] sm:$0xff] %vm333_vm0, %v716_v30  ;;  %852 = vst.msk [vmem:[#allocation2 + $0x159] sm:$0xff] %vm333_vm0, %v801_v32  ;;  %v9020_v48 = vpop.f32.mrb[12].mxu0  ;;  %v896_v60 = vld [vmem:[#allocation2 + $0x51] sm:$0xff]  ;;  %v897_v9 = vld [vmem:[#allocation2 + $0x61] sm:$0xff] }
 0x10c   : > { %1434 = vrot.lane.b32.xlu0 %v953_v24, %s9494_s17  ;;  %851 = vst.msk [vmem:[#allocation2 + $0x151] sm:$0xff] %vm333_vm0, %v796_v34  ;;  %v731_v49 = vadd.f32 %v9020_v48, %v9799_v39  ;;  %v725_v50 = vpop.f32.mrb[13].mxu0  ;;  %v9044_v52 = vpop.f32.mrb[12].mxu1  ;;  %v9915_v0 = vld [vmem:[#allocation2 + $0x52] sm:$0xff]  ;;  %v913_v13 = vld [vmem:[#allocation2 + $0x121] sm:$0xff]  ;;  %v898_v18 = vld [vmem:[#allocation2 + $0x69] sm:$0xff] }
 0x10d   : > { %v726_v51 = vadd.f32 %v9799_v39, %v725_v50  ;;  %v811_v53 = vadd.f32 %v9044_v52, %v9799_v39  ;;  %v805_v54 = vpop.f32.mrb[13].mxu1  ;;  %v974_v16 = vld [vmem:[#allocation2 + $0x110] sm:$0xff]  ;;  %v9949_v20 = vld [vmem:[#allocation2 + $0x62] sm:$0xff] }
 0x10e   : > { %1564 = vrot.lane.b32.xlu1 %v892_v62, %s9495_s18  ;;  %838 = vst.msk [vmem:[#allocation2 + $0xb1] sm:$0xff] %vm333_vm0, %v731_v49  ;;  %v806_v55 = vadd.f32 %v9799_v39, %v805_v54  ;;  %v912_v62 = vld [vmem:[#allocation2 + $0x111] sm:$0xff]  ;;  %v914_v21 = vld [vmem:[#allocation2 + $0x129] sm:$0xff]  ;;  %v975_v29 = vld [vmem:[#allocation2 + $0x120] sm:$0xff] }
 0x10f   : > { %837 = vst.msk [vmem:[#allocation2 + $0xa9] sm:$0xff] %vm333_vm0, %v726_v51  ;;  %854 = vst.msk [vmem:[#allocation2 + $0x171] sm:$0xff] %vm333_vm0, %v811_v53  ;;  %v9023_v5 = vpop.f32.mrb[14].mxu0  ;;  %v9962_v24 = vld [vmem:[#allocation2 + $0x6a] sm:$0xff]  ;;  %v900_v49 = vld [vmem:[#allocation2 + $0x81] sm:$0xff] }
 0x110   : > { %1466 = vrot.lane.b32.xlu0 %v969_v25, %s9494_s17  ;;  %853 = vst.msk [vmem:[#allocation2 + $0x169] sm:$0xff] %vm333_vm0, %v806_v55  ;;  %v741_v6 = vadd.f32 %v9023_v5, %v9799_v39  ;;  %v735_v7 = vpop.f32.mrb[15].mxu0  ;;  %v9966_v25 = vld [vmem:[#allocation2 + $0x60] sm:$0xff]  ;;  %v9974_v28 = vld [vmem:[#allocation2 + $0x12a] sm:$0xff] }
 0x111   : > { %v736_v8 = vadd.f32 %v9799_v39, %v735_v7  ;;  %v10014_v50 = vld [vmem:[#allocation2 + $0x7a] sm:$0xff] }
 0x112   : > { %1596 = vrot.lane.b32.xlu1 %v908_v3, %s9495_s18  ;;  %v9920_v3 = vld [vmem:[#allocation2 + $0x112] sm:$0xff]  ;;  %840 = vst.msk [vmem:[#allocation2 + $0xc9] sm:$0xff] %vm333_vm0, %v741_v6  ;;  %v916_v53 = vld [vmem:[#allocation2 + $0x141] sm:$0xff] }
 0x113   : > { %839 = vst.msk [vmem:[#allocation2 + $0xc1] sm:$0xff] %vm333_vm0, %v736_v8  ;;  %v10023_v54 = vld [vmem:[#allocation2 + $0x13a] sm:$0xff]  ;;  %v10101_v2 = vld [vmem:[#allocation2 + $0x152] sm:$0xff] }
 0x114   : > { %1562 = vrot.lane.b32.xlu0 %v985_v26, %s9495_s18 }
 0x116   : > { %1692 = vrot.lane.b32.xlu1 %v924_v19, %s9496_s22  ;;  %v9946_v19 = vpop.permute.xlu0 %1180 }
 0x118   : > { %1594 = vrot.lane.b32.xlu0 %v907_v1, %s9495_s18  ;;  %v957_v1 = vld [vmem:[#allocation2 + $0x48] sm:$0xff] }
 0x11a   : > { %1182 = vrot.lane.b32.xlu1 %v985_v26, %s9492_s29  ;;  %v9960_v23 = vpop.permute.xlu0 %1306 }
 0x11c   : > { %1690 = vrot.lane.b32.xlu0 %v923_v12, %s9496_s22  ;;  %v9047_v12 = vpop.f32.mrb[14].mxu1 }
 0x11d   : > { %v821_v14 = vadd.f32 %v9047_v12, %v9799_v39  ;;  %v815_v15 = vpop.f32.mrb[15].mxu1 }
 0x11e   : > { %1436 = vrot.lane.b32.xlu1 %v954_v36, %s9494_s17  ;;  %v816_v17 = vadd.f32 %v9799_v39, %v815_v15  ;;  %v9954_v39 = vld [vmem:[#allocation2 + $0x122] sm:$0xff]  ;;  %v917_v15 = vld [vmem:[#allocation2 + $0x151] sm:$0xff] }
 0x11f   : > { %856 = vst.msk [vmem:[#allocation2 + $0x189] sm:$0xff] %vm333_vm0, %v821_v14 }
 0x120   : > { %1186 = vrot.lane.b32.xlu0 %v893_v35, %s9492_s29  ;;  %855 = vst.msk [vmem:[#allocation2 + $0x181] sm:$0xff] %vm333_vm0, %v816_v17  ;;  %v10079_v17 = vld [vmem:[#allocation2 + $0x140] sm:$0xff] }
 0x122   : > { %1468 = vrot.lane.b32.xlu1 %v970_v38, %s9494_s17 }
 0x124   : > { %1218 = vrot.lane.b32.xlu0 %v909_v37, %s9492_s29 }
 0x126   : > { %1188 = vrot.lane.b32.xlu1 %v894_v40, %s9492_s29 }
 0x128   : > { %1314 = vrot.lane.b32.xlu0 %v9870_v41, %s9493_s30 }
 0x12a   : > { %1220 = vrot.lane.b32.xlu1 %v910_v42, %s9492_s29 }
 0x12c   : > { %1346 = vrot.lane.b32.xlu0 %v9875_v43, %s9493_s30 }
 0x12e   : > { %1316 = vrot.lane.b32.xlu1 %v9879_v44, %s9493_s30 }
 0x130   : > { %1438 = vrot.lane.b32.xlu0 %v955_v45, %s9494_s17  ;;  %v10004_v45 = vld [vmem:[#allocation2 + $0x128] sm:$0xff] }
 0x132   : > { %1348 = vrot.lane.b32.xlu1 %v9884_v46, %s9493_s30 }
 0x134   : > { %1470 = vrot.lane.b32.xlu0 %v971_v47, %s9494_s17 }
 0x136   : > { %1568 = vrot.lane.b32.xlu1 %v894_v40, %s9495_s18  ;;  %v915_v40 = vld [vmem:[#allocation2 + $0x139] sm:$0xff] }
 0x138   : > { %1566 = vrot.lane.b32.xlu0 %v893_v35, %s9495_s18  ;;  %v899_v35 = vld [vmem:[#allocation2 + $0x79] sm:$0xff] }
 0x13a   : > { %1600 = vrot.lane.b32.xlu1 %v910_v42, %s9495_s18 }
 0x13c   : > { %1598 = vrot.lane.b32.xlu0 %v909_v37, %s9495_s18  ;;  %v9995_v37 = vld [vmem:[#allocation2 + $0x68] sm:$0xff] }
 0x13e   : > { %1440 = vrot.lane.b32.xlu1 %v956_v57, %s9494_s17  ;;  %v10031_v57 = vld [vmem:[#allocation2 + $0x82] sm:$0xff] }
 0x140   : > { %1190 = vrot.lane.b32.xlu0 %v895_v56, %s9492_s29 }
 0x142   : > { %1472 = vrot.lane.b32.xlu1 %v972_v59, %s9494_s17 }
 0x144   : > { %1222 = vrot.lane.b32.xlu0 %v911_v58, %s9492_s29 }
 0x146   : > { %1192 = vrot.lane.b32.xlu1 %v896_v60, %s9492_s29 }
 0x148   : > { %1318 = vrot.lane.b32.xlu0 %v9906_v61, %s9493_s30 }
 0x14a   : > { %1224 = vrot.lane.b32.xlu1 %v912_v62, %s9492_s29 }
 0x14c   : > { %1350 = vrot.lane.b32.xlu0 %v9911_v63, %s9493_s30 }
 0x14e   : > { %1320 = vrot.lane.b32.xlu1 %v9915_v0, %s9493_s30 }
 0x150   : > { %1442 = vrot.lane.b32.xlu0 %v957_v1, %s9494_s17  ;;  %v10047_v1 = vld [vmem:[#allocation2 + $0x138] sm:$0xff] }
 0x152   : > { %1352 = vrot.lane.b32.xlu1 %v9920_v3, %s9493_s30 }
 0x154   : > { %1474 = vrot.lane.b32.xlu0 %v973_v4, %s9494_s17 }
 0x156   : > { %1572 = vrot.lane.b32.xlu1 %v896_v60, %s9495_s18 }
 0x158   : > { %1570 = vrot.lane.b32.xlu0 %v895_v56, %s9495_s18 }
 0x15a   : > { %1604 = vrot.lane.b32.xlu1 %v912_v62, %s9495_s18  ;;  %v10043_v62 = vld [vmem:[#allocation2 + $0x142] sm:$0xff] }
 0x15c   : > { %1602 = vrot.lane.b32.xlu0 %v911_v58, %s9495_s18  ;;  %v10035_v58 = vld [vmem:[#allocation2 + $0x78] sm:$0xff] }
 0x15e   : > { %1444 = vrot.lane.b32.xlu1 %v9933_v10, %s9494_s17 }
 0x160   : > { %1194 = vrot.lane.b32.xlu0 %v897_v9, %s9492_s29 }
 0x162   : > { %1476 = vrot.lane.b32.xlu1 %v974_v16, %s9494_s17 }
 0x164   : > { %1226 = vrot.lane.b32.xlu0 %v913_v13, %s9492_s29 }
 0x166   : > { %1196 = vrot.lane.b32.xlu1 %v898_v18, %s9492_s29 }
 0x168   : > { %1322 = vrot.lane.b32.xlu0 %v9949_v20, %s9493_s30 }
 0x16a   : > { %1228 = vrot.lane.b32.xlu1 %v914_v21, %s9492_s29 }
 0x16c   : > { %1354 = vrot.lane.b32.xlu0 %v9954_v39, %s9493_s30 }
 0x16e   : > { %1324 = vrot.lane.b32.xlu1 %v9962_v24, %s9493_s30 }
 0x170   : > { %1446 = vrot.lane.b32.xlu0 %v9966_v25, %s9494_s17  ;;  %v9970_v26 = vpop.permute.xlu1 %1184 }
 0x171   : > { %13561 = vst [vmem:[#allocation8_spill] sm:$0xff] %v9970_v26  ;;  %v1016_v26 = vld [vmem:[#allocation2 + $0x189] sm:$0xff] }
 0x172   : > { %v9972_v27 = vpop.permute.xlu0 %1214  ;;  %1356 = vrot.lane.b32.xlu1 %v9974_v28, %s9493_s30 }
 0x173   : > { %13562 = vst [vmem:[#allocation9_spill] sm:$0xff] %v9972_v27 }
 0x174   : > { %1478 = vrot.lane.b32.xlu0 %v975_v29, %s9494_s17  ;;  %v9979_v30 = vpop.permute.xlu1 %1216  ;;  %v10088_v29 = vld [vmem:[#allocation2 + $0x99] sm:$0xff] }
 0x175   : > { %13563 = vst [vmem:[#allocation10_spill] sm:$0xff] %v9979_v30 }
 0x176   : > { %v9981_v31 = vpop.permute.xlu0 %1310  ;;  %1576 = vrot.lane.b32.xlu1 %v898_v18, %s9495_s18 }
 0x177   : > { %13564 = vst [vmem:[#allocation11_spill] sm:$0xff] %v9981_v31  ;;  %v10261_v31 = vld [vmem:[#allocation2 + $0x180] sm:$0xff] }
 0x178   : > { %1574 = vrot.lane.b32.xlu0 %v897_v9, %s9495_s18  ;;  %v9985_v32 = vpop.permute.xlu1 %1312  ;;  %v10065_v9 = vld [vmem:[#allocation2 + $0x91] sm:$0xff] }
 0x179   : > { %13565 = vst [vmem:[#allocation12_spill] sm:$0xff] %v9985_v32 }
 0x17a   : > { %v9987_v33 = vpop.permute.xlu0 %1342  ;;  %1608 = vrot.lane.b32.xlu1 %v914_v21, %s9495_s18 }
 0x17b   : > { %13566 = vst [vmem:[#allocation13_spill] sm:$0xff] %v9987_v33 }
 0x17c   : > { %1606 = vrot.lane.b32.xlu0 %v913_v13, %s9495_s18  ;;  %v9991_v34 = vpop.permute.xlu1 %1344  ;;  %v10069_v13 = vld [vmem:[#allocation2 + $0x80] sm:$0xff] }
 0x17d   : > { %13567 = vst [vmem:[#allocation14_spill] sm:$0xff] %v9991_v34  ;;  %v10121_v34 = vld [vmem:[#allocation2 + $0x15a] sm:$0xff] }
 0x17e   : > { %v9993_v36 = vpop.permute.xlu0 %1434  ;;  %1448 = vrot.lane.b32.xlu1 %v9995_v37, %s9494_s17 }
 0x180   : > { %1198 = vrot.lane.b32.xlu0 %v899_v35, %s9492_s29  ;;  %v10000_v38 = vpop.permute.xlu1 %1564 }
 0x181   : > { %13568 = vst [vmem:[#allocation15_spill] sm:$0xff] %v10000_v38  ;;  %v10265_v38 = vld [vmem:[#allocation2 + $0xca] sm:$0xff] }
 0x182   : > { %v10002_v42 = vpop.permute.xlu0 %1466  ;;  %1480 = vrot.lane.b32.xlu1 %v10004_v45, %s9494_s17 }
 0x183   : > { %13569 = vst [vmem:[#allocation16_spill] sm:$0xff] %v10002_v42 }
 0x184   : > { %1230 = vrot.lane.b32.xlu0 %v915_v40, %s9492_s29  ;;  %v10009_v47 = vpop.permute.xlu1 %1596 }
 0x185   : > { %13570 = vst [vmem:[#allocation17_spill] sm:$0xff] %v10009_v47 }
 0x186   : > { %v10011_v48 = vpop.permute.xlu0 %1562  ;;  %1200 = vrot.lane.b32.xlu1 %v900_v49, %s9492_s29 }
 0x188   : > { %1326 = vrot.lane.b32.xlu0 %v10014_v50, %s9493_s30  ;;  %v10018_v51 = vpop.permute.xlu1 %1692 }
 0x189   : > { %13571 = vst [vmem:[#allocation18_spill] sm:$0xff] %v10018_v51  ;;  %v10189_v51 = vld [vmem:[#allocation2 + $0xb2] sm:$0xff] }
 0x18a   : > { %v10020_v52 = vpop.permute.xlu0 %1594  ;;  %1232 = vrot.lane.b32.xlu1 %v916_v53, %s9492_s29 }
 0x18b   : > { %13572 = vst [vmem:[#allocation19_spill] sm:$0xff] %v10020_v52 }
 0x18c   : > { %1358 = vrot.lane.b32.xlu0 %v10023_v54, %s9493_s30  ;;  %v10027_v55 = vpop.permute.xlu1 %1182 }
 0x18d   : > { %13573 = vst [vmem:[#allocation20_spill] sm:$0xff] %v10027_v55  ;;  %v10284_v55 = vld [vmem:[#allocation2 + $0x181] sm:$0xff] }
 0x18e   : > { %v10029_v56 = vpop.permute.xlu0 %1690  ;;  %1328 = vrot.lane.b32.xlu1 %v10031_v57, %s9493_s30 }
 0x190   : > { %1450 = vrot.lane.b32.xlu0 %v10035_v58, %s9494_s17  ;;  %v10039_v59 = vpop.permute.xlu1 %1436 }
 0x191   : > { %13574 = vst [vmem:[#allocation21_spill] sm:$0xff] %v10039_v59  ;;  %v10292_v59 = vld [vmem:[#allocation2 + $0xc8] sm:$0xff] }
 0x192   : > { %v10041_v60 = vpop.permute.xlu0 %1186  ;;  %1360 = vrot.lane.b32.xlu1 %v10043_v62, %s9493_s30 }
 0x193   : > { %13575 = vst [vmem:[#allocation22_spill] sm:$0xff] %v10041_v60  ;;  %v10251_v60 = vld [vmem:[#allocation2 + $0xc9] sm:$0xff] }
 0x194   : > { %1482 = vrot.lane.b32.xlu0 %v10047_v1, %s9494_s17  ;;  %v10051_v4 = vpop.permute.xlu1 %1468 }
 0x195   : > { %13576 = vst [vmem:[#allocation23_spill] sm:$0xff] %v10051_v4  ;;  %v10145_v4 = vld [vmem:[#allocation2 + $0xa9] sm:$0xff] }
 0x196   : > { %v10053_v5 = vpop.permute.xlu0 %1218  ;;  %1580 = vrot.lane.b32.xlu1 %v900_v49, %s9495_s18 }
 0x197   : > { %13577 = vst [vmem:[#allocation24_spill] sm:$0xff] %v10053_v5  ;;  %v10113_v5 = vld [vmem:[#allocation2 + $0x90] sm:$0xff] }
 0x198   : > { %1578 = vrot.lane.b32.xlu0 %v899_v35, %s9495_s18  ;;  %v10057_v6 = vpop.permute.xlu1 %1188  ;;  %v10092_v35 = vld [vmem:[#allocation2 + $0x92] sm:$0xff] }
 0x199   : > { %13578 = vst [vmem:[#allocation25_spill] sm:$0xff] %v10057_v6 }
 0x19a   : > { %v10059_v7 = vpop.permute.xlu0 %1314  ;;  %1612 = vrot.lane.b32.xlu1 %v916_v53, %s9495_s18  ;;  %v918_v53 = vld [vmem:[#allocation2 + $0x159] sm:$0xff] }
 0x19b   : > { %13579 = vst [vmem:[#allocation26_spill] sm:$0xff] %v10059_v7  ;;  %v10201_v7 = vld [vmem:[#allocation2 + $0x172] sm:$0xff] }
 0x19c   : > { %1610 = vrot.lane.b32.xlu0 %v915_v40, %s9495_s18  ;;  %v10063_v8 = vpop.permute.xlu1 %1220 }
 0x19d   : > { %13580 = vst [vmem:[#allocation27_spill] sm:$0xff] %v10063_v8 }
 0x19e   : > { %v10067_v12 = vpop.permute.xlu0 %1346  ;;  %1452 = vrot.lane.b32.xlu1 %v10069_v13, %s9494_s17 }
 0x19f   : > { %13581 = vst [vmem:[#allocation28_spill] sm:$0xff] %v10067_v12  ;;  %v10109_v12 = vld [vmem:[#allocation2 + $0x9a] sm:$0xff] }
 0x1a0   : > { %1202 = vrot.lane.b32.xlu0 %v10065_v9, %s9492_s29  ;;  %v10075_v14 = vpop.permute.xlu1 %1316 }
 0x1a1   : > { %13582 = vst [vmem:[#allocation29_spill] sm:$0xff] %v10075_v14 }
 0x1a2   : > { %v10077_v16 = vpop.permute.xlu0 %1438  ;;  %1484 = vrot.lane.b32.xlu1 %v10079_v17, %s9494_s17 }
 0x1a3   : > { %13583 = vst [vmem:[#allocation30_spill] sm:$0xff] %v10077_v16  ;;  %v10225_v16 = vld [vmem:[#allocation2 + $0xc1] sm:$0xff] }
 0x1a4   : > { %1234 = vrot.lane.b32.xlu0 %v917_v15, %s9492_s29  ;;  %v10084_v18 = vpop.permute.xlu1 %1348 }
 0x1a5   : > { %13584 = vst [vmem:[#allocation31_spill] sm:$0xff] %v10084_v18 }
 0x1a6   : > { %v10086_v21 = vpop.permute.xlu0 %1470  ;;  %1204 = vrot.lane.b32.xlu1 %v10088_v29, %s9492_s29 }
 0x1a7   : > { %13585 = vst [vmem:[#allocation32_spill] sm:$0xff] %v10086_v21 }
 0x1a8   : > { %1330 = vrot.lane.b32.xlu0 %v10092_v35, %s9493_s30  ;;  %v10096_v40 = vpop.permute.xlu1 %1568 }
 0x1a9   : > { %13586 = vst [vmem:[#allocation33_spill] sm:$0xff] %v10096_v40  ;;  %v10168_v40 = vld [vmem:[#allocation2 + $0xb1] sm:$0xff] }
 0x1aa   : > { %v10098_v49 = vpop.permute.xlu0 %1566  ;;  %1236 = vrot.lane.b32.xlu1 %v918_v53, %s9492_s29 }
 0x1ab   : > { %13587 = vst [vmem:[#allocation34_spill] sm:$0xff] %v10098_v49 }
 0x1ac   : > { %1362 = vrot.lane.b32.xlu0 %v10101_v2, %s9493_s30  ;;  %v10105_v18 = vpop.permute.xlu1 %1600 }
 0x1ad   : > { %13588 = vst [vmem:[#allocation35_spill] sm:$0xff] %v10105_v18  ;;  %v10125_v18 = vld [vmem:[#allocation2 + $0x150] sm:$0xff] }
 0x1ae   : > { %v10107_v8 = vpop.permute.xlu0 %1598  ;;  %1332 = vrot.lane.b32.xlu1 %v10109_v12, %s9493_s30 }
 0x1af   : > { %13589 = vst [vmem:[#allocation36_spill] sm:$0xff] %v10107_v8 }
 0x1b0   : > { %1454 = vrot.lane.b32.xlu0 %v10113_v5, %s9494_s17  ;;  %v10117_v47 = vpop.permute.xlu1 %1440 }
 0x1b1   : > { %13590 = vst [vmem:[#allocation37_spill] sm:$0xff] %v10117_v47 }
 0x1b2   : > { %v10119_v21 = vpop.permute.xlu0 %1190  ;;  %1364 = vrot.lane.b32.xlu1 %v10121_v34, %s9493_s30 }
 0x1b3   : > { %13591 = vst [vmem:[#allocation38_spill] sm:$0xff] %v10119_v21  ;;  %v920_v21 = vld [vmem:[#allocation2 + $0x171] sm:$0xff] }
 0x1b4   : > { %1486 = vrot.lane.b32.xlu0 %v10125_v18, %s9494_s17  ;;  %v10129_v8 = vpop.permute.xlu1 %1472 }
 0x1b5   : > { %13592 = vst [vmem:[#allocation39_spill] sm:$0xff] %v10129_v8 }
 0x1b6   : > { %v10131_v33 = vpop.permute.xlu0 %1222  ;;  %1584 = vrot.lane.b32.xlu1 %v10088_v29, %s9495_s18 }
 0x1b7   : > { %13593 = vst [vmem:[#allocation40_spill] sm:$0xff] %v10131_v33  ;;  %v10149_v33 = vld [vmem:[#allocation2 + $0x98] sm:$0xff] }
 0x1b8   : > { %1582 = vrot.lane.b32.xlu0 %v10065_v9, %s9495_s18  ;;  %v10137_v30 = vpop.permute.xlu1 %1192 }
 0x1b9   : > { %13594 = vst [vmem:[#allocation41_spill] sm:$0xff] %v10137_v30 }
 0x1ba   : > { %v10139_v27 = vpop.permute.xlu0 %1318  ;;  %1616 = vrot.lane.b32.xlu1 %v918_v53, %s9495_s18 }
 0x1bb   : > { %13595 = vst [vmem:[#allocation42_spill] sm:$0xff] %v10139_v27  ;;  %v919_v27 = vld [vmem:[#allocation2 + $0x169] sm:$0xff] }
 0x1bc   : > { %1614 = vrot.lane.b32.xlu0 %v917_v15, %s9495_s18  ;;  %v10143_v52 = vpop.permute.xlu1 %1224  ;;  %v10159_v15 = vld [vmem:[#allocation2 + $0x158] sm:$0xff] }
 0x1bd   : > { %13596 = vst [vmem:[#allocation43_spill] sm:$0xff] %v10143_v52 }
 0x1be   : > { %v10147_v8 = vpop.permute.xlu0 %1350  ;;  %1456 = vrot.lane.b32.xlu1 %v10149_v33, %s9494_s17 }
 0x1bf   : > { %13597 = vst [vmem:[#allocation44_spill] sm:$0xff] %v10147_v8 }
 0x1c0   : > { %1206 = vrot.lane.b32.xlu0 %v10145_v4, %s9492_s29  ;;  %v10155_v42 = vpop.permute.xlu1 %1320 }
 0x1c1   : > { %13598 = vst [vmem:[#allocation45_spill] sm:$0xff] %v10155_v42  ;;  %v10172_v42 = vld [vmem:[#allocation2 + $0xaa] sm:$0xff] }
 0x1c2   : > { %v10157_v53 = vpop.permute.xlu0 %1442  ;;  %1488 = vrot.lane.b32.xlu1 %v10159_v15, %s9494_s17 }
 0x1c3   : > { %13599 = vst [vmem:[#allocation46_spill] sm:$0xff] %v10157_v53 }
 0x1c4   : > { %1238 = vrot.lane.b32.xlu0 %v919_v27, %s9492_s29  ;;  %v10164_v52 = vpop.permute.xlu1 %1352 }
 0x1c5   : > { %13600 = vst [vmem:[#allocation47_spill] sm:$0xff] %v10164_v52  ;;  %v10181_v52 = vld [vmem:[#allocation2 + $0x16a] sm:$0xff] }
 0x1c6   : > { %v10166_v8 = vpop.permute.xlu0 %1474  ;;  %1208 = vrot.lane.b32.xlu1 %v10168_v40, %s9492_s29 }
 0x1c7   : > { %13601 = vst [vmem:[#allocation48_spill] sm:$0xff] %v10166_v8 }
 0x1c8   : > { %1334 = vrot.lane.b32.xlu0 %v10172_v42, %s9493_s30  ;;  %v10176_v53 = vpop.permute.xlu1 %1572 }
 0x1c9   : > { %13602 = vst [vmem:[#allocation49_spill] sm:$0xff] %v10176_v53  ;;  %v10193_v53 = vld [vmem:[#allocation2 + $0xa8] sm:$0xff] }
 0x1ca   : > { %v10178_v30 = vpop.permute.xlu0 %1570  ;;  %1240 = vrot.lane.b32.xlu1 %v920_v21, %s9492_s29 }
 0x1cb   : > { %13603 = vst [vmem:[#allocation50_spill] sm:$0xff] %v10178_v30 }
 0x1cc   : > { %1366 = vrot.lane.b32.xlu0 %v10181_v52, %s9493_s30  ;;  %v10185_v8 = vpop.permute.xlu1 %1604 }
 0x1cd   : > { %13604 = vst [vmem:[#allocation51_spill] sm:$0xff] %v10185_v8  ;;  %v10205_v8 = vld [vmem:[#allocation2 + $0x168] sm:$0xff] }
 0x1ce   : > { %v10187_v14 = vpop.permute.xlu0 %1602  ;;  %1336 = vrot.lane.b32.xlu1 %v10189_v51, %s9493_s30 }
 0x1cf   : > { %13605 = vst [vmem:[#allocation52_spill] sm:$0xff] %v10187_v14 }
 0x1d0   : > { %1458 = vrot.lane.b32.xlu0 %v10193_v53, %s9494_s17  ;;  %v10197_v30 = vpop.permute.xlu1 %1444 }
 0x1d1   : > { %13606 = vst [vmem:[#allocation53_spill] sm:$0xff] %v10197_v30 }
 0x1d2   : > { %v10199_v49 = vpop.permute.xlu0 %1194  ;;  %1368 = vrot.lane.b32.xlu1 %v10201_v7, %s9493_s30 }
 0x1d3   : > { %13607 = vst [vmem:[#allocation54_spill] sm:$0xff] %v10199_v49 }
 0x1d4   : > { %1490 = vrot.lane.b32.xlu0 %v10205_v8, %s9494_s17  ;;  %v10209_v14 = vpop.permute.xlu1 %1476 }
 0x1d5   : > { %13608 = vst [vmem:[#allocation55_spill] sm:$0xff] %v10209_v14 }
 0x1d6   : > { %v10211_v6 = vpop.permute.xlu0 %1226  ;;  %1588 = vrot.lane.b32.xlu1 %v10168_v40, %s9495_s18 }
 0x1d7   : > { %13609 = vst [vmem:[#allocation56_spill] sm:$0xff] %v10211_v6  ;;  %v10229_v6 = vld [vmem:[#allocation2 + $0xb0] sm:$0xff] }
 0x1d8   : > { %1586 = vrot.lane.b32.xlu0 %v10145_v4, %s9495_s18  ;;  %v10217_v49 = vpop.permute.xlu1 %1196 }
 0x1d9   : > { %13610 = vst [vmem:[#allocation57_spill] sm:$0xff] %v10217_v49 }
 0x1da   : > { %v10219_v30 = vpop.permute.xlu0 %1322  ;;  %1620 = vrot.lane.b32.xlu1 %v920_v21, %s9495_s18 }
 0x1db   : > { %13611 = vst [vmem:[#allocation58_spill] sm:$0xff] %v10219_v30  ;;  %v10237_v30 = vld [vmem:[#allocation2 + $0xc2] sm:$0xff] }
 0x1dc   : > { %1618 = vrot.lane.b32.xlu0 %v919_v27, %s9495_s18  ;;  %v10223_v47 = vpop.permute.xlu1 %1228  ;;  %v10241_v27 = vld [vmem:[#allocation2 + $0x170] sm:$0xff] }
 0x1dd   : > { %13612 = vst [vmem:[#allocation59_spill] sm:$0xff] %v10223_v47 }
 0x1de   : > { %v10227_v14 = vpop.permute.xlu0 %1354  ;;  %1460 = vrot.lane.b32.xlu1 %v10229_v6, %s9494_s17 }
 0x1df   : > { %13613 = vst [vmem:[#allocation60_spill] sm:$0xff] %v10227_v14 }
 0x1e0   : > { %1210 = vrot.lane.b32.xlu0 %v10225_v16, %s9492_s29  ;;  %v10235_v49 = vpop.permute.xlu1 %1324 }
 0x1e1   : > { %13614 = vst [vmem:[#allocation61_spill] sm:$0xff] %v10235_v49  ;;  %v10255_v49 = vld [vmem:[#allocation2 + $0xc0] sm:$0xff] }
 0x1e2   : > { %v10239_v21 = vpop.permute.xlu0 %1446  ;;  %1492 = vrot.lane.b32.xlu1 %v10241_v27, %s9494_s17 }
 0x1e3   : > { %13615 = vst [vmem:[#allocation62_spill] sm:$0xff] %v10239_v21 }
 0x1e4   : > { %1338 = vrot.lane.b32.xlu0 %v10237_v30, %s9493_s30  ;;  %v10247_v47 = vpop.permute.xlu1 %1356 }
 0x1e5   : > { %13616 = vst [vmem:[#allocation63_spill] sm:$0xff] %v10247_v47 }
 0x1e6   : > { %v10249_v14 = vpop.permute.xlu0 %1478  ;;  %1212 = vrot.lane.b32.xlu1 %v10251_v60, %s9492_s29 }
 0x1e7   : > { %13617 = vst [vmem:[#allocation64_spill] sm:$0xff] %v10249_v14 }
 0x1e8   : > { %1462 = vrot.lane.b32.xlu0 %v10255_v49, %s9494_s17  ;;  %v10259_v21 = vpop.permute.xlu1 %1576 }
 0x1e9   : > { %13618 = vst [vmem:[#allocation65_spill] sm:$0xff] %v10259_v21 }
 0x1ea   : > { %v10263_v32 = vpop.permute.xlu0 %1574  ;;  %1340 = vrot.lane.b32.xlu1 %v10265_v38, %s9493_s30 }
 0x1eb   : > { %13619 = vst [vmem:[#allocation66_spill] sm:$0xff] %v10263_v32 }
 0x1ec   : > { %1494 = vrot.lane.b32.xlu0 %v10261_v31, %s9494_s17  ;;  %v10271_v47 = vpop.permute.xlu1 %1608 }
 0x1ed   : > { %13620 = vst [vmem:[#allocation67_spill] sm:$0xff] %v10271_v47 }
 0x1ee   : > { %v10273_v14 = vpop.permute.xlu0 %1606  ;;  %1592 = vrot.lane.b32.xlu1 %v10251_v60, %s9495_s18 }
 0x1ef   : > { %13621 = vst [vmem:[#allocation68_spill] sm:$0xff] %v10273_v14 }
 0x1f0   : > { %1590 = vrot.lane.b32.xlu0 %v10225_v16, %s9495_s18  ;;  %v10279_v21 = vpop.permute.xlu1 %1448 }
 0x1f1   : > { %13622 = vst [vmem:[#allocation69_spill] sm:$0xff] %v10279_v21  ;;  %v10302_v21 = vld [vmem:[#allocation2 + $0x188] sm:$0xff] }
 0x1f2   : > { %v10281_v32 = vpop.permute.xlu0 %1198  ;;  %1624 = vrot.lane.b32.xlu1 %v1016_v26, %s9495_s18 }
 0x1f3   : > { %13623 = vst [vmem:[#allocation70_spill] sm:$0xff] %v10281_v32 }
 0x1f4   : > { %1622 = vrot.lane.b32.xlu0 %v10284_v55, %s9495_s18  ;;  %v10288_v47 = vpop.permute.xlu1 %1480 }
 0x1f5   : > { %13624 = vst [vmem:[#allocation71_spill] sm:$0xff] %v10288_v47 }
 0x1f6   : > { %v10290_v14 = vpop.permute.xlu0 %1230  ;;  %1464 = vrot.lane.b32.xlu1 %v10292_v59, %s9494_s17 }
 0x1f7   : > { %13625 = vst [vmem:[#allocation72_spill] sm:$0xff] %v10290_v14 }
 0x1f8   : > { %1694 = vrot.lane.b32.xlu0 %v9870_v41, %s9496_s22  ;;  %v10298_v32 = vpop.permute.xlu1 %1200 }
 0x1fa   : > { %v10300_v26 = vpop.permute.xlu0 %1326  ;;  %1496 = vrot.lane.b32.xlu1 %v10302_v21, %s9494_s17 }
 0x1fb   : > { %13626 = vst [vmem:[#allocation73_spill] sm:$0xff] %v10300_v26 }
 0x1fc   : > { %1698 = vrot.lane.b32.xlu0 %v9906_v61, %s9496_s22  ;;  %v10308_v14 = vpop.permute.xlu1 %1232 }
 0x1fd   : > { %13627 = vst [vmem:[#allocation74_spill] sm:$0xff] %v10308_v14 }
 0x1fe   : > { %v10310_v47 = vpop.permute.xlu0 %1358  ;;  %1696 = vrot.lane.b32.xlu1 %v9879_v44, %s9496_s22 }
 0x1ff   : > { %13628 = vst [vmem:[#allocation75_spill] sm:$0xff] %v10310_v47 }
 0x200   : > { %1702 = vrot.lane.b32.xlu0 %v9949_v20, %s9496_s22  ;;  %v10316_v41 = vpop.permute.xlu1 %1328 }
 0x202   : > { %v10318_v26 = vpop.permute.xlu0 %1450  ;;  %1700 = vrot.lane.b32.xlu1 %v9915_v0, %s9496_s22 }
 0x204   : > { %1706 = vrot.lane.b32.xlu0 %v10014_v50, %s9496_s22  ;;  %v10324_v61 = vpop.permute.xlu1 %1360 }
 0x205   : > { %13629 = vst [vmem:[#allocation76_spill] sm:$0xff] %v10324_v61 }
 0x206   : > { %v10326_v14 = vpop.permute.xlu0 %1482  ;;  %1704 = vrot.lane.b32.xlu1 %v9962_v24, %s9496_s22 }
 0x207   : > { %13630 = vst [vmem:[#allocation77_spill] sm:$0xff] %v10326_v14 }
 0x208   : > { %1710 = vrot.lane.b32.xlu0 %v10092_v35, %s9496_s22  ;;  %v10332_v44 = vpop.permute.xlu1 %1580 }
 0x20a   : > { %v10334_v20 = vpop.permute.xlu0 %1578  ;;  %1708 = vrot.lane.b32.xlu1 %v10031_v57, %s9496_s22  ;;  %v10354_v57 = vld [vmem:[#allocation2 + $0xda] sm:$0xff] }
 0x20c   : > { %1714 = vrot.lane.b32.xlu0 %v10172_v42, %s9496_s22  ;;  %v10340_v0 = vpop.permute.xlu1 %1612 }
 0x20d   : > { %13631 = vst [vmem:[#allocation78_spill] sm:$0xff] %v10340_v0 }
 0x20e   : > { %v10342_v50 = vpop.permute.xlu0 %1610  ;;  %1712 = vrot.lane.b32.xlu1 %v10109_v12, %s9496_s22 }
 0x20f   : > { %13632 = vst [vmem:[#allocation79_spill] sm:$0xff] %v10342_v50  ;;  %v10370_v50 = vld [vmem:[#allocation2 + $0xe2] sm:$0xff] }
 0x210   : > { %1718 = vrot.lane.b32.xlu0 %v10237_v30, %s9496_s22  ;;  %v10348_v24 = vpop.permute.xlu1 %1452 }
 0x212   : > { %v10350_v35 = vpop.permute.xlu0 %1202  ;;  %1716 = vrot.lane.b32.xlu1 %v10189_v51, %s9496_s22 }
 0x214   : > { %1722 = vrot.lane.b32.xlu0 %v10354_v57, %s9496_s22  ;;  %v10358_v61 = vpop.permute.xlu1 %1484 }
 0x215   : > { %13633 = vst [vmem:[#allocation80_spill] sm:$0xff] %v10358_v61 }
 0x216   : > { %v10360_v0 = vpop.permute.xlu0 %1234  ;;  %1720 = vrot.lane.b32.xlu1 %v10265_v38, %s9496_s22 }
 0x217   : > { %13634 = vst [vmem:[#allocation81_spill] sm:$0xff] %v10360_v0 }
 0x218   : > { %1726 = vrot.lane.b32.xlu0 %v9875_v43, %s9496_s22  ;;  %v10366_v12 = vpop.permute.xlu1 %1204 }
 0x21a   : > { %v10368_v47 = vpop.permute.xlu0 %1330  ;;  %1724 = vrot.lane.b32.xlu1 %v10370_v50, %s9496_s22 }
 0x21c   : > { %1730 = vrot.lane.b32.xlu0 %v9911_v63, %s9496_s22  ;;  %v10376_v61 = vpop.permute.xlu1 %1236 }
 0x21d   : > { %13635 = vst [vmem:[#allocation82_spill] sm:$0xff] %v10376_v61 }
 0x21e   : > { %v10378_v0 = vpop.permute.xlu0 %1362  ;;  %1728 = vrot.lane.b32.xlu1 %v9884_v46, %s9496_s22 }
 0x21f   : > { %13636 = vst [vmem:[#allocation83_spill] sm:$0xff] %v10378_v0  ;;  %v1052_v0 = vld [vmem:[#allocation2 + $0x48] sm:$0xff] }
 0x220   : > { %1734 = vrot.lane.b32.xlu0 %v9954_v39, %s9496_s22  ;;  %v10384_v43 = vpop.permute.xlu1 %1332 }
 0x222   : > { %v10386_v14 = vpop.permute.xlu0 %1454  ;;  %1732 = vrot.lane.b32.xlu1 %v9920_v3, %s9496_s22 }
 0x224   : > { %1738 = vrot.lane.b32.xlu0 %v10023_v54, %s9496_s22  ;;  %v10392_v63 = vpop.permute.xlu1 %1364 }
 0x225   : > { %13637 = vst [vmem:[#allocation84_spill] sm:$0xff] %v10392_v63 }
 0x226   : > { %v10394_v61 = vpop.permute.xlu0 %1486  ;;  %1736 = vrot.lane.b32.xlu1 %v9974_v28, %s9496_s22  ;;  %v10414_v28 = vld [vmem:[#allocation2 + $0x182] sm:$0xff] }
 0x227   : > { %13638 = vst [vmem:[#allocation85_spill] sm:$0xff] %v10394_v61 }
 0x228   : > { %1742 = vrot.lane.b32.xlu0 %v10101_v2, %s9496_s22  ;;  %v10400_v46 = vpop.permute.xlu1 %1584 }
 0x22a   : > { %v10402_v39 = vpop.permute.xlu0 %1582  ;;  %1740 = vrot.lane.b32.xlu1 %v10043_v62, %s9496_s22 }
 0x22c   : > { %1746 = vrot.lane.b32.xlu0 %v10181_v52, %s9496_s22  ;;  %v10408_v3 = vpop.permute.xlu1 %1616  ;;  %v1050_v52 = vld [vmem:[#allocation2 + $0x30] sm:$0xff] }
 0x22d   : > { %13639 = vst [vmem:[#allocation86_spill] sm:$0xff] %v10408_v3 }
 0x22e   : > { %v10410_v54 = vpop.permute.xlu0 %1614  ;;  %1744 = vrot.lane.b32.xlu1 %v10121_v34, %s9496_s22  ;;  %v10429_v34 = vld [vmem:[#allocation2 + $0x18a] sm:$0xff] }
 0x22f   : > { %13640 = vst [vmem:[#allocation87_spill] sm:$0xff] %v10410_v54 }
 0x230   : > { %1750 = vrot.lane.b32.xlu0 %v10414_v28, %s9496_s22  ;;  %v10418_v2 = vpop.permute.xlu1 %1456 }
 0x232   : > { %v10420_v63 = vpop.permute.xlu0 %1206  ;;  %1748 = vrot.lane.b32.xlu1 %v10201_v7, %s9496_s22  ;;  %v1051_v7 = vld [vmem:[#allocation2 + $0x38] sm:$0xff] }
 0x234   : > { %1818 = vrot.lane.b32.xlu0 %v1050_v52, %s9497_s23  ;;  %v10425_v62 = vpop.permute.xlu1 %1488 }
 0x235   : > { %13641 = vst [vmem:[#allocation88_spill] sm:$0xff] %v10425_v62 }
 0x236   : > { %v10427_v3 = vpop.permute.xlu0 %1238  ;;  %1752 = vrot.lane.b32.xlu1 %v10429_v34, %s9496_s22  ;;  %s9503_s22 = smov 28  }
 0x237   : > { %13642 = vst [vmem:[#allocation89_spill] sm:$0xff] %v10427_v3 }
 0x238   : > { %1822 = vrot.lane.b32.xlu0 %v1052_v0, %s9497_s23  ;;  %v10434_v54 = vpop.permute.xlu1 %1208 }
 0x23a   : > { %v10436_v61 = vpop.permute.xlu0 %1334  ;;  %1820 = vrot.lane.b32.xlu1 %v1051_v7, %s9497_s23 }
 0x23b   : > { %13643 = vst [vmem:[#allocation90_spill] sm:$0xff] %v10436_v61  ;;  %v858_v61 = vld [vmem:[#allocation2 + $0x8] sm:$0xff] }
 0x23c   : > { %1826 = vrot.lane.b32.xlu0 %v9966_v25, %s9497_s23  ;;  %v10441_v52 = vpop.permute.xlu1 %1240 }
 0x23d   : > { %13644 = vst [vmem:[#allocation91_spill] sm:$0xff] %v10441_v52 }
 0x23e   : > { %v10443_v3 = vpop.permute.xlu0 %1366  ;;  %1824 = vrot.lane.b32.xlu1 %v9933_v10, %s9497_s23 }
 0x23f   : > { %13645 = vst [vmem:[#allocation92_spill] sm:$0xff] %v10443_v3 }
 0x240   : > { %1830 = vrot.lane.b32.xlu0 %v10035_v58, %s9497_s23  ;;  %v10449_v0 = vpop.permute.xlu1 %1336 }
 0x241   : > { %13646 = vst [vmem:[#allocation93_spill] sm:$0xff] %v10449_v0 }
 0x242   : > { %v10451_v62 = vpop.permute.xlu0 %1458  ;;  %1828 = vrot.lane.b32.xlu1 %v9995_v37, %s9497_s23 }
 0x243   : > { %13647 = vst [vmem:[#allocation94_spill] sm:$0xff] %v10451_v62  ;;  %v13735_v62 = vld [vmem:[#allocation38_spill] sm:$0xff] }
 0x244   : > { %1834 = vrot.lane.b32.xlu0 %v10113_v5, %s9497_s23  ;;  %v10457_v25 = vpop.permute.xlu1 %1368 }
 0x245   : > { %13648 = vst [vmem:[#allocation95_spill] sm:$0xff] %v10457_v25 }
 0x246   : > { %v10459_v7 = vpop.permute.xlu0 %1490  ;;  %1832 = vrot.lane.b32.xlu1 %v10069_v13, %s9497_s23  ;;  %v1064_v13 = vld [vmem:[#allocation2 + $0xd8] sm:$0xff] }
 0x247   : > { %13649 = vst [vmem:[#allocation96_spill] sm:$0xff] %v10459_v7  ;;  %v1069_v7 = vld [vmem:[#allocation2 + $0x110] sm:$0xff] }
 0x248   : > { %1838 = vrot.lane.b32.xlu0 %v10193_v53, %s9497_s23  ;;  %v10465_v10 = vpop.permute.xlu1 %1588 }
 0x249   : > { %13650 = vst [vmem:[#allocation97_spill] sm:$0xff] %v10465_v10  ;;  %v1087_v10 = vld [vmem:[#allocation2 + $0x69] sm:$0xff] }
 0x24a   : > { %v10467_v58 = vpop.permute.xlu0 %1586  ;;  %1836 = vrot.lane.b32.xlu1 %v10149_v33, %s9497_s23  ;;  %v1066_v33 = vld [vmem:[#allocation2 + $0xf0] sm:$0xff] }
 0x24b   : > { %13651 = vst [vmem:[#allocation98_spill] sm:$0xff] %v10467_v58 }
 0x24c   : > { %1842 = vrot.lane.b32.xlu0 %v10255_v49, %s9497_s23  ;;  %v10473_v37 = vpop.permute.xlu1 %1620 }
 0x24d   : > { %13652 = vst [vmem:[#allocation99_spill] sm:$0xff] %v10473_v37  ;;  %v1065_v37 = vld [vmem:[#allocation2 + $0xe0] sm:$0xff] }
 0x24e   : > { %v10475_v5 = vpop.permute.xlu0 %1618  ;;  %1840 = vrot.lane.b32.xlu1 %v10229_v6, %s9497_s23  ;;  %v1068_v6 = vld [vmem:[#allocation2 + $0x108] sm:$0xff] }
 0x24f   : > { %13653 = vst [vmem:[#allocation100_spill] sm:$0xff] %v10475_v5  ;;  %v1067_v5 = vld [vmem:[#allocation2 + $0xf8] sm:$0xff] }
 0x250   : > { %1846 = vrot.lane.b32.xlu0 %v1064_v13, %s9497_s23  ;;  %v10480_v53 = vpop.permute.xlu1 %1460 }
 0x251   : > { %13654 = vst [vmem:[#allocation101_spill] sm:$0xff] %v10480_v53  ;;  %v13733_v53 = vld [vmem:[#allocation18_spill] sm:$0xff] }
 0x252   : > { %v10482_v25 = vpop.permute.xlu0 %1210  ;;  %1844 = vrot.lane.b32.xlu1 %v10292_v59, %s9497_s23  ;;  %v1070_v59 = vld [vmem:[#allocation2 + $0x120] sm:$0xff] }
 0x253   : > { %13655 = vst [vmem:[#allocation102_spill] sm:$0xff] %v10482_v25 }
 0x254   : > { %1850 = vrot.lane.b32.xlu0 %v1066_v33, %s9497_s23  ;;  %v10487_v49 = vpop.permute.xlu1 %1492 }
 0x255   : > { %13656 = vst [vmem:[#allocation103_spill] sm:$0xff] %v10487_v49 }
 0x256   : > { %v10489_v52 = vpop.permute.xlu0 %1338  ;;  %1848 = vrot.lane.b32.xlu1 %v1065_v37, %s9497_s23 }
 0x257   : > { %13657 = vst [vmem:[#allocation104_spill] sm:$0xff] %v10489_v52 }
 0x258   : > { %1854 = vrot.lane.b32.xlu0 %v1068_v6, %s9497_s23  ;;  %v10493_v13 = vpop.permute.xlu1 %1212 }
 0x259   : > { %13658 = vst [vmem:[#allocation105_spill] sm:$0xff] %v10493_v13 }
 0x25a   : > { %v10495_v3 = vpop.permute.xlu0 %1462  ;;  %1852 = vrot.lane.b32.xlu1 %v1067_v5, %s9497_s23 }
 0x25b   : > { %13659 = vst [vmem:[#allocation106_spill] sm:$0xff] %v10495_v3  ;;  %v1085_v3 = vld [vmem:[#allocation2 + $0x51] sm:$0xff] }
 0x25c   : > { %1858 = vrot.lane.b32.xlu0 %v1070_v59, %s9497_s23  ;;  %v10499_v33 = vpop.permute.xlu1 %1340 }
 0x25d   : > { %13660 = vst [vmem:[#allocation107_spill] sm:$0xff] %v10499_v33  ;;  %v1083_v33 = vld [vmem:[#allocation2 + $0x39] sm:$0xff] }
 0x25e   : > { %v10501_v49 = vpop.permute.xlu0 %1494  ;;  %1856 = vrot.lane.b32.xlu1 %v1069_v7, %s9497_s23 }
 0x25f   : > { %13661 = vst [vmem:[#allocation108_spill] sm:$0xff] %v10501_v49 }
 0x260   : > { %1862 = vrot.lane.b32.xlu0 %v10047_v1, %s9497_s23  ;;  %v10506_v37 = vpop.permute.xlu1 %1592 }
 0x261   : > { %13662 = vst [vmem:[#allocation109_spill] sm:$0xff] %v10506_v37 }
 0x262   : > { %v10508_v6 = vpop.permute.xlu0 %1590  ;;  %1860 = vrot.lane.b32.xlu1 %v10004_v45, %s9497_s23 }
 0x263   : > { %13663 = vst [vmem:[#allocation110_spill] sm:$0xff] %v10508_v6  ;;  %v449_v6 = vld [vmem:[%s13541_s3 + $0x10] sm:$0xff] }
 0x264   : > { %1866 = vrot.lane.b32.xlu0 %v10125_v18, %s9497_s23  ;;  %v10514_v5 = vpop.permute.xlu1 %1624  ;;  %v1080_v18 = vld [vmem:[#allocation2 + $0x198] sm:$0xff] }
 0x265   : > { %13664 = vst [vmem:[#allocation111_spill] sm:$0xff] %v10514_v5 }
 0x266   : > { %v10516_v59 = vpop.permute.xlu0 %1622  ;;  %1864 = vrot.lane.b32.xlu1 %v10079_v17, %s9497_s23 }
 0x267   : > { %13665 = vst [vmem:[#allocation112_spill] sm:$0xff] %v10516_v59 }
 0x268   : > { %1870 = vrot.lane.b32.xlu0 %v10205_v8, %s9497_s23  ;;  %v10522_v1 = vpop.permute.xlu1 %1464 }
 0x269   : > { %13666 = vst [vmem:[#allocation113_spill] sm:$0xff] %v10522_v1  ;;  %v1086_v1 = vld [vmem:[#allocation2 + $0x61] sm:$0xff] }
 0x26a   : > { %v10524_v7 = vpop.permute.xlu0 %1694  ;;  %1868 = vrot.lane.b32.xlu1 %v10159_v15, %s9497_s23  ;;  %v1082_v15 = vld [vmem:[#allocation2 + $0x31] sm:$0xff] }
 0x26c   : > { %1874 = vrot.lane.b32.xlu0 %v10261_v31, %s9497_s23  ;;  %v10530_v45 = vpop.permute.xlu1 %1496  ;;  %v1081_v31 = vld [vmem:[#allocation2 + $0x1a0] sm:$0xff] }
 0x26d   : > { %13667 = vst [vmem:[#allocation114_spill] sm:$0xff] %v10530_v45 }
 0x26e   : > { %v10532_v5 = vpop.permute.xlu0 %1698  ;;  %1872 = vrot.lane.b32.xlu1 %v10241_v27, %s9497_s23  ;;  %v447_v27 = vld [vmem:[%s13541_s3] sm:$0xff] }
 0x270   : > { %1878 = vrot.lane.b32.xlu0 %v1080_v18, %s9497_s23  ;;  %v10537_v8 = vpop.permute.xlu1 %1696  ;;  %v448_v18 = vld [vmem:[%s13541_s3 + $0x8] sm:$0xff] }
 0x271   : > { %v9172_v49 = vpack.c.bf16 %v448_v18, %v447_v27 }
 0x272   : > { %v10539_v17 = vpop.permute.xlu0 %1702  ;;  %1876 = vrot.lane.b32.xlu1 %v10302_v21, %s9497_s23  ;;  %v1084_v21 = vld [vmem:[#allocation2 + $0x49] sm:$0xff] }
 0x273   : > { %9173 = vmatprep.subr.bf16.mxu1 %v9172_v49 }
 0x274   : > { %1946 = vrot.lane.b32.xlu0 %v1082_v15, %s9498_s24  ;;  %v10544_v45 = vpop.permute.xlu1 %1700  ;;  %9175 = vmatpush3.bf16.msra.mxu1 %v9172_v49  ;;  %v1088_v49 = vld [vmem:[#allocation2 + $0x79] sm:$0xff] }
 0x276   : > { %v10546_v59 = vpop.permute.xlu0 %1706  ;;  %1880 = vrot.lane.b32.xlu1 %v1081_v31, %s9497_s23  ;;  %v450_v31 = vld [vmem:[%s13541_s3 + $0x18] sm:$0xff] }
 0x277   : > { %v9176_v27 = vpack.c.bf16 %v450_v31, %v449_v6  ;;  %v451_v6 = vld [vmem:[%s13541_s3 + $0x20] sm:$0xff] }
 0x278   : > { %1950 = vrot.lane.b32.xlu0 %v1084_v21, %s9498_s24  ;;  %v10556_v15 = vpop.permute.xlu1 %1704 }
 0x279   : > { %9177 = vmatprep.subr.bf16.mxu1 %v9176_v27 }
 0x27a   : > { %v10558_v37 = vpop.permute.xlu0 %1710  ;;  %1948 = vrot.lane.b32.xlu1 %v1083_v33, %s9498_s24  ;;  %9179 = vmatpush3.bf16.msra.mxu1 %v9176_v27 }
 0x27c   : > { %1954 = vrot.lane.b32.xlu0 %v1086_v1, %s9498_s24  ;;  %v10568_v18 = vpop.permute.xlu1 %1708  ;;  %v452_v1 = vld [vmem:[%s13541_s3 + $0x28] sm:$0xff] }
 0x27e   : > { %v10570_v21 = vpop.permute.xlu0 %1714  ;;  %1952 = vrot.lane.b32.xlu1 %v1085_v3, %s9498_s24  ;;  %v9180_v3 = vpack.c.bf16 %v452_v1, %v451_v6  ;;  %v454_v6 = vld [vmem:[%s13541_s3 + $0x38] sm:$0xff] }
 0x27f   : > { %13668 = vst [vmem:[#allocation115_spill] sm:$0xff] %v10570_v21 }
 0x280   : > { %1958 = vrot.lane.b32.xlu0 %v1088_v49, %s9498_s24  ;;  %v10574_v33 = vpop.permute.xlu1 %1712  ;;  %v1089_v49 = vld [vmem:[#allocation2 + $0x81] sm:$0xff]  ;;  %9181 = vmatprep.subr.bf16.mxu1 %v9180_v3 }
 0x281   : > { %13669 = vst [vmem:[#allocation116_spill] sm:$0xff] %v10574_v33  ;;  %9183 = vmatpush3.bf16.msra.mxu1 %v9180_v3 }
 0x282   : > { %v10576_v13 = vpop.permute.xlu0 %1718  ;;  %1956 = vrot.lane.b32.xlu1 %v1087_v10, %s9498_s24 }
 0x283   : > { %13670 = vst [vmem:[#allocation117_spill] sm:$0xff] %v10576_v13 }
 0x284   : > { %1962 = vrot.lane.b32.xlu0 %v10065_v9, %s9498_s24  ;;  %v10587_v31 = vpop.permute.xlu1 %1716  ;;  %v453_v9 = vld [vmem:[%s13541_s3 + $0x30] sm:$0xff] }
 0x285   : > { %13671 = vst [vmem:[#allocation118_spill] sm:$0xff] %v10587_v31  ;;  %v9184_v1 = vpack.c.bf16 %v454_v6, %v453_v9  ;;  %v1098_v9 = vld [vmem:[#allocation2 + $0xf1] sm:$0xff] }
 0x286   : > { %v10589_v27 = vpop.permute.xlu0 %1722  ;;  %1960 = vrot.lane.b32.xlu1 %v1089_v49, %s9498_s24  ;;  %v1096_v49 = vld [vmem:[#allocation2 + $0xd9] sm:$0xff] }
 0x287   : > { %13672 = vst [vmem:[#allocation119_spill] sm:$0xff] %v10589_v27  ;;  %9185 = vmatprep.subr.bf16.mxu1 %v9184_v1 }
 0x288   : > { %1966 = vrot.lane.b32.xlu0 %v10145_v4, %s9498_s24  ;;  %v10594_v10 = vpop.permute.xlu1 %1720  ;;  %9187 = vmatpush3.bf16.msra.mxu1 %v9184_v1  ;;  %v1097_v1 = vld [vmem:[#allocation2 + $0xe1] sm:$0xff] }
 0x289   : > { %13673 = vst [vmem:[#allocation120_spill] sm:$0xff] %v10594_v10  ;;  %v1131_v10 = vld [vmem:[#allocation2 + $0xfa] sm:$0xff] }
 0x28a   : > { %v10596_v13 = vpop.permute.xlu0 %1726  ;;  %1964 = vrot.lane.b32.xlu1 %v10088_v29, %s9498_s24 }
 0x28b   : > { %13674 = vst [vmem:[#allocation121_spill] sm:$0xff] %v10596_v13  ;;  %v455_v13 = vld [vmem:[%s13541_s3 + $0x40] sm:$0xff] }
 0x28c   : > { %1970 = vrot.lane.b32.xlu0 %v10225_v16, %s9498_s24  ;;  %v10608_v4 = vpop.permute.xlu1 %1724  ;;  %9064 = vmatprep.subr.mxu1 %v455_v13 }
 0x28d   : > { %13675 = vst [vmem:[#allocation122_spill] sm:$0xff] %v10608_v4  ;;  %9065 = vmatpush3.msra.mxu1 %v455_v13  ;;  %v1099_v13 = vld [vmem:[#allocation2 + $0xf9] sm:$0xff] }
 0x28e   : > { %v10610_v3 = vpop.permute.xlu0 %1730  ;;  %1968 = vrot.lane.b32.xlu1 %v10168_v40, %s9498_s24 }
 0x28f   : > { %13676 = vst [vmem:[#allocation123_spill] sm:$0xff] %v10610_v3 }
 0x290   : > { %1974 = vrot.lane.b32.xlu0 %v1096_v49, %s9498_s24  ;;  %v10618_v29 = vpop.permute.xlu1 %1728  ;;  %v1100_v49 = vld [vmem:[#allocation2 + $0x109] sm:$0xff] }
 0x291   : > { %13677 = vst [vmem:[#allocation124_spill] sm:$0xff] %v10618_v29  ;;  %v1121_v29 = vld [vmem:[#allocation2 + $0x82] sm:$0xff] }
 0x292   : > { %v10620_v16 = vpop.permute.xlu0 %1734  ;;  %1972 = vrot.lane.b32.xlu1 %v10251_v60, %s9498_s24  ;;  %v1114_v60 = vld [vmem:[#allocation2 + $0x32] sm:$0xff] }
 0x293   : > { %13678 = vst [vmem:[#allocation125_spill] sm:$0xff] %v10620_v16 }
 0x294   : > { %1978 = vrot.lane.b32.xlu0 %v1098_v9, %s9498_s24  ;;  %v10625_v40 = vpop.permute.xlu1 %1732 }
 0x295   : > { %13679 = vst [vmem:[#allocation126_spill] sm:$0xff] %v10625_v40  ;;  %v1101_v40 = vld [vmem:[#allocation2 + $0x111] sm:$0xff] }
 0x296   : > { %v10627_v6 = vpop.permute.xlu0 %1738  ;;  %1976 = vrot.lane.b32.xlu1 %v1097_v1, %s9498_s24  ;;  %v1116_v1 = vld [vmem:[#allocation2 + $0x4a] sm:$0xff] }
 0x297   : > { %13680 = vst [vmem:[#allocation127_spill] sm:$0xff] %v10627_v6 }
 0x298   : > { %1982 = vrot.lane.b32.xlu0 %v1100_v49, %s9498_s24  ;;  %v10631_v3 = vpop.permute.xlu1 %1736 }
 0x299   : > { %13681 = vst [vmem:[#allocation128_spill] sm:$0xff] %v10631_v3  ;;  %v1115_v3 = vld [vmem:[#allocation2 + $0x3a] sm:$0xff] }
 0x29a   : > { %v10633_v16 = vpop.permute.xlu0 %1742  ;;  %1980 = vrot.lane.b32.xlu1 %v1099_v13, %s9498_s24  ;;  %v1118_v13 = vld [vmem:[#allocation2 + $0x62] sm:$0xff] }
 0x29b   : > { %13682 = vst [vmem:[#allocation129_spill] sm:$0xff] %v10633_v16 }
 0x29c   : > { %2074 = vrot.lane.b32.xlu0 %v1114_v60, %s9499_s27  ;;  %v10637_v9 = vpop.permute.xlu1 %1740 }
 0x29d   : > { %13683 = vst [vmem:[#allocation130_spill] sm:$0xff] %v10637_v9 }
 0x29e   : > { %v10639_v6 = vpop.permute.xlu0 %1746  ;;  %1984 = vrot.lane.b32.xlu1 %v1101_v40, %s9498_s24  ;;  %v1120_v40 = vld [vmem:[#allocation2 + $0x7a] sm:$0xff] }
 0x29f   : > { %13684 = vst [vmem:[#allocation131_spill] sm:$0xff] %v10639_v6  ;;  %v1117_v6 = vld [vmem:[#allocation2 + $0x52] sm:$0xff] }
 0x2a0   : > { %2078 = vrot.lane.b32.xlu0 %v1116_v1, %s9499_s27  ;;  %v10643_v49 = vpop.permute.xlu1 %1744 }
 0x2a1   : > { %13685 = vst [vmem:[#allocation132_spill] sm:$0xff] %v10643_v49 }
 0x2a2   : > { %v10645_v16 = vpop.permute.xlu0 %1750  ;;  %2076 = vrot.lane.b32.xlu1 %v1115_v3, %s9499_s27  ;;  %v1122_v3 = vld [vmem:[#allocation2 + $0x92] sm:$0xff] }
 0x2a3   : > { %13686 = vst [vmem:[#allocation133_spill] sm:$0xff] %v10645_v16  ;;  %v1119_v16 = vld [vmem:[#allocation2 + $0x6a] sm:$0xff] }
 0x2a4   : > { %2082 = vrot.lane.b32.xlu0 %v1118_v13, %s9499_s27  ;;  %v10649_v60 = vpop.permute.xlu1 %1748 }
 0x2a5   : > { %13687 = vst [vmem:[#allocation134_spill] sm:$0xff] %v10649_v60 }
 0x2a6   : > { %v10651_v9 = vpop.permute.xlu0 %1818  ;;  %2080 = vrot.lane.b32.xlu1 %v1117_v6, %s9499_s27 }
 0x2a8   : > { %2086 = vrot.lane.b32.xlu0 %v1120_v40, %s9499_s27  ;;  %v10655_v1 = vpop.permute.xlu1 %1752 }
 0x2a9   : > { %13688 = vst [vmem:[#allocation135_spill] sm:$0xff] %v10655_v1  ;;  %v1123_v1 = vld [vmem:[#allocation2 + $0x9a] sm:$0xff] }
 0x2aa   : > { %v10657_v49 = vpop.permute.xlu0 %1822  ;;  %2084 = vrot.lane.b32.xlu1 %v1119_v16, %s9499_s27 }
 0x2ac   : > { %2090 = vrot.lane.b32.xlu0 %v1122_v3, %s9499_s27  ;;  %v10661_v13 = vpop.permute.xlu1 %1820 }
 0x2ae   : > { %v10663_v60 = vpop.permute.xlu0 %1826  ;;  %2088 = vrot.lane.b32.xlu1 %v1121_v29, %s9499_s27 }
 0x2b0   : > { %2094 = vrot.lane.b32.xlu0 %v10172_v42, %s9499_s27  ;;  %v10668_v6 = vpop.permute.xlu1 %1824 }
 0x2b2   : > { %v10670_v40 = vpop.permute.xlu0 %1830  ;;  %2092 = vrot.lane.b32.xlu1 %v1123_v1, %s9499_s27  ;;  %v1130_v1 = vld [vmem:[#allocation2 + $0xf2] sm:$0xff] }
 0x2b4   : > { %2098 = vrot.lane.b32.xlu0 %v10237_v30, %s9499_s27  ;;  %v10675_v16 = vpop.permute.xlu1 %1828 }
 0x2b6   : > { %v10677_v3 = vpop.permute.xlu0 %1834  ;;  %2096 = vrot.lane.b32.xlu1 %v10189_v51, %s9499_s27  ;;  %v1132_v51 = vld [vmem:[#allocation2 + $0x10a] sm:$0xff] }
 0x2b8   : > { %2102 = vrot.lane.b32.xlu0 %v10354_v57, %s9499_s27  ;;  %v10683_v42 = vpop.permute.xlu1 %1832 }
 0x2ba   : > { %v10685_v29 = vpop.permute.xlu0 %1838  ;;  %2100 = vrot.lane.b32.xlu1 %v10265_v38, %s9499_s27  ;;  %v1102_v38 = vld [vmem:[#allocation2 + $0x121] sm:$0xff] }
 0x2bc   : > { %2106 = vrot.lane.b32.xlu0 %v1130_v1, %s9499_s27  ;;  %v10690_v30 = vpop.permute.xlu1 %1836 }
 0x2be   : > { %v10692_v4 = vpop.permute.xlu0 %1842  ;;  %2104 = vrot.lane.b32.xlu1 %v10370_v50, %s9499_s27  ;;  %v1134_v50 = vld [vmem:[#allocation2 + $0x122] sm:$0xff] }
 0x2bf   : > { %13689 = vst [vmem:[#allocation136_spill] sm:$0xff] %v10692_v4  ;;  %v1133_v4 = vld [vmem:[#allocation2 + $0x112] sm:$0xff] }
 0x2c0   : > { %2110 = vrot.lane.b32.xlu0 %v1132_v51, %s9499_s27  ;;  %v10697_v57 = vpop.permute.xlu1 %1840 }
 0x2c1   : > { %13690 = vst [vmem:[#allocation137_spill] sm:$0xff] %v10697_v57 }
 0x2c2   : > { %v10699_v27 = vpop.permute.xlu0 %1846  ;;  %2108 = vrot.lane.b32.xlu1 %v1131_v10, %s9499_s27  ;;  %v1104_v10 = vld [vmem:[#allocation2 + $0x139] sm:$0xff] }
 0x2c3   : > { %13691 = vst [vmem:[#allocation138_spill] sm:$0xff] %v10699_v27  ;;  %v1103_v27 = vld [vmem:[#allocation2 + $0x129] sm:$0xff] }
 0x2c4   : > { %1986 = vrot.lane.b32.xlu0 %v1102_v38, %s9498_s24  ;;  %v10703_v1 = vpop.permute.xlu1 %1844 }
 0x2c5   : > { %13692 = vst [vmem:[#allocation139_spill] sm:$0xff] %v10703_v1 }
 0x2c6   : > { %v10705_v31 = vpop.permute.xlu0 %1850  ;;  %2112 = vrot.lane.b32.xlu1 %v1133_v4, %s9499_s27  ;;  %v1136_v4 = vld [vmem:[#allocation2 + $0x13a] sm:$0xff] }
 0x2c7   : > { %13693 = vst [vmem:[#allocation140_spill] sm:$0xff] %v10705_v31  ;;  %v1135_v31 = vld [vmem:[#allocation2 + $0x12a] sm:$0xff] }
 0x2c8   : > { %2114 = vrot.lane.b32.xlu0 %v1134_v50, %s9499_s27  ;;  %v10709_v51 = vpop.permute.xlu1 %1848 }
 0x2c9   : > { %13694 = vst [vmem:[#allocation141_spill] sm:$0xff] %v10709_v51 }
 0x2ca   : > { %v10711_v52 = vpop.permute.xlu0 %1854  ;;  %1988 = vrot.lane.b32.xlu1 %v1103_v27, %s9498_s24  ;;  %v1106_v27 = vld [vmem:[#allocation2 + $0x151] sm:$0xff] }
 0x2cb   : > { %13695 = vst [vmem:[#allocation142_spill] sm:$0xff] %v10711_v52  ;;  %v1105_v52 = vld [vmem:[#allocation2 + $0x141] sm:$0xff] }
 0x2cc   : > { %1990 = vrot.lane.b32.xlu0 %v1104_v10, %s9498_s24  ;;  %v10715_v38 = vpop.permute.xlu1 %1852 }
 0x2cd   : > { %13696 = vst [vmem:[#allocation143_spill] sm:$0xff] %v10715_v38 }
 0x2ce   : > { %v10717_v1 = vpop.permute.xlu0 %1858  ;;  %2116 = vrot.lane.b32.xlu1 %v1135_v31, %s9499_s27  ;;  %v1138_v31 = vld [vmem:[#allocation2 + $0x152] sm:$0xff] }
 0x2cf   : > { %13697 = vst [vmem:[#allocation144_spill] sm:$0xff] %v10717_v1  ;;  %v1137_v1 = vld [vmem:[#allocation2 + $0x142] sm:$0xff] }
 0x2d0   : > { %2118 = vrot.lane.b32.xlu0 %v1136_v4, %s9499_s27  ;;  %v10721_v50 = vpop.permute.xlu1 %1856 }
 0x2d1   : > { %13698 = vst [vmem:[#allocation145_spill] sm:$0xff] %v10721_v50 }
 0x2d2   : > { %v10723_v51 = vpop.permute.xlu0 %1862  ;;  %1992 = vrot.lane.b32.xlu1 %v1105_v52, %s9498_s24  ;;  %v1108_v52 = vld [vmem:[#allocation2 + $0x169] sm:$0xff] }
 0x2d3   : > { %13699 = vst [vmem:[#allocation146_spill] sm:$0xff] %v10723_v51  ;;  %v1107_v51 = vld [vmem:[#allocation2 + $0x159] sm:$0xff] }
 0x2d4   : > { %1994 = vrot.lane.b32.xlu0 %v1106_v27, %s9498_s24  ;;  %v10727_v10 = vpop.permute.xlu1 %1860 }
 0x2d5   : > { %13700 = vst [vmem:[#allocation147_spill] sm:$0xff] %v10727_v10 }
 0x2d6   : > { %v10729_v38 = vpop.permute.xlu0 %1866  ;;  %2120 = vrot.lane.b32.xlu1 %v1137_v1, %s9499_s27  ;;  %v1140_v1 = vld [vmem:[#allocation2 + $0x16a] sm:$0xff] }
 0x2d7   : > { %13701 = vst [vmem:[#allocation148_spill] sm:$0xff] %v10729_v38  ;;  %v1139_v38 = vld [vmem:[#allocation2 + $0x15a] sm:$0xff] }
 0x2d8   : > { %2122 = vrot.lane.b32.xlu0 %v1138_v31, %s9499_s27  ;;  %v10733_v4 = vpop.permute.xlu1 %1864 }
 0x2d9   : > { %13702 = vst [vmem:[#allocation149_spill] sm:$0xff] %v10733_v4 }
 0x2da   : > { %v10735_v50 = vpop.permute.xlu0 %1870  ;;  %1996 = vrot.lane.b32.xlu1 %v1107_v51, %s9498_s24 }
 0x2db   : > { %13703 = vst [vmem:[#allocation150_spill] sm:$0xff] %v10735_v50  ;;  %v1109_v50 = vld [vmem:[#allocation2 + $0x171] sm:$0xff] }
 0x2dc   : > { %1998 = vrot.lane.b32.xlu0 %v1108_v52, %s9498_s24  ;;  %v10739_v27 = vpop.permute.xlu1 %1868 }
 0x2dd   : > { %13704 = vst [vmem:[#allocation151_spill] sm:$0xff] %v10739_v27 }
 0x2de   : > { %v10741_v10 = vpop.permute.xlu0 %1874  ;;  %2124 = vrot.lane.b32.xlu1 %v1139_v38, %s9499_s27 }
 0x2df   : > { %13705 = vst [vmem:[#allocation152_spill] sm:$0xff] %v10741_v10  ;;  %v1141_v10 = vld [vmem:[#allocation2 + $0x172] sm:$0xff] }
 0x2e0   : > { %2126 = vrot.lane.b32.xlu0 %v1140_v1, %s9499_s27  ;;  %v10745_v31 = vpop.permute.xlu1 %1872  ;;  %v1112_v1 = vld [vmem:[#allocation2 + $0x199] sm:$0xff] }
 0x2e1   : > { %13706 = vst [vmem:[#allocation153_spill] sm:$0xff] %v10745_v31  ;;  %v1111_v31 = vld [vmem:[#allocation2 + $0x189] sm:$0xff] }
 0x2e2   : > { %v10747_v4 = vpop.permute.xlu0 %1878  ;;  %2000 = vrot.lane.b32.xlu1 %v1109_v50, %s9498_s24  ;;  %v1144_v50 = vld [vmem:[#allocation2 + $0x19a] sm:$0xff] }
 0x2e3   : > { %13707 = vst [vmem:[#allocation154_spill] sm:$0xff] %v10747_v4 }
 0x2e4   : > { %2002 = vrot.lane.b32.xlu0 %v10284_v55, %s9498_s24  ;;  %v10752_v51 = vpop.permute.xlu1 %1876  ;;  %v13710_v55 = vmov 0.0  }
 0x2e5   : > { %13708 = vst [vmem:[#allocation155_spill] sm:$0xff] %v10752_v51  ;;  %395 = vst.msk [vmem:[#allocation3 + $0x20] sm:$0xff] %vm389_vm2, %v13710_v55  ;;  %v1145_v51 = vld [vmem:[#allocation2 + $0x1a2] sm:$0xff] }
 0x2e6   : > { %v10754_v52 = vpop.permute.xlu0 %1946  ;;  %2128 = vrot.lane.b32.xlu1 %v1141_v10, %s9499_s27  ;;  %396 = vst.msk [vmem:[#allocation3 + $0x28] sm:$0x3] %vm392_vm3, %v13710_v55  ;;  %393 = vst.msk [vmem:[#allocation3 + $0x10] sm:$0x3] %vm392_vm3, %v13710_v55 }
 0x2e7   : > { %390 = vst.msk [vmem:[#allocation3] sm:$0xff] %vm389_vm2, %v13710_v55  ;;  %391 = vst.msk [vmem:[#allocation3 + $0x8] sm:$0xff] %vm389_vm2, %v13710_v55 }
 0x2e8   : > { %2130 = vrot.lane.b32.xlu0 %v10414_v28, %s9499_s27  ;;  %v10759_v38 = vpop.permute.xlu1 %1880  ;;  %394 = vst.msk [vmem:[#allocation3 + $0x18] sm:$0xff] %vm389_vm2, %v13710_v55  ;;  %397 = vst.msk [vmem:[#allocation3 + $0x30] sm:$0xff] %vm389_vm2, %v13710_v55 }
 0x2e9   : > { %13709 = vst [vmem:[#allocation156_spill] sm:$0xff] %v10759_v38  ;;  %398 = vst.msk [vmem:[#allocation3 + $0x38] sm:$0xff] %vm389_vm2, %v13710_v55 }
 0x2ea   : > { %v10761_v4 = vpop.permute.xlu0 %1950  ;;  %2004 = vrot.lane.b32.xlu1 %v1111_v31, %s9498_s24  ;;  %399 = vst.msk [vmem:[#allocation3 + $0x40] sm:$0x3] %vm392_vm3, %v13710_v55  ;;  %402 = vst.msk [vmem:[#allocation3 + $0x58] sm:$0x3] %vm392_vm3, %v13710_v55  ;;  %v1113_v31 = vld [vmem:[#allocation2 + $0x1a1] sm:$0xff] }
 0x2eb   : > { %400 = vst.msk [vmem:[#allocation3 + $0x48] sm:$0xff] %vm389_vm2, %v13710_v55  ;;  %401 = vst.msk [vmem:[#allocation3 + $0x50] sm:$0xff] %vm389_vm2, %v13710_v55 }
 0x2ec   : > { %2006 = vrot.lane.b32.xlu0 %v1112_v1, %s9498_s24  ;;  %403 = vst.msk [vmem:[#allocation3 + $0x60] sm:$0xff] %vm389_vm2, %v13710_v55  ;;  %404 = vst.msk [vmem:[#allocation3 + $0x68] sm:$0xff] %vm389_vm2, %v13710_v55  ;;  %v10873_v28 = vpop.permute.xlu1 %1948 }
 0x2ed   : > { %405 = vst.msk [vmem:[#allocation3 + $0x70] sm:$0x3] %vm392_vm3, %v13710_v55  ;;  %408 = vst.msk [vmem:[#allocation3 + $0x88] sm:$0x3] %vm392_vm3, %v13710_v55 }
 0x2ee   : > { %406 = vst.msk [vmem:[#allocation3 + $0x78] sm:$0xff] %vm389_vm2, %v13710_v55  ;;  %407 = vst.msk [vmem:[#allocation3 + $0x80] sm:$0xff] %vm389_vm2, %v13710_v55  ;;  %v10875_v10 = vpop.permute.xlu0 %1954  ;;  %2132 = vrot.lane.b32.xlu1 %v10429_v34, %s9499_s27 }
 0x2ef   : > { %409 = vst.msk [vmem:[#allocation3 + $0x90] sm:$0xff] %vm389_vm2, %v13710_v55  ;;  %410 = vst.msk [vmem:[#allocation3 + $0x98] sm:$0xff] %vm389_vm2, %v13710_v55 }
 0x2f0   : > { %411 = vst.msk [vmem:[#allocation3 + $0xa0] sm:$0x3] %vm392_vm3, %v13710_v55  ;;  %414 = vst.msk [vmem:[#allocation3 + $0xb8] sm:$0x3] %vm392_vm3, %v13710_v55  ;;  %2134 = vrot.lane.b32.xlu0 %v1144_v50, %s9499_s27  ;;  %v10880_v1 = vpop.permute.xlu1 %1952 }
 0x2f1   : > { %412 = vst.msk [vmem:[#allocation3 + $0xa8] sm:$0xff] %vm389_vm2, %v13710_v55  ;;  %413 = vst.msk [vmem:[#allocation3 + $0xb0] sm:$0xff] %vm389_vm2, %v13710_v55 }
 0x2f2   : > { %415 = vst.msk [vmem:[#allocation3 + $0xc0] sm:$0xff] %vm389_vm2, %v13710_v55  ;;  %416 = vst.msk [vmem:[#allocation3 + $0xc8] sm:$0xff] %vm389_vm2, %v13710_v55  ;;  %v10882_v38 = vpop.permute.xlu0 %1958  ;;  %2008 = vrot.lane.b32.xlu1 %v1113_v31, %s9498_s24  ;;  %v857_v31 = vld [vmem:[#allocation2] sm:$0xff]  ;;  %s9500_s24 = smov 4  }
 0x2f3   : > { %417 = vst.msk [vmem:[#allocation3 + $0xd0] sm:$0x3] %vm392_vm3, %v13710_v55  ;;  %420 = vst.msk [vmem:[#allocation3 + $0xe8] sm:$0x3] %vm392_vm3, %v13710_v55  ;;  %v2170_v58 = vsel %vm333_vm0, %v857_v31, %v9938_v11 }
 0x2f4   : > { %418 = vst.msk [vmem:[#allocation3 + $0xd8] sm:$0xff] %vm389_vm2, %v13710_v55  ;;  %419 = vst.msk [vmem:[#allocation3 + $0xe0] sm:$0xff] %vm389_vm2, %v13710_v55  ;;  %v10885_v27 = vpop.permute.xlu1 %1956 }
 0x2f5   : > { %421 = vst.msk [vmem:[#allocation3 + $0xf0] sm:$0xff] %vm389_vm2, %v13710_v55  ;;  %422 = vst.msk [vmem:[#allocation3 + $0xf8] sm:$0xff] %vm389_vm2, %v13710_v55 }
 0x2f6   : > { %423 = vst.msk [vmem:[#allocation3 + $0x100] sm:$0x3] %vm392_vm3, %v13710_v55  ;;  %426 = vst.msk [vmem:[#allocation3 + $0x118] sm:$0x3] %vm392_vm3, %v13710_v55  ;;  %2136 = vrot.lane.b32.xlu1 %v1145_v51, %s9499_s27  ;;  %s9433_s27 = scalar_lea.vmem %s9432_s26, 64 }
 0x2f7   : > { %424 = vst.msk [vmem:[#allocation3 + $0x108] sm:$0xff] %vm389_vm2, %v13710_v55  ;;  %425 = vst.msk [vmem:[#allocation3 + $0x110] sm:$0xff] %vm389_vm2, %v13710_v55 }
 0x2f8   : > { %427 = vst.msk [vmem:[#allocation3 + $0x120] sm:$0xff] %vm389_vm2, %v13710_v55  ;;  %428 = vst.msk [vmem:[#allocation3 + $0x128] sm:$0xff] %vm389_vm2, %v13710_v55  ;;  %v10890_v57 = vpop.permute.xlu1 %1960 }
 0x2f9   : > { %429 = vst.msk [vmem:[#allocation3 + $0x130] sm:$0x3] %vm392_vm3, %v13710_v55  ;;  %432 = vst.msk [vmem:[#allocation3 + $0x148] sm:$0x3] %vm392_vm3, %v13710_v55 }
 0x2fa   : > { %430 = vst.msk [vmem:[#allocation3 + $0x138] sm:$0xff] %vm389_vm2, %v13710_v55  ;;  %431 = vst.msk [vmem:[#allocation3 + $0x140] sm:$0xff] %vm389_vm2, %v13710_v55 }
 0x2fb   : > { %433 = vst.msk [vmem:[#allocation3 + $0x150] sm:$0xff] %vm389_vm2, %v13710_v55  ;;  %434 = vst.msk [vmem:[#allocation3 + $0x158] sm:$0xff] %vm389_vm2, %v13710_v55 }
 0x2fc   : > { %435 = vst.msk [vmem:[#allocation3 + $0x160] sm:$0x3] %vm392_vm3, %v13710_v55  ;;  %438 = vst.msk [vmem:[#allocation3 + $0x178] sm:$0x3] %vm392_vm3, %v13710_v55  ;;  %v10894_v34 = vpop.permute.xlu1 %1964 }
 0x2fd   : > { %436 = vst.msk [vmem:[#allocation3 + $0x168] sm:$0xff] %vm389_vm2, %v13710_v55  ;;  %437 = vst.msk [vmem:[#allocation3 + $0x170] sm:$0xff] %vm389_vm2, %v13710_v55 }
 0x2fe   : > { %439 = vst.msk [vmem:[#allocation3 + $0x180] sm:$0xff] %vm389_vm2, %v13710_v55  ;;  %440 = vst.msk [vmem:[#allocation3 + $0x188] sm:$0xff] %vm389_vm2, %v13710_v55 }
 0x2ff   : > { %441 = vst.msk [vmem:[#allocation3 + $0x190] sm:$0x3] %vm392_vm3, %v13710_v55  ;;  %444 = vst.msk [vmem:[#allocation3 + $0x1a8] sm:$0x3] %vm392_vm3, %v13710_v55  ;;  %vm8415_vm3 = vcmask 261312  }
 0x300   : > { %442 = vst.msk [vmem:[#allocation3 + $0x198] sm:$0xff] %vm389_vm2, %v13710_v55  ;;  %443 = vst.msk [vmem:[#allocation3 + $0x1a0] sm:$0xff] %vm389_vm2, %v13710_v55  ;;  %v10887_v55 = vpop.permute.xlu0 %1962  ;;  %v10898_v25 = vpop.permute.xlu1 %1968 }
 0x301   : > { %13713 = vst [vmem:[#allocation159_spill] sm:$0xff] %v10898_v25  ;;  %v13730_v25 = vld [vmem:[#allocation25_spill] sm:$0xff] }
 0x304   : > { %v10892_v21 = vpop.permute.xlu0 %1966  ;;  %v10902_v33 = vpop.permute.xlu1 %1972 }
 0x305   : > { %13711 = vst [vmem:[#allocation157_spill] sm:$0xff] %v10892_v21  ;;  %13715 = vst [vmem:[#allocation161_spill] sm:$0xff] %v10902_v33  ;;  %v2171_v21 = vsel %vm333_vm0, %v858_v61, %v9946_v19 }
 0x308   : > { %v10896_v50 = vpop.permute.xlu0 %1970 }
 0x309   : > { %13712 = vst [vmem:[#allocation158_spill] sm:$0xff] %v10896_v50  ;;  %v2203_v50 = vsel %vm2202_vm4, %v2170_v58, %v9960_v23  ;;  %v13719_v23 = vld [vmem:[#allocation21_spill] sm:$0xff] }
 0x30a   : > { %v2236_v33 = vsel %vm2235_vm5, %v2203_v50, %v9993_v36  ;;  %v9382_v50 = vld [vmem:[#allocation2 + $0x18] sm:$0xff] }
 0x30b   : > { %v2269_v31 = vsel %vm2268_vm6, %v2236_v33, %v10011_v48  ;;  %v9383_v33 = vld [vmem:[#allocation2 + $0x20] sm:$0xff] }
 0x30c   : > { %v10900_v0 = vpop.permute.xlu0 %1974  ;;  %v2302_v19 = vsel %vm2301_vm7, %v2269_v31, %v10029_v56  ;;  %v13722_v31 = vld [vmem:[#allocation8_spill] sm:$0xff] }
 0x30d   : > { %13714 = vst [vmem:[#allocation160_spill] sm:$0xff] %v10900_v0  ;;  %v10912_v0 = vpop.permute.xlu1 %1976  ;;  %v2335_v36 = vsel %vm2334_vm8, %v2302_v19, %v10651_v9  ;;  %v13724_v19 = vld [vmem:[#allocation12_spill] sm:$0xff] }
 0x30e   : > { %13717 = vst [vmem:[#allocation163_spill] sm:$0xff] %v10912_v0  ;;  %v13725_v0 = vld [vmem:[#allocation11_spill] sm:$0xff] }
 0x310   : > { %v10906_v51 = vpop.permute.xlu0 %1978 }
 0x311   : > { %13716 = vst [vmem:[#allocation162_spill] sm:$0xff] %v10906_v51  ;;  %v2204_v51 = vsel %vm2202_vm4, %v2171_v21, %v9956_v22  ;;  %v10928_v58 = vpop.permute.xlu1 %1980  ;;  %v2368_v22 = vsel %vm2367_vm9, %v2335_v36, %v10754_v52  ;;  %v9384_v52 = vld [vmem:[#allocation2 + $0x30] sm:$0xff] }
 0x312   : > { %v2237_v61 = vsel %vm2235_vm5, %v2204_v51, %v13719_v23  ;;  %13720 = vst [vmem:[#allocation21_spill] sm:$0xff] %v10928_v58  ;;  %v2173_v51 = vsel %vm333_vm0, %v9383_v33, %v13722_v31  ;;  %v13723_v23 = vld [vmem:[#allocation15_spill] sm:$0xff]  ;;  %v13727_v36 = vld [vmem:[#allocation22_spill] sm:$0xff]  ;;  %v13729_v31 = vld [vmem:[#allocation37_spill] sm:$0xff] }
 0x313   : > { %v2270_v9 = vsel %vm2268_vm6, %v2237_v61, %v13723_v23  ;;  %v2206_v58 = vsel %vm2202_vm4, %v2173_v51, %v13724_v19  ;;  %v13731_v19 = vld [vmem:[#allocation26_spill] sm:$0xff] }
 0x314   : > { %v10916_v11 = vpop.permute.xlu0 %1982  ;;  %v2239_v61 = vsel %vm2235_vm5, %v2206_v58, %v13729_v31 }
 0x315   : > { %13718 = vst [vmem:[#allocation164_spill] sm:$0xff] %v10916_v11  ;;  %v13721_v11 = vld [vmem:[#allocation20_spill] sm:$0xff] }
 0x316   : > { %v2172_v48 = vsel %vm333_vm0, %v9382_v50, %v13721_v11  ;;  %v10944_v50 = vpop.permute.xlu1 %1984 }
 0x317   : > { %v2205_v11 = vsel %vm2202_vm4, %v2172_v48, %v13725_v0  ;;  %13726 = vst [vmem:[#allocation20_spill] sm:$0xff] %v10944_v50  ;;  %v13732_v48 = vld [vmem:[#allocation34_spill] sm:$0xff] }
 0x318   : > { %v2075_v21 = vpop.permute.xlu0 %2074 }
 0x319   : > { %v2401_v56 = vsel %vm2400_vm10, %v2368_v22, %v2075_v21  ;;  %v2174_v22 = vsel %vm333_vm0, %v9384_v52, %v13727_v36  ;;  %v13728_v21 = vld [vmem:[#allocation30_spill] sm:$0xff]  ;;  %v2303_v52 = vsel %vm2301_vm7, %v2270_v9, %v13733_v53  ;;  %v13734_v36 = vld [vmem:[#allocation29_spill] sm:$0xff] }
 0x31a   : > { %9066 = vmatprep.mubr.msk.f32.mxu1 %vm2439_vm11, %v2401_v56  ;;  %v2238_v33 = vsel %vm2235_vm5, %v2205_v11, %v13728_v21  ;;  %v9385_v56 = vld [vmem:[#allocation2 + $0x38] sm:$0xff]  ;;  %v2207_v0 = vsel %vm2202_vm4, %v2174_v22, %v13731_v19  ;;  %v9386_v21 = vld [vmem:[#allocation2 + $0x48] sm:$0xff]  ;;  %v9387_v22 = vld [vmem:[#allocation2 + $0x50] sm:$0xff] }
 0x31b   : > { %v2175_v51 = vsel %vm333_vm0, %v9385_v56, %v13730_v25  ;;  %v2271_v50 = vsel %vm2268_vm6, %v2238_v33, %v13732_v48  ;;  %v2176_v58 = vsel %vm333_vm0, %v9386_v21, %v13735_v62  ;;  %v2336_v25 = vsel %vm2334_vm8, %v2303_v52, %v10661_v13  ;;  %v13736_v56 = vld [vmem:[#allocation41_spill] sm:$0xff]  ;;  %v2077_v62 = vpop.permute.xlu1 %2076  ;;  %v13738_v48 = vld [vmem:[#allocation46_spill] sm:$0xff] }
 0x31c   : > { %v2079_v23 = vpop.permute.xlu0 %2078  ;;  %v2208_v11 = vsel %vm2202_vm4, %v2175_v51, %v13734_v36  ;;  %v2304_v31 = vsel %vm2301_vm7, %v2271_v50, %v10524_v7  ;;  %v2177_v33 = vsel %vm333_vm0, %v9387_v22, %v13736_v56  ;;  %v13737_v19 = vld [vmem:[#allocation33_spill] sm:$0xff]  ;;  %v2369_v51 = vsel %vm2367_vm9, %v2336_v25, %v10873_v28  ;;  %v13743_v56 = vld [vmem:[#allocation54_spill] sm:$0xff] }
 0x31d   : > { %v2272_v53 = vsel %vm2268_vm6, %v2239_v61, %v13737_v19  ;;  %v2337_v9 = vsel %vm2334_vm8, %v2304_v31, %v10657_v49  ;;  %v2240_v7 = vsel %vm2235_vm5, %v2207_v0, %v13738_v48  ;;  %v13739_v50 = vld [vmem:[#allocation53_spill] sm:$0xff]  ;;  %v2402_v36 = vsel %vm2400_vm10, %v2369_v51, %v2077_v62  ;;  %v13740_v61 = vld [vmem:[#allocation42_spill] sm:$0xff] }
 0x31e   : > { %v2241_v13 = vsel %vm2235_vm5, %v2208_v11, %v13739_v50  ;;  %v2370_v52 = vsel %vm2367_vm9, %v2337_v9, %v10761_v4  ;;  %v2209_v22 = vsel %vm2202_vm4, %v2176_v58, %v13740_v61  ;;  %v13741_v49 = vld [vmem:[#allocation50_spill] sm:$0xff]  ;;  %v2305_v28 = vsel %vm2301_vm7, %v2272_v53, %v10537_v8  ;;  %9067 = vmatmul.mubr.msk.f32.vlgmr.msra.gmra.mrb[16].mxu1 %vm2439_vm11, %v2402_v36  ;;  %v13742_v11 = vld [vmem:[#allocation45_spill] sm:$0xff]  ;;  %v9388_v4 = vld [vmem:[#allocation2 + $0x60] sm:$0xff] }
 0x31f   : > { %v2273_v31 = vsel %vm2268_vm6, %v2240_v7, %v13741_v49  ;;  %v2403_v0 = vsel %vm2400_vm10, %v2370_v52, %v2079_v23  ;;  %v2210_v25 = vsel %vm2202_vm4, %v2177_v33, %v13742_v11  ;;  %v2178_v19 = vsel %vm333_vm0, %v9388_v4, %v13743_v56  ;;  %v9389_v8 = vld [vmem:[#allocation2 + $0x68] sm:$0xff]  ;;  %v2081_v7 = vpop.permute.xlu1 %2080 }
 0x320   : > { %v2083_v21 = vpop.permute.xlu0 %2082  ;;  %v2306_v58 = vsel %vm2301_vm7, %v2273_v31, %v10532_v5  ;;  %v2338_v9 = vsel %vm2334_vm8, %v2305_v28, %v10668_v6  ;;  %9069 = vmatprep.mubr.msk.f32.mxu1 %vm2439_vm11, %v2403_v0  ;;  %v13744_v53 = vld [vmem:[#allocation57_spill] sm:$0xff]  ;;  %v13746_v5 = vld [vmem:[#allocation62_spill] sm:$0xff] }
 0x321   : > { %v2179_v23 = vsel %vm333_vm0, %v9389_v8, %v13744_v53  ;;  %v13745_v51 = vld [vmem:[#allocation49_spill] sm:$0xff]  ;;  %v2339_v33 = vsel %vm2334_vm8, %v2306_v58, %v10663_v60  ;;  %v2371_v48 = vsel %vm2367_vm9, %v2338_v9, %v10880_v1  ;;  %v2242_v50 = vsel %vm2235_vm5, %v2209_v22, %v13746_v5  ;;  %v13749_v60 = vld [vmem:[#allocation66_spill] sm:$0xff] }
 0x322   : > { %v2274_v62 = vsel %vm2268_vm6, %v2241_v13, %v13745_v51  ;;  %v13747_v6 = vld [vmem:[#allocation69_spill] sm:$0xff]  ;;  %v2372_v36 = vsel %vm2367_vm9, %v2339_v33, %v10875_v10  ;;  %v2404_v61 = vsel %vm2400_vm10, %v2371_v48, %v2081_v7  ;;  %v13748_v13 = vld [vmem:[#allocation58_spill] sm:$0xff]  ;;  %v2275_v28 = vsel %vm2268_vm6, %v2242_v50, %v13749_v60 }
 0x323   : > { %v2243_v52 = vsel %vm2235_vm5, %v2210_v25, %v13747_v6  ;;  %v2211_v31 = vsel %vm2202_vm4, %v2178_v19, %v13748_v13  ;;  %v2307_v1 = vsel %vm2301_vm7, %v2274_v62, %v10544_v45  ;;  %v2405_v22 = vsel %vm2400_vm10, %v2372_v36, %v2083_v21  ;;  %9070 = vmatmul.mubr.msk.f32.gmra.mrb[18].mxu1 %vm2439_vm11, %v2404_v61  ;;  %v13750_v0 = vld [vmem:[#allocation61_spill] sm:$0xff]  ;;  %v9390_v10 = vld [vmem:[#allocation2 + $0x78] sm:$0xff]  ;;  %v9391_v45 = vld [vmem:[#allocation2 + $0x80] sm:$0xff] }
 0x324   : > { %v2087_v49 = vpop.permute.xlu0 %2086  ;;  %v2212_v11 = vsel %vm2202_vm4, %v2179_v23, %v13750_v0  ;;  %v13751_v25 = vld [vmem:[#allocation70_spill] sm:$0xff]  ;;  %v2308_v56 = vsel %vm2301_vm7, %v2275_v28, %v10539_v17  ;;  %v2340_v19 = vsel %vm2334_vm8, %v2307_v1, %v10675_v16  ;;  %9072 = vmatprep.mubr.msk.f32.mxu1 %vm2439_vm11, %v2405_v22  ;;  %v2181_v21 = vsel %vm333_vm0, %v9391_v45, %v10298_v32  ;;  %v13752_v58 = vld [vmem:[#allocation65_spill] sm:$0xff]  ;;  %v2085_v23 = vpop.permute.xlu1 %2084 }
 0x325   : > { %v2180_v4 = vsel %vm333_vm0, %v9390_v10, %v13751_v25  ;;  %v2276_v9 = vsel %vm2268_vm6, %v2243_v52, %v13752_v58  ;;  %v2341_v8 = vsel %vm2334_vm8, %v2308_v56, %v10670_v40  ;;  %v2373_v53 = vsel %vm2367_vm9, %v2340_v19, %v10885_v27  ;;  %v13753_v33 = vld [vmem:[#allocation73_spill] sm:$0xff]  ;;  %v13761_v58 = vld [vmem:[#allocation102_spill] sm:$0xff] }
 0x326   : > { %v2244_v17 = vsel %vm2235_vm5, %v2211_v31, %v10318_v26  ;;  %v2245_v16 = vsel %vm2235_vm5, %v2212_v11, %v10348_v24  ;;  %v2374_v51 = vsel %vm2367_vm9, %v2341_v8, %v10882_v38  ;;  %v2406_v32 = vsel %vm2400_vm10, %v2373_v53, %v2085_v23  ;;  %v9392_v38 = vld [vmem:[#allocation2 + $0x90] sm:$0xff]  ;;  %v13762_v8 = vld [vmem:[#allocation115_spill] sm:$0xff] }
 0x327   : > { %v2213_v48 = vsel %vm2202_vm4, %v2180_v4, %v13753_v33  ;;  %v2277_v40 = vsel %vm2268_vm6, %v2244_v17, %v10334_v20  ;;  %v2309_v27 = vsel %vm2301_vm7, %v2276_v9, %v10556_v15  ;;  %v2407_v26 = vsel %vm2400_vm10, %v2374_v51, %v2087_v49  ;;  %9073 = vmatmul.mubr.msk.f32.gmra.mrb[20].mxu1 %vm2439_vm11, %v2406_v32  ;;  %v9393_v15 = vld [vmem:[#allocation2 + $0x98] sm:$0xff]  ;;  %v13756_v22 = vld [vmem:[#allocation157_spill] sm:$0xff]  ;;  %v13766_v33 = vld [vmem:[#allocation136_spill] sm:$0xff] }
 0x328   : > { %v2091_v62 = vpop.permute.xlu0 %2090  ;;  %v2214_v24 = vsel %vm2202_vm4, %v2181_v21, %v10316_v41  ;;  %v2182_v7 = vsel %vm333_vm0, %v9392_v38, %v10350_v35  ;;  %v2310_v5 = vsel %vm2301_vm7, %v2277_v40, %v10546_v59  ;;  %v2342_v20 = vsel %vm2334_vm8, %v2309_v27, %v10683_v42  ;;  %9075 = vmatprep.mubr.msk.f32.mxu1 %vm2439_vm11, %v2407_v26  ;;  %v2089_v52 = vpop.permute.xlu1 %2088  ;;  %v13760_v19 = vld [vmem:[#allocation93_spill] sm:$0xff]  ;;  %v9396_v21 = vld [vmem:[#allocation2 + $0xc0] sm:$0xff] }
 0x329   : > { %v2183_v50 = vsel %vm333_vm0, %v9393_v15, %v10366_v12  ;;  %v2278_v6 = vsel %vm2268_vm6, %v2245_v16, %v10332_v44  ;;  %v2343_v41 = vsel %vm2334_vm8, %v2310_v5, %v10677_v3  ;;  %v2375_v35 = vsel %vm2367_vm9, %v2342_v20, %v10890_v57  ;;  %v13763_v23 = vld [vmem:[#allocation137_spill] sm:$0xff]  ;;  %v13764_v16 = vld [vmem:[#allocation104_spill] sm:$0xff]  ;;  %v13767_v40 = vld [vmem:[#allocation159_spill] sm:$0xff] }
 0x32a   : > { %v2246_v59 = vsel %vm2235_vm5, %v2213_v48, %v10386_v14  ;;  %v2247_v42 = vsel %vm2235_vm5, %v2214_v24, %v10418_v2  ;;  %v2376_v36 = vsel %vm2367_vm9, %v2343_v41, %v10887_v55  ;;  %v2408_v12 = vsel %vm2400_vm10, %v2375_v35, %v2089_v52  ;;  %v9394_v55 = vld [vmem:[#allocation2 + $0xa8] sm:$0xff]  ;;  %v13769_v5 = vld [vmem:[#allocation106_spill] sm:$0xff] }
 0x32b   : > { %v2215_v44 = vsel %vm2202_vm4, %v2182_v7, %v10368_v47  ;;  %v2279_v3 = vsel %vm2268_vm6, %v2246_v59, %v10402_v39  ;;  %v2311_v57 = vsel %vm2301_vm7, %v2278_v6, %v10568_v18  ;;  %v2409_v14 = vsel %vm2400_vm10, %v2376_v36, %v2091_v62  ;;  %9076 = vmatmul.mubr.msk.f32.gmra.mrb[22].mxu1 %vm2439_vm11, %v2408_v12  ;;  %v9395_v18 = vld [vmem:[#allocation2 + $0xb0] sm:$0xff]  ;;  %v9397_v24 = vld [vmem:[#allocation2 + $0xc8] sm:$0xff] }
 0x32c   : > { %v2095_v61 = vpop.permute.xlu0 %2094  ;;  %v2216_v2 = vsel %vm2202_vm4, %v2183_v50, %v10384_v43  ;;  %v2184_v49 = vsel %vm333_vm0, %v9394_v55, %v10420_v63  ;;  %v2312_v47 = vsel %vm2301_vm7, %v2279_v3, %v10558_v37  ;;  %v2344_v39 = vsel %vm2334_vm8, %v2311_v57, %v10690_v30  ;;  %9078 = vmatprep.mubr.msk.f32.mxu1 %vm2439_vm11, %v2409_v14  ;;  %v2093_v60 = vpop.permute.xlu1 %2092  ;;  %v13754_v37 = vld [vmem:[#allocation94_spill] sm:$0xff]  ;;  %v13755_v30 = vld [vmem:[#allocation101_spill] sm:$0xff]  ;;  %v13775_v57 = vld [vmem:[#allocation107_spill] sm:$0xff] }
 0x32d   : > { %v2185_v13 = vsel %vm333_vm0, %v9395_v18, %v10434_v54  ;;  %v2280_v31 = vsel %vm2268_vm6, %v2247_v42, %v10400_v46  ;;  %v2345_v43 = vsel %vm2334_vm8, %v2312_v47, %v10685_v29  ;;  %v2377_v63 = vsel %vm2367_vm9, %v2344_v39, %v10894_v34  ;;  %v13757_v46 = vld [vmem:[#allocation90_spill] sm:$0xff]  ;;  %v13759_v34 = vld [vmem:[#allocation116_spill] sm:$0xff]  ;;  %v13765_v32 = vld [vmem:[#allocation97_spill] sm:$0xff] }
 0x32e   : > { %v2248_v28 = vsel %vm2235_vm5, %v2215_v44, %v13754_v37  ;;  %v2249_v1 = vsel %vm2235_vm5, %v2216_v2, %v13755_v30  ;;  %v2378_v0 = vsel %vm2367_vm9, %v2345_v43, %v13756_v22  ;;  %v2410_v54 = vsel %vm2400_vm10, %v2377_v63, %v2093_v60  ;;  %v13758_v29 = vld [vmem:[#allocation98_spill] sm:$0xff]  ;;  %v13768_v38 = vld [vmem:[#allocation105_spill] sm:$0xff]  ;;  %v13774_v44 = vld [vmem:[#allocation16_spill] sm:$0xff] }
 0x32f   : > { %v2217_v10 = vsel %vm2202_vm4, %v2184_v49, %v13757_v46  ;;  %v2281_v25 = vsel %vm2268_vm6, %v2248_v28, %v13758_v29  ;;  %v2313_v4 = vsel %vm2301_vm7, %v2280_v31, %v13759_v34  ;;  %v2411_v56 = vsel %vm2400_vm10, %v2378_v0, %v2095_v61  ;;  %9079 = vmatmul.mubr.msk.f32.gmra.mrb[24].mxu1 %vm2439_vm11, %v2410_v54  ;;  %v13770_v15 = vld [vmem:[#allocation158_spill] sm:$0xff]  ;;  %v13772_v59 = vld [vmem:[#allocation113_spill] sm:$0xff]  ;;  %v13777_v49 = vld [vmem:[#allocation139_spill] sm:$0xff] }
 0x330   : > { %v2099_v11 = vpop.permute.xlu0 %2098  ;;  %v2218_v45 = vsel %vm2202_vm4, %v2185_v13, %v13760_v19  ;;  %v2186_v9 = vsel %vm333_vm0, %v9396_v21, %v13761_v58  ;;  %v2314_v53 = vsel %vm2301_vm7, %v2281_v25, %v13762_v8  ;;  %v2346_v17 = vsel %vm2334_vm8, %v2313_v4, %v13763_v23  ;;  %9081 = vmatprep.mubr.msk.f32.mxu1 %vm2439_vm11, %v2411_v56  ;;  %v2097_v26 = vpop.permute.xlu1 %2096  ;;  %v13771_v35 = vld [vmem:[#allocation110_spill] sm:$0xff]  ;;  %v13776_v2 = vld [vmem:[#allocation117_spill] sm:$0xff]  ;;  %v13781_v37 = vld [vmem:[#allocation160_spill] sm:$0xff] }
 0x331   : > { %v2219_v51 = vsel %vm2202_vm4, %v2186_v9, %v13764_v16  ;;  %v2282_v62 = vsel %vm2268_vm6, %v2249_v1, %v13765_v32  ;;  %v2347_v48 = vsel %vm2334_vm8, %v2314_v53, %v13766_v33  ;;  %v2379_v27 = vsel %vm2367_vm9, %v2346_v17, %v13767_v40  ;;  %v13773_v36 = vld [vmem:[#allocation118_spill] sm:$0xff]  ;;  %v13779_v13 = vld [vmem:[#allocation161_spill] sm:$0xff]  ;;  %v13782_v22 = vld [vmem:[#allocation23_spill] sm:$0xff] }
 0x332   : > { %v2187_v7 = vsel %vm333_vm0, %v9397_v24, %v13768_v38  ;;  %v2250_v20 = vsel %vm2235_vm5, %v2217_v10, %v13769_v5  ;;  %v2380_v50 = vsel %vm2367_vm9, %v2347_v48, %v13770_v15  ;;  %v2412_v6 = vsel %vm2400_vm10, %v2379_v27, %v2097_v26  ;;  %v13778_v39 = vld [vmem:[#allocation138_spill] sm:$0xff]  ;;  %v13780_v63 = vld [vmem:[#allocation109_spill] sm:$0xff]  ;;  %v13783_v54 = vld [vmem:[#allocation19_spill] sm:$0xff] }
 0x333   : > { %v2283_v52 = vsel %vm2268_vm6, %v2250_v20, %v13771_v35  ;;  %v2251_v42 = vsel %vm2235_vm5, %v2218_v45, %v13772_v59  ;;  %v2315_v12 = vsel %vm2301_vm7, %v2282_v62, %v13773_v36  ;;  %v2413_v61 = vsel %vm2400_vm10, %v2380_v50, %v2099_v11  ;;  %9082 = vmatmul.mubr.msk.f32.gmra.mrb[26].mxu1 %vm2439_vm11, %v2412_v6  ;;  %v13784_v46 = vld [vmem:[#allocation120_spill] sm:$0xff]  ;;  %v9398_v25 = vld [vmem:[#allocation2 + $0xd8] sm:$0xff]  ;;  %v13785_v34 = vld [vmem:[#allocation9_spill] sm:$0xff] }
 0x334   : > { %v2103_v41 = vpop.permute.xlu0 %2102  ;;  %v2252_v3 = vsel %vm2235_vm5, %v2219_v51, %v13774_v44  ;;  %v2220_v14 = vsel %vm2202_vm4, %v2187_v7, %v13775_v57  ;;  %v2316_v55 = vsel %vm2301_vm7, %v2283_v52, %v13776_v2  ;;  %v2348_v47 = vsel %vm2334_vm8, %v2315_v12, %v13777_v49  ;;  %9084 = vmatprep.mubr.msk.f32.mxu1 %vm2439_vm11, %v2413_v61  ;;  %v2101_v43 = vpop.permute.xlu1 %2100  ;;  %v9399_v56 = vld [vmem:[#allocation2 + $0xe0] sm:$0xff]  ;;  %v13786_v19 = vld [vmem:[#allocation10_spill] sm:$0xff]  ;;  %v13788_v9 = vld [vmem:[#allocation141_spill] sm:$0xff] }
 0x335   : > { %v2349_v18 = vsel %vm2334_vm8, %v2316_v55, %v13778_v39  ;;  %v2381_v31 = vsel %vm2367_vm9, %v2348_v47, %v13779_v13  ;;  %v2284_v60 = vsel %vm2268_vm6, %v2251_v42, %v13780_v63  ;;  %v2253_v0 = vsel %vm2235_vm5, %v2220_v14, %v13782_v22  ;;  %v13787_v21 = vld [vmem:[#allocation119_spill] sm:$0xff]  ;;  %v13789_v53 = vld [vmem:[#allocation13_spill] sm:$0xff]  ;;  %v13790_v17 = vld [vmem:[#allocation14_spill] sm:$0xff] }
 0x336   : > { %v2382_v28 = vsel %vm2367_vm9, %v2349_v18, %v13781_v37  ;;  %v2414_v30 = vsel %vm2400_vm10, %v2381_v31, %v2101_v43  ;;  %v2285_v11 = vsel %vm2268_vm6, %v2252_v3, %v13783_v54  ;;  %v2317_v10 = vsel %vm2301_vm7, %v2284_v60, %v13784_v46  ;;  %v13791_v51 = vld [vmem:[#allocation140_spill] sm:$0xff]  ;;  %v13792_v62 = vld [vmem:[#allocation163_spill] sm:$0xff]  ;;  %v13794_v26 = vld [vmem:[#allocation17_spill] sm:$0xff] }
 0x337   : > { %v2415_v29 = vsel %vm2400_vm10, %v2382_v28, %v2103_v41  ;;  %9085 = vmatmul.mubr.msk.f32.gmra.mrb[28].mxu1 %vm2439_vm11, %v2414_v30  ;;  %v2188_v4 = vsel %vm333_vm0, %v9398_v25, %v13785_v34  ;;  %v2189_v45 = vsel %vm333_vm0, %v9399_v56, %v13786_v19  ;;  %v2318_v58 = vsel %vm2301_vm7, %v2285_v11, %v13787_v21  ;;  %v13793_v40 = vld [vmem:[#allocation32_spill] sm:$0xff]  ;;  %v13795_v38 = vld [vmem:[#allocation162_spill] sm:$0xff]  ;;  %v13797_v6 = vld [vmem:[#allocation39_spill] sm:$0xff] }
 0x338   : > { %v2107_v1 = vpop.permute.xlu0 %2106  ;;  %v2350_v8 = vsel %vm2334_vm8, %v2317_v10, %v13788_v9  ;;  %9087 = vmatprep.mubr.msk.f32.mxu1 %vm2439_vm11, %v2415_v29  ;;  %v2221_v23 = vsel %vm2202_vm4, %v2188_v4, %v13789_v53  ;;  %v2222_v16 = vsel %vm2202_vm4, %v2189_v45, %v13790_v17  ;;  %v2351_v32 = vsel %vm2334_vm8, %v2318_v58, %v13791_v51  ;;  %v2105_v48 = vpop.permute.xlu1 %2104  ;;  %v13796_v15 = vld [vmem:[#allocation36_spill] sm:$0xff]  ;;  %v13798_v35 = vld [vmem:[#allocation122_spill] sm:$0xff]  ;;  %v13800_v61 = vld [vmem:[#allocation121_spill] sm:$0xff] }
 0x339   : > { %v2383_v33 = vsel %vm2367_vm9, %v2350_v8, %v13792_v62  ;;  %v2254_v27 = vsel %vm2235_vm5, %v2221_v23, %v13793_v40  ;;  %v2286_v24 = vsel %vm2268_vm6, %v2253_v0, %v13794_v26  ;;  %v2384_v7 = vsel %vm2367_vm9, %v2351_v32, %v13795_v38  ;;  %v9400_v42 = vld [vmem:[#allocation2 + $0xf0] sm:$0xff]  ;;  %v13799_v36 = vld [vmem:[#allocation24_spill] sm:$0xff]  ;;  %v13801_v3 = vld [vmem:[#allocation143_spill] sm:$0xff] }
 0x33a   : > { %v2416_v5 = vsel %vm2400_vm10, %v2383_v33, %v2105_v48  ;;  %v2287_v50 = vsel %vm2268_vm6, %v2254_v27, %v13796_v15  ;;  %v2255_v41 = vsel %vm2235_vm5, %v2222_v16, %v13797_v6  ;;  %v2319_v52 = vsel %vm2301_vm7, %v2286_v24, %v13798_v35  ;;  %v13802_v14 = vld [vmem:[#allocation28_spill] sm:$0xff]  ;;  %v13803_v55 = vld [vmem:[#allocation142_spill] sm:$0xff]  ;;  %v13804_v47 = vld [vmem:[#allocation21_spill] sm:$0xff] }
 0x33b   : > { %v2417_v59 = vsel %vm2400_vm10, %v2384_v7, %v2107_v1  ;;  %9088 = vmatmul.mubr.msk.f32.gmra.mrb[30].mxu1 %vm2439_vm11, %v2416_v5  ;;  %v2190_v12 = vsel %vm333_vm0, %v9400_v42, %v13799_v36  ;;  %v2320_v44 = vsel %vm2301_vm7, %v2287_v50, %v13800_v61  ;;  %v2352_v57 = vsel %vm2334_vm8, %v2319_v52, %v13801_v3  ;;  %v13805_v13 = vld [vmem:[#allocation48_spill] sm:$0xff]  ;;  %v13806_v43 = vld [vmem:[#allocation35_spill] sm:$0xff]  ;;  %v13811_v29 = vld [vmem:[#allocation145_spill] sm:$0xff] }
 0x33c   : > { %v2111_v20 = vpop.permute.xlu0 %2110  ;;  %9090 = vmatprep.mubr.msk.f32.mxu1 %vm2439_vm11, %v2417_v59  ;;  %v2223_v2 = vsel %vm2202_vm4, %v2190_v12, %v13802_v14  ;;  %v2353_v49 = vsel %vm2334_vm8, %v2320_v44, %v13803_v55  ;;  %v2385_v39 = vsel %vm2367_vm9, %v2352_v57, %v13804_v47  ;;  %v2109_v18 = vpop.permute.xlu1 %2108  ;;  %v2288_v63 = vsel %vm2268_vm6, %v2255_v41, %v13806_v43  ;;  %v13807_v60 = vld [vmem:[#allocation164_spill] sm:$0xff]  ;;  %v13810_v46 = vld [vmem:[#allocation123_spill] sm:$0xff]  ;;  %v13822_v41 = vld [vmem:[#allocation126_spill] sm:$0xff] }
 0x33d   : > { %v2256_v31 = vsel %vm2235_vm5, %v2223_v2, %v13805_v13  ;;  %v2386_v37 = vsel %vm2367_vm9, %v2353_v49, %v13807_v60  ;;  %v2418_v28 = vsel %vm2400_vm10, %v2385_v39, %v2109_v18  ;;  %v13808_v1 = vld [vmem:[#allocation52_spill] sm:$0xff]  ;;  %v9401_v34 = vld [vmem:[#allocation2 + $0xf8] sm:$0xff]  ;;  %v13823_v52 = vld [vmem:[#allocation125_spill] sm:$0xff] }
 0x33e   : > { %v2289_v22 = vsel %vm2268_vm6, %v2256_v31, %v13808_v1  ;;  %v13809_v0 = vld [vmem:[#allocation124_spill] sm:$0xff]  ;;  %v2419_v11 = vsel %vm2400_vm10, %v2386_v37, %v2111_v20  ;;  %v13812_v4 = vld [vmem:[#allocation27_spill] sm:$0xff]  ;;  %v9403_v12 = vld [vmem:[#allocation2 + $0x110] sm:$0xff] }
 0x33f   : > { %v2321_v54 = vsel %vm2301_vm7, %v2288_v63, %v13809_v0  ;;  %9091 = vmatmul.mubr.msk.f32.gmra.mrb[32].mxu1 %vm2439_vm11, %v2418_v28  ;;  %v2322_v10 = vsel %vm2301_vm7, %v2289_v22, %v13810_v46  ;;  %v2191_v56 = vsel %vm333_vm0, %v9401_v34, %v13812_v4  ;;  %v13813_v19 = vld [vmem:[#allocation144_spill] sm:$0xff]  ;;  %v13815_v8 = vld [vmem:[#allocation31_spill] sm:$0xff]  ;;  %v13826_v3 = vld [vmem:[#allocation146_spill] sm:$0xff] }
 0x340   : > { %v1987_v30 = vpop.permute.xlu0 %1986  ;;  %v2354_v25 = vsel %vm2334_vm8, %v2321_v54, %v13811_v29  ;;  %9093 = vmatprep.mubr.msk.f32.mxu1 %vm2439_vm11, %v2419_v11  ;;  %v2355_v45 = vsel %vm2334_vm8, %v2322_v10, %v13813_v19  ;;  %v13814_v21 = vld [vmem:[#allocation20_spill] sm:$0xff]  ;;  %v2113_v9 = vpop.permute.xlu1 %2112  ;;  %v2224_v53 = vsel %vm2202_vm4, %v2191_v56, %v13815_v8  ;;  %v13816_v51 = vld [vmem:[#allocation55_spill] sm:$0xff]  ;;  %v13831_v22 = vld [vmem:[#allocation77_spill] sm:$0xff] }
 0x341   : > { %v2387_v58 = vsel %vm2367_vm9, %v2354_v25, %v13814_v21  ;;  %v2388_v23 = vsel %vm2367_vm9, %v2355_v45, %v1987_v30  ;;  %v2257_v32 = vsel %vm2235_vm5, %v2224_v53, %v13816_v51  ;;  %v9402_v33 = vld [vmem:[#allocation2 + $0x108] sm:$0xff]  ;;  %v13820_v5 = vld [vmem:[#allocation51_spill] sm:$0xff] }
 0x342   : > { %v2420_v17 = vsel %vm2400_vm10, %v2387_v58, %v2113_v9  ;;  %v13817_v48 = vld [vmem:[#allocation40_spill] sm:$0xff]  ;;  %v2290_v20 = vsel %vm2268_vm6, %v2257_v32, %v13820_v5  ;;  %v13824_v42 = vld [vmem:[#allocation147_spill] sm:$0xff]  ;;  %v13836_v19 = vld [vmem:[#allocation149_spill] sm:$0xff] }
 0x343   : > { %9094 = vmatmul.mubr.msk.f32.gmra.mrb[34].mxu1 %vm2439_vm11, %v2420_v17  ;;  %v2192_v40 = vsel %vm333_vm0, %v9402_v33, %v13817_v48  ;;  %v13818_v27 = vld [vmem:[#allocation44_spill] sm:$0xff]  ;;  %v2323_v35 = vsel %vm2301_vm7, %v2290_v20, %v13822_v41  ;;  %v13825_v61 = vld [vmem:[#allocation43_spill] sm:$0xff] }
 0x344   : > { %v2115_v16 = vpop.permute.xlu0 %2114  ;;  %v2225_v26 = vsel %vm2202_vm4, %v2192_v40, %v13818_v27  ;;  %v1989_v24 = vpop.permute.xlu1 %1988  ;;  %v13819_v38 = vld [vmem:[#allocation64_spill] sm:$0xff]  ;;  %v2356_v36 = vsel %vm2334_vm8, %v2323_v35, %v13824_v42  ;;  %v2193_v44 = vsel %vm333_vm0, %v9403_v12, %v13825_v61  ;;  %v13827_v55 = vld [vmem:[#allocation47_spill] sm:$0xff]  ;;  %v13846_v42 = vld [vmem:[#allocation130_spill] sm:$0xff] }
 0x345   : > { %v2421_v62 = vsel %vm2400_vm10, %v2388_v23, %v2115_v16  ;;  %v2258_v7 = vsel %vm2235_vm5, %v2225_v26, %v13819_v38  ;;  %v13821_v50 = vld [vmem:[#allocation68_spill] sm:$0xff]  ;;  %v2389_v14 = vsel %vm2367_vm9, %v2356_v36, %v1989_v24  ;;  %v2226_v49 = vsel %vm2202_vm4, %v2193_v44, %v13827_v55  ;;  %v13828_v13 = vld [vmem:[#allocation71_spill] sm:$0xff]  ;;  %v13847_v12 = vld [vmem:[#allocation129_spill] sm:$0xff] }
 0x346   : > { %9096 = vmatprep.mubr.msk.f32.mxu1 %vm2439_vm11, %v2421_v62  ;;  %v2291_v6 = vsel %vm2268_vm6, %v2258_v7, %v13821_v50  ;;  %v2259_v31 = vsel %vm2235_vm5, %v2226_v49, %v13828_v13  ;;  %v9404_v63 = vld [vmem:[#allocation2 + $0x120] sm:$0xff]  ;;  %v9405_v21 = vld [vmem:[#allocation2 + $0x128] sm:$0xff]  ;;  %v9406_v26 = vld [vmem:[#allocation2 + $0x138] sm:$0xff] }
 0x347   : > { %v2324_v59 = vsel %vm2301_vm7, %v2291_v6, %v13823_v52  ;;  %v13829_v60 = vld [vmem:[#allocation56_spill] sm:$0xff]  ;;  %v13832_v54 = vld [vmem:[#allocation67_spill] sm:$0xff]  ;;  %v13844_v6 = vld [vmem:[#allocation78_spill] sm:$0xff] }
 0x348   : > { %v1991_v15 = vpop.permute.xlu0 %1990  ;;  %v2357_v57 = vsel %vm2334_vm8, %v2324_v59, %v13826_v3  ;;  %v2117_v2 = vpop.permute.xlu1 %2116  ;;  %v2194_v37 = vsel %vm333_vm0, %v9404_v63, %v13829_v60  ;;  %v13830_v28 = vld [vmem:[#allocation60_spill] sm:$0xff]  ;;  %v2292_v11 = vsel %vm2268_vm6, %v2259_v31, %v13832_v54  ;;  %v13833_v10 = vld [vmem:[#allocation79_spill] sm:$0xff]  ;;  %v13850_v55 = vld [vmem:[#allocation150_spill] sm:$0xff] }
 0x349   : > { %v2390_v47 = vsel %vm2367_vm9, %v2357_v57, %v1991_v15  ;;  %v2422_v39 = vsel %vm2400_vm10, %v2389_v14, %v2117_v2  ;;  %v2227_v30 = vsel %vm2202_vm4, %v2194_v37, %v13830_v28  ;;  %v13834_v25 = vld [vmem:[#allocation128_spill] sm:$0xff]  ;;  %v13835_v4 = vld [vmem:[#allocation127_spill] sm:$0xff]  ;;  %v13843_v15 = vld [vmem:[#allocation85_spill] sm:$0xff] }
 0x34a   : > { %9097 = vmatmul.mubr.msk.f32.gmra.mrb[36].mxu1 %vm2439_vm11, %v2422_v39  ;;  %v2260_v0 = vsel %vm2235_vm5, %v2227_v30, %v13831_v22  ;;  %v2325_v34 = vsel %vm2301_vm7, %v2292_v11, %v13834_v25  ;;  %v13837_v58 = vld [vmem:[#allocation59_spill] sm:$0xff]  ;;  %v13838_v8 = vld [vmem:[#allocation148_spill] sm:$0xff]  ;;  %v13849_v14 = vld [vmem:[#allocation74_spill] sm:$0xff] }
 0x34b   : > { %v2293_v29 = vsel %vm2268_vm6, %v2260_v0, %v13833_v10  ;;  %v2358_v45 = vsel %vm2334_vm8, %v2325_v34, %v13836_v19  ;;  %v2195_v9 = vsel %vm333_vm0, %v9405_v21, %v13837_v58  ;;  %v13839_v16 = vld [vmem:[#allocation63_spill] sm:$0xff]  ;;  %v13840_v48 = vld [vmem:[#allocation80_spill] sm:$0xff]  ;;  %v9408_v30 = vld [vmem:[#allocation2 + $0x150] sm:$0xff] }
 0x34c   : > { %v2119_v18 = vpop.permute.xlu0 %2118  ;;  %v1993_v1 = vpop.permute.xlu1 %1992  ;;  %v2326_v56 = vsel %vm2301_vm7, %v2293_v29, %v13835_v4  ;;  %v2228_v51 = vsel %vm2202_vm4, %v2195_v9, %v13839_v16  ;;  %v13841_v24 = vld [vmem:[#allocation72_spill] sm:$0xff]  ;;  %v13842_v7 = vld [vmem:[#allocation75_spill] sm:$0xff]  ;;  %v13856_v29 = vld [vmem:[#allocation86_spill] sm:$0xff] }
 0x34d   : > { %v2423_v43 = vsel %vm2400_vm10, %v2390_v47, %v2119_v18  ;;  %v2359_v53 = vsel %vm2334_vm8, %v2326_v56, %v13838_v8  ;;  %v2391_v23 = vsel %vm2367_vm9, %v2358_v45, %v1993_v1  ;;  %v2261_v40 = vsel %vm2235_vm5, %v2228_v51, %v13840_v48  ;;  %v13845_v52 = vld [vmem:[#allocation87_spill] sm:$0xff]  ;;  %v13851_v18 = vld [vmem:[#allocation76_spill] sm:$0xff]  ;;  %v13853_v1 = vld [vmem:[#allocation81_spill] sm:$0xff] }
 0x34e   : > { %9099 = vmatprep.mubr.msk.f32.mxu1 %vm2439_vm11, %v2423_v43  ;;  %v2196_v38 = vsel %vm333_vm0, %v9406_v26, %v13841_v24  ;;  %v2294_v41 = vsel %vm2268_vm6, %v2261_v40, %v13844_v6  ;;  %v13848_v44 = vld [vmem:[#allocation151_spill] sm:$0xff]  ;;  %v13852_v60 = vld [vmem:[#allocation88_spill] sm:$0xff]  ;;  %v2198_v22 = vsel %vm333_vm0, %v9408_v30, %v13853_v1  ;;  %v13860_v9 = vld [vmem:[#allocation153_spill] sm:$0xff] }
 0x34f   : > { %v2229_v5 = vsel %vm2202_vm4, %v2196_v38, %v13842_v7  ;;  %v2327_v36 = vsel %vm2301_vm7, %v2294_v41, %v13846_v42  ;;  %v9407_v57 = vld [vmem:[#allocation2 + $0x140] sm:$0xff]  ;;  %v13876_v1 = vld [vmem:[#allocation114_spill] sm:$0xff] }
 0x350   : > { %v1995_v46 = vpop.permute.xlu0 %1994  ;;  %v2121_v17 = vpop.permute.xlu1 %2120  ;;  %v2262_v50 = vsel %vm2235_vm5, %v2229_v5, %v13843_v15  ;;  %v2360_v3 = vsel %vm2334_vm8, %v2327_v36, %v13848_v44  ;;  %v2197_v2 = vsel %vm333_vm0, %v9407_v57, %v13849_v14  ;;  %v13854_v0 = vld [vmem:[#allocation83_spill] sm:$0xff]  ;;  %v13857_v4 = vld [vmem:[#allocation100_spill] sm:$0xff]  ;;  %v13870_v44 = vld [vmem:[#allocation134_spill] sm:$0xff] }
 0x351   : > { %v2392_v32 = vsel %vm2367_vm9, %v2359_v53, %v1995_v46  ;;  %v2424_v62 = vsel %vm2400_vm10, %v2391_v23, %v2121_v17  ;;  %v2295_v59 = vsel %vm2268_vm6, %v2262_v50, %v13845_v52  ;;  %v2230_v13 = vsel %vm2202_vm4, %v2197_v2, %v13851_v18  ;;  %v13855_v46 = vld [vmem:[#allocation96_spill] sm:$0xff]  ;;  %v13859_v21 = vld [vmem:[#allocation131_spill] sm:$0xff]  ;;  %v13861_v23 = vld [vmem:[#allocation82_spill] sm:$0xff] }
 0x352   : > { %9100 = vmatmul.mubr.msk.f32.gmra.mrb[38].mxu1 %vm2439_vm11, %v2424_v62  ;;  %v2328_v61 = vsel %vm2301_vm7, %v2295_v59, %v13847_v12  ;;  %v2263_v37 = vsel %vm2235_vm5, %v2230_v13, %v13852_v60  ;;  %v2231_v54 = vsel %vm2202_vm4, %v2198_v22, %v13854_v0  ;;  %v13858_v19 = vld [vmem:[#allocation132_spill] sm:$0xff]  ;;  %v9409_v53 = vld [vmem:[#allocation2 + $0x158] sm:$0xff]  ;;  %v13871_v57 = vld [vmem:[#allocation133_spill] sm:$0xff] }
 0x353   : > { %v2361_v49 = vsel %vm2334_vm8, %v2328_v61, %v13850_v55  ;;  %v2264_v10 = vsel %vm2235_vm5, %v2231_v54, %v13855_v46  ;;  %v2296_v25 = vsel %vm2268_vm6, %v2263_v37, %v13856_v29  ;;  %v2199_v17 = vsel %vm333_vm0, %v9409_v53, %v13861_v23  ;;  %v13862_v16 = vld [vmem:[#allocation152_spill] sm:$0xff]  ;;  %v13864_v24 = vld [vmem:[#allocation103_spill] sm:$0xff]  ;;  %v13874_v18 = vld [vmem:[#allocation154_spill] sm:$0xff] }
 0x354   : > { %v2123_v33 = vpop.permute.xlu0 %2122  ;;  %v1997_v20 = vpop.permute.xlu1 %1996  ;;  %v2297_v56 = vsel %vm2268_vm6, %v2264_v10, %v13857_v4  ;;  %v2329_v45 = vsel %vm2301_vm7, %v2296_v25, %v13858_v19  ;;  %v9410_v5 = vld [vmem:[#allocation2 + $0x168] sm:$0xff]  ;;  %v13868_v59 = vld [vmem:[#allocation99_spill] sm:$0xff] }
 0x355   : > { %v2425_v27 = vsel %vm2400_vm10, %v2392_v32, %v2123_v33  ;;  %v2393_v47 = vsel %vm2367_vm9, %v2360_v3, %v1997_v20  ;;  %v2330_v58 = vsel %vm2301_vm7, %v2297_v56, %v13859_v21  ;;  %v2362_v8 = vsel %vm2334_vm8, %v2329_v45, %v13860_v9  ;;  %v13863_v33 = vld [vmem:[#allocation84_spill] sm:$0xff]  ;;  %v13865_v20 = vld [vmem:[#allocation89_spill] sm:$0xff]  ;;  %v13872_v2 = vld [vmem:[#allocation155_spill] sm:$0xff] }
 0x356   : > { %9102 = vmatprep.mubr.msk.f32.mxu1 %vm2439_vm11, %v2425_v27  ;;  %v2363_v51 = vsel %vm2334_vm8, %v2330_v58, %v13862_v16  ;;  %v2232_v48 = vsel %vm2202_vm4, %v2199_v17, %v13863_v33  ;;  %v2200_v15 = vsel %vm333_vm0, %v9410_v5, %v13865_v20  ;;  %v13866_v50 = vld [vmem:[#allocation92_spill] sm:$0xff]  ;;  %v13878_v10 = vld [vmem:[#allocation135_spill] sm:$0xff]  ;;  %v2858_v45 = vld [vmem:[#allocation3 + $0x1] sm:$0xff] }
 0x357   : > { %v2265_v38 = vsel %vm2235_vm5, %v2232_v48, %v13864_v24  ;;  %v2233_v6 = vsel %vm2202_vm4, %v2200_v15, %v13866_v50  ;;  %v13869_v12 = vld [vmem:[#allocation112_spill] sm:$0xff]  ;;  %v2859_v21 = vld [vmem:[#allocation3 + $0x9] sm:$0xff]  ;;  %3147 = vrot.lane.b32.xlu0 %v2858_v45, %s9500_s24 }
 0x358   : > { %v1999_v35 = vpop.permute.xlu0 %1998  ;;  %v2125_v39 = vpop.permute.xlu1 %2124  ;;  %v2298_v42 = vsel %vm2268_vm6, %v2265_v38, %v13868_v59  ;;  %v13879_v25 = vld [vmem:[#allocation156_spill] sm:$0xff]  ;;  %3149 = vrot.lane.b32.xlu1 %v2859_v21, %s9500_s24  ;;  %v2890_v58 = vld [vmem:[#allocation3 + $0x2] sm:$0xff]  ;;  %v2891_v9 = vld [vmem:[#allocation3 + $0xa] sm:$0xff] }
 0x359   : > { %v2394_v31 = vsel %vm2367_vm9, %v2361_v49, %v1999_v35  ;;  %v2426_v43 = vsel %vm2400_vm10, %v2393_v47, %v2125_v39  ;;  %v13867_v35 = vld [vmem:[#allocation108_spill] sm:$0xff]  ;;  %v2331_v3 = vsel %vm2301_vm7, %v2298_v42, %v13870_v44  ;;  %v9411_v49 = vld [vmem:[#allocation2 + $0x170] sm:$0xff]  ;;  %v13873_v47 = vld [vmem:[#allocation91_spill] sm:$0xff] }
 0x35a   : > { %9103 = vmatmul.mubr.msk.f32.gmra.mrb[40].mxu1 %vm2439_vm11, %v2426_v43  ;;  %v2266_v52 = vsel %vm2235_vm5, %v2233_v6, %v13867_v35  ;;  %v2364_v55 = vsel %vm2334_vm8, %v2331_v3, %v13872_v2  ;;  %v2201_v39 = vsel %vm333_vm0, %v9411_v49, %v13873_v47 }
 0x35b   : > { %v2299_v61 = vsel %vm2268_vm6, %v2266_v52, %v13869_v12  ;;  %3275 = vrot.lane.b32.xlu0 %v2890_v58, %s9492_s29 }
 0x35c   : > { %v2127_v63 = vpop.permute.xlu0 %2126  ;;  %v2001_v11 = vpop.permute.xlu1 %2000  ;;  %v2332_v14 = vsel %vm2301_vm7, %v2299_v61, %v13871_v57  ;;  %3277 = vrot.lane.b32.xlu1 %v2891_v9, %s9492_s29 }
 0x35d   : > { %v2427_v28 = vsel %vm2400_vm10, %v2394_v31, %v2127_v63  ;;  %v2395_v32 = vsel %vm2367_vm9, %v2362_v8, %v2001_v11  ;;  %v2365_v13 = vsel %vm2334_vm8, %v2332_v14, %v13874_v18  ;;  %v13875_v63 = vld [vmem:[#allocation95_spill] sm:$0xff] }
 0x35e   : > { %9105 = vmatprep.mubr.msk.f32.mxu1 %vm2439_vm11, %v2427_v28  ;;  %v2234_v60 = vsel %vm2202_vm4, %v2201_v39, %v13875_v63  ;;  %v13877_v11 = vld [vmem:[#allocation111_spill] sm:$0xff] }
 0x35f   : > { %v2267_v22 = vsel %vm2235_vm5, %v2234_v60, %v13876_v1  ;;  %v11421_v8 = vld [vmem:[%s13542_s4] ss:$0 sm:$0xff] }
 0x360   : > { %v2003_v34 = vpop.permute.xlu0 %2002  ;;  %v2129_v62 = vpop.permute.xlu1 %2128  ;;  %v2300_v46 = vsel %vm2268_vm6, %v2267_v22, %v13877_v11 }
 0x361   : > { %v2396_v40 = vsel %vm2367_vm9, %v2363_v51, %v2003_v34  ;;  %v2428_v27 = vsel %vm2400_vm10, %v2395_v32, %v2129_v62  ;;  %v2333_v29 = vsel %vm2301_vm7, %v2300_v46, %v13878_v10  ;;  %vm8443_vm7 = vcmask 523712  }
 0x362   : > { %9106 = vmatmul.mubr.msk.f32.gmra.mrb[42].mxu1 %vm2439_vm11, %v2428_v27  ;;  %v2366_v34 = vsel %vm2334_vm8, %v2333_v29, %v13879_v25  ;;  %vm8450_vm8 = vcmask 589312  }
 0x364   : > { %v2131_v26 = vpop.permute.xlu0 %2130  ;;  %v2005_v41 = vpop.permute.xlu1 %2004 }
 0x365   : > { %v2429_v7 = vsel %vm2400_vm10, %v2396_v40, %v2131_v26  ;;  %v2397_v31 = vsel %vm2367_vm9, %v2364_v55, %v2005_v41 }
 0x366   : > { %9108 = vmatprep.mubr.msk.f32.mxu1 %vm2439_vm11, %v2429_v7 }
 0x368   : > { %v2007_v36 = vpop.permute.xlu0 %2006  ;;  %v2133_v43 = vpop.permute.xlu1 %2132 }
 0x369   : > { %v2398_v37 = vsel %vm2367_vm9, %v2365_v13, %v2007_v36  ;;  %v2430_v28 = vsel %vm2400_vm10, %v2397_v31, %v2133_v43 }
 0x36a   : > { %9109 = vmatmul.mubr.msk.f32.gmra.mrb[44].mxu1 %vm2439_vm11, %v2430_v28 }
 0x36c   : > { %v2135_v30 = vpop.permute.xlu0 %2134  ;;  %v2009_v54 = vpop.permute.xlu1 %2008 }
 0x36d   : > { %v2431_v0 = vsel %vm2400_vm10, %v2398_v37, %v2135_v30  ;;  %v2399_v4 = vsel %vm2367_vm9, %v2366_v34, %v2009_v54  ;;  %vm8457_vm9 = vcmask 654912  }
 0x36e   : > { %9111 = vmatprep.mubr.msk.f32.mxu1 %vm2439_vm11, %v2431_v0 }
 0x370   : > { %v2137_v56 = vpop.permute.xlu1 %2136 }
 0x371   : > { %v2432_v19 = vsel %vm2400_vm10, %v2399_v4, %v2137_v56  ;;  %vm8464_vm10 = vcmask 720512  }
 0x372   : > { %9112 = vmatmul.mubr.msk.f32.gmra.mrb[46].mxu1 %vm2439_vm11, %v2432_v19  ;;  %vm8471_vm11 = vcmask 786112  }
 0x3f1   : > { %v9068_v53 = vpop.f32.mrb[16].mxu1 }
 0x3f2   : > { %v2608_v23 = vadd.f32 %v9068_v53, %v11421_v8  ;;  %v2602_v17 = vpop.f32.mrb[17].mxu1 }
 0x3f3   : > { %v2603_v16 = vadd.f32 %v11421_v8, %v2602_v17 }
 0x3f4   : > { %v2762_v51 = vmax.f32 %v2608_v23, 0.0 }
 0x3f5   : > { %v2761_v32 = vmax.f32 %v2603_v16, 0.0 }
 0x3f6   : > { %v9071_v62 = vpop.f32.mrb[18].mxu1  ;;  %2795 = vst.msk [vmem:[#allocation3 + $0x21] sm:$0xff] %vm389_vm2, %v2762_v51 }
 0x3f7   : > { %v2618_v33 = vadd.f32 %v9071_v62, %v11421_v8  ;;  %v2612_v48 = vpop.f32.mrb[19].mxu1  ;;  %2794 = vst.msk [vmem:[#allocation3 + $0x19] sm:$0xff] %vm389_vm2, %v2761_v32 }
 0x3f8   : > { %v2613_v40 = vadd.f32 %v11421_v8, %v2612_v48 }
 0x3f9   : > { %v2764_v27 = vmax.f32 %v2618_v33, 0.0 }
 0x3fa   : > { %v2763_v26 = vmax.f32 %v2613_v40, 0.0  ;;  %v9074_v24 = vpop.f32.mrb[20].mxu1 }
 0x3fb   : > { %2797 = vst.msk [vmem:[#allocation3 + $0x39] sm:$0xff] %vm389_vm2, %v2764_v27  ;;  %v2628_v38 = vadd.f32 %v9074_v24, %v11421_v8  ;;  %v2622_v7 = vpop.f32.mrb[21].mxu1 }
 0x3fc   : > { %2796 = vst.msk [vmem:[#allocation3 + $0x31] sm:$0xff] %vm389_vm2, %v2763_v26  ;;  %v2623_v5 = vadd.f32 %v11421_v8, %v2622_v7 }
 0x3fd   : > { %v2766_v20 = vmax.f32 %v2628_v38, 0.0  ;;  %v11433_v6 = vld [vmem:[#allocation3 + $0x21] sm:$0xff] }
 0x3fe   : > { %v2765_v15 = vmax.f32 %v2623_v5, 0.0  ;;  %v9077_v50 = vpop.f32.mrb[22].mxu1  ;;  %3153 = vrot.lane.b32.xlu1 %v11433_v6, %s9500_s24  ;;  %v11439_v52 = vld [vmem:[#allocation3 + $0x19] sm:$0xff]  ;;  %v11445_v61 = vld [vmem:[#allocation3 + $0x22] sm:$0xff] }
 0x3ff   : > { %2799 = vst.msk [vmem:[#allocation3 + $0x51] sm:$0xff] %vm389_vm2, %v2766_v20  ;;  %v2638_v41 = vadd.f32 %v9077_v50, %v11421_v8  ;;  %v2632_v35 = vpop.f32.mrb[23].mxu1  ;;  %3151 = vrot.lane.b32.xlu0 %v11439_v52, %s9500_s24  ;;  %v11451_v57 = vld [vmem:[#allocation3 + $0x1a] sm:$0xff] }
 0x400   : > { %2798 = vst.msk [vmem:[#allocation3 + $0x49] sm:$0xff] %vm389_vm2, %v2765_v15  ;;  %v2633_v59 = vadd.f32 %v11421_v8, %v2632_v35 }
 0x401   : > { %v2768_v42 = vmax.f32 %v2638_v41, 0.0 }
 0x402   : > { %v2767_v36 = vmax.f32 %v2633_v59, 0.0  ;;  %v9080_v12 = vpop.f32.mrb[24].mxu1  ;;  %3281 = vrot.lane.b32.xlu1 %v11445_v61, %s9492_s29  ;;  %v11457_v47 = vld [vmem:[#allocation3 + $0x39] sm:$0xff] }
 0x403   : > { %2801 = vst.msk [vmem:[#allocation3 + $0x69] sm:$0xff] %vm389_vm2, %v2768_v42  ;;  %v2648_v44 = vadd.f32 %v9080_v12, %v11421_v8  ;;  %v2642_v3 = vpop.f32.mrb[25].mxu1  ;;  %3279 = vrot.lane.b32.xlu0 %v11451_v57, %s9492_s29  ;;  %v11463_v13 = vld [vmem:[#allocation3 + $0x31] sm:$0xff]  ;;  %v11469_v37 = vld [vmem:[#allocation3 + $0x3a] sm:$0xff] }
 0x404   : > { %2800 = vst.msk [vmem:[#allocation3 + $0x61] sm:$0xff] %vm389_vm2, %v2767_v36  ;;  %v2643_v14 = vadd.f32 %v11421_v8, %v2642_v3  ;;  %v11475_v1 = vld [vmem:[#allocation3 + $0x32] sm:$0xff] }
 0x405   : > { %v2770_v2 = vmax.f32 %v2648_v44, 0.0 }
 0x406   : > { %v2769_v55 = vmax.f32 %v2643_v14, 0.0  ;;  %v9083_v49 = vpop.f32.mrb[26].mxu1  ;;  %3157 = vrot.lane.b32.xlu1 %v11457_v47, %s9500_s24  ;;  %v11481_v46 = vld [vmem:[#allocation3 + $0x51] sm:$0xff] }
 0x407   : > { %2803 = vst.msk [vmem:[#allocation3 + $0x81] sm:$0xff] %vm389_vm2, %v2770_v2  ;;  %v2658_v39 = vadd.f32 %v9083_v49, %v11421_v8  ;;  %v2652_v18 = vpop.f32.mrb[27].mxu1  ;;  %3155 = vrot.lane.b32.xlu0 %v11463_v13, %s9500_s24  ;;  %v11487_v25 = vld [vmem:[#allocation3 + $0x49] sm:$0xff]  ;;  %v11493_v45 = vld [vmem:[#allocation3 + $0x52] sm:$0xff] }
 0x408   : > { %2802 = vst.msk [vmem:[#allocation3 + $0x79] sm:$0xff] %vm389_vm2, %v2769_v55  ;;  %v2653_v31 = vadd.f32 %v11421_v8, %v2652_v18  ;;  %v11499_v9 = vld [vmem:[#allocation3 + $0x4a] sm:$0xff] }
 0x409   : > { %v2772_v43 = vmax.f32 %v2658_v39, 0.0 }
 0x40a   : > { %v2771_v63 = vmax.f32 %v2653_v31, 0.0  ;;  %v9086_v60 = vpop.f32.mrb[28].mxu1  ;;  %3285 = vrot.lane.b32.xlu1 %v11469_v37, %s9492_s29  ;;  %v11505_v51 = vld [vmem:[#allocation3 + $0x69] sm:$0xff] }
 0x40b   : > { %2805 = vst.msk [vmem:[#allocation3 + $0x99] sm:$0xff] %vm389_vm2, %v2772_v43  ;;  %v2668_v28 = vadd.f32 %v9086_v60, %v11421_v8  ;;  %v2662_v30 = vpop.f32.mrb[29].mxu1  ;;  %3283 = vrot.lane.b32.xlu0 %v11475_v1, %s9492_s29  ;;  %v11511_v33 = vld [vmem:[#allocation3 + $0x61] sm:$0xff]  ;;  %v11517_v26 = vld [vmem:[#allocation3 + $0x6a] sm:$0xff] }
 0x40c   : > { %2804 = vst.msk [vmem:[#allocation3 + $0x91] sm:$0xff] %vm389_vm2, %v2771_v63  ;;  %v2663_v22 = vadd.f32 %v11421_v8, %v2662_v30  ;;  %v11522_v24 = vld [vmem:[#allocation3 + $0x62] sm:$0xff] }
 0x40d   : > { %v2774_v0 = vmax.f32 %v2668_v28, 0.0 }
 0x40e   : > { %v2773_v54 = vmax.f32 %v2663_v22, 0.0  ;;  %v9089_v11 = vpop.f32.mrb[30].mxu1  ;;  %3161 = vrot.lane.b32.xlu1 %v11481_v46, %s9500_s24  ;;  %v11527_v7 = vld [vmem:[#allocation3 + $0x81] sm:$0xff] }
 0x40f   : > { %2807 = vst.msk [vmem:[#allocation3 + $0xb1] sm:$0xff] %vm389_vm2, %v2774_v0  ;;  %v2678_v10 = vadd.f32 %v9089_v11, %v11421_v8  ;;  %v2672_v29 = vpop.f32.mrb[31].mxu1  ;;  %3159 = vrot.lane.b32.xlu0 %v11487_v25, %s9500_s24  ;;  %v11532_v15 = vld [vmem:[#allocation3 + $0x79] sm:$0xff]  ;;  %v11537_v59 = vld [vmem:[#allocation3 + $0x82] sm:$0xff] }
 0x410   : > { %2806 = vst.msk [vmem:[#allocation3 + $0xa9] sm:$0xff] %vm389_vm2, %v2773_v54  ;;  %v2673_v34 = vadd.f32 %v11421_v8, %v2672_v29  ;;  %v11542_v42 = vld [vmem:[#allocation3 + $0x7a] sm:$0xff] }
 0x411   : > { %v2776_v4 = vmax.f32 %v2678_v10, 0.0 }
 0x412   : > { %v2775_v56 = vmax.f32 %v2673_v34, 0.0  ;;  %v9092_v19 = vpop.f32.mrb[32].mxu1  ;;  %3289 = vrot.lane.b32.xlu1 %v11493_v45, %s9492_s29  ;;  %v11547_v12 = vld [vmem:[#allocation3 + $0x99] sm:$0xff] }
 0x413   : > { %2809 = vst.msk [vmem:[#allocation3 + $0xc9] sm:$0xff] %vm389_vm2, %v2776_v4  ;;  %v2688_v21 = vadd.f32 %v9092_v19, %v11421_v8  ;;  %v2682_v58 = vpop.f32.mrb[33].mxu1  ;;  %3287 = vrot.lane.b32.xlu0 %v11499_v9, %s9492_s29  ;;  %v11552_v14 = vld [vmem:[#allocation3 + $0x91] sm:$0xff]  ;;  %v11557_v39 = vld [vmem:[#allocation3 + $0x9a] sm:$0xff] }
 0x414   : > { %2808 = vst.msk [vmem:[#allocation3 + $0xc1] sm:$0xff] %vm389_vm2, %v2775_v56  ;;  %v2683_v53 = vadd.f32 %v11421_v8, %v2682_v58  ;;  %v11562_v18 = vld [vmem:[#allocation3 + $0x92] sm:$0xff] }
 0x415   : > { %v2778_v23 = vmax.f32 %v2688_v21, 0.0 }
 0x416   : > { %v2777_v17 = vmax.f32 %v2683_v53, 0.0  ;;  %v9095_v16 = vpop.f32.mrb[34].mxu1  ;;  %3165 = vrot.lane.b32.xlu1 %v11505_v51, %s9500_s24  ;;  %v2873_v43 = vld [vmem:[#allocation3 + $0xb1] sm:$0xff] }
 0x417   : > { %2811 = vst.msk [vmem:[#allocation3 + $0xe1] sm:$0xff] %vm389_vm2, %v2778_v23  ;;  %v2698_v32 = vadd.f32 %v9095_v16, %v11421_v8  ;;  %v2692_v62 = vpop.f32.mrb[35].mxu1  ;;  %3163 = vrot.lane.b32.xlu0 %v11511_v33, %s9500_s24  ;;  %v11569_v28 = vld [vmem:[#allocation3 + $0xa9] sm:$0xff]  ;;  %v2905_v54 = vld [vmem:[#allocation3 + $0xb2] sm:$0xff] }
 0x418   : > { %2810 = vst.msk [vmem:[#allocation3 + $0xd9] sm:$0xff] %vm389_vm2, %v2777_v17  ;;  %v2693_v48 = vadd.f32 %v11421_v8, %v2692_v62  ;;  %v11576_v11 = vld [vmem:[#allocation3 + $0xaa] sm:$0xff] }
 0x419   : > { %v2780_v40 = vmax.f32 %v2698_v32, 0.0 }
 0x41a   : > { %v2779_v27 = vmax.f32 %v2693_v48, 0.0  ;;  %3293 = vrot.lane.b32.xlu1 %v11517_v26, %s9492_s29  ;;  %v2875_v29 = vld [vmem:[#allocation3 + $0xc9] sm:$0xff] }
 0x41b   : > { %2813 = vst.msk [vmem:[#allocation3 + $0xf9] sm:$0xff] %vm389_vm2, %v2780_v40  ;;  %3291 = vrot.lane.b32.xlu0 %v11522_v24, %s9492_s29  ;;  %v2874_v56 = vld [vmem:[#allocation3 + $0xc1] sm:$0xff]  ;;  %v2907_v53 = vld [vmem:[#allocation3 + $0xca] sm:$0xff] }
 0x41c   : > { %2812 = vst.msk [vmem:[#allocation3 + $0xf1] sm:$0xff] %vm389_vm2, %v2779_v27  ;;  %v2906_v23 = vld [vmem:[#allocation3 + $0xc2] sm:$0xff] }
 0x41d   : > { %v9098_v38 = vpop.f32.mrb[36].mxu1 }
 0x41e   : > { %v2708_v5 = vadd.f32 %v9098_v38, %v11421_v8  ;;  %3169 = vrot.lane.b32.xlu1 %v11527_v7, %s9500_s24  ;;  %v2702_v20 = vpop.f32.mrb[37].mxu1  ;;  %v2877_v16 = vld [vmem:[#allocation3 + $0xe1] sm:$0xff] }
 0x41f   : > { %v2703_v50 = vadd.f32 %v11421_v8, %v2702_v20  ;;  %3167 = vrot.lane.b32.xlu0 %v11532_v15, %s9500_s24  ;;  %v2876_v48 = vld [vmem:[#allocation3 + $0xd9] sm:$0xff] }
 0x420   : > { %v2782_v41 = vmax.f32 %v2708_v5, 0.0  ;;  %v2909_v5 = vld [vmem:[#allocation3 + $0xe2] sm:$0xff]  ;;  %v2908_v20 = vld [vmem:[#allocation3 + $0xda] sm:$0xff] }
 0x421   : > { %v2781_v35 = vmax.f32 %v2703_v50, 0.0 }
 0x422   : > { %2815 = vst.msk [vmem:[#allocation3 + $0x111] sm:$0xff] %vm389_vm2, %v2782_v41  ;;  %3297 = vrot.lane.b32.xlu1 %v11537_v59, %s9492_s29  ;;  %v2879_v41 = vld [vmem:[#allocation3 + $0xf9] sm:$0xff] }
 0x423   : > { %2814 = vst.msk [vmem:[#allocation3 + $0x109] sm:$0xff] %vm389_vm2, %v2781_v35  ;;  %3295 = vrot.lane.b32.xlu0 %v11542_v42, %s9492_s29 }
 0x425   : > { %v9101_v36 = vpop.f32.mrb[38].mxu1 }
 0x426   : > { %v2718_v44 = vadd.f32 %v9101_v36, %v11421_v8  ;;  %3173 = vrot.lane.b32.xlu1 %v11547_v12, %s9500_s24  ;;  %v2712_v3 = vpop.f32.mrb[39].mxu1 }
 0x427   : > { %v2713_v2 = vadd.f32 %v11421_v8, %v2712_v3  ;;  %3171 = vrot.lane.b32.xlu0 %v11552_v14, %s9500_s24 }
 0x428   : > { %v2784_v55 = vmax.f32 %v2718_v44, 0.0  ;;  %v2878_v44 = vld [vmem:[#allocation3 + $0xf1] sm:$0xff] }
 0x429   : > { %v2783_v49 = vmax.f32 %v2713_v2, 0.0 }
 0x42a   : > { %2817 = vst.msk [vmem:[#allocation3 + $0x129] sm:$0xff] %vm389_vm2, %v2784_v55  ;;  %3301 = vrot.lane.b32.xlu1 %v11557_v39, %s9492_s29 }
 0x42b   : > { %2816 = vst.msk [vmem:[#allocation3 + $0x121] sm:$0xff] %vm389_vm2, %v2783_v49  ;;  %3299 = vrot.lane.b32.xlu0 %v11562_v18, %s9492_s29  ;;  %v2911_v49 = vld [vmem:[#allocation3 + $0xfa] sm:$0xff] }
 0x42d   : > { %v9104_v31 = vpop.f32.mrb[40].mxu1 }
 0x42e   : > { %v2728_v63 = vadd.f32 %v9104_v31, %v11421_v8  ;;  %3177 = vrot.lane.b32.xlu1 %v2873_v43, %s9500_s24  ;;  %v2722_v60 = vpop.f32.mrb[41].mxu1  ;;  %v2910_v31 = vld [vmem:[#allocation3 + $0xf2] sm:$0xff] }
 0x42f   : > { %v2723_v30 = vadd.f32 %v11421_v8, %v2722_v60  ;;  %3175 = vrot.lane.b32.xlu0 %v11569_v28, %s9500_s24  ;;  %v2881_v43 = vld [vmem:[#allocation3 + $0x111] sm:$0xff] }
 0x430   : > { %v2786_v22 = vmax.f32 %v2728_v63, 0.0  ;;  %v2880_v63 = vld [vmem:[#allocation3 + $0x109] sm:$0xff] }
 0x431   : > { %v2785_v0 = vmax.f32 %v2723_v30, 0.0  ;;  %v2912_v60 = vld [vmem:[#allocation3 + $0x10a] sm:$0xff] }
 0x432   : > { %2819 = vst.msk [vmem:[#allocation3 + $0x141] sm:$0xff] %vm389_vm2, %v2786_v22  ;;  %3305 = vrot.lane.b32.xlu1 %v2905_v54, %s9492_s29  ;;  %v2883_v30 = vld [vmem:[#allocation3 + $0x129] sm:$0xff]  ;;  %v2882_v22 = vld [vmem:[#allocation3 + $0x121] sm:$0xff] }
 0x433   : > { %2818 = vst.msk [vmem:[#allocation3 + $0x139] sm:$0xff] %vm389_vm2, %v2785_v0  ;;  %3303 = vrot.lane.b32.xlu0 %v11576_v11, %s9492_s29  ;;  %v2915_v0 = vld [vmem:[#allocation3 + $0x12a] sm:$0xff]  ;;  %v2914_v54 = vld [vmem:[#allocation3 + $0x122] sm:$0xff] }
 0x435   : > { %v9107_v10 = vpop.f32.mrb[42].mxu1 }
 0x436   : > { %v2738_v34 = vadd.f32 %v9107_v10, %v11421_v8  ;;  %3181 = vrot.lane.b32.xlu1 %v2875_v29, %s9500_s24  ;;  %v2732_v4 = vpop.f32.mrb[43].mxu1 }
 0x437   : > { %v2733_v19 = vadd.f32 %v11421_v8, %v2732_v4  ;;  %3179 = vrot.lane.b32.xlu0 %v2874_v56, %s9500_s24  ;;  %v11617_v56 = vpop.permute.xlu1 %3149 }
 0x438   : > { %v2788_v21 = vmax.f32 %v2738_v34, 0.0 }
 0x439   : > { %v2787_v58 = vmax.f32 %v2733_v19, 0.0  ;;  %v2885_v10 = vld [vmem:[#allocation3 + $0x141] sm:$0xff] }
 0x43a   : > { %2821 = vst.msk [vmem:[#allocation3 + $0x159] sm:$0xff] %vm389_vm2, %v2788_v21  ;;  %3309 = vrot.lane.b32.xlu1 %v2907_v53, %s9492_s29  ;;  %v2884_v29 = vld [vmem:[#allocation3 + $0x139] sm:$0xff]  ;;  %v2917_v34 = vld [vmem:[#allocation3 + $0x142] sm:$0xff] }
 0x43b   : > { %2820 = vst.msk [vmem:[#allocation3 + $0x151] sm:$0xff] %vm389_vm2, %v2787_v58  ;;  %3307 = vrot.lane.b32.xlu0 %v2906_v23, %s9492_s29  ;;  %v2916_v4 = vld [vmem:[#allocation3 + $0x13a] sm:$0xff]  ;;  %v11620_v58 = vpop.permute.xlu0 %3147  ;;  %v11624_v23 = vpop.permute.xlu1 %3277 }
 0x43d   : > { %v9110_v17 = vpop.f32.mrb[44].mxu1 }
 0x43e   : > { %v2748_v32 = vadd.f32 %v9110_v17, %v11421_v8  ;;  %3185 = vrot.lane.b32.xlu1 %v2877_v16, %s9500_s24  ;;  %v2742_v62 = vpop.f32.mrb[45].mxu1 }
 0x43f   : > { %v2743_v40 = vadd.f32 %v11421_v8, %v2742_v62  ;;  %3183 = vrot.lane.b32.xlu0 %v2876_v48, %s9500_s24  ;;  %v11627_v16 = vpop.permute.xlu0 %3275 }
 0x440   : > { %v2790_v27 = vmax.f32 %v2748_v32, 0.0 }
 0x441   : > { %v2789_v38 = vmax.f32 %v2743_v40, 0.0  ;;  %v2887_v19 = vld [vmem:[#allocation3 + $0x159] sm:$0xff] }
 0x442   : > { %2823 = vst.msk [vmem:[#allocation3 + $0x171] sm:$0xff] %vm389_vm2, %v2790_v27  ;;  %3313 = vrot.lane.b32.xlu1 %v2909_v5, %s9492_s29  ;;  %v2886_v21 = vld [vmem:[#allocation3 + $0x151] sm:$0xff]  ;;  %v2919_v53 = vld [vmem:[#allocation3 + $0x15a] sm:$0xff] }
 0x443   : > { %2822 = vst.msk [vmem:[#allocation3 + $0x169] sm:$0xff] %vm389_vm2, %v2789_v38  ;;  %3311 = vrot.lane.b32.xlu0 %v2908_v20, %s9492_s29  ;;  %v2918_v17 = vld [vmem:[#allocation3 + $0x152] sm:$0xff]  ;;  %v11639_v20 = vld [vmem:[#allocation3 + $0x20] sm:$0xff] }
 0x445   : > { %v9113_v50 = vpop.f32.mrb[46].mxu1 }
 0x446   : > { %v2758_v35 = vadd.f32 %v9113_v50, %v11421_v8  ;;  %3189 = vrot.lane.b32.xlu1 %v2879_v41, %s9500_s24  ;;  %v2752_v36 = vpop.f32.mrb[47].mxu1  ;;  %v11643_v41 = vld [vmem:[#allocation3 + $0x18] sm:$0xff] }
 0x447   : > { %v2753_v3 = vadd.f32 %v11421_v8, %v2752_v36  ;;  %3187 = vrot.lane.b32.xlu0 %v2878_v44, %s9500_s24  ;;  %v2913_v8 = vld [vmem:[#allocation3 + $0x112] sm:$0xff] }
 0x448   : > { %v2792_v2 = vmax.f32 %v2758_v35, 0.0  ;;  %v11651_v36 = vld [vmem:[#allocation3 + $0x38] sm:$0xff] }
 0x449   : > { %v2791_v55 = vmax.f32 %v2753_v3, 0.0  ;;  %v2889_v32 = vld [vmem:[#allocation3 + $0x171] sm:$0xff] }
 0x44a   : > { %2825 = vst.msk [vmem:[#allocation3 + $0x189] sm:$0xff] %vm389_vm2, %v2792_v2  ;;  %3317 = vrot.lane.b32.xlu1 %v2911_v49, %s9492_s29  ;;  %v2888_v62 = vld [vmem:[#allocation3 + $0x169] sm:$0xff]  ;;  %v2921_v27 = vld [vmem:[#allocation3 + $0x172] sm:$0xff] }
 0x44b   : > { %2824 = vst.msk [vmem:[#allocation3 + $0x181] sm:$0xff] %vm389_vm2, %v2791_v55  ;;  %3315 = vrot.lane.b32.xlu0 %v2910_v31, %s9492_s29  ;;  %v2920_v38 = vld [vmem:[#allocation3 + $0x16a] sm:$0xff] }
 0x44c   : > { %v11655_v3 = vld [vmem:[#allocation3 + $0x30] sm:$0xff]  ;;  %v11669_v31 = vld [vmem:[#allocation3 + $0x48] sm:$0xff] }
 0x44d   : > { %v11665_v49 = vld [vmem:[#allocation3 + $0x50] sm:$0xff] }
 0x44e   : > { %3193 = vrot.lane.b32.xlu1 %v2881_v43, %s9500_s24 }
 0x44f   : > { %3191 = vrot.lane.b32.xlu0 %v2880_v63, %s9500_s24 }
 0x452   : > { %3321 = vrot.lane.b32.xlu1 %v2913_v8, %s9492_s29  ;;  %v11677_v8 = vld [vmem:[#allocation3 + $0x68] sm:$0xff] }
 0x453   : > { %3319 = vrot.lane.b32.xlu0 %v2912_v60, %s9492_s29  ;;  %13887 = vst [vmem:[#allocation25_spill] sm:$0xff] %v11677_v8  ;;  %v11681_v60 = vld [vmem:[#allocation3 + $0x60] sm:$0xff] }
 0x454   : > { %13888 = vst [vmem:[#allocation26_spill] sm:$0xff] %v11681_v60 }
 0x456   : > { %3197 = vrot.lane.b32.xlu1 %v2883_v30, %s9500_s24 }
 0x457   : > { %3195 = vrot.lane.b32.xlu0 %v2882_v22, %s9500_s24 }
 0x45a   : > { %3325 = vrot.lane.b32.xlu1 %v2915_v0, %s9492_s29  ;;  %v11689_v0 = vld [vmem:[#allocation3 + $0x80] sm:$0xff] }
 0x45b   : > { %3323 = vrot.lane.b32.xlu0 %v2914_v54, %s9492_s29  ;;  %13891 = vst [vmem:[#allocation29_spill] sm:$0xff] %v11689_v0  ;;  %v11693_v54 = vld [vmem:[#allocation3 + $0x78] sm:$0xff] }
 0x45e   : > { %3201 = vrot.lane.b32.xlu1 %v2885_v10, %s9500_s24 }
 0x45f   : > { %3199 = vrot.lane.b32.xlu0 %v2884_v29, %s9500_s24 }
 0x462   : > { %3329 = vrot.lane.b32.xlu1 %v2917_v34, %s9492_s29  ;;  %v11701_v34 = vld [vmem:[#allocation3 + $0x98] sm:$0xff] }
 0x463   : > { %3327 = vrot.lane.b32.xlu0 %v2916_v4, %s9492_s29  ;;  %v11705_v4 = vld [vmem:[#allocation3 + $0x90] sm:$0xff] }
 0x466   : > { %3205 = vrot.lane.b32.xlu1 %v2887_v19, %s9500_s24 }
 0x467   : > { %3203 = vrot.lane.b32.xlu0 %v2886_v21, %s9500_s24 }
 0x46a   : > { %3333 = vrot.lane.b32.xlu1 %v2919_v53, %s9492_s29  ;;  %v11713_v53 = vld [vmem:[#allocation3 + $0xb0] sm:$0xff] }
 0x46b   : > { %3331 = vrot.lane.b32.xlu0 %v2918_v17, %s9492_s29  ;;  %v11717_v17 = vld [vmem:[#allocation3 + $0xa8] sm:$0xff] }
 0x46e   : > { %3209 = vrot.lane.b32.xlu1 %v2889_v32, %s9500_s24 }
 0x46f   : > { %3207 = vrot.lane.b32.xlu0 %v2888_v62, %s9500_s24 }
 0x470   : > { %v11631_v48 = vpop.permute.xlu1 %3153 }
 0x471   : > { %v11633_v40 = vpop.permute.xlu0 %3151 }
 0x472   : > { %3337 = vrot.lane.b32.xlu1 %v2921_v27, %s9492_s29  ;;  %v11725_v27 = vld [vmem:[#allocation3 + $0xc8] sm:$0xff] }
 0x473   : > { %3335 = vrot.lane.b32.xlu0 %v2920_v38, %s9492_s29  ;;  %v11729_v38 = vld [vmem:[#allocation3 + $0xc0] sm:$0xff] }
 0x474   : > { %v11637_v5 = vpop.permute.xlu1 %3281 }
 0x475   : > { %13880 = vst [vmem:[#allocation8_spill] sm:$0xff] %v11637_v5  ;;  %v11641_v50 = vpop.permute.xlu0 %3279 }
 0x476   : > { %3405 = vrot.lane.b32.xlu1 %v11639_v20, %s9501_s15 }
 0x477   : > { %3403 = vrot.lane.b32.xlu0 %v11643_v41, %s9501_s15 }
 0x478   : > { %v11649_v35 = vpop.permute.xlu1 %3157 }
 0x479   : > { %13881 = vst [vmem:[#allocation15_spill] sm:$0xff] %v11649_v35  ;;  %v11653_v44 = vpop.permute.xlu0 %3155  ;;  %v11785_v35 = vld [vmem:[#allocation3 + $0x140] sm:$0xff] }
 0x47a   : > { %13882 = vst [vmem:[#allocation12_spill] sm:$0xff] %v11653_v44  ;;  %3409 = vrot.lane.b32.xlu1 %v11651_v36, %s9501_s15 }
 0x47b   : > { %3407 = vrot.lane.b32.xlu0 %v11655_v3, %s9501_s15 }
 0x47c   : > { %v11661_v2 = vpop.permute.xlu1 %3285 }
 0x47d   : > { %13883 = vst [vmem:[#allocation11_spill] sm:$0xff] %v11661_v2  ;;  %v11663_v55 = vpop.permute.xlu0 %3283  ;;  %v11773_v2 = vld [vmem:[#allocation3 + $0x128] sm:$0xff] }
 0x47e   : > { %13884 = vst [vmem:[#allocation22_spill] sm:$0xff] %v11663_v55  ;;  %3413 = vrot.lane.b32.xlu1 %v11665_v49, %s9501_s15  ;;  %13910 = vst [vmem:[#allocation73_spill] sm:$0xff] %v11773_v2  ;;  %v2953_v55 = vld [vmem:[#allocation3 + $0x188] sm:$0xff] }
 0x47f   : > { %3411 = vrot.lane.b32.xlu0 %v11669_v31, %s9501_s15 }
 0x480   : > { %v11673_v43 = vpop.permute.xlu1 %3161 }
 0x481   : > { %13885 = vst [vmem:[#allocation30_spill] sm:$0xff] %v11673_v43  ;;  %v11675_v63 = vpop.permute.xlu0 %3159 }
 0x482   : > { %13886 = vst [vmem:[#allocation37_spill] sm:$0xff] %v11675_v63  ;;  %3417 = vrot.lane.b32.xlu1 %v11677_v8, %s9501_s15 }
 0x483   : > { %3415 = vrot.lane.b32.xlu0 %v11681_v60, %s9501_s15 }
 0x484   : > { %v11685_v30 = vpop.permute.xlu1 %3289 }
 0x485   : > { %13889 = vst [vmem:[#allocation34_spill] sm:$0xff] %v11685_v30  ;;  %v11687_v22 = vpop.permute.xlu0 %3287  ;;  %v11749_v30 = vld [vmem:[#allocation3 + $0xf8] sm:$0xff] }
 0x486   : > { %13890 = vst [vmem:[#allocation18_spill] sm:$0xff] %v11687_v22  ;;  %3421 = vrot.lane.b32.xlu1 %v11689_v0, %s9501_s15  ;;  %13902 = vst [vmem:[#allocation49_spill] sm:$0xff] %v11749_v30  ;;  %v11761_v22 = vld [vmem:[#allocation3 + $0x110] sm:$0xff] }
 0x487   : > { %3419 = vrot.lane.b32.xlu0 %v11693_v54, %s9501_s15  ;;  %13906 = vst [vmem:[#allocation66_spill] sm:$0xff] %v11761_v22 }
 0x488   : > { %v11697_v10 = vpop.permute.xlu1 %3165 }
 0x489   : > { %13892 = vst [vmem:[#allocation38_spill] sm:$0xff] %v11697_v10  ;;  %v11699_v29 = vpop.permute.xlu0 %3163 }
 0x48a   : > { %13893 = vst [vmem:[#allocation41_spill] sm:$0xff] %v11699_v29  ;;  %3425 = vrot.lane.b32.xlu1 %v11701_v34, %s9501_s15 }
 0x48b   : > { %3423 = vrot.lane.b32.xlu0 %v11705_v4, %s9501_s15 }
 0x48c   : > { %v11709_v19 = vpop.permute.xlu1 %3293 }
 0x48d   : > { %13894 = vst [vmem:[#allocation33_spill] sm:$0xff] %v11709_v19  ;;  %v11711_v21 = vpop.permute.xlu0 %3291 }
 0x48e   : > { %13895 = vst [vmem:[#allocation46_spill] sm:$0xff] %v11711_v21  ;;  %3429 = vrot.lane.b32.xlu1 %v11713_v53, %s9501_s15  ;;  %v11737_v21 = vld [vmem:[#allocation3 + $0xe0] sm:$0xff] }
 0x48f   : > { %3427 = vrot.lane.b32.xlu0 %v11717_v17, %s9501_s15 }
 0x490   : > { %v11721_v32 = vpop.permute.xlu1 %3169 }
 0x491   : > { %13896 = vst [vmem:[#allocation53_spill] sm:$0xff] %v11721_v32  ;;  %v11723_v62 = vpop.permute.xlu0 %3167  ;;  %v11741_v32 = vld [vmem:[#allocation3 + $0xd8] sm:$0xff] }
 0x492   : > { %13897 = vst [vmem:[#allocation42_spill] sm:$0xff] %v11723_v62  ;;  %3433 = vrot.lane.b32.xlu1 %v11725_v27, %s9501_s15 }
 0x493   : > { %3431 = vrot.lane.b32.xlu0 %v11729_v38, %s9501_s15 }
 0x494   : > { %v11733_v19 = vpop.permute.xlu1 %3297 }
 0x495   : > { %13898 = vst [vmem:[#allocation50_spill] sm:$0xff] %v11733_v19  ;;  %v11735_v10 = vpop.permute.xlu0 %3295  ;;  %v11753_v19 = vld [vmem:[#allocation3 + $0xf0] sm:$0xff] }
 0x496   : > { %13899 = vst [vmem:[#allocation45_spill] sm:$0xff] %v11735_v10  ;;  %3437 = vrot.lane.b32.xlu1 %v11737_v21, %s9501_s15  ;;  %13903 = vst [vmem:[#allocation62_spill] sm:$0xff] %v11753_v19 }
 0x497   : > { %3435 = vrot.lane.b32.xlu0 %v11741_v32, %s9501_s15 }
 0x498   : > { %v11745_v62 = vpop.permute.xlu1 %3173 }
 0x499   : > { %13900 = vst [vmem:[#allocation54_spill] sm:$0xff] %v11745_v62  ;;  %v11747_v29 = vpop.permute.xlu0 %3171  ;;  %v11765_v62 = vld [vmem:[#allocation3 + $0x108] sm:$0xff] }
 0x49a   : > { %13901 = vst [vmem:[#allocation57_spill] sm:$0xff] %v11747_v29  ;;  %3441 = vrot.lane.b32.xlu1 %v11749_v30, %s9501_s15  ;;  %13907 = vst [vmem:[#allocation61_spill] sm:$0xff] %v11765_v62 }
 0x49b   : > { %3439 = vrot.lane.b32.xlu0 %v11753_v19, %s9501_s15  ;;  %v11809_v19 = vld [vmem:[#allocation3 + $0x170] sm:$0xff] }
 0x49c   : > { %v11757_v10 = vpop.permute.xlu1 %3301 }
 0x49d   : > { %13904 = vst [vmem:[#allocation69_spill] sm:$0xff] %v11757_v10  ;;  %v11759_v43 = vpop.permute.xlu0 %3299  ;;  %v11777_v10 = vld [vmem:[#allocation3 + $0x120] sm:$0xff] }
 0x49e   : > { %13905 = vst [vmem:[#allocation58_spill] sm:$0xff] %v11759_v43  ;;  %3445 = vrot.lane.b32.xlu1 %v11761_v22, %s9501_s15  ;;  %13911 = vst [vmem:[#allocation94_spill] sm:$0xff] %v11777_v10 }
 0x49f   : > { %3443 = vrot.lane.b32.xlu0 %v11765_v62, %s9501_s15  ;;  %v11797_v62 = vld [vmem:[#allocation3 + $0x158] sm:$0xff] }
 0x4a0   : > { %v11769_v29 = vpop.permute.xlu1 %3177 }
 0x4a1   : > { %13908 = vst [vmem:[#allocation70_spill] sm:$0xff] %v11769_v29  ;;  %v11771_v63 = vpop.permute.xlu0 %3175  ;;  %v11789_v29 = vld [vmem:[#allocation3 + $0x138] sm:$0xff] }
 0x4a2   : > { %13909 = vst [vmem:[#allocation65_spill] sm:$0xff] %v11771_v63  ;;  %3449 = vrot.lane.b32.xlu1 %v11773_v2, %s9501_s15 }
 0x4a3   : > { %3447 = vrot.lane.b32.xlu0 %v11777_v10, %s9501_s15 }
 0x4a4   : > { %v11781_v43 = vpop.permute.xlu1 %3305 }
 0x4a5   : > { %13912 = vst [vmem:[#allocation101_spill] sm:$0xff] %v11781_v43  ;;  %v11783_v22 = vpop.permute.xlu0 %3303  ;;  %v11801_v43 = vld [vmem:[#allocation3 + $0x150] sm:$0xff] }
 0x4a6   : > { %13913 = vst [vmem:[#allocation157_spill] sm:$0xff] %v11783_v22  ;;  %3453 = vrot.lane.b32.xlu1 %v11785_v35, %s9501_s15 }
 0x4a7   : > { %3451 = vrot.lane.b32.xlu0 %v11789_v29, %s9501_s15 }
 0x4a8   : > { %v11793_v63 = vpop.permute.xlu1 %3181 }
 0x4a9   : > { %13914 = vst [vmem:[#allocation90_spill] sm:$0xff] %v11793_v63  ;;  %v11795_v2 = vpop.permute.xlu0 %3179  ;;  %v11813_v63 = vld [vmem:[#allocation3 + $0x168] sm:$0xff] }
 0x4aa   : > { %13915 = vst [vmem:[#allocation98_spill] sm:$0xff] %v11795_v2  ;;  %3457 = vrot.lane.b32.xlu1 %v11797_v62, %s9501_s15 }
 0x4ab   : > { %3455 = vrot.lane.b32.xlu0 %v11801_v43, %s9501_s15 }
 0x4ac   : > { %v11805_v22 = vpop.permute.xlu1 %3309 }
 0x4ad   : > { %13916 = vst [vmem:[#allocation116_spill] sm:$0xff] %v11805_v22  ;;  %v11807_v10 = vpop.permute.xlu0 %3307  ;;  %v2952_v22 = vld [vmem:[#allocation3 + $0x180] sm:$0xff] }
 0x4ae   : > { %13917 = vst [vmem:[#allocation93_spill] sm:$0xff] %v11807_v10  ;;  %3461 = vrot.lane.b32.xlu1 %v11809_v19, %s9501_s15 }
 0x4af   : > { %3459 = vrot.lane.b32.xlu0 %v11813_v63, %s9501_s15 }
 0x4b0   : > { %v11817_v2 = vpop.permute.xlu1 %3185 }
 0x4b1   : > { %13918 = vst [vmem:[#allocation102_spill] sm:$0xff] %v11817_v2  ;;  %v11819_v30 = vpop.permute.xlu0 %3183 }
 0x4b2   : > { %13919 = vst [vmem:[#allocation115_spill] sm:$0xff] %v11819_v30  ;;  %3465 = vrot.lane.b32.xlu1 %v2953_v55, %s9501_s15  ;;  %v457_v55 = vld [vmem:[%s13543_s5] sm:$0xff] }
 0x4b3   : > { %3463 = vrot.lane.b32.xlu0 %v2952_v22, %s9501_s15  ;;  %v458_v22 = vld [vmem:[%s13543_s5 + $0x8] sm:$0xff]  ;;  %s8886_s15 = sshll.u32 %s9581_s8, 5  ;;  %s8602_s8 = scalar_lea.sflag [#allocation6], %s325_s28 }
 0x4b4   : > { %v11823_v10 = vpop.permute.xlu1 %3313 }
 0x4b5   : > { %13920 = vst [vmem:[#allocation137_spill] sm:$0xff] %v11823_v10  ;;  %v11825_v44 = vpop.permute.xlu0 %3311  ;;  %v9188_v10 = vpack.c.bf16 %v458_v22, %v457_v55 }
 0x4b6   : > { %13921 = vst [vmem:[#allocation104_spill] sm:$0xff] %v11825_v44  ;;  %3533 = vrot.lane.b32.xlu1 %v11433_v6, %s9493_s30 }
 0x4b7   : > { %3531 = vrot.lane.b32.xlu0 %v11439_v52, %s9493_s30  ;;  %9189 = vmatprep.subr.bf16.mxu0 %v9188_v10 }
 0x4b8   : > { %v11831_v5 = vpop.permute.xlu1 %3189  ;;  %9191 = vmatpush3.bf16.msra.mxu0 %v9188_v10 }
 0x4b9   : > { %13922 = vst [vmem:[#allocation97_spill] sm:$0xff] %v11831_v5  ;;  %v11833_v2 = vpop.permute.xlu0 %3187  ;;  %v459_v5 = vld [vmem:[%s13543_s5 + $0x10] sm:$0xff] }
 0x4ba   : > { %13923 = vst [vmem:[#allocation136_spill] sm:$0xff] %v11833_v2  ;;  %3537 = vrot.lane.b32.xlu1 %v11457_v47, %s9493_s30  ;;  %v460_v2 = vld [vmem:[%s13543_s5 + $0x18] sm:$0xff] }
 0x4bb   : > { %3535 = vrot.lane.b32.xlu0 %v11463_v13, %s9493_s30  ;;  %v9192_v55 = vpack.c.bf16 %v460_v2, %v459_v5 }
 0x4bc   : > { %v11845_v6 = vpop.permute.xlu1 %3317 }
 0x4bd   : > { %13924 = vst [vmem:[#allocation159_spill] sm:$0xff] %v11845_v6  ;;  %v11847_v52 = vpop.permute.xlu0 %3315  ;;  %9193 = vmatprep.subr.bf16.mxu0 %v9192_v55  ;;  %v461_v6 = vld [vmem:[%s13543_s5 + $0x20] sm:$0xf] }
 0x4be   : > { %13925 = vst [vmem:[#allocation105_spill] sm:$0xff] %v11847_v52  ;;  %3661 = vrot.lane.b32.xlu1 %v11445_v61, %s9502_s10  ;;  %9195 = vmatpush3.bf16.msra.mxu0 %v9192_v55 }
 0x4bf   : > { %3659 = vrot.lane.b32.xlu0 %v11451_v57, %s9502_s10  ;;  %9122 = vmatprep.subr.msk.mxu0 %vm4501_vm12, %v461_v6 }
 0x4c0   : > { %v11859_v22 = vpop.permute.xlu1 %3193 }
 0x4c1   : > { %13926 = vst [vmem:[#allocation106_spill] sm:$0xff] %v11859_v22  ;;  %v11861_v10 = vpop.permute.xlu0 %3191 }
 0x4c2   : > { %13927 = vst [vmem:[#allocation158_spill] sm:$0xff] %v11861_v10  ;;  %3789 = vrot.lane.b32.xlu1 %v11651_v36, %s9494_s17  ;;  %9123 = vmatpush3.msk.msra.mxu0 %vm4501_vm12, %v461_v6  ;;  %vm8478_vm12 = vcmask 851712  }
 0x4c3   : > { %3787 = vrot.lane.b32.xlu0 %v11655_v3, %s9494_s17 }
 0x4c4   : > { %v11870_v61 = vpop.permute.xlu1 %3321 }
 0x4c5   : > { %13928 = vst [vmem:[#allocation110_spill] sm:$0xff] %v11870_v61  ;;  %v11872_v57 = vpop.permute.xlu0 %3319 }
 0x4c6   : > { %13929 = vst [vmem:[#allocation113_spill] sm:$0xff] %v11872_v57  ;;  %3917 = vrot.lane.b32.xlu1 %v11457_v47, %s9503_s22 }
 0x4c7   : > { %3915 = vrot.lane.b32.xlu0 %v11463_v13, %s9503_s22 }
 0x4c8   : > { %v11878_v5 = vpop.permute.xlu1 %3197 }
 0x4c9   : > { %13930 = vst [vmem:[#allocation118_spill] sm:$0xff] %v11878_v5  ;;  %v11880_v2 = vpop.permute.xlu0 %3195 }
 0x4ca   : > { %13931 = vst [vmem:[#allocation16_spill] sm:$0xff] %v11880_v2  ;;  %3663 = vrot.lane.b32.xlu1 %v11475_v1, %s9502_s10 }
 0x4cb   : > { %4043 = vrot.lane.b32.xlu0 %v11475_v1, %s9495_s18 }
 0x4cc   : > { %v11886_v55 = vpop.permute.xlu1 %3325 }
 0x4cd   : > { %13932 = vst [vmem:[#allocation107_spill] sm:$0xff] %v11886_v55  ;;  %v11888_v6 = vpop.permute.xlu0 %3323 }
 0x4ce   : > { %13933 = vst [vmem:[#allocation117_spill] sm:$0xff] %v11888_v6  ;;  %3665 = vrot.lane.b32.xlu1 %v11469_v37, %s9502_s10 }
 0x4cf   : > { %4045 = vrot.lane.b32.xlu0 %v11469_v37, %s9495_s18 }
 0x4d0   : > { %v11894_v47 = vpop.permute.xlu1 %3201 }
 0x4d1   : > { %v11896_v13 = vpop.permute.xlu0 %3199 }
 0x4d2   : > { %3793 = vrot.lane.b32.xlu1 %v11665_v49, %s9494_s17 }
 0x4d3   : > { %3791 = vrot.lane.b32.xlu0 %v11669_v31, %s9494_s17 }
 0x4d4   : > { %v11902_v1 = vpop.permute.xlu1 %3329 }
 0x4d5   : > { %v11904_v55 = vpop.permute.xlu0 %3327 }
 0x4d6   : > { %3539 = vrot.lane.b32.xlu1 %v11487_v25, %s9493_s30 }
 0x4d7   : > { %3919 = vrot.lane.b32.xlu0 %v11487_v25, %s9503_s22 }
 0x4d8   : > { %v11910_v37 = vpop.permute.xlu1 %3205 }
 0x4d9   : > { %v11912_v5 = vpop.permute.xlu0 %3203 }
 0x4da   : > { %4047 = vrot.lane.b32.xlu1 %v11499_v9, %s9495_s18 }
 0x4db   : > { %3921 = vrot.lane.b32.xlu0 %v11481_v46, %s9503_s22 }
 0x4dc   : > { %v11918_v6 = vpop.permute.xlu1 %3333 }
 0x4dd   : > { %v11920_v2 = vpop.permute.xlu0 %3331 }
 0x4de   : > { %3667 = vrot.lane.b32.xlu1 %v11499_v9, %s9502_s10 }
 0x4df   : > { %3541 = vrot.lane.b32.xlu0 %v11481_v46, %s9493_s30 }
 0x4e0   : > { %v11926_v25 = vpop.permute.xlu1 %3209 }
 0x4e1   : > { %v11928_v61 = vpop.permute.xlu0 %3207 }
 0x4e2   : > { %3669 = vrot.lane.b32.xlu1 %v11493_v45, %s9502_s10 }
 0x4e3   : > { %4049 = vrot.lane.b32.xlu0 %v11493_v45, %s9495_s18 }
 0x4e4   : > { %v11934_v22 = vpop.permute.xlu1 %3337 }
 0x4e5   : > { %v11936_v57 = vpop.permute.xlu0 %3335 }
 0x4e6   : > { %3797 = vrot.lane.b32.xlu1 %v11677_v8, %s9494_s17 }
 0x4e7   : > { %3795 = vrot.lane.b32.xlu0 %v11681_v60, %s9494_s17 }
 0x4e8   : > { %v11942_v46 = vpop.permute.xlu1 %3405 }
 0x4e9   : > { %v11944_v9 = vpop.permute.xlu0 %3403 }
 0x4ea   : > { %3543 = vrot.lane.b32.xlu1 %v11511_v33, %s9493_s30 }
 0x4eb   : > { %3923 = vrot.lane.b32.xlu0 %v11511_v33, %s9503_s22 }
 0x4ec   : > { %v11950_v45 = vpop.permute.xlu1 %3409 }
 0x4ed   : > { %v11952_v10 = vpop.permute.xlu0 %3407 }
 0x4ee   : > { %4051 = vrot.lane.b32.xlu1 %v11522_v24, %s9495_s18 }
 0x4ef   : > { %3925 = vrot.lane.b32.xlu0 %v11505_v51, %s9503_s22 }
 0x4f0   : > { %v11958_v52 = vpop.permute.xlu1 %3413 }
 0x4f1   : > { %v11960_v44 = vpop.permute.xlu0 %3411 }
 0x4f2   : > { %3671 = vrot.lane.b32.xlu1 %v11522_v24, %s9502_s10 }
 0x4f3   : > { %3545 = vrot.lane.b32.xlu0 %v11505_v51, %s9493_s30 }
 0x4f4   : > { %v11966_v33 = vpop.permute.xlu1 %3417 }
 0x4f5   : > { %v11968_v30 = vpop.permute.xlu0 %3415 }
 0x4f6   : > { %3673 = vrot.lane.b32.xlu1 %v11517_v26, %s9502_s10 }
 0x4f7   : > { %4053 = vrot.lane.b32.xlu0 %v11517_v26, %s9495_s18 }
 0x4f8   : > { %v11974_v8 = vpop.permute.xlu1 %3421 }
 0x4f9   : > { %13934 = vst [vmem:[#allocation139_spill] sm:$0xff] %v11974_v8  ;;  %v11976_v60 = vpop.permute.xlu0 %3419 }
 0x4fa   : > { %3801 = vrot.lane.b32.xlu1 %v11689_v0, %s9494_s17 }
 0x4fb   : > { %3799 = vrot.lane.b32.xlu0 %v11693_v54, %s9494_s17 }
 0x4fc   : > { %v11982_v51 = vpop.permute.xlu1 %3425 }
 0x4fd   : > { %13935 = vst [vmem:[#allocation138_spill] sm:$0xff] %v11982_v51  ;;  %v11984_v24 = vpop.permute.xlu0 %3423 }
 0x4fe   : > { %3547 = vrot.lane.b32.xlu1 %v11532_v15, %s9493_s30 }
 0x4ff   : > { %3927 = vrot.lane.b32.xlu0 %v11532_v15, %s9503_s22 }
 0x500   : > { %v11990_v26 = vpop.permute.xlu1 %3429 }
 0x501   : > { %13936 = vst [vmem:[#allocation161_spill] sm:$0xff] %v11990_v26  ;;  %v11992_v8 = vpop.permute.xlu0 %3427 }
 0x502   : > { %13937 = vst [vmem:[#allocation109_spill] sm:$0xff] %v11992_v8  ;;  %4055 = vrot.lane.b32.xlu1 %v11542_v42, %s9495_s18 }
 0x503   : > { %3929 = vrot.lane.b32.xlu0 %v11527_v7, %s9503_s22 }
 0x504   : > { %v11998_v0 = vpop.permute.xlu1 %3433 }
 0x505   : > { %13938 = vst [vmem:[#allocation160_spill] sm:$0xff] %v11998_v0  ;;  %v12000_v51 = vpop.permute.xlu0 %3431 }
 0x506   : > { %3675 = vrot.lane.b32.xlu1 %v11542_v42, %s9502_s10 }
 0x507   : > { %3549 = vrot.lane.b32.xlu0 %v11527_v7, %s9493_s30 }
 0x508   : > { %v12006_v15 = vpop.permute.xlu1 %3437 }
 0x509   : > { %v12008_v26 = vpop.permute.xlu0 %3435 }
 0x50a   : > { %3677 = vrot.lane.b32.xlu1 %v11537_v59, %s9502_s10 }
 0x50b   : > { %4057 = vrot.lane.b32.xlu0 %v11537_v59, %s9495_s18 }
 0x50c   : > { %v12014_v8 = vpop.permute.xlu1 %3441 }
 0x50d   : > { %13939 = vst [vmem:[#allocation23_spill] sm:$0xff] %v12014_v8  ;;  %v12016_v0 = vpop.permute.xlu0 %3439 }
 0x50e   : > { %13940 = vst [vmem:[#allocation19_spill] sm:$0xff] %v12016_v0  ;;  %3805 = vrot.lane.b32.xlu1 %v11701_v34, %s9494_s17 }
 0x50f   : > { %3803 = vrot.lane.b32.xlu0 %v11705_v4, %s9494_s17 }
 0x510   : > { %v12022_v7 = vpop.permute.xlu1 %3445 }
 0x511   : > { %13941 = vst [vmem:[#allocation120_spill] sm:$0xff] %v12022_v7  ;;  %v12024_v42 = vpop.permute.xlu0 %3443 }
 0x512   : > { %13942 = vst [vmem:[#allocation9_spill] sm:$0xff] %v12024_v42  ;;  %3551 = vrot.lane.b32.xlu1 %v11552_v14, %s9493_s30 }
 0x513   : > { %3931 = vrot.lane.b32.xlu0 %v11552_v14, %s9503_s22  ;;  %v4166_v14 = vsel %vm389_vm2, %v11785_v35, %v11894_v47 }
 0x514   : > { %v12030_v59 = vpop.permute.xlu1 %3449 }
 0x515   : > { %13943 = vst [vmem:[#allocation10_spill] sm:$0xff] %v12030_v59  ;;  %v12032_v8 = vpop.permute.xlu0 %3447  ;;  %v4165_v59 = vsel %vm389_vm2, %v11789_v29, %v11896_v13  ;;  %v4167_v29 = vsel %vm389_vm2, %v11801_v43, %v11912_v5  ;;  %v4169_v43 = vsel %vm389_vm2, %v11813_v63, %v11928_v61 }
 0x516   : > { %13944 = vst [vmem:[#allocation119_spill] sm:$0xff] %v12032_v8  ;;  %4059 = vrot.lane.b32.xlu1 %v11562_v18, %s9495_s18  ;;  %v4198_v8 = vsel %vm333_vm0, %v4166_v14, %v11902_v1 }
 0x517   : > { %3933 = vrot.lane.b32.xlu0 %v11547_v12, %s9503_s22 }
 0x518   : > { %v12038_v0 = vpop.permute.xlu1 %3453 }
 0x519   : > { %13945 = vst [vmem:[#allocation141_spill] sm:$0xff] %v12038_v0  ;;  %v12040_v7 = vpop.permute.xlu0 %3451 }
 0x51a   : > { %13946 = vst [vmem:[#allocation13_spill] sm:$0xff] %v12040_v7  ;;  %3679 = vrot.lane.b32.xlu1 %v11562_v18, %s9502_s10  ;;  %v4197_v7 = vsel %vm333_vm0, %v4165_v59, %v11904_v55  ;;  %v4199_v55 = vsel %vm333_vm0, %v4167_v29, %v11920_v2 }
 0x51b   : > { %3553 = vrot.lane.b32.xlu0 %v11547_v12, %s9493_s30  ;;  %v4168_v12 = vsel %vm389_vm2, %v11797_v62, %v11910_v37 }
 0x51c   : > { %v3458_v0 = vpop.permute.xlu1 %3457 }
 0x51d   : > { %v12057_v18 = vsel %vm4203_vm13, %v4198_v8, %v3458_v0  ;;  %v3456_v42 = vpop.permute.xlu0 %3455  ;;  %v4200_v8 = vsel %vm333_vm0, %v4168_v12, %v11918_v6  ;;  %v4201_v6 = vsel %vm333_vm0, %v4169_v43, %v11936_v57  ;;  %v2827_v12 = vld [vmem:[#allocation3 + $0x8] sm:$0xff] }
 0x51e   : > { %v12060_v35 = vsel %vm4203_vm13, %v4197_v7, %v3456_v42  ;;  %3681 = vrot.lane.b32.xlu1 %v11557_v39, %s9502_s10  ;;  %v2999_v7 = vld [vmem:[#allocation3 + $0xb2] sm:$0xff] }
 0x51f   : > { %4061 = vrot.lane.b32.xlu0 %v11557_v39, %s9495_s18  ;;  %v4170_v39 = vsel %vm389_vm2, %v11809_v19, %v11926_v25 }
 0x520   : > { %v3462_v0 = vpop.permute.xlu1 %3461  ;;  %v4202_v5 = vsel %vm333_vm0, %v4170_v39, %v11934_v22  ;;  %v3062_v22 = vld [vmem:[#allocation3 + $0xb1] sm:$0xff] }
 0x521   : > { %v12077_v47 = vsel %vm4203_vm13, %v4200_v8, %v3462_v0  ;;  %v3460_v13 = vpop.permute.xlu0 %3459  ;;  %v4140_v8 = vsel %vm389_vm2, %v2827_v12, %v11617_v56 }
 0x522   : > { %v12080_v62 = vsel %vm4203_vm13, %v4199_v55, %v3460_v13  ;;  %3809 = vrot.lane.b32.xlu1 %v11713_v53, %s9494_s17  ;;  %v2968_v55 = vld [vmem:[#allocation3 + $0xc1] sm:$0xff] }
 0x523   : > { %3807 = vrot.lane.b32.xlu0 %v11717_v17, %s9494_s17 }
 0x524   : > { %v3466_v2 = vpop.permute.xlu1 %3465 }
 0x525   : > { %v12097_v53 = vsel %vm4203_vm13, %v4202_v5, %v3466_v2  ;;  %v3464_v1 = vpop.permute.xlu0 %3463  ;;  %v3095_v5 = vld [vmem:[#allocation3 + $0xc2] sm:$0xff] }
 0x526   : > { %v12100_v19 = vsel %vm4203_vm13, %v4201_v6, %v3464_v1  ;;  %3555 = vrot.lane.b32.xlu1 %v11569_v28, %s9493_s30  ;;  %v3064_v1 = vld [vmem:[#allocation3 + $0xc9] sm:$0xff] }
 0x527   : > { %3935 = vrot.lane.b32.xlu0 %v11569_v28, %s9503_s22  ;;  %v2826_v28 = vld [vmem:[#allocation3] sm:$0xff] }
 0x528   : > { %v3534_v63 = vpop.permute.xlu1 %3533  ;;  %v4139_v59 = vsel %vm389_vm2, %v2826_v28, %v11620_v58  ;;  %v3001_v28 = vld [vmem:[#allocation3 + $0xca] sm:$0xff] }
 0x529   : > { %v3532_v17 = vpop.permute.xlu0 %3531 }
 0x52a   : > { %4063 = vrot.lane.b32.xlu1 %v11576_v11, %s9495_s18 }
 0x52b   : > { %3937 = vrot.lane.b32.xlu0 %v3062_v22, %s9503_s22 }
 0x52c   : > { %v12109_v61 = vpop.permute.xlu1 %3537 }
 0x52d   : > { %v3536_v57 = vpop.permute.xlu0 %3535 }
 0x52e   : > { %3683 = vrot.lane.b32.xlu1 %v11576_v11, %s9502_s10  ;;  %v4171_v11 = vsel %vm333_vm0, %v4139_v59, %v11627_v16  ;;  %v4172_v16 = vsel %vm333_vm0, %v4140_v8, %v11624_v23  ;;  %v4141_v59 = vsel %vm389_vm2, %v11643_v41, %v11633_v40 }
 0x52f   : > { %3557 = vrot.lane.b32.xlu0 %v3062_v22, %s9493_s30  ;;  %v4204_v0 = vsel %vm4203_vm13, %v4171_v11, %v11944_v9  ;;  %v4205_v9 = vsel %vm4203_vm13, %v4172_v16, %v11942_v46  ;;  %v3097_v16 = vld [vmem:[#allocation3 + $0xda] sm:$0xff] }
 0x530   : > { %v3662_v37 = vpop.permute.xlu1 %3661  ;;  %v4236_v13 = vsel %vm2202_vm4, %v4204_v0, %v3532_v17  ;;  %v4237_v2 = vsel %vm2202_vm4, %v4205_v9, %v3534_v63 }
 0x531   : > { %v3660_v25 = vpop.permute.xlu0 %3659  ;;  %v4270_v23 = vsel %vm4268_vm14, %v4237_v2, %v3662_v37  ;;  %v3003_v2 = vld [vmem:[#allocation3 + $0xe2] sm:$0xff] }
 0x532   : > { %3685 = vrot.lane.b32.xlu1 %v2999_v7, %s9502_s10 }
 0x533   : > { %4065 = vrot.lane.b32.xlu0 %v2999_v7, %s9495_s18 }
 0x534   : > { %v3790_v42 = vpop.permute.xlu1 %3789 }
 0x535   : > { %v3788_v14 = vpop.permute.xlu0 %3787  ;;  %v4302_v17 = vsel %vm2235_vm5, %v4270_v23, %v3790_v42  ;;  %v4173_v42 = vsel %vm333_vm0, %v4141_v59, %v11641_v50  ;;  %v13949_v23 = vld [vmem:[#allocation22_spill] sm:$0xff] }
 0x536   : > { %3813 = vrot.lane.b32.xlu1 %v11725_v27, %s9494_s17  ;;  %v4269_v27 = vsel %vm4268_vm14, %v4236_v13, %v3660_v25 }
 0x537   : > { %3811 = vrot.lane.b32.xlu0 %v11729_v38, %s9494_s17  ;;  %v4301_v38 = vsel %vm2235_vm5, %v4269_v27, %v3788_v14  ;;  %v4206_v14 = vsel %vm4203_vm13, %v4173_v42, %v11952_v10 }
 0x538   : > { %v3918_v29 = vpop.permute.xlu1 %3917  ;;  %v4238_v11 = vsel %vm2202_vm4, %v4206_v14, %v3536_v57  ;;  %v13947_v57 = vld [vmem:[#allocation8_spill] sm:$0xff] }
 0x539   : > { %v3916_v58 = vpop.permute.xlu0 %3915  ;;  %v4335_v22 = vsel %vm4333_vm15, %v4302_v17, %v3918_v29 }
 0x53a   : > { %3559 = vrot.lane.b32.xlu1 %v2968_v55, %s9493_s30  ;;  %v4334_v39 = vsel %vm4333_vm15, %v4301_v38, %v3916_v58  ;;  %v2970_v58 = vld [vmem:[#allocation3 + $0xd9] sm:$0xff] }
 0x53b   : > { %3939 = vrot.lane.b32.xlu0 %v2968_v55, %s9503_s22 }
 0x53c   : > { %v3664_v56 = vpop.permute.xlu1 %3663 }
 0x53d   : > { %v4044_v43 = vpop.permute.xlu0 %4043  ;;  %v4271_v8 = vsel %vm4268_vm14, %v4238_v11, %v3664_v56  ;;  %v3066_v56 = vld [vmem:[#allocation3 + $0xe1] sm:$0xff]  ;;  %v2972_v11 = vld [vmem:[#allocation3 + $0xf1] sm:$0xff] }
 0x53e   : > { %v4366_v6 = vsel %vm2268_vm6, %v4334_v39, %v4044_v43  ;;  %4067 = vrot.lane.b32.xlu1 %v3095_v5, %s9495_s18 }
 0x53f   : > { %3941 = vrot.lane.b32.xlu0 %v3064_v1, %s9503_s22  ;;  %9124 = vmatprep.mubr.msk.f32.mxu0 %vm4404_vm1, %v4366_v6  ;;  %v13948_v6 = vld [vmem:[#allocation12_spill] sm:$0xff] }
 0x540   : > { %v3666_v46 = vpop.permute.xlu1 %3665 }
 0x541   : > { %v4046_v25 = vpop.permute.xlu0 %4045 }
 0x542   : > { %v4367_v7 = vsel %vm2268_vm6, %v4335_v22, %v4046_v25  ;;  %3687 = vrot.lane.b32.xlu1 %v3095_v5, %s9502_s10 }
 0x543   : > { %3561 = vrot.lane.b32.xlu0 %v3064_v1, %s9493_s30  ;;  %9125 = vmatmul.mubr.msk.f32.vlgmr.msra.gmra.mrb[16].mxu0 %vm4404_vm1, %v4367_v7  ;;  %v4143_v1 = vsel %vm389_vm2, %v11655_v3, %v13948_v6  ;;  %v13957_v6 = vld [vmem:[#allocation61_spill] sm:$0xff] }
 0x544   : > { %v3794_v63 = vpop.permute.xlu1 %3793  ;;  %v4175_v17 = vsel %vm333_vm0, %v4143_v1, %v13949_v23 }
 0x545   : > { %v3792_v37 = vpop.permute.xlu0 %3791 }
 0x546   : > { %3689 = vrot.lane.b32.xlu1 %v3001_v28, %s9502_s10  ;;  %v4303_v40 = vsel %vm2235_vm5, %v4271_v8, %v3792_v37  ;;  %v13950_v37 = vld [vmem:[#allocation49_spill] sm:$0xff]  ;;  %v13953_v8 = vld [vmem:[#allocation11_spill] sm:$0xff] }
 0x547   : > { %4069 = vrot.lane.b32.xlu0 %v3001_v28, %s9495_s18  ;;  %v13951_v28 = vld [vmem:[#allocation62_spill] sm:$0xff] }
 0x548   : > { %v3540_v12 = vpop.permute.xlu1 %3539 }
 0x549   : > { %v3920_v29 = vpop.permute.xlu0 %3919 }
 0x54a   : > { %3817 = vrot.lane.b32.xlu1 %v11737_v21, %s9494_s17  ;;  %v4336_v50 = vsel %vm4333_vm15, %v4303_v40, %v3920_v29  ;;  %v4142_v21 = vsel %vm389_vm2, %v11639_v20, %v11631_v48 }
 0x54b   : > { %3815 = vrot.lane.b32.xlu0 %v11741_v32, %s9494_s17  ;;  %v4174_v32 = vsel %vm333_vm0, %v4142_v21, %v13947_v57  ;;  %v3068_v21 = vld [vmem:[#allocation3 + $0xf9] sm:$0xff] }
 0x54c   : > { %v4048_v41 = vpop.permute.xlu1 %4047  ;;  %v4207_v13 = vsel %vm4203_vm13, %v4174_v32, %v11950_v45 }
 0x54d   : > { %v4368_v0 = vsel %vm2268_vm6, %v4336_v50, %v4048_v41  ;;  %v3922_v10 = vpop.permute.xlu0 %3921  ;;  %v4239_v38 = vsel %vm2202_vm4, %v4207_v13, %v12109_v61 }
 0x54e   : > { %3563 = vrot.lane.b32.xlu1 %v2970_v58, %s9493_s30  ;;  %9127 = vmatprep.mubr.msk.f32.mxu0 %vm4404_vm1, %v4368_v0  ;;  %v4272_v9 = vsel %vm4268_vm14, %v4239_v38, %v3666_v46  ;;  %v4208_v46 = vsel %vm4203_vm13, %v4175_v17, %v11960_v44  ;;  %v3005_v38 = vld [vmem:[#allocation3 + $0xfa] sm:$0xff] }
 0x54f   : > { %3943 = vrot.lane.b32.xlu0 %v2970_v58, %s9503_s22  ;;  %v4304_v48 = vsel %vm2235_vm5, %v4272_v9, %v3794_v63  ;;  %v4240_v25 = vsel %vm2202_vm4, %v4208_v46, %v3540_v12  ;;  %v13952_v12 = vld [vmem:[#allocation15_spill] sm:$0xff] }
 0x550   : > { %v3668_v55 = vpop.permute.xlu1 %3667  ;;  %v4337_v39 = vsel %vm4333_vm15, %v4304_v48, %v3922_v10  ;;  %v4144_v29 = vsel %vm389_vm2, %v11651_v36, %v13952_v12  ;;  %v3099_v10 = vld [vmem:[#allocation3 + $0xf2] sm:$0xff]  ;;  %v13955_v48 = vld [vmem:[#allocation18_spill] sm:$0xff] }
 0x551   : > { %v3542_v27 = vpop.permute.xlu0 %3541  ;;  %v4273_v63 = vsel %vm4268_vm14, %v4240_v25, %v3668_v55  ;;  %v4176_v40 = vsel %vm333_vm0, %v4144_v29, %v13953_v8  ;;  %v2974_v46 = vld [vmem:[#allocation3 + $0x109] sm:$0xff] }
 0x552   : > { %4071 = vrot.lane.b32.xlu1 %v3097_v16, %s9495_s18  ;;  %v4209_v41 = vsel %vm4203_vm13, %v4176_v40, %v11958_v52 }
 0x553   : > { %3945 = vrot.lane.b32.xlu0 %v3066_v56, %s9503_s22  ;;  %v4241_v58 = vsel %vm2202_vm4, %v4209_v41, %v3542_v27  ;;  %v13960_v41 = vld [vmem:[#allocation41_spill] sm:$0xff] }
 0x554   : > { %v3670_v20 = vpop.permute.xlu1 %3669 }
 0x555   : > { %v4050_v43 = vpop.permute.xlu0 %4049  ;;  %v4274_v57 = vsel %vm4268_vm14, %v4241_v58, %v3670_v20  ;;  %v13962_v58 = vld [vmem:[#allocation46_spill] sm:$0xff] }
 0x556   : > { %v4369_v45 = vsel %vm2268_vm6, %v4337_v39, %v4050_v43  ;;  %3691 = vrot.lane.b32.xlu1 %v3097_v16, %s9502_s10 }
 0x557   : > { %3565 = vrot.lane.b32.xlu0 %v3066_v56, %s9493_s30  ;;  %9128 = vmatmul.mubr.msk.f32.gmra.mrb[18].mxu0 %vm4404_vm1, %v4369_v45  ;;  %v13954_v56 = vld [vmem:[#allocation37_spill] sm:$0xff] }
 0x558   : > { %v3798_v61 = vpop.permute.xlu1 %3797  ;;  %v4145_v9 = vsel %vm389_vm2, %v11669_v31, %v13954_v56 }
 0x559   : > { %v3796_v5 = vpop.permute.xlu0 %3795  ;;  %v4306_v36 = vsel %vm2235_vm5, %v4274_v57, %v3798_v61  ;;  %v4177_v20 = vsel %vm333_vm0, %v4145_v9, %v13955_v48  ;;  %v2976_v48 = vld [vmem:[#allocation3 + $0x121] sm:$0xff] }
 0x55a   : > { %3693 = vrot.lane.b32.xlu1 %v3003_v2, %s9502_s10  ;;  %v4305_v3 = vsel %vm2235_vm5, %v4273_v63, %v3796_v5  ;;  %v4210_v39 = vsel %vm4203_vm13, %v4177_v20, %v11968_v30  ;;  %v13965_v20 = vld [vmem:[#allocation38_spill] sm:$0xff] }
 0x55b   : > { %4073 = vrot.lane.b32.xlu0 %v3003_v2, %s9495_s18  ;;  %v13956_v2 = vld [vmem:[#allocation66_spill] sm:$0xff] }
 0x55c   : > { %v3544_v22 = vpop.permute.xlu1 %3543 }
 0x55d   : > { %v3924_v7 = vpop.permute.xlu0 %3923  ;;  %v4242_v45 = vsel %vm2202_vm4, %v4210_v39, %v3544_v22  ;;  %v13958_v22 = vld [vmem:[#allocation30_spill] sm:$0xff]  ;;  %v13966_v39 = vld [vmem:[#allocation25_spill] sm:$0xff] }
 0x55e   : > { %3821 = vrot.lane.b32.xlu1 %v13950_v37, %s9494_s17  ;;  %v4338_v59 = vsel %vm4333_vm15, %v4305_v3, %v3924_v7  ;;  %v4146_v25 = vsel %vm389_vm2, %v11665_v49, %v13958_v22  ;;  %v13959_v7 = vld [vmem:[#allocation34_spill] sm:$0xff] }
 0x55f   : > { %3819 = vrot.lane.b32.xlu0 %v13951_v28, %s9494_s17  ;;  %v4178_v63 = vsel %vm333_vm0, %v4146_v25, %v13959_v7 }
 0x560   : > { %v4052_v42 = vpop.permute.xlu1 %4051  ;;  %v4211_v3 = vsel %vm4203_vm13, %v4178_v63, %v11966_v33 }
 0x561   : > { %v4370_v14 = vsel %vm2268_vm6, %v4338_v59, %v4052_v42  ;;  %v3926_v44 = vpop.permute.xlu0 %3925  ;;  %v3101_v59 = vld [vmem:[#allocation3 + $0x10a] sm:$0xff] }
 0x562   : > { %3567 = vrot.lane.b32.xlu1 %v2972_v11, %s9493_s30  ;;  %9130 = vmatprep.mubr.msk.f32.mxu0 %vm4404_vm1, %v4370_v14  ;;  %v4339_v55 = vsel %vm4333_vm15, %v4306_v36, %v3926_v44  ;;  %v3070_v14 = vld [vmem:[#allocation3 + $0x111] sm:$0xff] }
 0x563   : > { %3947 = vrot.lane.b32.xlu0 %v2972_v11, %s9503_s22 }
 0x564   : > { %v3672_v50 = vpop.permute.xlu1 %3671 }
 0x565   : > { %v3546_v0 = vpop.permute.xlu0 %3545  ;;  %v4275_v5 = vsel %vm4268_vm14, %v4242_v45, %v3672_v50  ;;  %v3007_v50 = vld [vmem:[#allocation3 + $0x112] sm:$0xff]  ;;  %v13967_v45 = vld [vmem:[#allocation33_spill] sm:$0xff] }
 0x566   : > { %4075 = vrot.lane.b32.xlu1 %v3099_v10, %s9495_s18  ;;  %v4243_v42 = vsel %vm2202_vm4, %v4211_v3, %v3546_v0  ;;  %v13961_v0 = vld [vmem:[#allocation26_spill] sm:$0xff] }
 0x567   : > { %3949 = vrot.lane.b32.xlu0 %v3068_v21, %s9503_s22 }
 0x568   : > { %v3674_v32 = vpop.permute.xlu1 %3673 }
 0x569   : > { %v4054_v13 = vpop.permute.xlu0 %4053  ;;  %v4276_v44 = vsel %vm4268_vm14, %v4243_v42, %v3674_v32 }
 0x56a   : > { %v4371_v16 = vsel %vm2268_vm6, %v4339_v55, %v4054_v13  ;;  %3695 = vrot.lane.b32.xlu1 %v3099_v10, %s9502_s10  ;;  %v4147_v10 = vsel %vm389_vm2, %v13961_v0, %v13960_v41 }
 0x56b   : > { %3569 = vrot.lane.b32.xlu0 %v3068_v21, %s9493_s30  ;;  %9131 = vmatmul.mubr.msk.f32.gmra.mrb[20].mxu0 %vm4404_vm1, %v4371_v16  ;;  %v4179_v21 = vsel %vm333_vm0, %v4147_v10, %v13962_v58  ;;  %v13963_v16 = vld [vmem:[#allocation73_spill] sm:$0xff] }
 0x56c   : > { %v3802_v52 = vpop.permute.xlu1 %3801  ;;  %v4212_v57 = vsel %vm4203_vm13, %v4179_v21, %v11976_v60  ;;  %v2978_v10 = vld [vmem:[#allocation3 + $0x139] sm:$0xff] }
 0x56d   : > { %v3800_v27 = vpop.permute.xlu0 %3799  ;;  %v4308_v49 = vsel %vm2235_vm5, %v4276_v44, %v3802_v52  ;;  %v13971_v58 = vld [vmem:[#allocation53_spill] sm:$0xff] }
 0x56e   : > { %3697 = vrot.lane.b32.xlu1 %v3005_v38, %s9502_s10  ;;  %v4307_v31 = vsel %vm2235_vm5, %v4275_v5, %v3800_v27  ;;  %v13964_v27 = vld [vmem:[#allocation94_spill] sm:$0xff]  ;;  %v13972_v21 = vld [vmem:[#allocation29_spill] sm:$0xff] }
 0x56f   : > { %4077 = vrot.lane.b32.xlu0 %v3005_v38, %s9495_s18 }
 0x570   : > { %v3548_v43 = vpop.permute.xlu1 %3547 }
 0x571   : > { %v3928_v61 = vpop.permute.xlu0 %3927  ;;  %v4244_v32 = vsel %vm2202_vm4, %v4212_v57, %v3548_v43  ;;  %v4148_v43 = vsel %vm389_vm2, %v13966_v39, %v13965_v20  ;;  %v4150_v57 = vsel %vm389_vm2, %v13972_v21, %v13971_v58 }
 0x572   : > { %3825 = vrot.lane.b32.xlu1 %v13956_v2, %s9494_s17  ;;  %v4340_v1 = vsel %vm4333_vm15, %v4307_v31, %v3928_v61  ;;  %v4180_v61 = vsel %vm333_vm0, %v4148_v43, %v13967_v45  ;;  %v13968_v2 = vld [vmem:[#allocation139_spill] sm:$0xff] }
 0x573   : > { %3823 = vrot.lane.b32.xlu0 %v13957_v6, %s9494_s17  ;;  %v4213_v31 = vsel %vm4203_vm13, %v4180_v61, %v13968_v2  ;;  %v13975_v2 = vld [vmem:[#allocation57_spill] sm:$0xff] }
 0x574   : > { %v4056_v23 = vpop.permute.xlu1 %4055 }
 0x575   : > { %v4372_v17 = vsel %vm2268_vm6, %v4340_v1, %v4056_v23  ;;  %v3930_v30 = vpop.permute.xlu0 %3929  ;;  %v3103_v1 = vld [vmem:[#allocation3 + $0x122] sm:$0xff] }
 0x576   : > { %3571 = vrot.lane.b32.xlu1 %v2974_v46, %s9493_s30  ;;  %9133 = vmatprep.mubr.msk.f32.mxu0 %vm4404_vm1, %v4372_v17  ;;  %v4341_v12 = vsel %vm4333_vm15, %v4308_v49, %v3930_v30  ;;  %v3072_v17 = vld [vmem:[#allocation3 + $0x129] sm:$0xff] }
 0x577   : > { %3951 = vrot.lane.b32.xlu0 %v2974_v46, %s9503_s22 }
 0x578   : > { %v3676_v37 = vpop.permute.xlu1 %3675 }
 0x579   : > { %v3550_v28 = vpop.permute.xlu0 %3549  ;;  %v4277_v13 = vsel %vm4268_vm14, %v4244_v32, %v3676_v37 }
 0x57a   : > { %4079 = vrot.lane.b32.xlu1 %v3101_v59, %s9495_s18  ;;  %v4245_v23 = vsel %vm2202_vm4, %v4213_v31, %v3550_v28  ;;  %v3009_v28 = vld [vmem:[#allocation3 + $0x12a] sm:$0xff]  ;;  %v4151_v31 = vsel %vm389_vm2, %v11705_v4, %v13975_v2 }
 0x57b   : > { %3953 = vrot.lane.b32.xlu0 %v3070_v14, %s9503_s22  ;;  %v3043_v4 = vld [vmem:[#allocation3 + $0x150] sm:$0xff] }
 0x57c   : > { %v3678_v11 = vpop.permute.xlu1 %3677  ;;  %v9413_v2 = vld [vmem:[#allocation3 + $0xb0] sm:$0xff] }
 0x57d   : > { %v4058_v29 = vpop.permute.xlu0 %4057  ;;  %v4278_v30 = vsel %vm4268_vm14, %v4245_v23, %v3678_v11  ;;  %v13977_v23 = vld [vmem:[#allocation109_spill] sm:$0xff] }
 0x57e   : > { %v4373_v8 = vsel %vm2268_vm6, %v4341_v12, %v4058_v29  ;;  %3699 = vrot.lane.b32.xlu1 %v3101_v59, %s9502_s10  ;;  %v13969_v59 = vld [vmem:[#allocation42_spill] sm:$0xff] }
 0x57f   : > { %3573 = vrot.lane.b32.xlu0 %v3070_v14, %s9493_s30  ;;  %9134 = vmatmul.mubr.msk.f32.gmra.mrb[22].mxu0 %vm4404_vm1, %v4373_v8  ;;  %v4149_v42 = vsel %vm389_vm2, %v11693_v54, %v13969_v59  ;;  %v13970_v14 = vld [vmem:[#allocation45_spill] sm:$0xff] }
 0x580   : > { %v3806_v33 = vpop.permute.xlu1 %3805  ;;  %v4181_v44 = vsel %vm333_vm0, %v4149_v42, %v13970_v14  ;;  %v3042_v8 = vld [vmem:[#allocation3 + $0x140] sm:$0xff]  ;;  %v3041_v54 = vld [vmem:[#allocation3 + $0x138] sm:$0xff] }
 0x581   : > { %v3804_v40 = vpop.permute.xlu0 %3803  ;;  %v4310_v46 = vsel %vm2235_vm5, %v4278_v30, %v3806_v33  ;;  %v4214_v49 = vsel %vm4203_vm13, %v4181_v44, %v11984_v24  ;;  %v2980_v42 = vld [vmem:[#allocation3 + $0x151] sm:$0xff]  ;;  %v13978_v14 = vld [vmem:[#allocation54_spill] sm:$0xff] }
 0x582   : > { %3701 = vrot.lane.b32.xlu1 %v3007_v50, %s9502_s10  ;;  %v4309_v52 = vsel %vm2235_vm5, %v4277_v13, %v3804_v40  ;;  %v13974_v13 = vld [vmem:[#allocation138_spill] sm:$0xff]  ;;  %v4152_v44 = vsel %vm389_vm2, %v11701_v34, %v13978_v14 }
 0x583   : > { %4081 = vrot.lane.b32.xlu0 %v3007_v50, %s9495_s18 }
 0x584   : > { %v3552_v36 = vpop.permute.xlu1 %3551 }
 0x585   : > { %v3932_v55 = vpop.permute.xlu0 %3931  ;;  %v4246_v12 = vsel %vm2202_vm4, %v4214_v49, %v3552_v36  ;;  %v13973_v36 = vld [vmem:[#allocation50_spill] sm:$0xff]  ;;  %v13979_v49 = vld [vmem:[#allocation69_spill] sm:$0xff] }
 0x586   : > { %3829 = vrot.lane.b32.xlu1 %v13963_v16, %s9494_s17  ;;  %v4342_v38 = vsel %vm4333_vm15, %v4309_v52, %v3932_v55  ;;  %v4182_v32 = vsel %vm333_vm0, %v4150_v57, %v13973_v36  ;;  %v3013_v36 = vld [vmem:[#allocation3 + $0x15a] sm:$0xff] }
 0x587   : > { %3827 = vrot.lane.b32.xlu0 %v13964_v27, %s9494_s17  ;;  %v4215_v16 = vsel %vm4203_vm13, %v4182_v32, %v13974_v13  ;;  %v3105_v27 = vld [vmem:[#allocation3 + $0x13a] sm:$0xff]  ;;  %v9412_v32 = vld [vmem:[#allocation3 + $0xa8] sm:$0xff] }
 0x588   : > { %v4060_v56 = vpop.permute.xlu1 %4059 }
 0x589   : > { %v4374_v9 = vsel %vm2268_vm6, %v4342_v38, %v4060_v56  ;;  %v3934_v60 = vpop.permute.xlu0 %3933  ;;  %v3074_v56 = vld [vmem:[#allocation3 + $0x141] sm:$0xff] }
 0x58a   : > { %3575 = vrot.lane.b32.xlu1 %v2976_v48, %s9493_s30  ;;  %9136 = vmatprep.mubr.msk.f32.mxu0 %vm4404_vm1, %v4374_v9  ;;  %v4343_v25 = vsel %vm4333_vm15, %v4310_v46, %v3934_v60 }
 0x58b   : > { %3955 = vrot.lane.b32.xlu0 %v2976_v48, %s9503_s22 }
 0x58c   : > { %v3680_v5 = vpop.permute.xlu1 %3679 }
 0x58d   : > { %v3554_v6 = vpop.permute.xlu0 %3553  ;;  %v4279_v33 = vsel %vm4268_vm14, %v4246_v12, %v3680_v5  ;;  %v3011_v5 = vld [vmem:[#allocation3 + $0x142] sm:$0xff] }
 0x58e   : > { %4083 = vrot.lane.b32.xlu1 %v3103_v1, %s9495_s18  ;;  %v4247_v38 = vsel %vm2202_vm4, %v4215_v16, %v3554_v6  ;;  %v13976_v6 = vld [vmem:[#allocation58_spill] sm:$0xff]  ;;  %v13982_v16 = vld [vmem:[#allocation157_spill] sm:$0xff] }
 0x58f   : > { %3957 = vrot.lane.b32.xlu0 %v3072_v17, %s9503_s22 }
 0x590   : > { %v3682_v22 = vpop.permute.xlu1 %3681 }
 0x591   : > { %v4062_v7 = vpop.permute.xlu0 %4061  ;;  %v4280_v9 = vsel %vm4268_vm14, %v4247_v38, %v3682_v22 }
 0x592   : > { %v4375_v63 = vsel %vm2268_vm6, %v4343_v25, %v4062_v7  ;;  %3703 = vrot.lane.b32.xlu1 %v3103_v1, %s9502_s10  ;;  %v4183_v1 = vsel %vm333_vm0, %v4151_v31, %v13976_v6  ;;  %v3044_v25 = vld [vmem:[#allocation3 + $0x158] sm:$0xff]  ;;  %v13983_v31 = vld [vmem:[#allocation70_spill] sm:$0xff] }
 0x593   : > { %3577 = vrot.lane.b32.xlu0 %v3072_v17, %s9493_s30  ;;  %9137 = vmatmul.mubr.msk.f32.gmra.mrb[24].mxu0 %vm4404_vm1, %v4375_v63  ;;  %v4216_v17 = vsel %vm4203_vm13, %v4183_v1, %v13977_v23  ;;  %v4154_v6 = vsel %vm389_vm2, %v9413_v2, %v13983_v31  ;;  %v13984_v1 = vld [vmem:[#allocation101_spill] sm:$0xff]  ;;  %v3017_v2 = vld [vmem:[#allocation3 + $0x18a] sm:$0xff] }
 0x594   : > { %v3810_v37 = vpop.permute.xlu1 %3809  ;;  %v4186_v23 = vsel %vm333_vm0, %v4154_v6, %v13984_v1  ;;  %v9416_v31 = vld [vmem:[#allocation3 + $0xd8] sm:$0xff]  ;;  %v13990_v6 = vld [vmem:[#allocation115_spill] sm:$0xff] }
 0x595   : > { %v3808_v3 = vpop.permute.xlu0 %3807  ;;  %v4312_v60 = vsel %vm2235_vm5, %v4280_v9, %v3810_v37  ;;  %v4157_v1 = vsel %vm389_vm2, %v9416_v31, %v13990_v6  ;;  %v14000_v6 = vld [vmem:[#allocation159_spill] sm:$0xff] }
 0x596   : > { %3705 = vrot.lane.b32.xlu1 %v3009_v28, %s9502_s10  ;;  %v4311_v40 = vsel %vm2235_vm5, %v4279_v33, %v3808_v3 }
 0x597   : > { %4085 = vrot.lane.b32.xlu0 %v3009_v28, %s9495_s18 }
 0x598   : > { %v3556_v11 = vpop.permute.xlu1 %3555 }
 0x599   : > { %v3936_v29 = vpop.permute.xlu0 %3935  ;;  %v4248_v46 = vsel %vm2202_vm4, %v4216_v17, %v3556_v11  ;;  %v4184_v11 = vsel %vm333_vm0, %v4152_v44, %v13979_v49  ;;  %v3015_v49 = vld [vmem:[#allocation3 + $0x172] sm:$0xff] }
 0x59a   : > { %3833 = vrot.lane.b32.xlu1 %v3042_v8, %s9494_s17  ;;  %v4344_v50 = vsel %vm4333_vm15, %v4311_v40, %v3936_v29  ;;  %v13980_v29 = vld [vmem:[#allocation161_spill] sm:$0xff] }
 0x59b   : > { %3831 = vrot.lane.b32.xlu0 %v3041_v54, %s9494_s17  ;;  %v4217_v8 = vsel %vm4203_vm13, %v4184_v11, %v13980_v29  ;;  %v3107_v54 = vld [vmem:[#allocation3 + $0x152] sm:$0xff]  ;;  %v9414_v11 = vld [vmem:[#allocation3 + $0xc0] sm:$0xff] }
 0x59c   : > { %v4064_v41 = vpop.permute.xlu1 %4063 }
 0x59d   : > { %v4376_v0 = vsel %vm2268_vm6, %v4344_v50, %v4064_v41  ;;  %v3938_v24 = vpop.permute.xlu0 %3937  ;;  %v3076_v50 = vld [vmem:[#allocation3 + $0x159] sm:$0xff] }
 0x59e   : > { %3579 = vrot.lane.b32.xlu1 %v2978_v10, %s9493_s30  ;;  %9139 = vmatprep.mubr.msk.f32.mxu0 %vm4404_vm1, %v4376_v0  ;;  %v4345_v20 = vsel %vm4333_vm15, %v4312_v60, %v3938_v24  ;;  %v3046_v60 = vld [vmem:[#allocation3 + $0x170] sm:$0xff] }
 0x59f   : > { %3959 = vrot.lane.b32.xlu0 %v2978_v10, %s9503_s22 }
 0x5a0   : > { %v3684_v55 = vpop.permute.xlu1 %3683 }
 0x5a1   : > { %v3558_v52 = vpop.permute.xlu0 %3557  ;;  %v4281_v7 = vsel %vm4268_vm14, %v4248_v46, %v3684_v55  ;;  %v13981_v55 = vld [vmem:[#allocation65_spill] sm:$0xff] }
 0x5a2   : > { %4087 = vrot.lane.b32.xlu1 %v3105_v27, %s9495_s18  ;;  %v4249_v40 = vsel %vm2202_vm4, %v4217_v8, %v3558_v52  ;;  %v4153_v13 = vsel %vm389_vm2, %v9412_v32, %v13981_v55  ;;  %v13987_v8 = vld [vmem:[#allocation93_spill] sm:$0xff]  ;;  %v9415_v32 = vld [vmem:[#allocation3 + $0xc8] sm:$0xff] }
 0x5a3   : > { %3961 = vrot.lane.b32.xlu0 %v3074_v56, %s9503_s22  ;;  %v4185_v52 = vsel %vm333_vm0, %v4153_v13, %v13982_v16  ;;  %v13988_v55 = vld [vmem:[#allocation90_spill] sm:$0xff]  ;;  %v13989_v16 = vld [vmem:[#allocation116_spill] sm:$0xff] }
 0x5a4   : > { %v3686_v48 = vpop.permute.xlu1 %3685  ;;  %v4156_v13 = vsel %vm389_vm2, %v9415_v32, %v13988_v55 }
 0x5a5   : > { %v4066_v39 = vpop.permute.xlu0 %4065  ;;  %v4282_v41 = vsel %vm4268_vm14, %v4249_v40, %v3686_v48 }
 0x5a6   : > { %v4377_v43 = vsel %vm2268_vm6, %v4345_v20, %v4066_v39  ;;  %3707 = vrot.lane.b32.xlu1 %v3105_v27, %s9502_s10  ;;  %v4218_v27 = vsel %vm4203_vm13, %v4185_v52, %v12000_v51  ;;  %v3045_v20 = vld [vmem:[#allocation3 + $0x168] sm:$0xff]  ;;  %v4188_v52 = vsel %vm333_vm0, %v4156_v13, %v13989_v16  ;;  %v9418_v13 = vld [vmem:[#allocation3 + $0xf0] sm:$0xff] }
 0x5a7   : > { %3581 = vrot.lane.b32.xlu0 %v3074_v56, %s9493_s30  ;;  %9140 = vmatmul.mubr.msk.f32.gmra.mrb[26].mxu0 %vm4404_vm1, %v4377_v43  ;;  %v13996_v16 = vld [vmem:[#allocation136_spill] sm:$0xff] }
 0x5a8   : > { %v3814_v45 = vpop.permute.xlu1 %3813 }
 0x5a9   : > { %v3812_v61 = vpop.permute.xlu0 %3811  ;;  %v4314_v34 = vsel %vm2235_vm5, %v4282_v41, %v3814_v45 }
 0x5aa   : > { %3709 = vrot.lane.b32.xlu1 %v3011_v5, %s9502_s10  ;;  %v4313_v63 = vsel %vm2235_vm5, %v4281_v7, %v3812_v61 }
 0x5ab   : > { %4089 = vrot.lane.b32.xlu0 %v3011_v5, %s9495_s18  ;;  %v2982_v5 = vld [vmem:[#allocation3 + $0x169] sm:$0xff] }
 0x5ac   : > { %v3560_v30 = vpop.permute.xlu1 %3559 }
 0x5ad   : > { %v3940_v22 = vpop.permute.xlu0 %3939  ;;  %v4250_v56 = vsel %vm2202_vm4, %v4218_v27, %v3560_v30  ;;  %v13985_v30 = vld [vmem:[#allocation160_spill] sm:$0xff] }
 0x5ae   : > { %3837 = vrot.lane.b32.xlu1 %v3044_v25, %s9494_s17  ;;  %v4346_v37 = vsel %vm4333_vm15, %v4313_v63, %v3940_v22  ;;  %v4219_v46 = vsel %vm4203_vm13, %v4186_v23, %v13985_v30  ;;  %v3109_v25 = vld [vmem:[#allocation3 + $0x16a] sm:$0xff]  ;;  %v13991_v23 = vld [vmem:[#allocation104_spill] sm:$0xff]  ;;  %v3050_v30 = vld [vmem:[#allocation3 + $0x1a0] sm:$0xff] }
 0x5af   : > { %3835 = vrot.lane.b32.xlu0 %v3043_v4, %s9494_s17  ;;  %v3078_v4 = vld [vmem:[#allocation3 + $0x171] sm:$0xff] }
 0x5b0   : > { %v4068_v3 = vpop.permute.xlu1 %4067 }
 0x5b1   : > { %v4378_v28 = vsel %vm2268_vm6, %v4346_v37, %v4068_v3  ;;  %v3942_v59 = vpop.permute.xlu0 %3941 }
 0x5b2   : > { %3583 = vrot.lane.b32.xlu1 %v2980_v42, %s9493_s30  ;;  %9142 = vmatprep.mubr.msk.f32.mxu0 %vm4404_vm1, %v4378_v28  ;;  %v4347_v24 = vsel %vm4333_vm15, %v4314_v34, %v3942_v59  ;;  %v3048_v34 = vld [vmem:[#allocation3 + $0x188] sm:$0xff] }
 0x5b3   : > { %3963 = vrot.lane.b32.xlu0 %v2980_v42, %s9503_s22 }
 0x5b4   : > { %v3688_v12 = vpop.permute.xlu1 %3687 }
 0x5b5   : > { %v3562_v33 = vpop.permute.xlu0 %3561  ;;  %v4283_v48 = vsel %vm4268_vm14, %v4250_v56, %v3688_v12  ;;  %v13986_v12 = vld [vmem:[#allocation98_spill] sm:$0xff] }
 0x5b6   : > { %4091 = vrot.lane.b32.xlu1 %v3107_v54, %s9495_s18  ;;  %v4251_v7 = vsel %vm2202_vm4, %v4219_v46, %v3562_v33  ;;  %v4155_v29 = vsel %vm389_vm2, %v9414_v11, %v13986_v12  ;;  %v13992_v46 = vld [vmem:[#allocation19_spill] sm:$0xff]  ;;  %v9417_v11 = vld [vmem:[#allocation3 + $0xe0] sm:$0xff] }
 0x5b7   : > { %3965 = vrot.lane.b32.xlu0 %v3076_v50, %s9503_s22  ;;  %v4187_v33 = vsel %vm333_vm0, %v4155_v29, %v13987_v8  ;;  %v13993_v12 = vld [vmem:[#allocation102_spill] sm:$0xff] }
 0x5b8   : > { %v3690_v0 = vpop.permute.xlu1 %3689  ;;  %v4158_v29 = vsel %vm389_vm2, %v9417_v11, %v13993_v12  ;;  %v3114_v8 = vld [vmem:[#allocation3 + $0x1a2] sm:$0xff]  ;;  %v14004_v12 = vld [vmem:[#allocation119_spill] sm:$0xff] }
 0x5b9   : > { %v4070_v10 = vpop.permute.xlu0 %4069  ;;  %v4284_v63 = vsel %vm4268_vm14, %v4251_v7, %v3690_v0  ;;  %v3049_v7 = vld [vmem:[#allocation3 + $0x198] sm:$0xff] }
 0x5ba   : > { %v4379_v58 = vsel %vm2268_vm6, %v4347_v24, %v4070_v10  ;;  %3711 = vrot.lane.b32.xlu1 %v3107_v54, %s9502_s10  ;;  %v4220_v54 = vsel %vm4203_vm13, %v4187_v33, %v12008_v26  ;;  %v3047_v24 = vld [vmem:[#allocation3 + $0x180] sm:$0xff] }
 0x5bb   : > { %3585 = vrot.lane.b32.xlu0 %v3076_v50, %s9493_s30  ;;  %9143 = vmatmul.mubr.msk.f32.gmra.mrb[28].mxu0 %vm4404_vm1, %v4379_v58  ;;  %v13994_v33 = vld [vmem:[#allocation137_spill] sm:$0xff] }
 0x5bc   : > { %v3818_v21 = vpop.permute.xlu1 %3817 }
 0x5bd   : > { %v3816_v57 = vpop.permute.xlu0 %3815  ;;  %v4316_v37 = vsel %vm2235_vm5, %v4284_v63, %v3818_v21 }
 0x5be   : > { %3713 = vrot.lane.b32.xlu1 %v3013_v36, %s9502_s10  ;;  %v4315_v39 = vsel %vm2235_vm5, %v4283_v48, %v3816_v57  ;;  %v3080_v48 = vld [vmem:[#allocation3 + $0x189] sm:$0xff] }
 0x5bf   : > { %4093 = vrot.lane.b32.xlu0 %v3013_v36, %s9495_s18  ;;  %v2984_v36 = vld [vmem:[#allocation3 + $0x181] sm:$0xff] }
 0x5c0   : > { %v3564_v38 = vpop.permute.xlu1 %3563 }
 0x5c1   : > { %v3944_v9 = vpop.permute.xlu0 %3943  ;;  %v4252_v50 = vsel %vm2202_vm4, %v4220_v54, %v3564_v38  ;;  %v4221_v38 = vsel %vm4203_vm13, %v4188_v52, %v12006_v15  ;;  %v4190_v54 = vsel %vm333_vm0, %v4158_v29, %v13994_v33  ;;  %v4159_v52 = vsel %vm389_vm2, %v9418_v13, %v13996_v16  ;;  %v12524_v16 = vld [vmem:[%s13545_s7] ss:$0 sm:$0xff] }
 0x5c2   : > { %3841 = vrot.lane.b32.xlu1 %v3046_v60, %s9494_s17  ;;  %v4348_v43 = vsel %vm4333_vm15, %v4315_v39, %v3944_v9  ;;  %v3111_v9 = vld [vmem:[#allocation3 + $0x182] sm:$0xff] }
 0x5c3   : > { %3839 = vrot.lane.b32.xlu0 %v3045_v20, %s9494_s17 }
 0x5c4   : > { %v4072_v45 = vpop.permute.xlu1 %4071 }
 0x5c5   : > { %v4380_v61 = vsel %vm2268_vm6, %v4348_v43, %v4072_v45  ;;  %v3946_v51 = vpop.permute.xlu0 %3945 }
 0x5c6   : > { %3587 = vrot.lane.b32.xlu1 %v2982_v5, %s9493_s30  ;;  %9145 = vmatprep.mubr.msk.f32.mxu0 %vm4404_vm1, %v4380_v61  ;;  %v4349_v28 = vsel %vm4333_vm15, %v4316_v37, %v3946_v51 }
 0x5c7   : > { %3967 = vrot.lane.b32.xlu0 %v2982_v5, %s9503_s22 }
 0x5c8   : > { %v3692_v17 = vpop.permute.xlu1 %3691 }
 0x5c9   : > { %v3566_v22 = vpop.permute.xlu0 %3565  ;;  %v4285_v0 = vsel %vm4268_vm14, %v4252_v50, %v3692_v17  ;;  %v4189_v17 = vsel %vm333_vm0, %v4157_v1, %v13991_v23  ;;  %v3113_v50 = vld [vmem:[#allocation3 + $0x19a] sm:$0xff] }
 0x5ca   : > { %4095 = vrot.lane.b32.xlu1 %v3109_v25, %s9495_s18  ;;  %v4253_v60 = vsel %vm2202_vm4, %v4221_v38, %v3566_v22  ;;  %v4222_v22 = vsel %vm4203_vm13, %v4189_v17, %v13992_v46  ;;  %v14001_v17 = vld [vmem:[#allocation120_spill] sm:$0xff] }
 0x5cb   : > { %3969 = vrot.lane.b32.xlu0 %v3078_v4, %s9503_s22 }
 0x5cc   : > { %v3694_v3 = vpop.permute.xlu1 %3693 }
 0x5cd   : > { %v4074_v59 = vpop.permute.xlu0 %4073  ;;  %v4286_v20 = vsel %vm4268_vm14, %v4253_v60, %v3694_v3 }
 0x5ce   : > { %v4381_v42 = vsel %vm2268_vm6, %v4349_v28, %v4074_v59  ;;  %3715 = vrot.lane.b32.xlu1 %v3109_v25, %s9502_s10  ;;  %v3082_v28 = vld [vmem:[#allocation3 + $0x1a1] sm:$0xff] }
 0x5cf   : > { %3589 = vrot.lane.b32.xlu0 %v3078_v4, %s9493_s30  ;;  %9146 = vmatmul.mubr.msk.f32.gmra.mrb[30].mxu0 %vm4404_vm1, %v4381_v42 }
 0x5d0   : > { %v3822_v14 = vpop.permute.xlu1 %3821 }
 0x5d1   : > { %v3820_v44 = vpop.permute.xlu0 %3819  ;;  %v4318_v39 = vsel %vm2235_vm5, %v4286_v20, %v3822_v14  ;;  %v3081_v14 = vld [vmem:[#allocation3 + $0x199] sm:$0xff] }
 0x5d2   : > { %3717 = vrot.lane.b32.xlu1 %v3015_v49, %s9502_s10  ;;  %v4317_v10 = vsel %vm2235_vm5, %v4285_v0, %v3820_v44 }
 0x5d3   : > { %4097 = vrot.lane.b32.xlu0 %v3015_v49, %s9495_s18 }
 0x5d4   : > { %v3568_v40 = vpop.permute.xlu1 %3567 }
 0x5d5   : > { %v3948_v41 = vpop.permute.xlu0 %3947  ;;  %v4254_v4 = vsel %vm2202_vm4, %v4222_v22, %v3568_v40 }
 0x5d6   : > { %3845 = vrot.lane.b32.xlu1 %v3048_v34, %s9494_s17  ;;  %v4350_v58 = vsel %vm4333_vm15, %v4317_v10, %v3948_v41  ;;  %v13995_v41 = vld [vmem:[#allocation23_spill] sm:$0xff] }
 0x5d7   : > { %3843 = vrot.lane.b32.xlu0 %v3047_v24, %s9494_s17  ;;  %v4223_v34 = vsel %vm4203_vm13, %v4190_v54, %v13995_v41 }
 0x5d8   : > { %v4076_v21 = vpop.permute.xlu1 %4075 }
 0x5d9   : > { %v4382_v57 = vsel %vm2268_vm6, %v4350_v58, %v4076_v21  ;;  %v3950_v26 = vpop.permute.xlu0 %3949 }
 0x5da   : > { %3591 = vrot.lane.b32.xlu1 %v2984_v36, %s9493_s30  ;;  %9148 = vmatprep.mubr.msk.f32.mxu0 %vm4404_vm1, %v4382_v57  ;;  %v4351_v45 = vsel %vm4333_vm15, %v4318_v39, %v3950_v26 }
 0x5db   : > { %3971 = vrot.lane.b32.xlu0 %v2984_v36, %s9503_s22 }
 0x5dc   : > { %v3696_v27 = vpop.permute.xlu1 %3695 }
 0x5dd   : > { %v3570_v56 = vpop.permute.xlu0 %3569  ;;  %v4287_v37 = vsel %vm4268_vm14, %v4254_v4, %v3696_v27  ;;  %v13997_v27 = vld [vmem:[#allocation105_spill] sm:$0xff] }
 0x5de   : > { %4099 = vrot.lane.b32.xlu1 %v3111_v9, %s9495_s18  ;;  %v4255_v24 = vsel %vm2202_vm4, %v4223_v34, %v3570_v56  ;;  %v4191_v38 = vsel %vm333_vm0, %v4159_v52, %v13997_v27  ;;  %v13998_v56 = vld [vmem:[#allocation9_spill] sm:$0xff] }
 0x5df   : > { %3973 = vrot.lane.b32.xlu0 %v3080_v48, %s9503_s22 }
 0x5e0   : > { %v3698_v43 = vpop.permute.xlu1 %3697 }
 0x5e1   : > { %v4078_v61 = vpop.permute.xlu0 %4077  ;;  %v4288_v10 = vsel %vm4268_vm14, %v4255_v24, %v3698_v43 }
 0x5e2   : > { %v4383_v51 = vsel %vm2268_vm6, %v4351_v45, %v4078_v61  ;;  %3719 = vrot.lane.b32.xlu1 %v3111_v9, %s9502_s10  ;;  %v4224_v9 = vsel %vm4203_vm13, %v4191_v38, %v13998_v56  ;;  %v14007_v38 = vld [vmem:[#allocation10_spill] sm:$0xff] }
 0x5e3   : > { %3593 = vrot.lane.b32.xlu0 %v3080_v48, %s9493_s30  ;;  %9149 = vmatmul.mubr.msk.f32.gmra.mrb[32].mxu0 %vm4404_vm1, %v4383_v51 }
 0x5e4   : > { %v3826_v15 = vpop.permute.xlu1 %3825 }
 0x5e5   : > { %v3824_v5 = vpop.permute.xlu0 %3823  ;;  %v4320_v58 = vsel %vm2235_vm5, %v4288_v10, %v3826_v15 }
 0x5e6   : > { %3721 = vrot.lane.b32.xlu1 %v3017_v2, %s9502_s10  ;;  %v4319_v3 = vsel %vm2235_vm5, %v4287_v37, %v3824_v5  ;;  %v9419_v5 = vld [vmem:[#allocation3 + $0xf8] sm:$0xff]  ;;  %s8679_s10 = sshll.u32 %s325_s28, 1 }
 0x5e7   : > { %4101 = vrot.lane.b32.xlu0 %v3017_v2, %s9495_s18  ;;  %v13999_v2 = vld [vmem:[#allocation97_spill] sm:$0xff]  ;;  %s327_s29 = scalar_lea.vmem [#allocation5], %s8679_s10 }
 0x5e8   : > { %v3572_v25 = vpop.permute.xlu1 %3571  ;;  %v4160_v31 = vsel %vm389_vm2, %v9419_v5, %v13999_v2 }
 0x5e9   : > { %v3952_v63 = vpop.permute.xlu0 %3951  ;;  %v4256_v48 = vsel %vm2202_vm4, %v4224_v9, %v3572_v25  ;;  %v4192_v1 = vsel %vm333_vm0, %v4160_v31, %v14000_v6 }
 0x5ea   : > { %3849 = vrot.lane.b32.xlu1 %v3050_v30, %s9494_s17  ;;  %v4352_v59 = vsel %vm4333_vm15, %v4319_v3, %v3952_v63  ;;  %v4225_v30 = vsel %vm4203_vm13, %v4192_v1, %v14001_v17  ;;  %v9422_v17 = vld [vmem:[#allocation3 + $0x120] sm:$0xff] }
 0x5eb   : > { %3847 = vrot.lane.b32.xlu0 %v3049_v7, %s9494_s17 }
 0x5ec   : > { %v4080_v42 = vpop.permute.xlu1 %4079 }
 0x5ed   : > { %v4384_v44 = vsel %vm2268_vm6, %v4352_v59, %v4080_v42  ;;  %v3954_v49 = vpop.permute.xlu0 %3953  ;;  %v9420_v42 = vld [vmem:[#allocation3 + $0x108] sm:$0xff] }
 0x5ee   : > { %3977 = vrot.lane.b32.xlu1 %v3082_v28, %s9503_s22  ;;  %9151 = vmatprep.mubr.msk.f32.mxu0 %vm4404_vm1, %v4384_v44  ;;  %v4353_v57 = vsel %vm4333_vm15, %v4320_v58, %v3954_v49  ;;  %v14003_v49 = vld [vmem:[#allocation113_spill] sm:$0xff] }
 0x5ef   : > { %3975 = vrot.lane.b32.xlu0 %v3081_v14, %s9503_s22  ;;  %v14002_v14 = vld [vmem:[#allocation158_spill] sm:$0xff]  ;;  %s8616_s22 = sshll.u32 %s327_s29, 4  ;;  %s13496_s22 = int_to_ptr.vmem [resolvable:$true] %s8616_s22 }
 0x5f0   : > { %v3700_v40 = vpop.permute.xlu1 %3699  ;;  %v4161_v44 = vsel %vm389_vm2, %v9420_v42, %v14002_v14  ;;  %s9427_s23 = scalar_lea.vmem %s13496_s22, 32  ;;  %p9434_p0 = scmp.lt.s32.totalorder %s13496_s22, %s9432_s26 }
 0x5f1   : > { %v3574_v0 = vpop.permute.xlu0 %3573  ;;  %v4289_v39 = vsel %vm4268_vm14, %v4256_v48, %v3700_v40  ;;  %v4193_v11 = vsel %vm333_vm0, %v4161_v44, %v14003_v49  ;;  %p9428_p11 = scmp.ne.s32.totalorder %s13496_s22, %s9427_s23  ;;  %p9435_p1 = scmp.lt.s32.totalorder %s9433_s27, %s9427_s23 }
 0x5f2   : > { %4105 = vrot.lane.b32.xlu1 %v3114_v8, %s9495_s18  ;;  %v4257_v22 = vsel %vm2202_vm4, %v4225_v30, %v3574_v0  ;;  %v4226_v29 = vsel %vm4203_vm13, %v4193_v11, %v14004_v12  ;;  %v12512_v0 = vld [vmem:[%s13544_s6] ss:$0 sm:$0xff]  ;;  %v14008_v30 = vld [vmem:[#allocation16_spill] sm:$0xff]  ;;  %v9423_v12 = vld [vmem:[#allocation3 + $0x128] sm:$0xff] }
 0x5f3   : > { %4103 = vrot.lane.b32.xlu0 %v3113_v50, %s9495_s18  ;;  %s13494_s18 = scalar_lea.hbm %s13547_s9, %s8886_s15  ;;  %p9429_p12 = pnand %p9428_p11, %p9598_p5 }
 0x5f4   : > { %v3702_v21 = vpop.permute.xlu1 %3701  ;;  %p9436_p2 = por %p9435_p1, %p9434_p0 }
 0x5f5   : > { %v4082_v26 = vpop.permute.xlu0 %4081  ;;  %v4290_v25 = vsel %vm4268_vm14, %v4257_v22, %v3702_v21  ;;  %v9421_v21 = vld [vmem:[#allocation3 + $0x110] sm:$0xff]  ;;  %v14009_v22 = vld [vmem:[#allocation117_spill] sm:$0xff]  ;;  %p9430_p13 = pneg %p9429_p12 }
 0x5f6   : > { %v4385_v36 = vsel %vm2268_vm6, %v4353_v57, %v4082_v26  ;;  %v14005_v57 = vld [vmem:[#allocation106_spill] sm:$0xff] }
 0x5f7   : > { %9152 = vmatmul.mubr.msk.f32.gmra.mrb[34].mxu0 %vm4404_vm1, %v4385_v36  ;;  %v4162_v26 = vsel %vm389_vm2, %v9421_v21, %v14005_v57  ;;  %p9437_p3 = pnand %p9436_p2, %p9430_p13 }
 0x5f8   : > { %v3830_v32 = vpop.permute.xlu1 %3829 }
 0x5f9   : > { %v3828_v55 = vpop.permute.xlu0 %3827  ;;  %v4322_v7 = vsel %vm2235_vm5, %v4290_v25, %v3830_v32 }
 0x5fa   : > { %v4321_v43 = vsel %vm2235_vm5, %v4289_v39, %v3828_v55  ;;  %v14006_v55 = vld [vmem:[#allocation110_spill] sm:$0xff] }
 0x5fb   : > { %v4194_v13 = vsel %vm333_vm0, %v4162_v26, %v14006_v55 }
 0x5fc   : > { %v3576_v60 = vpop.permute.xlu1 %3575  ;;  %v4227_v56 = vsel %vm4203_vm13, %v4194_v13, %v14007_v38 }
 0x5fd   : > { %v3956_v20 = vpop.permute.xlu0 %3955  ;;  %v4258_v33 = vsel %vm2202_vm4, %v4226_v29, %v3576_v60  ;;  %v14011_v29 = vld [vmem:[#allocation118_spill] sm:$0xff] }
 0x5fe   : > { %v4354_v45 = vsel %vm4333_vm15, %v4321_v43, %v3956_v20 }
 0x600   : > { %v4084_v61 = vpop.permute.xlu1 %4083 }
 0x601   : > { %v4386_v51 = vsel %vm2268_vm6, %v4354_v45, %v4084_v61  ;;  %v3958_v15 = vpop.permute.xlu0 %3957 }
 0x602   : > { %9154 = vmatprep.mubr.msk.f32.mxu0 %vm4404_vm1, %v4386_v51  ;;  %v4355_v63 = vsel %vm4333_vm15, %v4322_v7, %v3958_v15  ;;  %v14010_v7 = vld [vmem:[#allocation13_spill] sm:$0xff] }
 0x604   : > { %v3704_v23 = vpop.permute.xlu1 %3703 }
 0x605   : > { %v3578_v46 = vpop.permute.xlu0 %3577  ;;  %v4291_v40 = vsel %vm4268_vm14, %v4258_v33, %v3704_v23  ;;  %v4164_v33 = vsel %vm389_vm2, %v9423_v12, %v14011_v29 }
 0x606   : > { %v4259_v48 = vsel %vm2202_vm4, %v4227_v56, %v3578_v46  ;;  %v4163_v46 = vsel %vm389_vm2, %v9422_v17, %v14008_v30 }
 0x607   : > { %v4195_v25 = vsel %vm333_vm0, %v4163_v46, %v14009_v22 }
 0x608   : > { %v3706_v4 = vpop.permute.xlu1 %3705 }
 0x609   : > { %v4086_v37 = vpop.permute.xlu0 %4085  ;;  %v4292_v39 = vsel %vm4268_vm14, %v4259_v48, %v3706_v4  ;;  %v4228_v4 = vsel %vm4203_vm13, %v4195_v25, %v14010_v7 }
 0x60a   : > { %v4387_v3 = vsel %vm2268_vm6, %v4355_v63, %v4086_v37 }
 0x60b   : > { %9155 = vmatmul.mubr.msk.f32.gmra.mrb[36].mxu0 %vm4404_vm1, %v4387_v3 }
 0x60c   : > { %v3834_v28 = vpop.permute.xlu1 %3833 }
 0x60d   : > { %v3832_v59 = vpop.permute.xlu0 %3831  ;;  %v4324_v45 = vsel %vm2235_vm5, %v4292_v39, %v3834_v28 }
 0x60e   : > { %v4323_v50 = vsel %vm2235_vm5, %v4291_v40, %v3832_v59  ;;  %v14012_v40 = vld [vmem:[#allocation107_spill] sm:$0xff] }
 0x610   : > { %v3580_v8 = vpop.permute.xlu1 %3579 }
 0x611   : > { %v3960_v54 = vpop.permute.xlu0 %3959  ;;  %v4260_v37 = vsel %vm2202_vm4, %v4228_v4, %v3580_v8 }
 0x612   : > { %v4356_v41 = vsel %vm4333_vm15, %v4323_v50, %v3960_v54  ;;  %v4196_v50 = vsel %vm333_vm0, %v4164_v33, %v14012_v40  ;;  %vm8401_vm0 = vcmask 130112  }
 0x614   : > { %v4088_v34 = vpop.permute.xlu1 %4087 }
 0x615   : > { %v4388_v24 = vsel %vm2268_vm6, %v4356_v41, %v4088_v34  ;;  %v3962_v10 = vpop.permute.xlu0 %3961 }
 0x616   : > { %v9126_v58 = vpop.f32.mrb[16].mxu0  ;;  %9157 = vmatprep.mubr.msk.f32.mxu0 %vm4404_vm1, %v4388_v24  ;;  %v4357_v15 = vsel %vm4333_vm15, %v4324_v45, %v3962_v10  ;;  %v14013_v24 = vld [vmem:[#allocation141_spill] sm:$0xff] }
 0x617   : > { %v4577_v36 = vadd.f32 %v9126_v58, %v12512_v0  ;;  %v4571_v32 = vpop.f32.mrb[17].mxu0  ;;  %v4229_v10 = vsel %vm4203_vm13, %v4196_v50, %v14013_v24  ;;  %vm8485_vm13 = vcmask 917312  }
 0x618   : > { %v4572_v52 = vadd.f32 %v12512_v0, %v4571_v32  ;;  %v3708_v27 = vpop.permute.xlu1 %3707 }
 0x619   : > { %v4731_v9 = vmax.f32 %v4577_v36, 0.0  ;;  %v3582_v60 = vpop.permute.xlu0 %3581  ;;  %v4293_v28 = vsel %vm4268_vm14, %v4260_v37, %v3708_v27 }
 0x61a   : > { %v4730_v20 = vmax.f32 %v4572_v52, 0.0  ;;  %v4261_v21 = vsel %vm2202_vm4, %v4229_v10, %v3582_v60 }
 0x61b   : > { %v4769_v43 = vmul.f32 %v12524_v16, %v4731_v9 }
 0x61c   : > { %v4768_v61 = vmul.f32 %v12524_v16, %v4730_v20  ;;  %v3710_v51 = vpop.permute.xlu1 %3709 }
 0x61d   : > { %v4090_v5 = vpop.permute.xlu0 %4089  ;;  %v4803_v2 = vsel %vm389_vm2, %v4769_v43, 0.0  ;;  %v4294_v36 = vsel %vm4268_vm14, %v4261_v21, %v3710_v51 }
 0x61e   : > { %v4389_v31 = vsel %vm2268_vm6, %v4357_v15, %v4090_v5  ;;  %4804 = vadd.xlane.f32.xlu1 %v4803_v2  ;;  %v4800_v6 = vsel %vm389_vm2, %v4768_v61, 0.0 }
 0x61f   : > { %4801 = vadd.xlane.f32.xlu0 %v4800_v6  ;;  %9158 = vmatmul.mubr.msk.f32.gmra.mrb[38].mxu0 %vm4404_vm1, %v4389_v31 }
 0x620   : > { %v3838_v1 = vpop.permute.xlu1 %3837 }
 0x621   : > { %v3836_v23 = vpop.permute.xlu0 %3835  ;;  %v4326_v32 = vsel %vm2235_vm5, %v4294_v36, %v3838_v1 }
 0x622   : > { %v4325_v59 = vsel %vm2235_vm5, %v4293_v28, %v3836_v23 }
 0x624   : > { %v3584_v63 = vpop.permute.xlu1 %3583 }
 0x625   : > { %v3964_v3 = vpop.permute.xlu0 %3963  ;;  %v4262_v43 = vsel %vm2202_vm4, %v12060_v35, %v3584_v63 }
 0x626   : > { %v4358_v42 = vsel %vm4333_vm15, %v4325_v59, %v3964_v3 }
 0x628   : > { %v4092_v14 = vpop.permute.xlu1 %4091 }
 0x629   : > { %v4390_v44 = vsel %vm2268_vm6, %v4358_v42, %v4092_v14  ;;  %v3966_v49 = vpop.permute.xlu0 %3965 }
 0x62a   : > { %v9129_v11 = vpop.f32.mrb[18].mxu0  ;;  %9160 = vmatprep.mubr.msk.f32.mxu0 %vm4404_vm1, %v4390_v44  ;;  %v4359_v52 = vsel %vm4333_vm15, %v4326_v32, %v3966_v49 }
 0x62b   : > { %v4587_v8 = vadd.f32 %v9129_v11, %v12512_v0  ;;  %v4581_v54 = vpop.f32.mrb[19].mxu0 }
 0x62c   : > { %v4582_v41 = vadd.f32 %v12512_v0, %v4581_v54  ;;  %v3712_v34 = vpop.permute.xlu1 %3711 }
 0x62d   : > { %v3586_v58 = vpop.permute.xlu0 %3585  ;;  %v4733_v57 = vmax.f32 %v4587_v8, 0.0  ;;  %v4295_v61 = vsel %vm4268_vm14, %v4262_v43, %v3712_v34 }
 0x62e   : > { %v4732_v26 = vmax.f32 %v4582_v41, 0.0  ;;  %v4263_v46 = vsel %vm2202_vm4, %v12057_v18, %v3586_v58 }
 0x62f   : > { %v4771_v38 = vmul.f32 %v12524_v16, %v4733_v57 }
 0x630   : > { %v4770_v55 = vmul.f32 %v12524_v16, %v4732_v26  ;;  %v3714_v13 = vpop.permute.xlu1 %3713 }
 0x631   : > { %v4094_v27 = vpop.permute.xlu0 %4093  ;;  %v4809_v20 = vsel %vm389_vm2, %v4771_v38, 0.0  ;;  %v4296_v7 = vsel %vm4268_vm14, %v4263_v46, %v3714_v13 }
 0x632   : > { %v4391_v56 = vsel %vm2268_vm6, %v4359_v52, %v4094_v27  ;;  %v4806_v9 = vsel %vm389_vm2, %v4770_v55, 0.0 }
 0x633   : > { %4807 = vadd.xlane.f32.xlu1 %v4806_v9  ;;  %9161 = vmatmul.mubr.msk.f32.gmra.mrb[40].mxu0 %vm4404_vm1, %v4391_v56 }
 0x634   : > { %v3842_v60 = vpop.permute.xlu1 %3841 }
 0x635   : > { %v3840_v48 = vpop.permute.xlu0 %3839  ;;  %v4328_v4 = vsel %vm2235_vm5, %v4296_v7, %v3842_v60 }
 0x636   : > { %v4327_v51 = vsel %vm2235_vm5, %v4295_v61, %v3840_v48 }
 0x637   : > { %4810 = vadd.xlane.f32.xlu1 %v4809_v20 }
 0x638   : > { %v3588_v39 = vpop.permute.xlu1 %3587 }
 0x639   : > { %v3968_v45 = vpop.permute.xlu0 %3967  ;;  %v4264_v12 = vsel %vm2202_vm4, %v12080_v62, %v3588_v39 }
 0x63a   : > { %v4360_v15 = vsel %vm4333_vm15, %v4327_v51, %v3968_v45 }
 0x63c   : > { %v4096_v5 = vpop.permute.xlu1 %4095 }
 0x63d   : > { %v4392_v2 = vsel %vm2268_vm6, %v4360_v15, %v4096_v5  ;;  %v3970_v31 = vpop.permute.xlu0 %3969 }
 0x63e   : > { %v9132_v6 = vpop.f32.mrb[20].mxu0  ;;  %9163 = vmatprep.mubr.msk.f32.mxu0 %vm4404_vm1, %v4392_v2  ;;  %v4361_v3 = vsel %vm4333_vm15, %v4328_v4, %v3970_v31 }
 0x63f   : > { %v4597_v1 = vadd.f32 %v9132_v6, %v12512_v0  ;;  %v4591_v23 = vpop.f32.mrb[21].mxu0 }
 0x640   : > { %v4592_v17 = vadd.f32 %v12512_v0, %v4591_v23  ;;  %v3716_v35 = vpop.permute.xlu1 %3715 }
 0x641   : > { %v3590_v30 = vpop.permute.xlu0 %3589  ;;  %v4735_v22 = vmax.f32 %v4597_v1, 0.0  ;;  %v4297_v33 = vsel %vm4268_vm14, %v4264_v12, %v3716_v35 }
 0x642   : > { %v4734_v25 = vmax.f32 %v4592_v17, 0.0  ;;  %v4265_v57 = vsel %vm2202_vm4, %v12077_v47, %v3590_v30 }
 0x643   : > { %v4773_v59 = vmul.f32 %v12524_v16, %v4735_v22 }
 0x644   : > { %v4772_v63 = vmul.f32 %v12524_v16, %v4734_v25  ;;  %v3718_v37 = vpop.permute.xlu1 %3717 }
 0x645   : > { %v4098_v28 = vpop.permute.xlu0 %4097  ;;  %v4815_v49 = vsel %vm389_vm2, %v4773_v59, 0.0  ;;  %v4298_v32 = vsel %vm4268_vm14, %v4265_v57, %v3718_v37  ;;  %v9504_v37 = vmov 0  }
 0x646   : > { %v4393_v42 = vsel %vm2268_vm6, %v4361_v3, %v4098_v28  ;;  %v4812_v14 = vsel %vm389_vm2, %v4772_v63, 0.0  ;;  %9252 = vset.pattern.permute.xlu1 %v9504_v37  ;;  %9253 = vset.pattern.permute.xlu0 %v9504_v37 }
 0x647   : > { %9164 = vmatmul.mubr.msk.f32.gmra.mrb[42].mxu0 %vm4404_vm1, %v4393_v42  ;;  %4813 = vadd.xlane.f32.xlu1 %v4812_v14 }
 0x648   : > { %v3846_v18 = vpop.permute.xlu1 %3845 }
 0x649   : > { %v3844_v44 = vpop.permute.xlu0 %3843  ;;  %v4330_v55 = vsel %vm2235_vm5, %v4298_v32, %v3846_v18 }
 0x64a   : > { %v4329_v8 = vsel %vm2235_vm5, %v4297_v33, %v3844_v44 }
 0x64b   : > { %4816 = vadd.xlane.f32.xlu1 %v4815_v49 }
 0x64c   : > { %v3592_v11 = vpop.permute.xlu1 %3591 }
 0x64d   : > { %v3972_v29 = vpop.permute.xlu0 %3971  ;;  %v4266_v45 = vsel %vm2202_vm4, %v12100_v19, %v3592_v11 }
 0x64e   : > { %v4362_v54 = vsel %vm4333_vm15, %v4329_v8, %v3972_v29 }
 0x650   : > { %v4100_v40 = vpop.permute.xlu1 %4099 }
 0x651   : > { %v4394_v50 = vsel %vm2268_vm6, %v4362_v54, %v4100_v40  ;;  %v3974_v41 = vpop.permute.xlu0 %3973 }
 0x652   : > { %v9135_v34 = vpop.f32.mrb[22].mxu0  ;;  %9166 = vmatprep.mubr.msk.f32.mxu0 %vm4404_vm1, %v4394_v50  ;;  %v4363_v27 = vsel %vm4333_vm15, %v4330_v55, %v3974_v41 }
 0x653   : > { %v4607_v24 = vadd.f32 %v9135_v34, %v12512_v0  ;;  %v4601_v10 = vpop.f32.mrb[23].mxu0 }
 0x654   : > { %v4602_v58 = vadd.f32 %v12512_v0, %v4601_v10  ;;  %v3720_v62 = vpop.permute.xlu1 %3719 }
 0x655   : > { %v3594_v21 = vpop.permute.xlu0 %3593  ;;  %v4737_v26 = vmax.f32 %v4607_v24, 0.0  ;;  %v4299_v61 = vsel %vm4268_vm14, %v4266_v45, %v3720_v62 }
 0x656   : > { %v4736_v36 = vmax.f32 %v4602_v58, 0.0  ;;  %v4267_v51 = vsel %vm2202_vm4, %v12097_v53, %v3594_v21  ;;  %vm8422_vm4 = vcmask 326912  }
 0x657   : > { %v4775_v56 = vmul.f32 %v12524_v16, %v4737_v26 }
 0x658   : > { %v4774_v13 = vmul.f32 %v12524_v16, %v4736_v36  ;;  %v3722_v52 = vpop.permute.xlu1 %3721 }
 0x659   : > { %v4102_v38 = vpop.permute.xlu0 %4101  ;;  %v4821_v20 = vsel %vm389_vm2, %v4775_v56, 0.0  ;;  %v4300_v15 = vsel %vm4268_vm14, %v4267_v51, %v3722_v52  ;;  %v12645_v52 = vld [vmem:[#allocation4] ss:$0 sm:$0xff]  ;;  %vm8492_vm14 = vcmask 982912  }
 0x65a   : > { %v4395_v9 = vsel %vm2268_vm6, %v4363_v27, %v4102_v38  ;;  %v4818_v60 = vsel %vm389_vm2, %v4774_v13, 0.0 }
 0x65b   : > { %9167 = vmatmul.mubr.msk.f32.gmra.mrb[44].mxu0 %vm4404_vm1, %v4395_v9  ;;  %4819 = vadd.xlane.f32.xlu1 %v4818_v60 }
 0x65c   : > { %v3850_v47 = vpop.permute.xlu1 %3849 }
 0x65d   : > { %v3848_v48 = vpop.permute.xlu0 %3847  ;;  %v4332_v31 = vsel %vm2235_vm5, %v4300_v15, %v3850_v47 }
 0x65e   : > { %v4331_v5 = vsel %vm2235_vm5, %v4299_v61, %v3848_v48  ;;  %vm8429_vm5 = vcmask 392512  }
 0x65f   : > { %4822 = vadd.xlane.f32.xlu1 %v4821_v20 }
 0x660   : > { %v3978_v39 = vpop.permute.xlu1 %3977 }
 0x661   : > { %v3976_v43 = vpop.permute.xlu0 %3975  ;;  %v4365_v23 = vsel %vm4333_vm15, %v4332_v31, %v3978_v39 }
 0x662   : > { %v4364_v6 = vsel %vm4333_vm15, %v4331_v5, %v3976_v43  ;;  %vm8499_vm15 = vcmask 1048512  }
 0x664   : > { %v4106_v2 = vpop.permute.xlu1 %4105 }
 0x665   : > { %v4104_v1 = vpop.permute.xlu0 %4103  ;;  %v4397_v35 = vsel %vm2268_vm6, %v4365_v23, %v4106_v2  ;;  %v9505_v2 = vmov 1966171168  }
 0x666   : > { %v4396_v17 = vsel %vm2268_vm6, %v4364_v6, %v4104_v1  ;;  %v9138_v19 = vpop.f32.mrb[24].mxu0  ;;  %v5160_v31 = vunpack.c.l.s4 %v9505_v2  ;;  %v5162_v6 = vlaneseq  ;;  %vm8436_vm6 = vcmask 458112  }
 0x667   : > { %v4617_v30 = vadd.f32 %v9138_v19, %v12512_v0  ;;  %v4611_v53 = vpop.f32.mrb[25].mxu0  ;;  %9169 = vmatprep.mubr.msk.f32.mxu0 %vm4404_vm1, %v4396_v17 }
 0x668   : > { %v4612_v46 = vadd.f32 %v12512_v0, %v4611_v53  ;;  %9170 = vmatmul.mubr.msk.f32.gmra.mrb[46].mxu0 %vm4404_vm1, %v4397_v35  ;;  %v5161_v19 = vunpack.c.0.s8 %v5160_v31  ;;  %v12658_v35 = vshrl.u32 %v5162_v6, 7  ;;  %vm8598_vm1 = vcmp.lt.s32.totalorder %v5162_v6, 256 }
 0x669   : > { %v4739_v22 = vmax.f32 %v4617_v30, 0.0 }
 0x66a   : > { %v4738_v25 = vmax.f32 %v4612_v46, 0.0 }
 0x66b   : > { %v4777_v4 = vmul.f32 %v12524_v16, %v4739_v22 }
 0x66c   : > { %v4776_v7 = vmul.f32 %v12524_v16, %v4738_v25  ;;  %v12663_v25 = vsub.s32 %v5161_v19, %v12658_v35 }
 0x66d   : > { %v4827_v3 = vsel %vm389_vm2, %v4777_v4, 0.0 }
 0x66e   : > { %v4824_v63 = vsel %vm389_vm2, %v4776_v7, 0.0 }
 0x66f   : > { %4825 = vadd.xlane.f32.xlu1 %v4824_v63 }
 0x673   : > { %4828 = vadd.xlane.f32.xlu1 %v4827_v3 }
 0x67a   : > { %v9141_v28 = vpop.f32.mrb[26].mxu0 }
 0x67b   : > { %v4627_v59 = vadd.f32 %v9141_v28, %v12512_v0  ;;  %v4621_v42 = vpop.f32.mrb[27].mxu0 }
 0x67c   : > { %v4622_v14 = vadd.f32 %v12512_v0, %v4621_v42 }
 0x67d   : > { %v4741_v18 = vmax.f32 %v4627_v59, 0.0 }
 0x67e   : > { %v4740_v44 = vmax.f32 %v4622_v14, 0.0 }
 0x67f   : > { %v4779_v11 = vmul.f32 %v12524_v16, %v4741_v18 }
 0x680   : > { %v4778_v49 = vmul.f32 %v12524_v16, %v4740_v44 }
 0x681   : > { %v4833_v29 = vsel %vm389_vm2, %v4779_v11, 0.0 }
 0x682   : > { %v4830_v12 = vsel %vm389_vm2, %v4778_v49, 0.0 }
 0x683   : > { %4831 = vadd.xlane.f32.xlu1 %v4830_v12 }
 0x687   : > { %4834 = vadd.xlane.f32.xlu1 %v4833_v29 }
 0x68e   : > { %v9144_v33 = vpop.f32.mrb[28].mxu0 }
 0x68f   : > { %v4637_v8 = vadd.f32 %v9144_v33, %v12512_v0  ;;  %v4631_v54 = vpop.f32.mrb[29].mxu0 }
 0x690   : > { %v4632_v40 = vadd.f32 %v12512_v0, %v4631_v54 }
 0x691   : > { %v4743_v50 = vmax.f32 %v4637_v8, 0.0 }
 0x692   : > { %v4742_v41 = vmax.f32 %v4632_v40, 0.0 }
 0x693   : > { %v4781_v24 = vmul.f32 %v12524_v16, %v4743_v50 }
 0x694   : > { %v4780_v34 = vmul.f32 %v12524_v16, %v4742_v41 }
 0x695   : > { %v4839_v58 = vsel %vm389_vm2, %v4781_v24, 0.0 }
 0x696   : > { %v4836_v10 = vsel %vm389_vm2, %v4780_v34, 0.0 }
 0x697   : > { %4837 = vadd.xlane.f32.xlu1 %v4836_v10 }
 0x69b   : > { %4840 = vadd.xlane.f32.xlu1 %v4839_v58 }
 0x6a2   : > { %v9147_v62 = vpop.f32.mrb[30].mxu0 }
 0x6a3   : > { %v4647_v21 = vadd.f32 %v9147_v62, %v12512_v0  ;;  %v4641_v57 = vpop.f32.mrb[31].mxu0 }
 0x6a4   : > { %v4642_v26 = vadd.f32 %v12512_v0, %v4641_v57 }
 0x6a5   : > { %v4745_v36 = vmax.f32 %v4647_v21, 0.0 }
 0x6a6   : > { %v4744_v32 = vmax.f32 %v4642_v26, 0.0 }
 0x6a7   : > { %v4783_v13 = vmul.f32 %v12524_v16, %v4745_v36 }
 0x6a8   : > { %v4782_v55 = vmul.f32 %v12524_v16, %v4744_v32 }
 0x6a9   : > { %v4845_v9 = vsel %vm389_vm2, %v4783_v13, 0.0 }
 0x6aa   : > { %v4842_v27 = vsel %vm389_vm2, %v4782_v55, 0.0 }
 0x6ab   : > { %4843 = vadd.xlane.f32.xlu1 %v4842_v27  ;;  %v12652_v51 = vpop.xlane.xlu1 %4804 }
 0x6ac   : > { %v4802_v38 = vpop.xlane.xlu0 %4801 }
 0x6ad   : > { %v4902_v56 = vadd.f32 %v12645_v52, %v4802_v38 }
 0x6af   : > { %v8784_v60 = vmul.f32 -1.442695, %v4902_v56  ;;  %4846 = vadd.xlane.f32.xlu1 %v4845_v9 }
 0x6b1   : > { %9254 = vpow2.f32 %v8784_v60 }
 0x6b6   : > { %v9150_v47 = vpop.f32.mrb[32].mxu0 }
 0x6b7   : > { %v4657_v48 = vadd.f32 %v9150_v47, %v12512_v0  ;;  %v4651_v20 = vpop.f32.mrb[33].mxu0 }
 0x6b8   : > { %v4652_v39 = vadd.f32 %v12512_v0, %v4651_v20 }
 0x6b9   : > { %v4747_v43 = vmax.f32 %v4657_v48, 0.0 }
 0x6ba   : > { %v4746_v45 = vmax.f32 %v4652_v39, 0.0 }
 0x6bb   : > { %v9255_v61 = vpop.eup %9254  ;;  %v4785_v1 = vmul.f32 %v12524_v16, %v4747_v43 }
 0x6bc   : > { %v5030_v15 = vadd.f32 1.0, %v9255_v61  ;;  %v4784_v5 = vmul.f32 %v12524_v16, %v4746_v45 }
 0x6bd   : > { %v4851_v53 = vsel %vm389_vm2, %v4785_v1, 0.0 }
 0x6be   : > { %9256 = vrcp.f32 %v5030_v15  ;;  %v4848_v23 = vsel %vm389_vm2, %v4784_v5, 0.0 }
 0x6bf   : > { %4849 = vadd.xlane.f32.xlu0 %v4848_v23 }
 0x6c0   : > { %v4808_v17 = vpop.xlane.xlu1 %4807 }
 0x6c1   : > { %v4904_v30 = vadd.f32 %v12645_v52, %v4808_v17 }
 0x6c3   : > { %v8786_v46 = vmul.f32 -1.442695, %v4904_v30  ;;  %4852 = vadd.xlane.f32.xlu0 %v4851_v53 }
 0x6c4   : > { %v4811_v22 = vpop.xlane.xlu1 %4810 }
 0x6c5   : > { %9258 = vpow2.f32 %v8786_v46  ;;  %v4905_v7 = vadd.f32 %v12645_v52, %v4811_v22 }
 0x6c7   : > { %v8787_v4 = vmul.f32 -1.442695, %v4905_v7 }
 0x6c8   : > { %v9257_v63 = vpop.eup %9256 }
 0x6c9   : > { %v5158_v37 = vcombine.high %v9257_v63, %v9257_v63  ;;  %v5165_v3 = vrot.slane %v9257_v63, %v12663_v25  ;;  %9260 = vpow2.f32 %v8787_v4 }
 0x6ca   : > { %v9153_v28 = vpop.f32.mrb[34].mxu0 }
 0x6cb   : > { %v5172_v59 = vrot.slane %v5158_v37, %v12663_v25  ;;  %v5173_v42 = vcombine.high %v5165_v3, %v5165_v3  ;;  %v4667_v14 = vadd.f32 %v9153_v28, %v12512_v0  ;;  %v4661_v18 = vpop.f32.mrb[35].mxu0  ;;  %v5181_v11 = vrot.slane %v5165_v3, %v12663_v25 }
 0x6cc   : > { %v4662_v44 = vadd.f32 %v12512_v0, %v4661_v18 }
 0x6cd   : > { %v5174_v49 = vcombine.high %v5172_v59, %v5172_v59  ;;  %v5195_v12 = vrot.slane %v5173_v42, %v12663_v25  ;;  %v4749_v29 = vmax.f32 %v4667_v14, 0.0  ;;  %v5188_v54 = vrot.slane %v5172_v59, %v12663_v25 }
 0x6ce   : > { %v4748_v33 = vmax.f32 %v4662_v44, 0.0 }
 0x6cf   : > { %v9259_v8 = vpop.eup %9258  ;;  %v5202_v40 = vrot.slane %v5174_v49, %v12663_v25  ;;  %v6726_v50 = vcombine.low %v5181_v11, %v5195_v12  ;;  %v8816_v41 = vcombine.high %v5181_v11, %v5195_v12  ;;  %v4787_v21 = vmul.f32 %v12524_v16, %v4749_v29 }
 0x6d0   : > { %v5032_v34 = vadd.f32 1.0, %v9259_v8  ;;  %v4786_v24 = vmul.f32 %v12524_v16, %v4748_v33 }
 0x6d1   : > { %v6728_v10 = vcombine.low %v5188_v54, %v5202_v40  ;;  %v8817_v58 = vcombine.high %v5188_v54, %v5202_v40  ;;  %v6736_v62 = vrot.slane %v6726_v50, %v12663_v25  ;;  %v6743_v26 = vrot.slane %v8816_v41, %v12663_v25 }
 0x6d2   : > { %9262 = vrcp.f32 %v5032_v34  ;;  %v4854_v57 = vsel %vm389_vm2, %v4786_v24, 0.0  ;;  %v4857_v60 = vsel %vm389_vm2, %v4787_v21, 0.0 }
 0x6d3   : > { %v9261_v36 = vpop.eup %9260  ;;  %4855 = vadd.xlane.f32.xlu0 %v4854_v57  ;;  %v6750_v32 = vrot.slane %v6728_v10, %v12663_v25  ;;  %v6757_v55 = vrot.slane %v8817_v58, %v12663_v25  ;;  %v6758_v38 = vcombine.low %v6736_v62, %v6743_v26 }
 0x6d4   : > { %v5033_v13 = vadd.f32 1.0, %v9261_v36  ;;  %v4814_v27 = vpop.xlane.xlu1 %4813 }
 0x6d5   : > { %v4906_v56 = vadd.f32 %v12645_v52, %v4814_v27  ;;  %v6759_v9 = vcombine.low %v6750_v32, %v6757_v55  ;;  %v6766_v48 = vrot.slane %v6758_v38, %v12663_v25 }
 0x6d6   : > { %9264 = vrcp.f32 %v5033_v13 }
 0x6d7   : > { %v8788_v47 = vmul.f32 -1.442695, %v4906_v56  ;;  %4858 = vadd.xlane.f32.xlu0 %v4857_v60  ;;  %v6773_v20 = vrot.slane %v6759_v9, %v12663_v25 }
 0x6d8   : > { %v4817_v39 = vpop.xlane.xlu1 %4816 }
 0x6d9   : > { %9266 = vpow2.f32 %v8788_v47  ;;  %v4907_v43 = vadd.f32 %v12645_v52, %v4817_v39  ;;  %v6774_v45 = vcombine.low %v6766_v48, %v6773_v20 }
 0x6db   : > { %v8789_v61 = vmul.f32 -1.442695, %v4907_v43  ;;  %8295 = vperm.xlu1 %9252, %v6774_v45  }
 0x6dc   : > { %v9263_v15 = vpop.eup %9262 }
 0x6dd   : > { %v5256_v5 = vcombine.high %v9263_v15, %v9263_v15  ;;  %v5263_v2 = vrot.slane %v9263_v15, %v12663_v25  ;;  %9268 = vpow2.f32 %v8789_v61 }
 0x6de   : > { %v9156_v31 = vpop.f32.mrb[36].mxu0 }
 0x6df   : > { %v5270_v1 = vrot.slane %v5256_v5, %v12663_v25  ;;  %v5271_v23 = vcombine.high %v5263_v2, %v5263_v2  ;;  %v4677_v17 = vadd.f32 %v9156_v31, %v12512_v0  ;;  %v4671_v19 = vpop.f32.mrb[37].mxu0  ;;  %v5279_v37 = vrot.slane %v5263_v2, %v12663_v25 }
 0x6e0   : > { %v9265_v30 = vpop.eup %9264  ;;  %v4672_v53 = vadd.f32 %v12512_v0, %v4671_v19 }
 0x6e1   : > { %v5305_v46 = vcombine.high %v9265_v30, %v9265_v30  ;;  %v5312_v22 = vrot.slane %v9265_v30, %v12663_v25  ;;  %v4751_v7 = vmax.f32 %v4677_v17, 0.0  ;;  %v5272_v4 = vcombine.high %v5270_v1, %v5270_v1 }
 0x6e2   : > { %v4750_v63 = vmax.f32 %v4672_v53, 0.0  ;;  %v5293_v3 = vrot.slane %v5271_v23, %v12663_v25  ;;  %v5286_v14 = vrot.slane %v5270_v1, %v12663_v25 }
 0x6e3   : > { %v9267_v28 = vpop.eup %9266  ;;  %v5319_v59 = vrot.slane %v5305_v46, %v12663_v25  ;;  %v5320_v42 = vcombine.high %v5312_v22, %v5312_v22  ;;  %v5300_v18 = vrot.slane %v5272_v4, %v12663_v25  ;;  %v4789_v29 = vmul.f32 %v12524_v16, %v4751_v7 }
 0x6e4   : > { %v5034_v44 = vadd.f32 1.0, %v9267_v28  ;;  %v4788_v49 = vmul.f32 %v12524_v16, %v4750_v63  ;;  %v6824_v11 = vcombine.low %v5279_v37, %v5293_v3  ;;  %v8820_v12 = vcombine.high %v5279_v37, %v5293_v3 }
 0x6e5   : > { %v6826_v33 = vcombine.low %v5286_v14, %v5300_v18  ;;  %v8821_v8 = vcombine.high %v5286_v14, %v5300_v18  ;;  %v5321_v54 = vcombine.high %v5319_v59, %v5319_v59  ;;  %v5328_v58 = vrot.slane %v5312_v22, %v12663_v25 }
 0x6e6   : > { %9270 = vrcp.f32 %v5034_v44  ;;  %v4860_v40 = vsel %vm389_vm2, %v4788_v49, 0.0  ;;  %v6834_v50 = vrot.slane %v6824_v11, %v12663_v25  ;;  %v6841_v41 = vrot.slane %v8820_v12, %v12663_v25 }
 0x6e7   : > { %v9269_v34 = vpop.eup %9268  ;;  %4861 = vadd.xlane.f32.xlu0 %v4860_v40  ;;  %v6848_v24 = vrot.slane %v6826_v33, %v12663_v25  ;;  %v6855_v10 = vrot.slane %v8821_v8, %v12663_v25  ;;  %v5342_v26 = vrot.slane %v5320_v42, %v12663_v25  ;;  %v5349_v36 = vrot.slane %v5321_v54, %v12663_v25 }
 0x6e8   : > { %v5035_v62 = vadd.f32 1.0, %v9269_v34  ;;  %v4820_v21 = vpop.xlane.xlu1 %4819  ;;  %v6856_v57 = vcombine.low %v6834_v50, %v6841_v41  ;;  %v4863_v55 = vsel %vm389_vm2, %v4789_v29, 0.0  ;;  %v5335_v27 = vrot.slane %v5319_v59, %v12663_v25 }
 0x6e9   : > { %v4908_v32 = vadd.f32 %v12645_v52, %v4820_v21  ;;  %v6857_v13 = vcombine.low %v6848_v24, %v6855_v10  ;;  %v6873_v56 = vcombine.low %v5328_v58, %v5342_v26  ;;  %v8822_v9 = vcombine.high %v5328_v58, %v5342_v26 }
 0x6ea   : > { %9272 = vrcp.f32 %v5035_v62  ;;  %v6864_v38 = vrot.slane %v6856_v57, %v12663_v25  ;;  %v6875_v48 = vcombine.low %v5335_v27, %v5349_v36  ;;  %v8823_v20 = vcombine.high %v5335_v27, %v5349_v36 }
 0x6eb   : > { %v8790_v60 = vmul.f32 -1.442695, %v4908_v32  ;;  %4864 = vadd.xlane.f32.xlu0 %v4863_v55  ;;  %v6871_v47 = vrot.slane %v6857_v13, %v12663_v25  ;;  %v6883_v43 = vrot.slane %v6873_v56, %v12663_v25  ;;  %v6890_v45 = vrot.slane %v8822_v9, %v12663_v25 }
 0x6ec   : > { %v4823_v39 = vpop.xlane.xlu1 %4822  ;;  %v6897_v5 = vrot.slane %v6875_v48, %v12663_v25  ;;  %v6904_v2 = vrot.slane %v8823_v20, %v12663_v25 }
 0x6ed   : > { %9274 = vpow2.f32 %v8790_v60  ;;  %v4909_v61 = vadd.f32 %v12645_v52, %v4823_v39  ;;  %v6872_v15 = vcombine.low %v6864_v38, %v6871_v47  ;;  %v6905_v31 = vcombine.low %v6883_v43, %v6890_v45 }
 0x6ee   : > { %v6906_v17 = vcombine.low %v6897_v5, %v6904_v2 }
 0x6ef   : > { %v8791_v1 = vmul.f32 -1.442695, %v4909_v61  ;;  %8301 = vperm.xlu1 %9252, %v6872_v15   ;;  %v6913_v46 = vrot.slane %v6905_v31, %v12663_v25 }
 0x6f0   : > { %v9271_v23 = vpop.eup %9270  ;;  %v6920_v22 = vrot.slane %v6906_v17, %v12663_v25 }
 0x6f1   : > { %v5354_v19 = vcombine.high %v9271_v23, %v9271_v23  ;;  %v5361_v30 = vrot.slane %v9271_v23, %v12663_v25  ;;  %9276 = vpow2.f32 %v8791_v1 }
 0x6f2   : > { %v9159_v53 = vpop.f32.mrb[38].mxu0  ;;  %v6921_v59 = vcombine.low %v6913_v46, %v6920_v22 }
 0x6f3   : > { %v5368_v7 = vrot.slane %v5354_v19, %v12663_v25  ;;  %v5369_v4 = vcombine.high %v5361_v30, %v5361_v30  ;;  %v4687_v63 = vadd.f32 %v9159_v53, %v12512_v0  ;;  %v4681_v37 = vpop.f32.mrb[39].mxu0  ;;  %v5377_v11 = vrot.slane %v5361_v30, %v12663_v25 }
 0x6f4   : > { %v9273_v3 = vpop.eup %9272  ;;  %v4682_v28 = vadd.f32 %v12512_v0, %v4681_v37  ;;  %8304 = vperm.xlu1 %9252, %v6921_v59  }
 0x6f5   : > { %v5403_v42 = vcombine.high %v9273_v3, %v9273_v3  ;;  %v5410_v14 = vrot.slane %v9273_v3, %v12663_v25  ;;  %v4753_v18 = vmax.f32 %v4687_v63, 0.0  ;;  %v5370_v44 = vcombine.high %v5368_v7, %v5368_v7 }
 0x6f6   : > { %v4752_v49 = vmax.f32 %v4682_v28, 0.0  ;;  %v5391_v12 = vrot.slane %v5369_v4, %v12663_v25  ;;  %v5384_v54 = vrot.slane %v5368_v7, %v12663_v25 }
 0x6f7   : > { %v9275_v29 = vpop.eup %9274  ;;  %v5417_v33 = vrot.slane %v5403_v42, %v12663_v25  ;;  %v5418_v8 = vcombine.high %v5410_v14, %v5410_v14  ;;  %v5398_v40 = vrot.slane %v5370_v44, %v12663_v25  ;;  %v4791_v10 = vmul.f32 %v12524_v16, %v4753_v18 }
 0x6f8   : > { %v5036_v50 = vadd.f32 1.0, %v9275_v29  ;;  %v4790_v41 = vmul.f32 %v12524_v16, %v4752_v49  ;;  %v6922_v34 = vcombine.low %v5377_v11, %v5391_v12  ;;  %v8824_v24 = vcombine.high %v5377_v11, %v5391_v12 }
 0x6f9   : > { %v6924_v58 = vcombine.low %v5384_v54, %v5398_v40  ;;  %v8825_v62 = vcombine.high %v5384_v54, %v5398_v40  ;;  %v5419_v21 = vcombine.high %v5417_v33, %v5417_v33  ;;  %v5426_v27 = vrot.slane %v5410_v14, %v12663_v25 }
 0x6fa   : > { %9278 = vrcp.f32 %v5036_v50  ;;  %v4866_v57 = vsel %vm389_vm2, %v4790_v41, 0.0  ;;  %v6932_v26 = vrot.slane %v6922_v34, %v12663_v25  ;;  %v6939_v36 = vrot.slane %v8824_v24, %v12663_v25 }
 0x6fb   : > { %v9277_v32 = vpop.eup %9276  ;;  %4867 = vadd.xlane.f32.xlu0 %v4866_v57  ;;  %v6946_v55 = vrot.slane %v6924_v58, %v12663_v25  ;;  %v6953_v13 = vrot.slane %v8825_v62, %v12663_v25  ;;  %v5440_v60 = vrot.slane %v5418_v8, %v12663_v25  ;;  %v5447_v47 = vrot.slane %v5419_v21, %v12663_v25 }
 0x6fc   : > { %v5037_v38 = vadd.f32 1.0, %v9277_v32  ;;  %v4826_v56 = vpop.xlane.xlu1 %4825  ;;  %v6954_v9 = vcombine.low %v6932_v26, %v6939_v36  ;;  %v4869_v20 = vsel %vm389_vm2, %v4791_v10, 0.0  ;;  %v5433_v43 = vrot.slane %v5417_v33, %v12663_v25 }
 0x6fd   : > { %v4910_v48 = vadd.f32 %v12645_v52, %v4826_v56  ;;  %v6955_v39 = vcombine.low %v6946_v55, %v6953_v13  ;;  %v6971_v61 = vcombine.low %v5426_v27, %v5440_v60  ;;  %v8826_v15 = vcombine.high %v5426_v27, %v5440_v60 }
 0x6fe   : > { %9280 = vrcp.f32 %v5037_v38  ;;  %v6962_v45 = vrot.slane %v6954_v9, %v12663_v25  ;;  %v6973_v31 = vcombine.low %v5433_v43, %v5447_v47  ;;  %v8827_v1 = vcombine.high %v5433_v43, %v5447_v47 }
 0x6ff   : > { %v8792_v5 = vmul.f32 -1.442695, %v4910_v48  ;;  %4870 = vadd.xlane.f32.xlu0 %v4869_v20  ;;  %v6969_v2 = vrot.slane %v6955_v39, %v12663_v25  ;;  %v6981_v17 = vrot.slane %v6971_v61, %v12663_v25  ;;  %v6988_v19 = vrot.slane %v8826_v15, %v12663_v25 }
 0x700   : > { %v4829_v23 = vpop.xlane.xlu1 %4828  ;;  %v6995_v46 = vrot.slane %v6973_v31, %v12663_v25  ;;  %v7002_v22 = vrot.slane %v8827_v1, %v12663_v25 }
 0x701   : > { %9282 = vpow2.f32 %v8792_v5  ;;  %v4911_v30 = vadd.f32 %v12645_v52, %v4829_v23  ;;  %v6970_v53 = vcombine.low %v6962_v45, %v6969_v2  ;;  %v7003_v7 = vcombine.low %v6981_v17, %v6988_v19 }
 0x702   : > { %v7004_v37 = vcombine.low %v6995_v46, %v7002_v22  ;;  %v4903_v22 = vadd.f32 %v12645_v52, %v12652_v51 }
 0x703   : > { %v8793_v4 = vmul.f32 -1.442695, %v4911_v30  ;;  %8307 = vperm.xlu1 %9252, %v6970_v53   ;;  %v7011_v42 = vrot.slane %v7003_v7, %v12663_v25 }
 0x704   : > { %v9279_v63 = vpop.eup %9278  ;;  %v7018_v14 = vrot.slane %v7004_v37, %v12663_v25 }
 0x705   : > { %v5452_v3 = vcombine.high %v9279_v63, %v9279_v63  ;;  %v5459_v28 = vrot.slane %v9279_v63, %v12663_v25  ;;  %9284 = vpow2.f32 %v8793_v4 }
 0x706   : > { %v9162_v59 = vpop.f32.mrb[40].mxu0  ;;  %v7019_v33 = vcombine.low %v7011_v42, %v7018_v14 }
 0x707   : > { %v5466_v18 = vrot.slane %v5452_v3, %v12663_v25  ;;  %v5467_v44 = vcombine.high %v5459_v28, %v5459_v28  ;;  %v4697_v49 = vadd.f32 %v9162_v59, %v12512_v0  ;;  %v4691_v11 = vpop.f32.mrb[41].mxu0  ;;  %v5475_v34 = vrot.slane %v5459_v28, %v12663_v25 }
 0x708   : > { %v9281_v12 = vpop.eup %9280  ;;  %v4692_v29 = vadd.f32 %v12512_v0, %v4691_v11  ;;  %8310 = vperm.xlu1 %9252, %v7019_v33   ;;  %v8785_v59 = vmul.f32 -1.442695, %v4903_v22 }
 0x709   : > { %v5501_v8 = vcombine.high %v9281_v12, %v9281_v12  ;;  %v5508_v54 = vrot.slane %v9281_v12, %v12663_v25  ;;  %v4755_v40 = vmax.f32 %v4697_v49, 0.0  ;;  %v5468_v50 = vcombine.high %v5466_v18, %v5466_v18  ;;  %v12787_v12 = vld [vmem:[%s13544_s6] ss:$0 sm:$0xff] }
 0x70a   : > { %v4754_v41 = vmax.f32 %v4692_v29, 0.0  ;;  %v5489_v24 = vrot.slane %v5467_v44, %v12663_v25  ;;  %v5482_v21 = vrot.slane %v5466_v18, %v12663_v25 }
 0x70b   : > { %v9283_v10 = vpop.eup %9282  ;;  %v5515_v58 = vrot.slane %v5501_v8, %v12663_v25  ;;  %v5516_v62 = vcombine.high %v5508_v54, %v5508_v54  ;;  %v5496_v0 = vrot.slane %v5468_v50, %v12663_v25  ;;  %v4793_v55 = vmul.f32 %v12524_v16, %v4755_v40 }
 0x70c   : > { %v5038_v57 = vadd.f32 1.0, %v9283_v10  ;;  %v4792_v26 = vmul.f32 %v12524_v16, %v4754_v41  ;;  %v7020_v36 = vcombine.low %v5475_v34, %v5489_v24  ;;  %v8828_v32 = vcombine.high %v5475_v34, %v5489_v24 }
 0x70d   : > { %v7022_v13 = vcombine.low %v5482_v21, %v5496_v0  ;;  %v8829_v27 = vcombine.high %v5482_v21, %v5496_v0  ;;  %v5517_v38 = vcombine.high %v5515_v58, %v5515_v58  ;;  %v5524_v39 = vrot.slane %v5508_v54, %v12663_v25 }
 0x70e   : > { %9286 = vrcp.f32 %v5038_v57  ;;  %v4872_v56 = vsel %vm389_vm2, %v4792_v26, 0.0  ;;  %v7030_v9 = vrot.slane %v7020_v36, %v12663_v25  ;;  %v7037_v60 = vrot.slane %v8828_v32, %v12663_v25  ;;  %v12800_v36 = vld [vmem:[%s13545_s7] ss:$0 sm:$0xff] }
 0x70f   : > { %v9285_v47 = vpop.eup %9284  ;;  %4873 = vadd.xlane.f32.xlu0 %v4872_v56  ;;  %v7044_v48 = vrot.slane %v7022_v13, %v12663_v25  ;;  %v7051_v20 = vrot.slane %v8829_v27, %v12663_v25  ;;  %v5538_v45 = vrot.slane %v5516_v62, %v12663_v25  ;;  %v5545_v61 = vrot.slane %v5517_v38, %v12663_v25 }
 0x710   : > { %v5039_v43 = vadd.f32 1.0, %v9285_v47  ;;  %v7052_v16 = vcombine.low %v7030_v9, %v7037_v60  ;;  %v5531_v5 = vrot.slane %v5515_v58, %v12663_v25  ;;  %v4875_v2 = vsel %vm389_vm2, %v4793_v55, 0.0 }
 0x711   : > { %v7053_v15 = vcombine.low %v7044_v48, %v7051_v20  ;;  %v7069_v31 = vcombine.low %v5524_v39, %v5538_v45  ;;  %v8830_v1 = vcombine.high %v5524_v39, %v5538_v45 }
 0x712   : > { %9288 = vrcp.f32 %v5039_v43  ;;  %v7060_v23 = vrot.slane %v7052_v16, %v12663_v25  ;;  %v7071_v19 = vcombine.low %v5531_v5, %v5545_v61  ;;  %v8831_v30 = vcombine.high %v5531_v5, %v5545_v61 }
 0x713   : > { %4876 = vadd.xlane.f32.xlu0 %v4875_v2  ;;  %v7067_v17 = vrot.slane %v7053_v15, %v12663_v25  ;;  %v7079_v53 = vrot.slane %v7069_v31, %v12663_v25  ;;  %v7086_v46 = vrot.slane %v8830_v1, %v12663_v25  ;;  %9290 = vpow2.f32 %v8785_v59 }
 0x714   : > { %v7093_v4 = vrot.slane %v7071_v19, %v12663_v25  ;;  %v7100_v63 = vrot.slane %v8831_v30, %v12663_v25 }
 0x715   : > { %v7068_v7 = vcombine.low %v7060_v23, %v7067_v17  ;;  %v7101_v37 = vcombine.low %v7079_v53, %v7086_v46 }
 0x716   : > { %v7102_v28 = vcombine.low %v7093_v4, %v7100_v63 }
 0x717   : > { %8313 = vperm.xlu1 %9252, %v7068_v7   ;;  %v7109_v44 = vrot.slane %v7101_v37, %v12663_v25 }
 0x718   : > { %v9287_v3 = vpop.eup %9286  ;;  %v7116_v49 = vrot.slane %v7102_v28, %v12663_v25 }
 0x719   : > { %v5550_v42 = vcombine.high %v9287_v3, %v9287_v3  ;;  %v5557_v14 = vrot.slane %v9287_v3, %v12663_v25 }
 0x71a   : > { %v9165_v18 = vpop.f32.mrb[42].mxu0  ;;  %v7117_v40 = vcombine.low %v7109_v44, %v7116_v49 }
 0x71b   : > { %v5564_v51 = vrot.slane %v5550_v42, %v12663_v25  ;;  %v5565_v11 = vcombine.high %v5557_v14, %v5557_v14  ;;  %v4707_v29 = vadd.f32 %v12787_v12, %v9165_v18  ;;  %v4701_v33 = vpop.f32.mrb[43].mxu0  ;;  %v5573_v58 = vrot.slane %v5557_v14, %v12663_v25 }
 0x71c   : > { %v9289_v8 = vpop.eup %9288  ;;  %v4702_v54 = vadd.f32 %v12787_v12, %v4701_v33  ;;  %8316 = vperm.xlu1 %9252, %v7117_v40   ;;  %v4832_v33 = vpop.xlane.xlu1 %4831 }
 0x71d   : > { %v5599_v50 = vcombine.high %v9289_v8, %v9289_v8  ;;  %v5606_v41 = vrot.slane %v9289_v8, %v12663_v25  ;;  %v5566_v34 = vcombine.high %v5564_v51, %v5564_v51  ;;  %v4757_v24 = vmax.f32 %v4707_v29, 0.0  ;;  %v9291_v23 = vpop.eup %9290 }
 0x71e   : > { %v4756_v10 = vmax.f32 %v4702_v54, 0.0  ;;  %v5587_v62 = vrot.slane %v5565_v11, %v12663_v25  ;;  %v5580_v0 = vrot.slane %v5564_v51, %v12663_v25  ;;  %v5031_v3 = vadd.f32 1.0, %v9291_v23 }
 0x71f   : > { %v5613_v21 = vrot.slane %v5599_v50, %v12663_v25  ;;  %v5594_v57 = vrot.slane %v5566_v34, %v12663_v25  ;;  %v5614_v26 = vcombine.high %v5606_v41, %v5606_v41  ;;  %v4795_v9 = vmul.f32 %v12800_v36, %v4757_v24 }
 0x720   : > { %v4794_v32 = vmul.f32 %v12800_v36, %v4756_v10  ;;  %v7118_v55 = vcombine.low %v5573_v58, %v5587_v62  ;;  %v8832_v13 = vcombine.high %v5573_v58, %v5587_v62  ;;  %v5622_v16 = vrot.slane %v5606_v41, %v12663_v25 }
 0x721   : > { %v7120_v27 = vcombine.low %v5580_v0, %v5594_v57  ;;  %v8833_v38 = vcombine.high %v5580_v0, %v5594_v57  ;;  %v5615_v56 = vcombine.high %v5613_v21, %v5613_v21  ;;  %v5636_v45 = vrot.slane %v5614_v26, %v12663_v25  ;;  %v4835_v0 = vpop.xlane.xlu1 %4834 }
 0x722   : > { %v4878_v60 = vsel %vm389_vm2, %v4794_v32, 0.0  ;;  %v7128_v47 = vrot.slane %v7118_v55, %v12663_v25  ;;  %v7135_v48 = vrot.slane %v8832_v13, %v12663_v25  ;;  %v5629_v5 = vrot.slane %v5613_v21, %v12663_v25 }
 0x723   : > { %4879 = vadd.xlane.f32.xlu0 %v4878_v60  ;;  %v7142_v20 = vrot.slane %v7120_v27, %v12663_v25  ;;  %v7149_v39 = vrot.slane %v8833_v38, %v12663_v25  ;;  %v5643_v61 = vrot.slane %v5615_v56, %v12663_v25  ;;  %v4881_v2 = vsel %vm389_vm2, %v4795_v9, 0.0 }
 0x724   : > { %v7150_v43 = vcombine.low %v7128_v47, %v7135_v48  ;;  %v7167_v31 = vcombine.low %v5622_v16, %v5636_v45  ;;  %v8834_v1 = vcombine.high %v5622_v16, %v5636_v45  ;;  %9292 = vrcp.f32 %v5031_v3 }
 0x725   : > { %v7151_v15 = vcombine.low %v7142_v20, %v7149_v39  ;;  %v7169_v30 = vcombine.low %v5629_v5, %v5643_v61  ;;  %v8835_v53 = vcombine.high %v5629_v5, %v5643_v61  ;;  %v4912_v54 = vadd.f32 %v12645_v52, %v4832_v33 }
 0x726   : > { %v7158_v17 = vrot.slane %v7150_v43, %v12663_v25  ;;  %v7177_v46 = vrot.slane %v7167_v31, %v12663_v25  ;;  %v7184_v22 = vrot.slane %v8834_v1, %v12663_v25  ;;  %v4913_v13 = vadd.f32 %v12645_v52, %v4835_v0 }
 0x727   : > { %4882 = vadd.xlane.f32.xlu0 %v4881_v2  ;;  %v7165_v19 = vrot.slane %v7151_v15, %v12663_v25  ;;  %v7191_v4 = vrot.slane %v7169_v30, %v12663_v25  ;;  %v7198_v63 = vrot.slane %v8835_v53, %v12663_v25  ;;  %v8794_v34 = vmul.f32 -1.442695, %v4912_v54 }
 0x728   : > { %v7199_v37 = vcombine.low %v7177_v46, %v7184_v22  ;;  %v8795_v60 = vmul.f32 -1.442695, %v4913_v13  ;;  %v4838_v22 = vpop.xlane.xlu1 %4837 }
 0x729   : > { %v7166_v7 = vcombine.low %v7158_v17, %v7165_v19  ;;  %v7200_v28 = vcombine.low %v7191_v4, %v7198_v63  ;;  %9294 = vpow2.f32 %v8794_v34 }
 0x72a   : > { %v7207_v42 = vrot.slane %v7199_v37, %v12663_v25  ;;  %9296 = vpow2.f32 %v8795_v60 }
 0x72b   : > { %8319 = vperm.xlu1 %9252, %v7166_v7   ;;  %v7214_v14 = vrot.slane %v7200_v28, %v12663_v25  ;;  %v4914_v28 = vadd.f32 %v12645_v52, %v4838_v22 }
 0x72d   : > { %v7215_v51 = vcombine.low %v7207_v42, %v7214_v14 }
 0x72e   : > { %v9168_v59 = vpop.f32.mrb[44].mxu0  ;;  %v9293_v41 = vpop.eup %9292 }
 0x72f   : > { %v4717_v18 = vadd.f32 %v12787_v12, %v9168_v59  ;;  %v4711_v44 = vpop.f32.mrb[45].mxu0  ;;  %8322 = vperm.xlu1 %9252, %v7215_v51   ;;  %v5207_v58 = vcombine.high %v9293_v41, %v9293_v41  ;;  %v5214_v38 = vrot.slane %v9293_v41, %v12663_v25 }
 0x730   : > { %v4712_v49 = vadd.f32 %v12787_v12, %v4711_v44 }
 0x731   : > { %v4759_v11 = vmax.f32 %v4717_v18, 0.0  ;;  %v5221_v55 = vrot.slane %v5207_v58, %v12663_v25  ;;  %v5222_v48 = vcombine.high %v5214_v38, %v5214_v38  ;;  %v8796_v18 = vmul.f32 -1.442695, %v4914_v28 }
 0x732   : > { %v4758_v29 = vmax.f32 %v4712_v49, 0.0 }
 0x733   : > { %v4797_v40 = vmul.f32 %v12800_v36, %v4759_v11  ;;  %v5223_v47 = vcombine.high %v5221_v55, %v5221_v55  ;;  %v9295_v20 = vpop.eup %9294  ;;  %v5237_v43 = vrot.slane %v5221_v55, %v12663_v25  ;;  %v5244_v16 = vrot.slane %v5222_v48, %v12663_v25 }
 0x734   : > { %v4796_v8 = vmul.f32 %v12800_v36, %v4758_v29  ;;  %v5040_v45 = vadd.f32 1.0, %v9295_v20  ;;  %v9297_v46 = vpop.eup %9296 }
 0x735   : > { %v4887_v24 = vsel %vm389_vm2, %v4797_v40, 0.0  ;;  %v5251_v39 = vrot.slane %v5223_v47, %v12663_v25  ;;  %v5041_v3 = vadd.f32 1.0, %v9297_v46  ;;  %v4841_v40 = vpop.xlane.xlu1 %4840 }
 0x736   : > { %v4884_v50 = vsel %vm389_vm2, %v4796_v8, 0.0  ;;  %9298 = vrcp.f32 %v5040_v45 }
 0x737   : > { %4885 = vadd.xlane.f32.xlu0 %v4884_v50  ;;  %v6777_v15 = vcombine.low %v5237_v43, %v5251_v39  ;;  %v8819_v5 = vcombine.high %v5237_v43, %v5251_v39 }
 0x739   : > { %v6799_v19 = vrot.slane %v6777_v15, %v12663_v25  ;;  %v6806_v30 = vrot.slane %v8819_v5, %v12663_v25 }
 0x73b   : > { %v9171_v10 = vpop.f32.mrb[46].mxu0  ;;  %4888 = vadd.xlane.f32.xlu0 %v4887_v24  ;;  %v6808_v37 = vcombine.low %v6799_v19, %v6806_v30 }
 0x73c   : > { %v4727_v62 = vadd.f32 %v12787_v12, %v9171_v10  ;;  %v4721_v21 = vpop.f32.mrb[47].mxu0  ;;  %v4915_v10 = vadd.f32 %v12645_v52, %v4841_v40 }
 0x73d   : > { %v4722_v57 = vadd.f32 %v12787_v12, %v4721_v21  ;;  %v6822_v42 = vrot.slane %v6808_v37, %v12663_v25 }
 0x73e   : > { %v4761_v26 = vmax.f32 %v4727_v62, 0.0  ;;  %v8797_v55 = vmul.f32 -1.442695, %v4915_v10  ;;  %v4844_v10 = vpop.xlane.xlu1 %4843 }
 0x73f   : > { %v4760_v32 = vmax.f32 %v4722_v57, 0.0 }
 0x740   : > { %v4799_v56 = vmul.f32 %v12800_v36, %v4761_v26  ;;  %v9299_v14 = vpop.eup %9298 }
 0x741   : > { %v4798_v27 = vmul.f32 %v12800_v36, %v4760_v32  ;;  %v5230_v36 = vrot.slane %v5214_v38, %v12663_v25  ;;  %v5648_v51 = vcombine.high %v9299_v14, %v9299_v14  ;;  %v5655_v8 = vrot.slane %v9299_v14, %v12663_v25 }
 0x742   : > { %v4893_v12 = vsel %vm389_vm2, %v4799_v56, 0.0 }
 0x743   : > { %v4890_v9 = vsel %vm389_vm2, %v4798_v27, 0.0  ;;  %v6775_v31 = vcombine.low %v5230_v36, %v5244_v16  ;;  %v8818_v1 = vcombine.high %v5230_v36, %v5244_v16  ;;  %v5662_v54 = vrot.slane %v5648_v51, %v12663_v25 }
 0x744   : > { %4891 = vadd.xlane.f32.xlu0 %v4890_v9  ;;  %v5663_v62 = vcombine.high %v5655_v8, %v5655_v8  ;;  %vm8408_vm2 = vcmask 195712  }
 0x745   : > { %v6785_v7 = vrot.slane %v6775_v31, %v12663_v25  ;;  %v6792_v4 = vrot.slane %v8818_v1, %v12663_v25  ;;  %v5664_v0 = vcombine.high %v5662_v54, %v5662_v54  ;;  %v12871_v20 = vrot.slane %v5662_v54, %v12663_v25 }
 0x746   : > { %v12860_v56 = vrot.slane %v5663_v62, %v12663_v25 }
 0x747   : > { %v6807_v59 = vcombine.low %v6785_v7, %v6792_v4  ;;  %v12863_v9 = vrot.slane %v5664_v0, %v12663_v25 }
 0x748   : > { %4894 = vadd.xlane.f32.xlu0 %v4893_v12  ;;  %v5671_v12 = vrot.slane %v5655_v8, %v12663_v25 }
 0x749   : > { %v6815_v44 = vrot.slane %v6807_v59, %v12663_v25  ;;  %v7218_v15 = vcombine.low %v12871_v20, %v12863_v9  ;;  %v8837_v1 = vcombine.high %v12871_v20, %v12863_v9 }
 0x74a   : > { %v8836_v36 = vcombine.high %v5671_v12, %v12860_v56 }
 0x74b   : > { %v6823_v29 = vcombine.low %v6815_v44, %v6822_v42  ;;  %v7240_v20 = vrot.slane %v7218_v15, %v12663_v25 }
 0x74c   : > { %v4850_v61 = vpop.xlane.xlu0 %4849 }
 0x74d   : > { %v4918_v2 = vadd.f32 %v12645_v52, %v4850_v61  ;;  %v7216_v61 = vcombine.low %v5671_v12, %v12860_v56 }
 0x74f   : > { %v8800_v23 = vmul.f32 -1.442695, %v4918_v2 }
 0x750   : > { %v4853_v17 = vpop.xlane.xlu0 %4852 }
 0x751   : > { %9300 = vpow2.f32 %v8800_v23  ;;  %v4919_v53 = vadd.f32 %v12645_v52, %v4853_v17 }
 0x753   : > { %v8801_v63 = vmul.f32 -1.442695, %v4919_v53 }
 0x755   : > { %9302 = vpow2.f32 %v8801_v63 }
 0x756   : > { %9304 = vrcp.f32 %v5041_v3  ;;  %v12891_v3 = vrot.slane %v7216_v61, %v12663_v25 }
 0x757   : > { %9306 = vpow2.f32 %v8796_v18 }
 0x75b   : > { %v9301_v49 = vpop.eup %9300 }
 0x75c   : > { %v5046_v11 = vadd.f32 1.0, %v9301_v49 }
 0x75e   : > { %9308 = vrcp.f32 %v5046_v11  ;;  %8298 = vperm.xlu0 %9253, %v6823_v29  }
 0x75f   : > { %v9303_v33 = vpop.eup %9302 }
 0x760   : > { %v5047_v50 = vadd.f32 1.0, %v9303_v33  ;;  %v4856_v41 = vpop.xlane.xlu0 %4855  ;;  %v9305_v24 = vpop.eup %9304 }
 0x761   : > { %v4920_v34 = vadd.f32 %v12645_v52, %v4856_v41  ;;  %v5697_v26 = vcombine.high %v9305_v24, %v9305_v24  ;;  %v9307_v32 = vpop.eup %9306  ;;  %v12857_v38 = vrot.slane %v9305_v24, %v12663_v25 }
 0x762   : > { %9310 = vrcp.f32 %v5047_v50  ;;  %v5042_v48 = vadd.f32 1.0, %v9307_v32 }
 0x763   : > { %v8802_v58 = vmul.f32 -1.442695, %v4920_v34  ;;  %v5712_v45 = vcombine.high %v12857_v38, %v12857_v38 }
 0x764   : > { %v4859_v21 = vpop.xlane.xlu0 %4858 }
 0x765   : > { %9312 = vpow2.f32 %v8802_v58  ;;  %v4921_v57 = vadd.f32 %v12645_v52, %v4859_v21  ;;  %v12867_v52 = vrot.slane %v5697_v26, %v12663_v25  ;;  %v12901_v58 = vld [vmem:[#allocation4] ss:$0 sm:$0xff]  ;;  %v12926_v15 = vrot.slane %v5712_v45, %v12663_v25 }
 0x767   : > { %v8803_v13 = vmul.f32 -1.442695, %v4921_v57  ;;  %v5713_v19 = vcombine.high %v12867_v52, %v12867_v52  ;;  %v12939_v45 = vrot.slane %v12867_v52, %v12663_v25 }
 0x768   : > { %v9309_v27 = vpop.eup %9308 }
 0x769   : > { %v5942_v60 = vcombine.high %v9309_v27, %v9309_v27  ;;  %v5949_v47 = vrot.slane %v9309_v27, %v12663_v25  ;;  %9314 = vpow2.f32 %v8803_v13 }
 0x76a   : > { %9316 = vpow2.f32 %v8797_v55  ;;  %v7233_v55 = vrot.slane %v8836_v36, %v12663_v25 }
 0x76b   : > { %v5956_v39 = vrot.slane %v5942_v60, %v12663_v25  ;;  %v5957_v43 = vcombine.high %v5949_v47, %v5949_v47  ;;  %9318 = vrcp.f32 %v5042_v48  ;;  %v5965_v23 = vrot.slane %v5949_v47, %v12663_v25 }
 0x76c   : > { %v9311_v16 = vpop.eup %9310  ;;  %v4916_v47 = vadd.f32 %v12901_v58, %v4844_v10 }
 0x76d   : > { %v5991_v5 = vcombine.high %v9311_v16, %v9311_v16  ;;  %v5998_v2 = vrot.slane %v9311_v16, %v12663_v25  ;;  %v5958_v31 = vcombine.high %v5956_v39, %v5956_v39  ;;  %v5979_v17 = vrot.slane %v5957_v43, %v12663_v25 }
 0x76e   : > { %v5972_v22 = vrot.slane %v5956_v39, %v12663_v25  ;;  %v7247_v39 = vrot.slane %v8837_v1, %v12663_v25 }
 0x76f   : > { %v9313_v30 = vpop.eup %9312  ;;  %v6005_v53 = vrot.slane %v5991_v5, %v12663_v25  ;;  %v6006_v46 = vcombine.high %v5998_v2, %v5998_v2  ;;  %v5986_v7 = vrot.slane %v5958_v31, %v12663_v25  ;;  %v7510_v63 = vcombine.low %v5965_v23, %v5979_v17 }
 0x770   : > { %v5048_v4 = vadd.f32 1.0, %v9313_v30  ;;  %v8848_v37 = vcombine.high %v5965_v23, %v5979_v17  ;;  %v6014_v14 = vrot.slane %v5998_v2, %v12663_v25  ;;  %v7248_v31 = vcombine.low %v12891_v3, %v7233_v55 }
 0x771   : > { %v7512_v28 = vcombine.low %v5972_v22, %v5986_v7  ;;  %v8849_v59 = vcombine.high %v5972_v22, %v5986_v7  ;;  %v6007_v42 = vcombine.high %v6005_v53, %v6005_v53  ;;  %v7520_v18 = vrot.slane %v7510_v63, %v12663_v25  ;;  %v4847_v63 = vpop.xlane.xlu1 %4846 }
 0x772   : > { %9320 = vrcp.f32 %v5048_v4  ;;  %v7527_v44 = vrot.slane %v8848_v37, %v12663_v25  ;;  %v6028_v49 = vrot.slane %v6006_v46, %v12663_v25  ;;  %v6021_v33 = vrot.slane %v6005_v53, %v12663_v25 }
 0x773   : > { %v9315_v51 = vpop.eup %9314  ;;  %v7534_v11 = vrot.slane %v7512_v28, %v12663_v25  ;;  %v7541_v29 = vrot.slane %v8849_v59, %v12663_v25  ;;  %v6035_v8 = vrot.slane %v6007_v42, %v12663_v25  ;;  %v12920_v23 = vrot.slane %v12857_v38, %v12663_v25 }
 0x774   : > { %v5049_v54 = vadd.f32 1.0, %v9315_v51  ;;  %v4862_v40 = vpop.xlane.xlu0 %4861  ;;  %v7542_v50 = vcombine.low %v7520_v18, %v7527_v44  ;;  %v7559_v41 = vcombine.low %v6014_v14, %v6028_v49  ;;  %v8850_v34 = vcombine.high %v6014_v14, %v6028_v49  ;;  %v9317_v24 = vpop.eup %9316 }
 0x775   : > { %v4922_v62 = vadd.f32 %v12901_v58, %v4862_v40  ;;  %v7543_v21 = vcombine.low %v7534_v11, %v7541_v29  ;;  %v7561_v0 = vcombine.low %v6021_v33, %v6035_v8  ;;  %v8851_v57 = vcombine.high %v6021_v33, %v6035_v8  ;;  %v12910_v60 = vpop.eup %9318 }
 0x776   : > { %9322 = vrcp.f32 %v5049_v54  ;;  %v7550_v26 = vrot.slane %v7542_v50, %v12663_v25  ;;  %v7569_v32 = vrot.slane %v7559_v41, %v12663_v25  ;;  %v7576_v56 = vrot.slane %v8850_v34, %v12663_v25 }
 0x777   : > { %v8804_v13 = vmul.f32 -1.442695, %v4922_v62  ;;  %v7557_v27 = vrot.slane %v7543_v21, %v12663_v25  ;;  %v7583_v9 = vrot.slane %v7561_v0, %v12663_v25  ;;  %v7590_v12 = vrot.slane %v8851_v57, %v12663_v25 }
 0x778   : > { %v4865_v48 = vpop.xlane.xlu0 %4864  ;;  %v7591_v61 = vcombine.low %v7569_v32, %v7576_v56  ;;  %v5043_v36 = vadd.f32 1.0, %v9317_v24  ;;  %v7249_v53 = vcombine.low %v7240_v20, %v7247_v39  ;;  %v12934_v46 = vrot.slane %v5713_v19, %v12663_v25 }
 0x779   : > { %9324 = vpow2.f32 %v8804_v13  ;;  %v4923_v43 = vadd.f32 %v12901_v58, %v4865_v48  ;;  %v7558_v16 = vcombine.low %v7550_v26, %v7557_v27  ;;  %v7592_v5 = vcombine.low %v7583_v9, %v7590_v12 }
 0x77a   : > { %v7599_v17 = vrot.slane %v7591_v61, %v12663_v25  ;;  %v8798_v22 = vmul.f32 -1.442695, %v4916_v47  ;;  %v12943_v28 = vrot.slane %v7248_v31, %v12663_v25  ;;  %v7265_v19 = vcombine.low %v12920_v23, %v12926_v15 }
 0x77b   : > { %v8805_v2 = vmul.f32 -1.442695, %v4923_v43  ;;  %8343 = vperm.xlu0 %9253, %v7558_v16   ;;  %v7606_v30 = vrot.slane %v7592_v5, %v12663_v25  ;;  %v12948_v42 = vrot.slane %v7249_v53, %v12663_v25  ;;  %v8838_v14 = vcombine.high %v12920_v23, %v12926_v15 }
 0x77c   : > { %v9321_v1 = vpop.eup %9320  ;;  %v7267_v52 = vcombine.low %v12939_v45, %v12934_v46  ;;  %v8839_v18 = vcombine.high %v12939_v45, %v12934_v46  ;;  %v5746_v11 = vcombine.high %v12910_v60, %v12910_v60  ;;  %v4917_v29 = vadd.f32 %v12901_v58, %v4847_v63 }
 0x77d   : > { %v6040_v7 = vcombine.high %v9321_v1, %v9321_v1  ;;  %v6047_v4 = vrot.slane %v9321_v1, %v12663_v25  ;;  %9326 = vpow2.f32 %v8805_v2  ;;  %v7607_v38 = vcombine.low %v7599_v17, %v7606_v30 }
 0x77e   : > { %9328 = vrcp.f32 %v5043_v36  ;;  %v12967_v24 = vrot.slane %v12910_v60, %v12663_v25  ;;  %v5760_v23 = vrot.slane %v5746_v11, %v12663_v25  ;;  %v12988_v45 = vrot.slane %v7265_v19, %v12663_v25 }
 0x77f   : > { %v6054_v37 = vrot.slane %v6040_v7, %v12663_v25  ;;  %v6055_v3 = vcombine.high %v6047_v4, %v6047_v4  ;;  %8346 = vperm.xlu1 %9252, %v7607_v38   ;;  %9330 = vpow2.f32 %v8798_v22  ;;  %v6063_v33 = vrot.slane %v6047_v4, %v12663_v25 }
 0x780   : > { %v9323_v59 = vpop.eup %9322  ;;  %v5761_v7 = vcombine.high %v12967_v24, %v12967_v24  ;;  %v12991_v63 = vrot.slane %v8838_v14, %v12663_v25  ;;  %v5762_v11 = vcombine.high %v5760_v23, %v5760_v23  ;;  %v7264_v19 = vcombine.low %v12943_v28, %v12948_v42 }
 0x781   : > { %v6089_v44 = vcombine.high %v9323_v59, %v9323_v59  ;;  %v6096_v49 = vrot.slane %v9323_v59, %v12663_v25  ;;  %v6056_v51 = vcombine.high %v6054_v37, %v6054_v37  ;;  %v6077_v8 = vrot.slane %v6055_v3, %v12663_v25 }
 0x782   : > { %v6070_v41 = vrot.slane %v6054_v37, %v12663_v25 }
 0x783   : > { %v9325_v54 = vpop.eup %9324  ;;  %v6103_v40 = vrot.slane %v6089_v44, %v12663_v25  ;;  %v6104_v50 = vcombine.high %v6096_v49, %v6096_v49  ;;  %v6084_v34 = vrot.slane %v6056_v51, %v12663_v25  ;;  %v7608_v62 = vcombine.low %v6063_v33, %v6077_v8 }
 0x784   : > { %v5050_v10 = vadd.f32 1.0, %v9325_v54  ;;  %v8852_v21 = vcombine.high %v6063_v33, %v6077_v8  ;;  %v6112_v32 = vrot.slane %v6096_v49, %v12663_v25  ;;  %v12995_v49 = vrot.slane %v7267_v52, %v12663_v25 }
 0x785   : > { %v7610_v0 = vcombine.low %v6070_v41, %v6084_v34  ;;  %v8853_v57 = vcombine.high %v6070_v41, %v6084_v34  ;;  %v6105_v26 = vcombine.high %v6103_v40, %v6103_v40  ;;  %v7618_v55 = vrot.slane %v7608_v62, %v12663_v25 }
 0x786   : > { %9332 = vrcp.f32 %v5050_v10  ;;  %v7625_v13 = vrot.slane %v8852_v21, %v12663_v25  ;;  %v6126_v27 = vrot.slane %v6104_v50, %v12663_v25  ;;  %v6119_v47 = vrot.slane %v6103_v40, %v12663_v25 }
 0x787   : > { %v9327_v56 = vpop.eup %9326  ;;  %v7632_v9 = vrot.slane %v7610_v0, %v12663_v25  ;;  %v7639_v60 = vrot.slane %v8853_v57, %v12663_v25  ;;  %v6133_v48 = vrot.slane %v6105_v26, %v12663_v25  ;;  %v12998_v51 = vrot.slane %v8839_v18, %v12663_v25 }
 0x788   : > { %v9329_v12 = vpop.eup %9328  ;;  %v5051_v20 = vadd.f32 1.0, %v9327_v56  ;;  %v4868_v39 = vpop.xlane.xlu0 %4867  ;;  %v7640_v43 = vcombine.low %v7618_v55, %v7625_v13  ;;  %v7657_v16 = vcombine.low %v6112_v32, %v6126_v27  ;;  %v8854_v61 = vcombine.high %v6112_v32, %v6126_v27 }
 0x789   : > { %v4924_v36 = vadd.f32 %v12901_v58, %v4868_v39  ;;  %v7641_v5 = vcombine.low %v7632_v9, %v7639_v60  ;;  %v7659_v2 = vcombine.low %v6119_v47, %v6133_v48  ;;  %v8855_v31 = vcombine.high %v6119_v47, %v6133_v48  ;;  %v9331_v17 = vpop.eup %9330 }
 0x78a   : > { %9334 = vrcp.f32 %v5051_v20  ;;  %v7648_v15 = vrot.slane %v7640_v43, %v12663_v25  ;;  %v7667_v1 = vrot.slane %v7657_v16, %v12663_v25  ;;  %v7674_v46 = vrot.slane %v8854_v61, %v12663_v25 }
 0x78b   : > { %v8806_v30 = vmul.f32 -1.442695, %v4924_v36  ;;  %v7655_v53 = vrot.slane %v7641_v5, %v12663_v25  ;;  %v7681_v22 = vrot.slane %v7659_v2, %v12663_v25  ;;  %v7688_v38 = vrot.slane %v8855_v31, %v12663_v25 }
 0x78c   : > { %v4871_v4 = vpop.xlane.xlu0 %4870  ;;  %v7689_v59 = vcombine.low %v7667_v1, %v7674_v46  ;;  %v8799_v33 = vmul.f32 -1.442695, %v4917_v29  ;;  %v5795_v54 = vcombine.high %v9329_v12, %v9329_v12  ;;  %v13003_v40 = vrot.slane %v9329_v12, %v12663_v25 }
 0x78d   : > { %9336 = vpow2.f32 %v8806_v30  ;;  %v4925_v37 = vadd.f32 %v12901_v58, %v4871_v4  ;;  %v7656_v3 = vcombine.low %v7648_v15, %v7655_v53  ;;  %v7690_v44 = vcombine.low %v7681_v22, %v7688_v38 }
 0x78e   : > { %v7697_v50 = vrot.slane %v7689_v59, %v12663_v25  ;;  %v13009_v29 = vrot.slane %v5761_v7, %v12663_v25  ;;  %v7297_v10 = vcombine.low %v12988_v45, %v12991_v63  ;;  %v7298_v62 = vcombine.low %v12995_v49, %v12998_v51 }
 0x78f   : > { %v8807_v8 = vmul.f32 -1.442695, %v4925_v37  ;;  %8349 = vperm.xlu0 %9253, %v7656_v3   ;;  %v7704_v52 = vrot.slane %v7690_v44, %v12663_v25  ;;  %v13016_v21 = vrot.slane %v5762_v11, %v12663_v25  ;;  %v5769_v26 = vrot.slane %v12967_v24, %v12663_v25 }
 0x790   : > { %v9333_v14 = vpop.eup %9332  ;;  %v13022_v55 = vrot.slane %v5795_v54, %v12663_v25  ;;  %v5810_v13 = vcombine.high %v13003_v40, %v13003_v40  ;;  %v5044_v27 = vadd.f32 1.0, %v9331_v17  ;;  %v13027_v56 = vrot.slane %v5760_v23, %v12663_v25 }
 0x791   : > { %v6138_v41 = vcombine.high %v9333_v14, %v9333_v14  ;;  %v6145_v18 = vrot.slane %v9333_v14, %v12663_v25  ;;  %9338 = vpow2.f32 %v8807_v8  ;;  %v7705_v34 = vcombine.low %v7697_v50, %v7704_v52 }
 0x792   : > { %9340 = vpow2.f32 %v8799_v33  ;;  %v7314_v48 = vcombine.low %v5769_v26, %v13009_v29  ;;  %v8840_v20 = vcombine.high %v5769_v26, %v13009_v29  ;;  %v7316_v39 = vcombine.low %v13027_v56, %v13016_v21 }
 0x793   : > { %v6152_v0 = vrot.slane %v6138_v41, %v12663_v25  ;;  %v6153_v57 = vcombine.high %v6145_v18, %v6145_v18  ;;  %8352 = vperm.xlu1 %9252, %v7705_v34   ;;  %v6161_v24 = vrot.slane %v6145_v18, %v12663_v25  ;;  %9342 = vrcp.f32 %v5044_v27 }
 0x794   : > { %v9335_v32 = vpop.eup %9334  ;;  %v8841_v34 = vcombine.high %v13027_v56, %v13016_v21  ;;  %v13084_v45 = vrot.slane %v13003_v40, %v12663_v25  ;;  %v13097_v40 = vrot.slane %v13022_v55, %v12663_v25 }
 0x795   : > { %v6187_v9 = vcombine.high %v9335_v32, %v9335_v32  ;;  %v6194_v60 = vrot.slane %v9335_v32, %v12663_v25  ;;  %v6154_v47 = vcombine.high %v6152_v0, %v6152_v0  ;;  %v6175_v12 = vrot.slane %v6153_v57, %v12663_v25 }
 0x796   : > { %v6168_v36 = vrot.slane %v6152_v0, %v12663_v25 }
 0x797   : > { %v9337_v43 = vpop.eup %9336  ;;  %v6201_v16 = vrot.slane %v6187_v9, %v12663_v25  ;;  %v6202_v61 = vcombine.high %v6194_v60, %v6194_v60  ;;  %v6182_v5 = vrot.slane %v6154_v47, %v12663_v25  ;;  %v7706_v31 = vcombine.low %v6161_v24, %v6175_v12 }
 0x798   : > { %v5052_v2 = vadd.f32 1.0, %v9337_v43  ;;  %v8856_v23 = vcombine.high %v6161_v24, %v6175_v12  ;;  %v6210_v30 = vrot.slane %v6194_v60, %v12663_v25  ;;  %v7324_v60 = vrot.slane %v7314_v48, %v12663_v25 }
 0x799   : > { %v7708_v15 = vcombine.low %v6168_v36, %v6182_v5  ;;  %v8857_v1 = vcombine.high %v6168_v36, %v6182_v5  ;;  %v6203_v17 = vcombine.high %v6201_v16, %v6201_v16  ;;  %v7716_v53 = vrot.slane %v7706_v31, %v12663_v25 }
 0x79a   : > { %9344 = vrcp.f32 %v5052_v2  ;;  %v7723_v46 = vrot.slane %v8856_v23, %v12663_v25  ;;  %v6224_v22 = vrot.slane %v6202_v61, %v12663_v25  ;;  %v6217_v37 = vrot.slane %v6201_v16, %v12663_v25 }
 0x79b   : > { %v9339_v7 = vpop.eup %9338  ;;  %v7730_v4 = vrot.slane %v7708_v15, %v12663_v25  ;;  %v7737_v38 = vrot.slane %v8857_v1, %v12663_v25  ;;  %v6231_v3 = vrot.slane %v6203_v17, %v12663_v25  ;;  %v7331_v47 = vrot.slane %v8840_v20, %v12663_v25 }
 0x79c   : > { %v5053_v59 = vadd.f32 1.0, %v9339_v7  ;;  %v4874_v44 = vpop.xlane.xlu0 %4873  ;;  %v7738_v11 = vcombine.low %v7716_v53, %v7723_v46  ;;  %v7755_v33 = vcombine.low %v6210_v30, %v6224_v22  ;;  %v8858_v8 = vcombine.high %v6210_v30, %v6224_v22  ;;  %v9341_v14 = vpop.eup %9340 }
 0x79d   : > { %v4926_v54 = vadd.f32 %v12901_v58, %v4874_v44  ;;  %v7739_v50 = vcombine.low %v7730_v4, %v7737_v38  ;;  %v7757_v52 = vcombine.low %v6217_v37, %v6231_v3  ;;  %v8859_v41 = vcombine.high %v6217_v37, %v6231_v3  ;;  %v9343_v43 = vpop.eup %9342 }
 0x79e   : > { %9346 = vrcp.f32 %v5053_v59  ;;  %v7746_v18 = vrot.slane %v7738_v11, %v12663_v25  ;;  %v7765_v29 = vrot.slane %v7755_v33, %v12663_v25  ;;  %v7772_v26 = vrot.slane %v8858_v8, %v12663_v25 }
 0x79f   : > { %v8808_v0 = vmul.f32 -1.442695, %v4926_v54  ;;  %v7753_v57 = vrot.slane %v7739_v50, %v12663_v25  ;;  %v7779_v32 = vrot.slane %v7757_v52, %v12663_v25  ;;  %v7786_v9 = vrot.slane %v8859_v41, %v12663_v25 }
 0x7a0   : > { %v4877_v27 = vpop.xlane.xlu0 %4876  ;;  %v5811_v24 = vcombine.high %v13022_v55, %v13022_v55  ;;  %v7787_v12 = vcombine.low %v7765_v29, %v7772_v26  ;;  %v13065_v61 = vrot.slane %v7297_v10, %v12663_v25  ;;  %v13071_v48 = vrot.slane %v7298_v62, %v12663_v25 }
 0x7a1   : > { %9348 = vpow2.f32 %v8808_v0  ;;  %v4927_v21 = vadd.f32 %v12901_v58, %v4877_v27  ;;  %v7754_v56 = vcombine.low %v7746_v18, %v7753_v57  ;;  %v7788_v16 = vcombine.low %v7779_v32, %v7786_v9 }
 0x7a2   : > { %v13077_v20 = vrot.slane %v5810_v13, %v12663_v25  ;;  %v5045_v36 = vadd.f32 1.0, %v9341_v14  ;;  %v13080_v2 = vrot.slane %v7316_v39, %v12663_v25  ;;  %v7795_v49 = vrot.slane %v7787_v12, %v12663_v25 }
 0x7a3   : > { %v8809_v5 = vmul.f32 -1.442695, %v4927_v21  ;;  %8355 = vperm.xlu0 %9253, %v7754_v56   ;;  %v7802_v51 = vrot.slane %v7788_v16, %v12663_v25  ;;  %v13089_v10 = vrot.slane %v8841_v34, %v12663_v25  ;;  %v13092_v62 = vrot.slane %v5811_v24, %v12663_v25 }
 0x7a4   : > { %v9345_v63 = vpop.eup %9344  ;;  %v7346_v39 = vcombine.low %v7324_v60, %v7331_v47  ;;  %v5844_v23 = vcombine.high %v9343_v43, %v9343_v43  ;;  %v7363_v1 = vcombine.low %v13084_v45, %v13077_v20  ;;  %v8842_v53 = vcombine.high %v13084_v45, %v13077_v20 }
 0x7a5   : > { %v6236_v13 = vcombine.high %v9345_v63, %v9345_v63  ;;  %v6243_v31 = vrot.slane %v9345_v63, %v12663_v25  ;;  %9350 = vpow2.f32 %v8809_v5  ;;  %v7803_v15 = vcombine.low %v7795_v49, %v7802_v51 }
 0x7a6   : > { %9352 = vrcp.f32 %v5045_v36  ;;  %v13105_v22 = vrot.slane %v9343_v43, %v12663_v25  ;;  %v7347_v7 = vcombine.low %v13080_v2, %v13089_v10  ;;  %v7365_v55 = vcombine.low %v13097_v40, %v13092_v62 }
 0x7a7   : > { %v6250_v17 = vrot.slane %v6236_v13, %v12663_v25  ;;  %v6251_v30 = vcombine.high %v6243_v31, %v6243_v31  ;;  %8358 = vperm.xlu1 %9252, %v7803_v15   ;;  %v8843_v4 = vcombine.high %v13097_v40, %v13092_v62  ;;  %v13115_v59 = vrot.slane %v7346_v39, %v12663_v25 }
 0x7a8   : > { %v9347_v46 = vpop.eup %9346  ;;  %v5858_v44 = vrot.slane %v5844_v23, %v12663_v25  ;;  %v6259_v11 = vrot.slane %v6243_v31, %v12663_v25  ;;  %v13121_v8 = vrot.slane %v7363_v1, %v12663_v25  ;;  %v5859_v18 = vcombine.high %v13105_v22, %v13105_v22 }
 0x7a9   : > { %v6285_v38 = vcombine.high %v9347_v46, %v9347_v46  ;;  %v6292_v37 = vrot.slane %v9347_v46, %v12663_v25  ;;  %v6252_v3 = vcombine.high %v6250_v17, %v6250_v17  ;;  %v6273_v33 = vrot.slane %v6251_v30, %v12663_v25 }
 0x7aa   : > { %v6266_v52 = vrot.slane %v6250_v17, %v12663_v25  ;;  %v5860_v15 = vcombine.high %v5858_v44, %v5858_v44  ;;  %v13175_v40 = vrot.slane %v7347_v7, %v12663_v25 }
 0x7ab   : > { %v9349_v14 = vpop.eup %9348  ;;  %v6299_v54 = vrot.slane %v6285_v38, %v12663_v25  ;;  %v6300_v50 = vcombine.high %v6292_v37, %v6292_v37  ;;  %v6280_v41 = vrot.slane %v6252_v3, %v12663_v25  ;;  %v7804_v34 = vcombine.low %v6259_v11, %v6273_v33 }
 0x7ac   : > { %v5054_v29 = vadd.f32 1.0, %v9349_v14  ;;  %v8860_v0 = vcombine.high %v6259_v11, %v6273_v33  ;;  %v6308_v27 = vrot.slane %v6292_v37, %v12663_v25  ;;  %v13144_v11 = vrot.slane %v8842_v53, %v12663_v25 }
 0x7ad   : > { %v7806_v57 = vcombine.low %v6266_v52, %v6280_v41  ;;  %v8861_v26 = vcombine.high %v6266_v52, %v6280_v41  ;;  %v6301_v32 = vcombine.high %v6299_v54, %v6299_v54  ;;  %v7814_v9 = vrot.slane %v7804_v34, %v12663_v25 }
 0x7ae   : > { %9354 = vrcp.f32 %v5054_v29  ;;  %v7821_v60 = vrot.slane %v8860_v0, %v12663_v25  ;;  %v6322_v47 = vrot.slane %v6300_v50, %v12663_v25  ;;  %v6315_v12 = vrot.slane %v6299_v54, %v12663_v25 }
 0x7af   : > { %v9351_v24 = vpop.eup %9350  ;;  %v7828_v21 = vrot.slane %v7806_v57, %v12663_v25  ;;  %v7835_v56 = vrot.slane %v8861_v26, %v12663_v25  ;;  %v6329_v43 = vrot.slane %v6301_v32, %v12663_v25  ;;  %v5881_v33 = vrot.slane %v5859_v18, %v12663_v25 }
 0x7b0   : > { %v5055_v16 = vadd.f32 1.0, %v9351_v24  ;;  %v4880_v20 = vpop.xlane.xlu0 %4879  ;;  %v7836_v36 = vcombine.low %v7814_v9, %v7821_v60  ;;  %v7853_v5 = vcombine.low %v6308_v27, %v6322_v47  ;;  %v8862_v45 = vcombine.high %v6308_v27, %v6322_v47  ;;  %v9353_v63 = vpop.eup %9352 }
 0x7b1   : > { %v4928_v49 = vadd.f32 %v12901_v58, %v4880_v20  ;;  %v7837_v51 = vcombine.low %v7828_v21, %v7835_v56  ;;  %v7855_v13 = vcombine.low %v6315_v12, %v6329_v43  ;;  %v8863_v31 = vcombine.high %v6315_v12, %v6329_v43 }
 0x7b2   : > { %9356 = vrcp.f32 %v5055_v16  ;;  %v7844_v39 = vrot.slane %v7836_v36, %v12663_v25  ;;  %v7863_v23 = vrot.slane %v7853_v5, %v12663_v25  ;;  %v7870_v30 = vrot.slane %v8862_v45, %v12663_v25 }
 0x7b3   : > { %v8810_v1 = vmul.f32 -1.442695, %v4928_v49  ;;  %v7851_v17 = vrot.slane %v7837_v51, %v12663_v25  ;;  %v7877_v46 = vrot.slane %v7855_v13, %v12663_v25  ;;  %v5893_v38 = vcombine.high %v9353_v63, %v9353_v63 }
 0x7b4   : > { %v4883_v37 = vpop.xlane.xlu0 %4882  ;;  %v7884_v3 = vrot.slane %v8863_v31, %v12663_v25  ;;  %v7885_v50 = vcombine.low %v7863_v23, %v7870_v30  ;;  %v5900_v52 = vrot.slane %v9353_v63, %v12663_v25  ;;  %v5867_v29 = vrot.slane %v13105_v22, %v12663_v25 }
 0x7b5   : > { %9358 = vpow2.f32 %v8810_v1  ;;  %v4929_v14 = vadd.f32 %v12901_v58, %v4883_v37  ;;  %v7852_v54 = vcombine.low %v7844_v39, %v7851_v17  ;;  %v5888_v34 = vrot.slane %v5860_v15, %v12663_v25 }
 0x7b6   : > { %v7886_v41 = vcombine.low %v7877_v46, %v7884_v3  ;;  %v13156_v53 = vrot.slane %v7365_v55, %v12663_v25  ;;  %v13162_v18 = vrot.slane %v8843_v4, %v12663_v25  ;;  %v5874_v57 = vrot.slane %v5858_v44, %v12663_v25 }
 0x7b7   : > { %v8811_v0 = vmul.f32 -1.442695, %v4929_v14  ;;  %8361 = vperm.xlu0 %9253, %v7852_v54   ;;  %v13166_v22 = vrot.slane %v5893_v38, %v12663_v25  ;;  %v7893_v32 = vrot.slane %v7885_v50, %v12663_v25  ;;  %v7412_v9 = vcombine.low %v5867_v29, %v5881_v33 }
 0x7b8   : > { %v9355_v26 = vpop.eup %9354  ;;  %v7900_v27 = vrot.slane %v7886_v41, %v12663_v25  ;;  %v8844_v47 = vcombine.high %v5867_v29, %v5881_v33  ;;  %v5908_v24 = vcombine.high %v5900_v52, %v5900_v52  ;;  %v7414_v4 = vcombine.low %v5874_v57, %v5888_v34 }
 0x7b9   : > { %v6334_v60 = vcombine.high %v9355_v26, %v9355_v26  ;;  %v6341_v55 = vrot.slane %v9355_v26, %v12663_v25  ;;  %9360 = vpow2.f32 %v8811_v0  ;;  %v7395_v56 = vcombine.low %v13121_v8, %v13144_v11 }
 0x7ba   : > { %v7901_v62 = vcombine.low %v7893_v32, %v7900_v27  ;;  %v7396_v12 = vcombine.low %v13156_v53, %v13162_v18  ;;  %v8845_v16 = vcombine.high %v5874_v57, %v5888_v34  ;;  %v13183_v20 = vrot.slane %v7412_v9, %v12663_v25 }
 0x7bb   : > { %v6348_v44 = vrot.slane %v6334_v60, %v12663_v25  ;;  %v6349_v21 = vcombine.high %v6341_v55, %v6341_v55  ;;  %v5909_v2 = vcombine.high %v13166_v22, %v13166_v22  ;;  %v13188_v10 = vrot.slane %v5900_v52, %v12663_v25 }
 0x7bc   : > { %v9357_v43 = vpop.eup %9356  ;;  %8364 = vperm.xlu1 %9252, %v7901_v62   ;;  %v13192_v45 = vrot.slane %v8844_v47, %v12663_v25  ;;  %v6357_v63 = vrot.slane %v6341_v55, %v12663_v25  ;;  %v13197_v51 = vrot.slane %v7414_v4, %v12663_v25  ;;  %v13200_v13 = vrot.slane %v5908_v24, %v12663_v25 }
 0x7bd   : > { %v6383_v7 = vcombine.high %v9357_v43, %v9357_v43  ;;  %v6390_v36 = vrot.slane %v9357_v43, %v12663_v25  ;;  %v6350_v5 = vcombine.high %v6348_v44, %v6348_v44  ;;  %v6371_v49 = vrot.slane %v6349_v21, %v12663_v25 }
 0x7be   : > { %v6364_v15 = vrot.slane %v6348_v44, %v12663_v25  ;;  %v13206_v38 = vrot.slane %v8845_v16, %v12663_v25 }
 0x7bf   : > { %v9359_v31 = vpop.eup %9358  ;;  %v6397_v39 = vrot.slane %v6383_v7, %v12663_v25  ;;  %v6398_v23 = vcombine.high %v6390_v36, %v6390_v36  ;;  %v6378_v1 = vrot.slane %v6350_v5, %v12663_v25  ;;  %v7902_v30 = vcombine.low %v6357_v63, %v6371_v49 }
 0x7c0   : > { %v5056_v17 = vadd.f32 1.0, %v9359_v31  ;;  %v8864_v46 = vcombine.high %v6357_v63, %v6371_v49  ;;  %v6406_v14 = vrot.slane %v6390_v36, %v12663_v25  ;;  %v5937_v49 = vrot.slane %v5909_v2, %v12663_v25 }
 0x7c1   : > { %v7904_v37 = vcombine.low %v6364_v15, %v6378_v1  ;;  %v8865_v3 = vcombine.high %v6364_v15, %v6378_v1  ;;  %v6399_v33 = vcombine.high %v6397_v39, %v6397_v39  ;;  %v7912_v54 = vrot.slane %v7902_v30, %v12663_v25 }
 0x7c2   : > { %9362 = vrcp.f32 %v5056_v17  ;;  %v7919_v50 = vrot.slane %v8864_v46, %v12663_v25  ;;  %v6420_v52 = vrot.slane %v6398_v23, %v12663_v25  ;;  %v6413_v0 = vrot.slane %v6397_v39, %v12663_v25 }
 0x7c3   : > { %v9361_v41 = vpop.eup %9360  ;;  %v7926_v29 = vrot.slane %v7904_v37, %v12663_v25  ;;  %v7933_v34 = vrot.slane %v8865_v3, %v12663_v25  ;;  %v6427_v57 = vrot.slane %v6399_v33, %v12663_v25  ;;  %v7461_v31 = vcombine.low %v13188_v10, %v13200_v13 }
 0x7c4   : > { %v5057_v26 = vadd.f32 1.0, %v9361_v41  ;;  %v4886_v32 = vpop.xlane.xlu0 %4885  ;;  %v7934_v27 = vcombine.low %v7912_v54, %v7919_v50  ;;  %v7951_v9 = vcombine.low %v6406_v14, %v6420_v52  ;;  %v8866_v60 = vcombine.high %v6406_v14, %v6420_v52 }
 0x7c5   : > { %v4930_v55 = vadd.f32 %v12901_v58, %v4886_v32  ;;  %v7935_v47 = vcombine.low %v7926_v29, %v7933_v34  ;;  %v7953_v24 = vcombine.low %v6413_v0, %v6427_v57  ;;  %v8867_v62 = vcombine.high %v6413_v0, %v6427_v57 }
 0x7c6   : > { %9364 = vrcp.f32 %v5057_v26  ;;  %v7942_v4 = vrot.slane %v7934_v27, %v12663_v25  ;;  %v7961_v44 = vrot.slane %v7951_v9, %v12663_v25  ;;  %v7968_v21 = vrot.slane %v8866_v60, %v12663_v25 }
 0x7c7   : > { %v8812_v43 = vmul.f32 -1.442695, %v4930_v55  ;;  %v7949_v16 = vrot.slane %v7935_v47, %v12663_v25  ;;  %v7975_v7 = vrot.slane %v7953_v24, %v12663_v25  ;;  %v7982_v36 = vrot.slane %v8867_v62, %v12663_v25 }
 0x7c8   : > { %v4889_v5 = vpop.xlane.xlu0 %4888  ;;  %v7983_v63 = vcombine.low %v7961_v44, %v7968_v21  ;;  %v8846_v39 = vcombine.high %v13188_v10, %v13200_v13  ;;  %v13233_v17 = vrot.slane %v7395_v56, %v12663_v25  ;;  %v13239_v2 = vrot.slane %v7396_v12, %v12663_v25 }
 0x7c9   : > { %9366 = vpow2.f32 %v8812_v43  ;;  %v4931_v23 = vadd.f32 %v12901_v58, %v4889_v5  ;;  %v7950_v15 = vcombine.low %v7942_v4, %v7949_v16  ;;  %v7984_v1 = vcombine.low %v7975_v7, %v7982_v36 }
 0x7ca   : > { %v7444_v10 = vcombine.low %v13183_v20, %v13192_v45  ;;  %v5923_v13 = vrot.slane %v13166_v22, %v12663_v25  ;;  %v7991_v46 = vrot.slane %v7983_v63, %v12663_v25  ;;  %v7445_v11 = vcombine.low %v13197_v51, %v13206_v38 }
 0x7cb   : > { %v8813_v30 = vmul.f32 -1.442695, %v4931_v23  ;;  %8367 = vperm.xlu0 %9253, %v7950_v15   ;;  %v7998_v8 = vrot.slane %v7984_v1, %v12663_v25  ;;  %v13250_v18 = vrot.slane %v7461_v31, %v12663_v25  ;;  %v13253_v12 = vrot.slane %v8846_v39, %v12663_v25 }
 0x7cc   : > { %v9363_v56 = vpop.eup %9362  ;;  %v7463_v37 = vcombine.low %v5923_v13, %v5937_v49  ;;  %v8847_v53 = vcombine.high %v5923_v13, %v5937_v49  ;;  %v7313_v3 = vcombine.low %v13065_v61, %v13071_v48  ;;  %v7362_v51 = vcombine.low %v13115_v59, %v13175_v40 }
 0x7cd   : > { %v6432_v20 = vcombine.high %v9363_v56, %v9363_v56  ;;  %v6439_v22 = vrot.slane %v9363_v56, %v12663_v25  ;;  %9368 = vpow2.f32 %v8813_v30  ;;  %v7999_v45 = vcombine.low %v7991_v46, %v7998_v8 }
 0x7ce   : > { %v7411_v14 = vcombine.low %v13233_v17, %v13239_v2  ;;  %v13267_v50 = vrot.slane %v7444_v10, %v12663_v25  ;;  %v7459_v61 = vrot.slane %v7445_v11, %v12663_v25  ;;  %v7485_v48 = vrot.slane %v7463_v37, %v12663_v25 }
 0x7cf   : > { %v6446_v38 = vrot.slane %v6432_v20, %v12663_v25  ;;  %v6447_v33 = vcombine.high %v6439_v22, %v6439_v22  ;;  %8370 = vperm.xlu1 %9252, %v7999_v45   ;;  %8325 = vperm.xlu0 %9253, %v7264_v19   ;;  %v7492_v59 = vrot.slane %v8847_v53, %v12663_v25 }
 0x7d0   : > { %v9365_v54 = vpop.eup %9364  ;;  %v7493_v28 = vcombine.low %v13250_v18, %v13253_v12  ;;  %v6455_v19 = vrot.slane %v6439_v22, %v12663_v25  ;;  %v7460_v12 = vcombine.low %v13267_v50, %v7459_v61 }
 0x7d1   : > { %v6481_v40 = vcombine.high %v9365_v54, %v9365_v54  ;;  %v6488_v52 = vrot.slane %v9365_v54, %v12663_v25  ;;  %v4892_v41 = vpop.xlane.xlu0 %4891  ;;  %v6448_v29 = vcombine.high %v6446_v38, %v6446_v38  ;;  %v6462_v34 = vrot.slane %v6446_v38, %v12663_v25 }
 0x7d2   : > { %v4932_v42 = vadd.f32 %v12901_v58, %v4892_v41  ;;  %v6469_v0 = vrot.slane %v6447_v33, %v12663_v25  ;;  %v7494_v10 = vcombine.low %v7485_v48, %v7492_v59 }
 0x7d3   : > { %v9367_v57 = vpop.eup %9366  ;;  %v6495_v26 = vrot.slane %v6481_v40, %v12663_v25  ;;  %v6496_v32 = vcombine.high %v6488_v52, %v6488_v52  ;;  %8328 = vperm.xlu0 %9253, %v7313_v3   ;;  %v6476_v27 = vrot.slane %v6448_v29, %v12663_v25  ;;  %v6504_v9 = vrot.slane %v6488_v52, %v12663_v25 }
 0x7d4   : > { %v5058_v60 = vadd.f32 1.0, %v9367_v57  ;;  %v8814_v55 = vmul.f32 -1.442695, %v4932_v42  ;;  %v8000_v47 = vcombine.low %v6455_v19, %v6469_v0  ;;  %v8868_v24 = vcombine.high %v6455_v19, %v6469_v0 }
 0x7d5   : > { %v4895_v62 = vpop.xlane.xlu0 %4894  ;;  %v8002_v4 = vcombine.low %v6462_v34, %v6476_v27  ;;  %v8869_v44 = vcombine.high %v6462_v34, %v6476_v27  ;;  %v6497_v21 = vcombine.high %v6495_v26, %v6495_v26  ;;  %v6511_v43 = vrot.slane %v6495_v26, %v12663_v25 }
 0x7d6   : > { %9370 = vrcp.f32 %v5058_v60  ;;  %v4933_v16 = vadd.f32 %v12901_v58, %v4895_v62  ;;  %v8010_v7 = vrot.slane %v8000_v47, %v12663_v25  ;;  %v8017_v36 = vrot.slane %v8868_v24, %v12663_v25 }
 0x7d7   : > { %v9369_v5 = vpop.eup %9368  ;;  %9372 = vpow2.f32 %v8814_v55  ;;  %8331 = vperm.xlu0 %9253, %v7362_v51   ;;  %v8024_v63 = vrot.slane %v8002_v4, %v12663_v25  ;;  %v8031_v49 = vrot.slane %v8869_v44, %v12663_v25  ;;  %v6518_v31 = vrot.slane %v6496_v32, %v12663_v25 }
 0x7d8   : > { %v5059_v39 = vadd.f32 1.0, %v9369_v5  ;;  %v8815_v23 = vmul.f32 -1.442695, %v4933_v16  ;;  %v8032_v15 = vcombine.low %v8010_v7, %v8017_v36  ;;  %v6525_v1 = vrot.slane %v6497_v21, %v12663_v25 }
 0x7d9   : > { %v8033_v17 = vcombine.low %v8024_v63, %v8031_v49  ;;  %v8049_v58 = vcombine.low %v6504_v9, %v6518_v31  ;;  %v8870_v2 = vcombine.high %v6504_v9, %v6518_v31  ;;  %v7508_v22 = vrot.slane %v7494_v10, %v12663_v25 }
 0x7da   : > { %9374 = vrcp.f32 %v5059_v39  ;;  %v8040_v13 = vrot.slane %v8032_v15, %v12663_v25  ;;  %v8051_v30 = vcombine.low %v6511_v43, %v6525_v1  ;;  %v8871_v46 = vcombine.high %v6511_v43, %v6525_v1 }
 0x7db   : > { %9376 = vpow2.f32 %v8815_v23  ;;  %8334 = vperm.xlu0 %9253, %v7411_v14   ;;  %v8047_v8 = vrot.slane %v8033_v17, %v12663_v25  ;;  %v8059_v11 = vrot.slane %v8049_v58, %v12663_v25  ;;  %v8066_v56 = vrot.slane %v8870_v2, %v12663_v25 }
 0x7dc   : > { %v8073_v37 = vrot.slane %v8051_v30, %v12663_v25  ;;  %v8080_v53 = vrot.slane %v8871_v46, %v12663_v25  ;;  %v7501_v3 = vrot.slane %v7493_v28, %v12663_v25 }
 0x7dd   : > { %v8048_v18 = vcombine.low %v8040_v13, %v8047_v8  ;;  %v8081_v20 = vcombine.low %v8059_v11, %v8066_v56 }
 0x7de   : > { %v8082_v45 = vcombine.low %v8073_v37, %v8080_v53  ;;  %v7509_v59 = vcombine.low %v7501_v3, %v7508_v22 }
 0x7df   : > { %8373 = vperm.xlu1 %9252, %v8048_v18   ;;  %8337 = vperm.xlu0 %9253, %v7460_v12   ;;  %v8089_v38 = vrot.slane %v8081_v20, %v12663_v25 }
 0x7e0   : > { %v9371_v51 = vpop.eup %9370  ;;  %v8096_v33 = vrot.slane %v8082_v45, %v12663_v25 }
 0x7e1   : > { %v9373_v14 = vpop.eup %9372  ;;  %v6530_v54 = vcombine.high %v9371_v51, %v9371_v51  ;;  %v6537_v48 = vrot.slane %v9371_v51, %v12663_v25 }
 0x7e2   : > { %v5060_v40 = vadd.f32 1.0, %v9373_v14  ;;  %v8097_v50 = vcombine.low %v8089_v38, %v8096_v33 }
 0x7e3   : > { %v6544_v61 = vrot.slane %v6530_v54, %v12663_v25  ;;  %v6545_v52 = vcombine.high %v6537_v48, %v6537_v48  ;;  %8340 = vperm.xlu0 %9253, %v7509_v59   ;;  %v6553_v0 = vrot.slane %v6537_v48, %v12663_v25 }
 0x7e4   : > { %v9375_v41 = vpop.eup %9374  ;;  %9378 = vrcp.f32 %v5060_v40  ;;  %8376 = vperm.xlu1 %9252, %v8097_v50  }
 0x7e5   : > { %v9377_v29 = vpop.eup %9376  ;;  %v6579_v28 = vcombine.high %v9375_v41, %v9375_v41  ;;  %v6586_v42 = vrot.slane %v9375_v41, %v12663_v25  ;;  %v6546_v19 = vcombine.high %v6544_v61, %v6544_v61  ;;  %v6567_v57 = vrot.slane %v6545_v52, %v12663_v25 }
 0x7e6   : > { %v5061_v34 = vadd.f32 1.0, %v9377_v29  ;;  %v6560_v27 = vrot.slane %v6544_v61, %v12663_v25 }
 0x7e7   : > { %v6593_v26 = vrot.slane %v6579_v28, %v12663_v25  ;;  %v6594_v32 = vcombine.high %v6586_v42, %v6586_v42  ;;  %v6574_v9 = vrot.slane %v6546_v19, %v12663_v25  ;;  %v8098_v60 = vcombine.low %v6553_v0, %v6567_v57 }
 0x7e8   : > { %9380 = vrcp.f32 %v5061_v34  ;;  %v8872_v55 = vcombine.high %v6553_v0, %v6567_v57  ;;  %v6602_v21 = vrot.slane %v6586_v42, %v12663_v25 }
 0x7e9   : > { %v8100_v47 = vcombine.low %v6560_v27, %v6574_v9  ;;  %v8873_v24 = vcombine.high %v6560_v27, %v6574_v9  ;;  %v6595_v62 = vcombine.high %v6593_v26, %v6593_v26  ;;  %v8108_v4 = vrot.slane %v8098_v60, %v12663_v25 }
 0x7ea   : > { %v8115_v44 = vrot.slane %v8872_v55, %v12663_v25  ;;  %v6616_v43 = vrot.slane %v6594_v32, %v12663_v25  ;;  %v6609_v36 = vrot.slane %v6593_v26, %v12663_v25 }
 0x7eb   : > { %v8122_v16 = vrot.slane %v8100_v47, %v12663_v25  ;;  %v8129_v7 = vrot.slane %v8873_v24, %v12663_v25  ;;  %v6623_v5 = vrot.slane %v6595_v62, %v12663_v25 }
 0x7ec   : > { %v8130_v63 = vcombine.low %v8108_v4, %v8115_v44  ;;  %v8147_v49 = vcombine.low %v6602_v21, %v6616_v43  ;;  %v8874_v31 = vcombine.high %v6602_v21, %v6616_v43 }
 0x7ed   : > { %v8131_v39 = vcombine.low %v8122_v16, %v8129_v7  ;;  %v8149_v23 = vcombine.low %v6609_v36, %v6623_v5  ;;  %v8875_v15 = vcombine.high %v6609_v36, %v6623_v5 }
 0x7ee   : > { %v9379_v1 = vpop.eup %9378  ;;  %v8138_v17 = vrot.slane %v8130_v63, %v12663_v25  ;;  %v8157_v58 = vrot.slane %v8147_v49, %v12663_v25  ;;  %v8164_v2 = vrot.slane %v8874_v31, %v12663_v25 }
 0x7ef   : > { %v6628_v10 = vcombine.high %v9379_v1, %v9379_v1  ;;  %v6635_v13 = vrot.slane %v9379_v1, %v12663_v25  ;;  %v8145_v30 = vrot.slane %v8131_v39, %v12663_v25  ;;  %v8171_v46 = vrot.slane %v8149_v23, %v12663_v25  ;;  %v8296_v39 = vpop.permute.xlu1 %8295 }
 0x7f0   : > { %v8178_v8 = vrot.slane %v8875_v15, %v12663_v25  ;;  %v8179_v11 = vcombine.low %v8157_v58, %v8164_v2  ;;  %v8299_v2 = vpop.permute.xlu0 %8298 }
 0x7f1   : > { %v6642_v56 = vrot.slane %v6628_v10, %v12663_v25  ;;  %v6643_v37 = vcombine.high %v6635_v13, %v6635_v13  ;;  %v8146_v53 = vcombine.low %v8138_v17, %v8145_v30  ;;  %v6651_v38 = vrot.slane %v6635_v13, %v12663_v25 }
 0x7f2   : > { %v9381_v18 = vpop.eup %9380  ;;  %v8180_v12 = vcombine.low %v8171_v46, %v8178_v8  ;;  %v8187_v3 = vrot.slane %v8179_v11, %v12663_v25 }
 0x7f3   : > { %v6677_v20 = vcombine.high %v9381_v18, %v9381_v18  ;;  %v6684_v22 = vrot.slane %v9381_v18, %v12663_v25  ;;  %8379 = vperm.xlu1 %9252, %v8146_v53   ;;  %v6644_v45 = vcombine.high %v6642_v56, %v6642_v56  ;;  %v6665_v33 = vrot.slane %v6643_v37, %v12663_v25  ;;  %v8302_v23 = vpop.permute.xlu1 %8301 }
 0x7f4   : > { %v8194_v51 = vrot.slane %v8180_v12, %v12663_v25  ;;  %v6658_v48 = vrot.slane %v6642_v56, %v12663_v25  ;;  %v13370_v53 = vand.u32 127, %v5162_v6 }
 0x7f5   : > { %v6691_v14 = vrot.slane %v6677_v20, %v12663_v25  ;;  %v6692_v54 = vcombine.high %v6684_v22, %v6684_v22  ;;  %v6672_v59 = vrot.slane %v6644_v45, %v12663_v25  ;;  %v8196_v50 = vcombine.low %v6651_v38, %v6665_v33 }
 0x7f6   : > { %v8195_v40 = vcombine.low %v8187_v3, %v8194_v51  ;;  %v8876_v61 = vcombine.high %v6651_v38, %v6665_v33  ;;  %v6700_v19 = vrot.slane %v6684_v22, %v12663_v25  ;;  %v8396_v20 = vadd.s32 4294967288, %v13370_v53 }
 0x7f7   : > { %v8198_v52 = vcombine.low %v6658_v48, %v6672_v59  ;;  %v8877_v41 = vcombine.high %v6658_v48, %v6672_v59  ;;  %v6693_v29 = vcombine.high %v6691_v14, %v6691_v14  ;;  %v8206_v28 = vrot.slane %v8196_v50, %v12663_v25  ;;  %v8305_v15 = vpop.permute.xlu1 %8304 }
 0x7f8   : > { %8382 = vperm.xlu1 %9252, %v8195_v40   ;;  %v8213_v42 = vrot.slane %v8876_v61, %v12663_v25  ;;  %v6714_v34 = vrot.slane %v6692_v54, %v12663_v25  ;;  %v6707_v26 = vrot.slane %v6691_v14, %v12663_v25  ;;  %v13380_v45 = vsub.s32 %v8396_v20, %v12658_v35 }
 0x7f9   : > { %v8220_v0 = vrot.slane %v8198_v52, %v12663_v25  ;;  %v8227_v57 = vrot.slane %v8877_v41, %v12663_v25  ;;  %v6721_v32 = vrot.slane %v6693_v29, %v12663_v25  ;;  %v8403_v3 = vadd.s32 4294967280, %v13370_v53 }
 0x7fa   : > { %v8228_v27 = vcombine.low %v8206_v28, %v8213_v42  ;;  %v8245_v9 = vcombine.low %v6700_v19, %v6714_v34  ;;  %v8878_v60 = vcombine.high %v6700_v19, %v6714_v34  ;;  %v13355_v13 = vpop.permute.xlu0 %8343  ;;  %v8394_v38 = vsub.s32 %v13370_v53, %v12658_v35 }
 0x7fb   : > { %v8229_v55 = vcombine.low %v8220_v0, %v8227_v57  ;;  %v8247_v47 = vcombine.low %v6707_v26, %v6721_v32  ;;  %v8879_v24 = vcombine.high %v6707_v26, %v6721_v32  ;;  %v8308_v1 = vpop.permute.xlu1 %8307  ;;  %v8410_v14 = vadd.s32 4294967272, %v13370_v53 }
 0x7fc   : > { %v8255_v62 = vrot.slane %v8245_v9, %v12663_v25  ;;  %v8262_v4 = vrot.slane %v8878_v60, %v12663_v25  ;;  %v8236_v44 = vrot.slane %v8228_v27, %v12663_v25  ;;  %v8400_v54 = vrot.slane %v8299_v2, %v13380_v45 }
 0x7fd   : > { %v8243_v21 = vrot.slane %v8229_v55, %v12663_v25  ;;  %v8269_v43 = vrot.slane %v8247_v47, %v12663_v25  ;;  %v8276_v16 = vrot.slane %v8879_v24, %v12663_v25  ;;  %v8406_v48 = vsub.s32 %v8403_v3, %v12658_v35 }
 0x7fe   : > { %v8277_v7 = vcombine.low %v8255_v62, %v8262_v4  ;;  %v8395_v59 = vrot.slane %v8296_v39, %v8394_v38  ;;  %v8417_v40 = vadd.s32 4294967264, %v13370_v53  ;;  %v8413_v52 = vsub.s32 %v8410_v14, %v12658_v35 }
 0x7ff   : > { %v8244_v36 = vcombine.low %v8236_v44, %v8243_v21  ;;  %v8278_v5 = vcombine.low %v8269_v43, %v8276_v16  ;;  %v13349_v17 = vpop.permute.xlu1 %8310  ;;  %v8407_v29 = vrot.slane %v8302_v23, %v8406_v48  ;;  %v8424_v28 = vadd.s32 4294967256, %v13370_v53 }
 0x800   : > { %v8285_v63 = vrot.slane %v8277_v7, %v12663_v25  ;;  %v8402_v41 = vsel %vm8401_vm0, %v8400_v54, %v8395_v59  ;;  %v8420_v42 = vsub.s32 %v8417_v40, %v12658_v35  ;;  %v8414_v0 = vrot.slane %v8305_v15, %v8413_v52 }
 0x801   : > { %8385 = vperm.xlu1 %9252, %v8244_v36   ;;  %v8292_v49 = vrot.slane %v8278_v5, %v12663_v25  ;;  %v8409_v19 = vsel %vm8408_vm2, %v8407_v29, %v8402_v41  ;;  %v8431_v57 = vadd.s32 4294967248, %v13370_v53  ;;  %v8438_v26 = vadd.s32 4294967240, %v13370_v53 }
 0x802   : > { %v8445_v32 = vadd.s32 4294967232, %v13370_v53  ;;  %v8427_v9 = vsub.s32 %v8424_v28, %v12658_v35  ;;  %v8452_v60 = vadd.s32 4294967224, %v13370_v53  ;;  %v8416_v55 = vsel %vm8415_vm3, %v8414_v0, %v8409_v19 }
 0x803   : > { %v8293_v31 = vcombine.low %v8285_v63, %v8292_v49  ;;  %v13351_v58 = vpop.permute.xlu1 %8313  ;;  %v8421_v47 = vrot.slane %v8308_v1, %v8420_v42  ;;  %v8434_v24 = vsub.s32 %v8431_v57, %v12658_v35  ;;  %v8441_v62 = vsub.s32 %v8438_v26, %v12658_v35 }
 0x804   : > { %v8448_v4 = vsub.s32 %v8445_v32, %v12658_v35  ;;  %v8428_v43 = vrot.slane %v13349_v17, %v8427_v9  ;;  %v13420_v16 = vsub.s32 %v8452_v60, %v12658_v35  ;;  %v8459_v7 = vadd.s32 4294967216, %v13370_v53 }
 0x805   : > { %8388 = vperm.xlu1 %9252, %v8293_v31   ;;  %v8423_v44 = vsel %vm8422_vm4, %v8421_v47, %v8416_v55  ;;  %v8435_v5 = vrot.slane %v13351_v58, %v8434_v24  ;;  %v8466_v15 = vadd.s32 4294967208, %v13370_v53  ;;  %v8504_v58 = vrot.slane %v13355_v13, %v8394_v38 }
 0x806   : > { %v8430_v49 = vsel %vm8429_vm5, %v8428_v43, %v8423_v44  ;;  %v8480_v3 = vadd.s32 4294967192, %v13370_v53 }
 0x807   : > { %v13353_v10 = vpop.permute.xlu1 %8316 }
 0x808   : > { %v8442_v31 = vrot.slane %v13353_v10, %v8441_v62  ;;  %v8437_v10 = vsel %vm8436_vm6, %v8435_v5, %v8430_v49  ;;  %v8483_v28 = vsub.s32 %v8480_v3, %v12658_v35 }
 0x80a   : > { %v8444_v54 = vsel %vm8443_vm7, %v8442_v31, %v8437_v10 }
 0x80b   : > { %v13357_v30 = vpop.permute.xlu1 %8319 }
 0x80c   : > { %v8449_v39 = vrot.slane %v13357_v30, %v8448_v4  ;;  %v8462_v30 = vsub.s32 %v8459_v7, %v12658_v35 }
 0x80e   : > { %v13359_v46 = vpop.permute.xlu0 %8349 }
 0x80f   : > { %v13361_v8 = vpop.permute.xlu1 %8322  ;;  %v8513_v23 = vrot.slane %v13359_v46, %v8406_v48  ;;  %v8473_v46 = vadd.s32 4294967200, %v13370_v53 }
 0x810   : > { %v8456_v17 = vrot.slane %v13361_v8, %v13420_v16  ;;  %v8487_v8 = vadd.s32 4294967184, %v13370_v53 }
 0x813   : > { %v13365_v56 = vpop.permute.xlu1 %8346 }
 0x814   : > { %v8508_v63 = vrot.slane %v13365_v56, %v13380_v45 }
 0x816   : > { %v8509_v20 = vsel %vm8401_vm0, %v8508_v63, %v8504_v58 }
 0x817   : > { %v13372_v18 = vpop.permute.xlu1 %8352  ;;  %v8514_v13 = vsel %vm8408_vm2, %v8513_v23, %v8509_v20 }
 0x818   : > { %v8518_v2 = vrot.slane %v13372_v18, %v8413_v52  ;;  %v8476_v52 = vsub.s32 %v8473_v46, %v12658_v35 }
 0x81a   : > { %v8519_v14 = vsel %vm8415_vm3, %v8518_v2, %v8514_v13 }
 0x822   : > { %v13363_v11 = vpop.permute.xlu0 %8355 }
 0x823   : > { %v8523_v56 = vrot.slane %v13363_v11, %v8420_v42  ;;  %v8469_v11 = vsub.s32 %v8466_v15, %v12658_v35  ;;  %v8451_v42 = vsel %vm8450_vm8, %v8449_v39, %v8444_v54 }
 0x825   : > { %v8524_v59 = vsel %vm8422_vm4, %v8523_v56, %v8519_v14 }
 0x826   : > { %v13377_v22 = vpop.permute.xlu1 %8358 }
 0x827   : > { %v8528_v45 = vrot.slane %v13377_v22, %v8427_v9  ;;  %v8494_v22 = vadd.s32 4294967176, %v13370_v53 }
 0x829   : > { %v8529_v41 = vsel %vm8429_vm5, %v8528_v45, %v8524_v59  ;;  %v8497_v26 = vsub.s32 %v8494_v22, %v12658_v35 }
 0x836   : > { %v13367_v37 = vpop.permute.xlu0 %8361 }
 0x837   : > { %v8533_v18 = vrot.slane %v13367_v37, %v8434_v24 }
 0x839   : > { %v8534_v53 = vsel %vm8436_vm6, %v8533_v18, %v8529_v41 }
 0x83b   : > { %v13387_v33 = vpop.permute.xlu1 %8364 }
 0x83c   : > { %v8538_v48 = vrot.slane %v13387_v33, %v8441_v62  ;;  %v8490_v33 = vsub.s32 %v8487_v8, %v12658_v35 }
 0x83e   : > { %v8539_v0 = vsel %vm8443_vm7, %v8538_v48, %v8534_v53 }
 0x84a   : > { %v13374_v12 = vpop.permute.xlu0 %8367 }
 0x84b   : > { %v8543_v40 = vrot.slane %v13374_v12, %v8448_v4 }
 0x84d   : > { %v8544_v32 = vsel %vm8450_vm8, %v8543_v40, %v8539_v0 }
 0x84e   : > { %v13383_v51 = vpop.permute.xlu0 %8325  ;;  %v13393_v50 = vpop.permute.xlu1 %8370 }
 0x84f   : > { %v8548_v29 = vrot.slane %v13393_v50, %v13420_v16  ;;  %v8463_v12 = vrot.slane %v13383_v51, %v8462_v30 }
 0x851   : > { %v8549_v47 = vsel %vm8457_vm9, %v8548_v29, %v8544_v32 }
 0x852   : > { %v13395_v61 = vpop.permute.xlu0 %8328 }
 0x853   : > { %v8470_v57 = vrot.slane %v13395_v61, %v8469_v11 }
 0x856   : > { %v13407_v27 = vpop.permute.xlu0 %8331 }
 0x857   : > { %v8477_v9 = vrot.slane %v13407_v27, %v8476_v52 }
 0x85a   : > { %v13423_v36 = vpop.permute.xlu0 %8334 }
 0x85b   : > { %v8484_v61 = vrot.slane %v13423_v36, %v8483_v28 }
 0x85e   : > { %v13402_v34 = vpop.permute.xlu1 %8373  ;;  %v8338_v38 = vpop.permute.xlu0 %8337 }
 0x85f   : > { %v8553_v19 = vrot.slane %v13402_v34, %v8462_v30  ;;  %v8458_v34 = vsel %vm8457_vm9, %v8456_v17, %v8451_v42  ;;  %v8491_v62 = vrot.slane %v8338_v38, %v8490_v33 }
 0x860   : > { %v8465_v24 = vsel %vm8464_vm10, %v8463_v12, %v8458_v34 }
 0x861   : > { %v8554_v4 = vsel %vm8464_vm10, %v8553_v19, %v8549_v47  ;;  %v8472_v44 = vsel %vm8471_vm11, %v8470_v57, %v8465_v24 }
 0x862   : > { %v8341_v60 = vpop.permute.xlu0 %8340  ;;  %v8479_v16 = vsel %vm8478_vm12, %v8477_v9, %v8472_v44 }
 0x863   : > { %v13416_v21 = vpop.permute.xlu1 %8376  ;;  %v8486_v5 = vsel %vm8485_vm13, %v8484_v61, %v8479_v16 }
 0x864   : > { %v8558_v50 = vrot.slane %v13416_v21, %v8469_v11  ;;  %v8498_v21 = vrot.slane %v8341_v60, %v8497_v26  ;;  %v8493_v31 = vsel %vm8492_vm14, %v8491_v62, %v8486_v5 }
 0x866   : > { %v8559_v43 = vsel %vm8471_vm11, %v8558_v50, %v8554_v4  ;;  %v8500_v23 = vsel %vm8499_vm15, %v8498_v21, %v8493_v31 }
 0x872   : > { %v13433_v1 = vpop.permute.xlu1 %8379 }
 0x873   : > { %v8563_v55 = vrot.slane %v13433_v1, %v8476_v52 }
 0x875   : > { %v8564_v7 = vsel %vm8478_vm12, %v8563_v55, %v8559_v43 }
 0x877   : > { %v8383_v37 = vpop.permute.xlu1 %8382 }
 0x878   : > { %v8568_v35 = vrot.slane %v8383_v37, %v8483_v28 }
 0x87a   : > { %v8569_v63 = vsel %vm8485_vm13, %v8568_v35, %v8564_v7 }
 0x880   : > { %v8386_v51 = vpop.permute.xlu1 %8385 }
 0x881   : > { %v8573_v27 = vrot.slane %v8386_v51, %v8490_v33 }
 0x883   : > { %v8574_v39 = vsel %vm8492_vm14, %v8573_v27, %v8569_v63 }
 0x884   : > { %v8389_v36 = vpop.permute.xlu1 %8388 }
 0x885   : > { %v8578_v49 = vrot.slane %v8389_v36, %v8497_v26 }
 0x887   : > { %v8579_v15 = vsel %vm8499_vm15, %v8578_v49, %v8574_v39 }
 0x888   : > { %v8580_v1 = vcombine.low %v8500_v23, %v8579_v15 }
 0x88a   : > { %v8587_v17 = vrot.slane %v8580_v1, %v12663_v25 }
 0x88c   : > { %v8594_v58 = vrot.slane %v8587_v17, %v12663_v25 }
 0x88e   : > { %8600 = vst.msk [vmem:[%s327_s29] sm:$0x3] %vm8598_vm1, %v8594_v58 }
 0x88f   : > { %9440 = shalt.err (!%p9437_p3)
}
 0x890   : > { %s9441_s24 = scalar_lea.hbm %s13494_s18, 32  ;;  %s9445_s15 = scalar_lea.hbm %s13547_s9, 64 }
 0x891   : > { %p9442_p4 = scmp.ne.s32.totalorder %s13494_s18, %s9441_s24  ;;  %p9446_p9 = scmp.lt.u32.totalorder %s13494_s18, %s13547_s9 }
 0x892   : > { %p9447_p10 = scmp.lt.u32.totalorder %s9445_s15, %s9441_s24  ;;  %p9449_p12 = scmp.lt.u32.totalorder %s9441_s24, %s13494_s18 }
 0x893   : > { %p9443_p7 = pnand %p9442_p4, %p9598_p5 }
 0x894   : > { %p9448_p11 = por %p9447_p10, %p9446_p9 }
 0x895   : > { %p9444_p8 = pneg %p9443_p7 }
 0x896   : > { %p9450_p13 = por %p9449_p12, %p9448_p11 }
 0x898   : > { %p9451_p0 = pnand %p9450_p13, %p9444_p8 }
 0x89a   : > { %9454 = shalt.err (!%p9451_p0)
}
 0x89b   : > { %9198 = dma.vmem_to_hbm [thread:$0]  (%p9598_p5), %s13496_s22, 32, %s13494_s18, %s8602_s8  }
 0x89c PF: > { %p9204_p1 = scmp.ge.s32.totalorder %s9489_s14, 2  ;;  %s8628_s17 = sand.u32 1, %s9477_s11  }
 0x89d   : > { %s8629_s23 = scalar_lea.sflag [#allocation6], %s8628_s17 }
 0x89e   : > { %p9201_p2 = pnand %p9204_p1, %p9602_p6 }
 0x8a0   : > { %9472 = dma.done.wait (!%p9201_p2), %s8629_s23, 32  }
 0x8a1   : > { %9474 = vsyncadd (!%p9201_p2), %s8629_s23, 4294967264  ;;  %p21_p3 = scmp.ge.s32.totalorder %s9585_s16, 4   ;;  %s14014_s11 = smov %s9481_s12 }
 0x8a2   : > { %s14015_s12 = smov %s9485_s13  ;;  %s14016_s13 = smov %s9596_s19 }
 0x8a3   : > { %s14017_s14 = smov %s9585_s16  ;;  %23 = sbr.rel (!%p21_p3) target bundleno = 6 (0x6), region = 95 }
 0x8aa   :  { %8634 = vsyncpa [#allocation6], 1 }
 0x8ab   :  { %8636 = vsyncpa [#allocation6 + $0x1], 1 }

</bundles_post_ra>
